<compile_context>
chip_gen: v7x
topology: tpu7x:2x2x1
jax: 0.10.0
libtpu: 0.0.40
codegen_flags: <defaults>
</compile_context>

<pallas_src>
import jax
import jax.numpy as jnp
from jax.experimental import pallas as pl
from jax.experimental.pallas import tpu as pltpu

N_EMBD = 128
N_HEAD = 8
HEAD_SIZE = N_EMBD // N_HEAD
FF_HIDDEN = 4 * N_EMBD

_F32 = jnp.float32
_BF16 = jnp.bfloat16
_N_BLOCK_REFS = 13


# ---------------------------------------------------------------------------
# In-kernel building blocks (traced into the single fused kernel)
# ---------------------------------------------------------------------------
def _layernorm(x, gamma, beta):
    mu = jnp.mean(x, axis=-1, keepdims=True)
    var = jnp.mean((x - mu) ** 2, axis=-1, keepdims=True)
    return (x - mu) * jax.lax.rsqrt(var + 1e-5) * gamma + beta


def _attention_block(x, refs):
    """Pre-LN causal transformer block on a (T, C) f32 activation slab.

    All heads are handled by head-batched dot_generals (leading batch dim H);
    head-split weights are prepared outside the kernel so no in-kernel
    reshape/transpose of activations is needed.
    """
    (ln1_g, ln1_b, wqh, wkh, wvh, wprojh, bproj,
     ln2_g, ln2_b, wf1, bf1, wf2, bf2) = refs
    T, C = x.shape

    # ---- LayerNorm 1 + multi-head causal self-attention ----
    xn = _layernorm(x, ln1_g[...], ln1_b[...])
    xb = jnp.broadcast_to(xn.astype(_BF16)[None], (N_HEAD, T, C))

    q = jnp.einsum("htc,hcd->htd", xb, wqh[...], preferred_element_type=_F32)
    k = jnp.einsum("htc,hcd->htd", xb, wkh[...], preferred_element_type=_F32)
    v = jnp.einsum("htc,hcd->htd", xb, wvh[...], preferred_element_type=_F32)

    s = jnp.einsum("hqd,hkd->hqk", q.astype(_BF16), k.astype(_BF16),
                   preferred_element_type=_F32) * (HEAD_SIZE ** -0.5)
    row = jax.lax.broadcasted_iota(jnp.int32, (N_HEAD, T, T), 1)
    col = jax.lax.broadcasted_iota(jnp.int32, (N_HEAD, T, T), 2)
    s = jnp.where(col <= row, s, -1e30)                    # causal mask
    s = s - jnp.max(s, axis=-1, keepdims=True)
    p = jnp.exp(s)
    p = p * pl.reciprocal(jnp.sum(p, axis=-1, keepdims=True), approx=True)

    o = jnp.einsum("hqk,hkd->hqd", p.astype(_BF16), v.astype(_BF16),
                   preferred_element_type=_F32)            # (H, T, D)
    proj = jnp.einsum("htd,hdc->htc", o.astype(_BF16), wprojh[...],
                      preferred_element_type=_F32)         # (H, T, C)
    x = x + jnp.sum(proj, axis=0) + bproj[...]             # residual 1

    # ---- LayerNorm 2 + FFN ----
    xn2 = _layernorm(x, ln2_g[...], ln2_b[...])
    h1 = jnp.dot(xn2.astype(_BF16), wf1[...], preferred_element_type=_F32) + bf1[...]
    h1 = jnp.maximum(h1, 0.0)
    ff = jnp.dot(h1.astype(_BF16), wf2[...], preferred_element_type=_F32) + bf2[...]
    return x + ff                                          # residual 2


def fused_qfunc_kernel(*refs):
    """Entire MLPQFunction forward for one batch element (grid over B)."""
    obs_ref, act_ref, w1o, w1a, b1 = refs[:5]
    rest = refs[5:]
    blk1, rest = rest[:_N_BLOCK_REFS], rest[_N_BLOCK_REFS:]
    (w2, b2), rest = rest[:2], rest[2:]
    blk2, rest = rest[:_N_BLOCK_REFS], rest[_N_BLOCK_REFS:]
    (w3, b3), rest = rest[:2], rest[2:]
    blk3, rest = rest[:_N_BLOCK_REFS], rest[_N_BLOCK_REFS:]
    w4, b4, o_ref = rest

    obs = obs_ref[0]                                       # (T, obs_dim)
    act = act_ref[0]                                       # (T, act_dim)

    # Linear(din,128) + ReLU ; cat([obs, act], -1) @ W1 == obs @ W1a + act @ W1b
    h = (jnp.dot(obs, w1o[...], preferred_element_type=_F32)
         + jnp.dot(act, w1a[...], preferred_element_type=_F32) + b1[...])
    x = jnp.maximum(h, 0.0)
    x = _attention_block(x, blk1)

    # Linear(128,128) + ReLU + block
    h = jnp.dot(x.astype(_BF16), w2[...], preferred_element_type=_F32) + b2[...]
    x = jnp.maximum(h, 0.0)
    x = _attention_block(x, blk2)

    # Linear(128,128) + block (tail of mlp(): no activation here)
    x = jnp.dot(x.astype(_BF16), w3[...], preferred_element_type=_F32) + b3[...]
    x = _attention_block(x, blk3)

    # Linear(128,1) + Identity
    q = jnp.dot(x.astype(_BF16), w4[...], preferred_element_type=_F32) + b4[...]
    o_ref[0] = q.astype(o_ref.dtype)                       # (T, 1)


# ---------------------------------------------------------------------------
# Wrapper: weight prep (head split + bf16 cast) and the single pallas_call
# ---------------------------------------------------------------------------
def _head_in(w):
    # (C, C) -> (H, C, D): head h reads output columns [h*D, (h+1)*D)
    return jnp.transpose(w.reshape(N_EMBD, N_HEAD, HEAD_SIZE), (1, 0, 2)).astype(_BF16)


def _head_out(w):
    # (C, C) -> (H, D, C): head h's rows [h*D, (h+1)*D) of the output projection
    return w.reshape(N_HEAD, HEAD_SIZE, N_EMBD).astype(_BF16)


def _block_inputs(p):
    return [
        p["ln1_g"], p["ln1_b"],
        _head_in(p["wq"]), _head_in(p["wk"]), _head_in(p["wv"]),
        _head_out(p["wproj"]), p["bproj"],
        p["ln2_g"], p["ln2_b"],
        p["wf1"].astype(_BF16), p["bf1"], p["wf2"].astype(_BF16), p["bf2"],
    ]


def _const_spec(arr):
    nd = arr.ndim
    return pl.BlockSpec(arr.shape, lambda b: (0,) * nd)


@jax.jit
def mlpq_forward(obs, act, params):
    B, T, obs_dim = obs.shape
    act_dim = act.shape[-1]

    w1 = params["w1"]
    weights = (
        [w1[:obs_dim], w1[obs_dim:], params["b1"]]
        + _block_inputs(params["blk1"])
        + [params["w2"].astype(_BF16), params["b2"]]
        + _block_inputs(params["blk2"])
        + [params["w3"].astype(_BF16), params["b3"]]
        + _block_inputs(params["blk3"])
        + [params["w4"].astype(_BF16), params["b4"]]
    )

    in_specs = (
        [pl.BlockSpec((1, T, obs_dim), lambda b: (b, 0, 0)),
         pl.BlockSpec((1, T, act_dim), lambda b: (b, 0, 0))]
        + [_const_spec(w) for w in weights]
    )

    q = pl.pallas_call(
        fused_qfunc_kernel,
        out_shape=jax.ShapeDtypeStruct((B, T, 1), jnp.float32),
        grid=(B,),
        in_specs=in_specs,
        out_specs=pl.BlockSpec((1, T, 1), lambda b: (b, 0, 0)),
        compiler_params=pltpu.CompilerParams(
            dimension_semantics=("parallel",)),
    )(obs, act, *weights)
    return q.reshape(B, T)                                 # == squeeze(-1)


# ---------------------------------------------------------------------------
# Parameter initialization (deterministic, synthetic)
# ---------------------------------------------------------------------------
def init_linear(key, din, dout, scale=0.02):
    w = jax.random.normal(key, (din, dout), jnp.float32) * scale
    b = jnp.zeros((1, dout), jnp.float32)
    return w, b


def init_block(key):
    ks = jax.random.split(key, 6)
    C = N_EMBD
    s = 0.02
    return dict(
        ln1_g=jnp.ones((1, C), jnp.float32), ln1_b=jnp.zeros((1, C), jnp.float32),
        wk=jax.random.normal(ks[0], (C, C), jnp.float32) * s,
        wq=jax.random.normal(ks[1], (C, C), jnp.float32) * s,
        wv=jax.random.normal(ks[2], (C, C), jnp.float32) * s,
        wproj=jax.random.normal(ks[3], (C, C), jnp.float32) * s,
        bproj=jnp.zeros((1, C), jnp.float32),
        ln2_g=jnp.ones((1, C), jnp.float32), ln2_b=jnp.zeros((1, C), jnp.float32),
        wf1=jax.random.normal(ks[4], (C, FF_HIDDEN), jnp.float32) * s,
        bf1=jnp.zeros((1, FF_HIDDEN), jnp.float32),
        wf2=jax.random.normal(ks[5], (FF_HIDDEN, C), jnp.float32) * s,
        bf2=jnp.zeros((1, C), jnp.float32),
    )


def init_mlpq_params(key, obs_dim, act_dim):
    din = obs_dim + act_dim
    ks = jax.random.split(key, 7)
    w1, b1 = init_linear(ks[0], din, N_EMBD)
    w2, b2 = init_linear(ks[1], N_EMBD, N_EMBD)
    w3, b3 = init_linear(ks[2], N_EMBD, N_EMBD)
    w4, b4 = init_linear(ks[3], N_EMBD, 1)
    return dict(
        w1=w1, b1=b1, blk1=init_block(ks[4]),
        w2=w2, b2=b2, blk2=init_block(ks[5]),
        w3=w3, b3=b3, blk3=init_block(ks[6]),
        w4=w4, b4=b4,
    )


# ---------------------------------------------------------------------------
# Pure-JAX reference (f32 everywhere)
# ---------------------------------------------------------------------------
def _ref_layernorm(x, g, b):
    mu = x.mean(-1, keepdims=True)
    var = ((x - mu) ** 2).mean(-1, keepdims=True)
    return (x - mu) * jax.lax.rsqrt(var + 1e-5) * g + b


def _ref_block(x, p):
    B, T, C = x.shape
    xn = _ref_layernorm(x, p["ln1_g"][0], p["ln1_b"][0])
    q = xn @ p["wq"]
    k = xn @ p["wk"]
    v = xn @ p["wv"]
    qh = q.reshape(B, T, N_HEAD, HEAD_SIZE).transpose(0, 2, 1, 3)
    kh = k.reshape(B, T, N_HEAD, HEAD_SIZE).transpose(0, 2, 1, 3)
    vh = v.reshape(B, T, N_HEAD, HEAD_SIZE).transpose(0, 2, 1, 3)
    s = jnp.einsum("bhqd,bhkd->bhqk", qh, kh) * (HEAD_SIZE ** -0.5)
    mask = jnp.tril(jnp.ones((T, T), bool))
    s = jnp.where(mask, s, -1e30)
    a = jax.nn.softmax(s, axis=-1)
    o = jnp.einsum("bhqk,bhkd->bhqd", a, vh).transpose(0, 2, 1, 3).reshape(B, T, C)
    x = x + o @ p["wproj"] + p["bproj"][0]
    xn2 = _ref_layernorm(x, p["ln2_g"][0], p["ln2_b"][0])
    h = jnp.maximum(xn2 @ p["wf1"] + p["bf1"][0], 0.0)
    return x + h @ p["wf2"] + p["bf2"][0]


def mlpq_forward_ref(obs, act, params):
    x = jnp.concatenate([obs, act], axis=-1)
    x = _ref_block(jnp.maximum(x @ params["w1"] + params["b1"][0], 0.0), params["blk1"])
    x = _ref_block(jnp.maximum(x @ params["w2"] + params["b2"][0], 0.0), params["blk2"])
    x = _ref_block(x @ params["w3"] + params["b3"][0], params["blk3"])
    q = x @ params["w4"] + params["b4"][0]
    return jnp.squeeze(q, -1)


# ---------------------------------------------------------------------------
if __name__ == "__main__":
    B, T = 2, 8
    OBS_DIM, ACT_DIM = 10, 6

    key = jax.random.PRNGKey(0)
    k_obs, k_act, k_par = jax.random.split(key, 3)
    obs = jax.random.normal(k_obs, (B, T, OBS_DIM), jnp.float32)
    act = jax.random.normal(k_act, (B, T, ACT_DIM), jnp.float32)
    params = init_mlpq_params(k_par, OBS_DIM, ACT_DIM)

    q_pallas = jax.block_until_ready(mlpq_forward(obs, act, params))
    q_ref = jax.block_until_ready(mlpq_forward_ref(obs, act, params))

    assert q_pallas.shape == (B, T), q_pallas.shape
    assert jnp.allclose(q_pallas, q_ref, atol=5e-2, rtol=5e-2), (
        float(jnp.max(jnp.abs(q_pallas - q_ref))))

    print("KERNEL_OK")
</pallas_src>

<mosaic_0001>
module attributes {stable_mosaic.version = 11 : i64} {
  func.func @fused_qfunc_kernel(%arg0: i32, %arg1: memref<1x8x10xf32, #tpu.memory_space<vmem>>, %arg2: memref<1x8x6xf32, #tpu.memory_space<vmem>>, %arg3: memref<10x128xf32, #tpu.memory_space<vmem>>, %arg4: memref<6x128xf32, #tpu.memory_space<vmem>>, %arg5: memref<1x128xf32, #tpu.memory_space<vmem>>, %arg6: memref<1x128xf32, #tpu.memory_space<vmem>>, %arg7: memref<1x128xf32, #tpu.memory_space<vmem>>, %arg8: memref<8x128x16xbf16, #tpu.memory_space<vmem>>, %arg9: memref<8x128x16xbf16, #tpu.memory_space<vmem>>, %arg10: memref<8x128x16xbf16, #tpu.memory_space<vmem>>, %arg11: memref<8x16x128xbf16, #tpu.memory_space<vmem>>, %arg12: memref<1x128xf32, #tpu.memory_space<vmem>>, %arg13: memref<1x128xf32, #tpu.memory_space<vmem>>, %arg14: memref<1x128xf32, #tpu.memory_space<vmem>>, %arg15: memref<128x512xbf16, #tpu.memory_space<vmem>>, %arg16: memref<1x512xf32, #tpu.memory_space<vmem>>, %arg17: memref<512x128xbf16, #tpu.memory_space<vmem>>, %arg18: memref<1x128xf32, #tpu.memory_space<vmem>>, %arg19: memref<128x128xbf16, #tpu.memory_space<vmem>>, %arg20: memref<1x128xf32, #tpu.memory_space<vmem>>, %arg21: memref<1x128xf32, #tpu.memory_space<vmem>>, %arg22: memref<1x128xf32, #tpu.memory_space<vmem>>, %arg23: memref<8x128x16xbf16, #tpu.memory_space<vmem>>, %arg24: memref<8x128x16xbf16, #tpu.memory_space<vmem>>, %arg25: memref<8x128x16xbf16, #tpu.memory_space<vmem>>, %arg26: memref<8x16x128xbf16, #tpu.memory_space<vmem>>, %arg27: memref<1x128xf32, #tpu.memory_space<vmem>>, %arg28: memref<1x128xf32, #tpu.memory_space<vmem>>, %arg29: memref<1x128xf32, #tpu.memory_space<vmem>>, %arg30: memref<128x512xbf16, #tpu.memory_space<vmem>>, %arg31: memref<1x512xf32, #tpu.memory_space<vmem>>, %arg32: memref<512x128xbf16, #tpu.memory_space<vmem>>, %arg33: memref<1x128xf32, #tpu.memory_space<vmem>>, %arg34: memref<128x128xbf16, #tpu.memory_space<vmem>>, %arg35: memref<1x128xf32, #tpu.memory_space<vmem>>, %arg36: memref<1x128xf32, #tpu.memory_space<vmem>>, %arg37: memref<1x128xf32, #tpu.memory_space<vmem>>, %arg38: memref<8x128x16xbf16, #tpu.memory_space<vmem>>, %arg39: memref<8x128x16xbf16, #tpu.memory_space<vmem>>, %arg40: memref<8x128x16xbf16, #tpu.memory_space<vmem>>, %arg41: memref<8x16x128xbf16, #tpu.memory_space<vmem>>, %arg42: memref<1x128xf32, #tpu.memory_space<vmem>>, %arg43: memref<1x128xf32, #tpu.memory_space<vmem>>, %arg44: memref<1x128xf32, #tpu.memory_space<vmem>>, %arg45: memref<128x512xbf16, #tpu.memory_space<vmem>>, %arg46: memref<1x512xf32, #tpu.memory_space<vmem>>, %arg47: memref<512x128xbf16, #tpu.memory_space<vmem>>, %arg48: memref<1x128xf32, #tpu.memory_space<vmem>>, %arg49: memref<128x1xbf16, #tpu.memory_space<vmem>>, %arg50: memref<1x1xf32, #tpu.memory_space<vmem>>, %arg51: memref<1x8x1xf32, #tpu.memory_space<vmem>>) attributes {dimension_semantics = [#tpu.dimension_semantics<parallel>], iteration_bounds = array<i64: 2>, scalar_prefetch = 0 : i64, scratch_operands = 0 : i64, tpu.core_type = #tpu.core_type<tc>, window_params = [{transform_indices = @transform_0, window_bounds = array<i64: 1, 8, 10>}, {transform_indices = @transform_1, window_bounds = array<i64: 1, 8, 6>}, {pipeline_mode = #tpu.pipeline_mode<synchronous>, transform_indices = @transform_2, window_bounds = array<i64: 10, 128>}, {pipeline_mode = #tpu.pipeline_mode<synchronous>, transform_indices = @transform_3, window_bounds = array<i64: 6, 128>}, {pipeline_mode = #tpu.pipeline_mode<synchronous>, transform_indices = @transform_4, window_bounds = array<i64: 1, 128>}, {pipeline_mode = #tpu.pipeline_mode<synchronous>, transform_indices = @transform_5, window_bounds = array<i64: 1, 128>}, {pipeline_mode = #tpu.pipeline_mode<synchronous>, transform_indices = @transform_6, window_bounds = array<i64: 1, 128>}, {pipeline_mode = #tpu.pipeline_mode<synchronous>, transform_indices = @transform_7, window_bounds = array<i64: 8, 128, 16>}, {pipeline_mode = #tpu.pipeline_mode<synchronous>, transform_indices = @transform_8, window_bounds = array<i64: 8, 128, 16>}, {pipeline_mode = #tpu.pipeline_mode<synchronous>, transform_indices = @transform_9, window_bounds = array<i64: 8, 128, 16>}, {pipeline_mode = #tpu.pipeline_mode<synchronous>, transform_indices = @transform_10, window_bounds = array<i64: 8, 16, 128>}, {pipeline_mode = #tpu.pipeline_mode<synchronous>, transform_indices = @transform_11, window_bounds = array<i64: 1, 128>}, {pipeline_mode = #tpu.pipeline_mode<synchronous>, transform_indices = @transform_12, window_bounds = array<i64: 1, 128>}, {pipeline_mode = #tpu.pipeline_mode<synchronous>, transform_indices = @transform_13, window_bounds = array<i64: 1, 128>}, {pipeline_mode = #tpu.pipeline_mode<synchronous>, transform_indices = @transform_14, window_bounds = array<i64: 128, 512>}, {pipeline_mode = #tpu.pipeline_mode<synchronous>, transform_indices = @transform_15, window_bounds = array<i64: 1, 512>}, {pipeline_mode = #tpu.pipeline_mode<synchronous>, transform_indices = @transform_16, window_bounds = array<i64: 512, 128>}, {pipeline_mode = #tpu.pipeline_mode<synchronous>, transform_indices = @transform_17, window_bounds = array<i64: 1, 128>}, {pipeline_mode = #tpu.pipeline_mode<synchronous>, transform_indices = @transform_18, window_bounds = array<i64: 128, 128>}, {pipeline_mode = #tpu.pipeline_mode<synchronous>, transform_indices = @transform_19, window_bounds = array<i64: 1, 128>}, {pipeline_mode = #tpu.pipeline_mode<synchronous>, transform_indices = @transform_20, window_bounds = array<i64: 1, 128>}, {pipeline_mode = #tpu.pipeline_mode<synchronous>, transform_indices = @transform_21, window_bounds = array<i64: 1, 128>}, {pipeline_mode = #tpu.pipeline_mode<synchronous>, transform_indices = @transform_22, window_bounds = array<i64: 8, 128, 16>}, {pipeline_mode = #tpu.pipeline_mode<synchronous>, transform_indices = @transform_23, window_bounds = array<i64: 8, 128, 16>}, {pipeline_mode = #tpu.pipeline_mode<synchronous>, transform_indices = @transform_24, window_bounds = array<i64: 8, 128, 16>}, {pipeline_mode = #tpu.pipeline_mode<synchronous>, transform_indices = @transform_25, window_bounds = array<i64: 8, 16, 128>}, {pipeline_mode = #tpu.pipeline_mode<synchronous>, transform_indices = @transform_26, window_bounds = array<i64: 1, 128>}, {pipeline_mode = #tpu.pipeline_mode<synchronous>, transform_indices = @transform_27, window_bounds = array<i64: 1, 128>}, {pipeline_mode = #tpu.pipeline_mode<synchronous>, transform_indices = @transform_28, window_bounds = array<i64: 1, 128>}, {pipeline_mode = #tpu.pipeline_mode<synchronous>, transform_indices = @transform_29, window_bounds = array<i64: 128, 512>}, {pipeline_mode = #tpu.pipeline_mode<synchronous>, transform_indices = @transform_30, window_bounds = array<i64: 1, 512>}, {pipeline_mode = #tpu.pipeline_mode<synchronous>, transform_indices = @transform_31, window_bounds = array<i64: 512, 128>}, {pipeline_mode = #tpu.pipeline_mode<synchronous>, transform_indices = @transform_32, window_bounds = array<i64: 1, 128>}, {pipeline_mode = #tpu.pipeline_mode<synchronous>, transform_indices = @transform_33, window_bounds = array<i64: 128, 128>}, {pipeline_mode = #tpu.pipeline_mode<synchronous>, transform_indices = @transform_34, window_bounds = array<i64: 1, 128>}, {pipeline_mode = #tpu.pipeline_mode<synchronous>, transform_indices = @transform_35, window_bounds = array<i64: 1, 128>}, {pipeline_mode = #tpu.pipeline_mode<synchronous>, transform_indices = @transform_36, window_bounds = array<i64: 1, 128>}, {pipeline_mode = #tpu.pipeline_mode<synchronous>, transform_indices = @transform_37, window_bounds = array<i64: 8, 128, 16>}, {pipeline_mode = #tpu.pipeline_mode<synchronous>, transform_indices = @transform_38, window_bounds = array<i64: 8, 128, 16>}, {pipeline_mode = #tpu.pipeline_mode<synchronous>, transform_indices = @transform_39, window_bounds = array<i64: 8, 128, 16>}, {pipeline_mode = #tpu.pipeline_mode<synchronous>, transform_indices = @transform_40, window_bounds = array<i64: 8, 16, 128>}, {pipeline_mode = #tpu.pipeline_mode<synchronous>, transform_indices = @transform_41, window_bounds = array<i64: 1, 128>}, {pipeline_mode = #tpu.pipeline_mode<synchronous>, transform_indices = @transform_42, window_bounds = array<i64: 1, 128>}, {pipeline_mode = #tpu.pipeline_mode<synchronous>, transform_indices = @transform_43, window_bounds = array<i64: 1, 128>}, {pipeline_mode = #tpu.pipeline_mode<synchronous>, transform_indices = @transform_44, window_bounds = array<i64: 128, 512>}, {pipeline_mode = #tpu.pipeline_mode<synchronous>, transform_indices = @transform_45, window_bounds = array<i64: 1, 512>}, {pipeline_mode = #tpu.pipeline_mode<synchronous>, transform_indices = @transform_46, window_bounds = array<i64: 512, 128>}, {pipeline_mode = #tpu.pipeline_mode<synchronous>, transform_indices = @transform_47, window_bounds = array<i64: 1, 128>}, {pipeline_mode = #tpu.pipeline_mode<synchronous>, transform_indices = @transform_48, window_bounds = array<i64: 128, 1>}, {pipeline_mode = #tpu.pipeline_mode<synchronous>, transform_indices = @transform_49, window_bounds = array<i64: 1, 1>}, {transform_indices = @transform_50, window_bounds = array<i64: 1, 8, 1>}]} {
    %c0 = arith.constant 0 : index
    %c0_0 = arith.constant 0 : index
    %c0_1 = arith.constant 0 : index
    %0 = vector.load %arg1[%c0, %c0_0, %c0_1] : memref<1x8x10xf32, #tpu.memory_space<vmem>>, vector<1x8x10xf32>
    %1 = vector.shape_cast %0 : vector<1x8x10xf32> to vector<8x10xf32>
    %c0_2 = arith.constant 0 : index
    %c0_3 = arith.constant 0 : index
    %c0_4 = arith.constant 0 : index
    %2 = vector.load %arg2[%c0_2, %c0_3, %c0_4] : memref<1x8x6xf32, #tpu.memory_space<vmem>>, vector<1x8x6xf32>
    %3 = vector.shape_cast %2 : vector<1x8x6xf32> to vector<8x6xf32>
    %c0_5 = arith.constant 0 : index
    %c0_6 = arith.constant 0 : index
    %4 = vector.load %arg3[%c0_5, %c0_6] : memref<10x128xf32, #tpu.memory_space<vmem>>, vector<10x128xf32>
    %cst = arith.constant dense<0.000000e+00> : vector<8x128xf32>
    %5 = tpu.matmul %1, %4, %cst {dimension_numbers = #tpu.dot_dimension_numbers<[1], [0], [0], [1], [0, 0, 1, 1], [], []>} : vector<8x10xf32>, vector<10x128xf32>, vector<8x128xf32> -> vector<8x128xf32>
    %c0_7 = arith.constant 0 : index
    %c0_8 = arith.constant 0 : index
    %6 = vector.load %arg4[%c0_7, %c0_8] : memref<6x128xf32, #tpu.memory_space<vmem>>, vector<6x128xf32>
    %cst_9 = arith.constant dense<0.000000e+00> : vector<8x128xf32>
    %7 = tpu.matmul %3, %6, %cst_9 {dimension_numbers = #tpu.dot_dimension_numbers<[1], [0], [0], [1], [0, 0, 1, 1], [], []>} : vector<8x6xf32>, vector<6x128xf32>, vector<8x128xf32> -> vector<8x128xf32>
    %8 = arith.addf %5, %7 : vector<8x128xf32>
    %c0_10 = arith.constant 0 : index
    %c0_11 = arith.constant 0 : index
    %9 = vector.load %arg5[%c0_10, %c0_11] : memref<1x128xf32, #tpu.memory_space<vmem>>, vector<1x128xf32>
    %10 = vector.broadcast %9 : vector<1x128xf32> to vector<8x128xf32>
    %11 = arith.addf %8, %10 : vector<8x128xf32>
    %cst_12 = arith.constant 0.000000e+00 : f32
    %12 = vector.broadcast %cst_12 : f32 to vector<8x128xf32>
    %13 = arith.maximumf %11, %12 : vector<8x128xf32>
    %c0_13 = arith.constant 0 : index
    %c0_14 = arith.constant 0 : index
    %14 = vector.load %arg6[%c0_13, %c0_14] : memref<1x128xf32, #tpu.memory_space<vmem>>, vector<1x128xf32>
    %c0_15 = arith.constant 0 : index
    %c0_16 = arith.constant 0 : index
    %15 = vector.load %arg7[%c0_15, %c0_16] : memref<1x128xf32, #tpu.memory_space<vmem>>, vector<1x128xf32>
    %cst_17 = arith.constant dense<0.000000e+00> : vector<8xf32>
    %16 = vector.multi_reduction <add>, %13, %cst_17 [1] : vector<8x128xf32> to vector<8xf32>
    %17 = vector.shape_cast %16 : vector<8xf32> to vector<8x1xf32>
    %cst_18 = arith.constant 1.280000e+02 : f32
    %18 = vector.broadcast %cst_18 : f32 to vector<8x1xf32>
    %19 = arith.divf %17, %18 : vector<8x1xf32>
    %20 = vector.broadcast %19 : vector<8x1xf32> to vector<8x128xf32>
    %21 = arith.subf %13, %20 : vector<8x128xf32>
    %22 = arith.mulf %21, %21 : vector<8x128xf32>
    %cst_19 = arith.constant dense<0.000000e+00> : vector<8xf32>
    %23 = vector.multi_reduction <add>, %22, %cst_19 [1] : vector<8x128xf32> to vector<8xf32>
    %24 = vector.shape_cast %23 : vector<8xf32> to vector<8x1xf32>
    %cst_20 = arith.constant 1.280000e+02 : f32
    %25 = vector.broadcast %cst_20 : f32 to vector<8x1xf32>
    %26 = arith.divf %24, %25 : vector<8x1xf32>
    %27 = vector.broadcast %19 : vector<8x1xf32> to vector<8x128xf32>
    %28 = arith.subf %13, %27 : vector<8x128xf32>
    %cst_21 = arith.constant 9.99999974E-6 : f32
    %29 = vector.broadcast %cst_21 : f32 to vector<8x1xf32>
    %30 = arith.addf %26, %29 : vector<8x1xf32>
    %31 = math.rsqrt %30 : vector<8x1xf32>
    %32 = vector.broadcast %31 : vector<8x1xf32> to vector<8x128xf32>
    %33 = arith.mulf %28, %32 : vector<8x128xf32>
    %34 = vector.broadcast %14 : vector<1x128xf32> to vector<8x128xf32>
    %35 = arith.mulf %33, %34 : vector<8x128xf32>
    %36 = vector.broadcast %15 : vector<1x128xf32> to vector<8x128xf32>
    %37 = arith.addf %35, %36 : vector<8x128xf32>
    %38 = arith.truncf %37 : vector<8x128xf32> to vector<8x128xbf16>
    %39 = vector.shape_cast %38 : vector<8x128xbf16> to vector<1x8x128xbf16>
    %40 = vector.shape_cast %39 : vector<1x8x128xbf16> to vector<1x8x128xbf16>
    %41 = vector.broadcast %40 : vector<1x8x128xbf16> to vector<8x8x128xbf16>
    %c0_22 = arith.constant 0 : index
    %c0_23 = arith.constant 0 : index
    %c0_24 = arith.constant 0 : index
    %42 = vector.load %arg8[%c0_22, %c0_23, %c0_24] : memref<8x128x16xbf16, #tpu.memory_space<vmem>>, vector<8x128x16xbf16>
    "tpu.trace_start"() <{level = 10 : i32, message = "htc,hcd->htd"}> : () -> ()
    %cst_25 = arith.constant dense<0.000000e+00> : vector<8x8x16xf32>
    %43 = tpu.matmul %41, %42, %cst_25 {dimension_numbers = #tpu.dot_dimension_numbers<[2], [1], [1], [2], [0, 0, 0, 1, 1, 2], [0], [0]>} : vector<8x8x128xbf16>, vector<8x128x16xbf16>, vector<8x8x16xf32> -> vector<8x8x16xf32>
    "tpu.trace_stop"() : () -> ()
    %c0_26 = arith.constant 0 : index
    %c0_27 = arith.constant 0 : index
    %c0_28 = arith.constant 0 : index
    %44 = vector.load %arg9[%c0_26, %c0_27, %c0_28] : memref<8x128x16xbf16, #tpu.memory_space<vmem>>, vector<8x128x16xbf16>
    "tpu.trace_start"() <{level = 10 : i32, message = "htc,hcd->htd"}> : () -> ()
    %cst_29 = arith.constant dense<0.000000e+00> : vector<8x8x16xf32>
    %45 = tpu.matmul %41, %44, %cst_29 {dimension_numbers = #tpu.dot_dimension_numbers<[2], [1], [1], [2], [0, 0, 0, 1, 1, 2], [0], [0]>} : vector<8x8x128xbf16>, vector<8x128x16xbf16>, vector<8x8x16xf32> -> vector<8x8x16xf32>
    "tpu.trace_stop"() : () -> ()
    %c0_30 = arith.constant 0 : index
    %c0_31 = arith.constant 0 : index
    %c0_32 = arith.constant 0 : index
    %46 = vector.load %arg10[%c0_30, %c0_31, %c0_32] : memref<8x128x16xbf16, #tpu.memory_space<vmem>>, vector<8x128x16xbf16>
    "tpu.trace_start"() <{level = 10 : i32, message = "htc,hcd->htd"}> : () -> ()
    %cst_33 = arith.constant dense<0.000000e+00> : vector<8x8x16xf32>
    %47 = tpu.matmul %41, %46, %cst_33 {dimension_numbers = #tpu.dot_dimension_numbers<[2], [1], [1], [2], [0, 0, 0, 1, 1, 2], [0], [0]>} : vector<8x8x128xbf16>, vector<8x128x16xbf16>, vector<8x8x16xf32> -> vector<8x8x16xf32>
    "tpu.trace_stop"() : () -> ()
    %48 = arith.truncf %43 : vector<8x8x16xf32> to vector<8x8x16xbf16>
    %49 = arith.truncf %45 : vector<8x8x16xf32> to vector<8x8x16xbf16>
    "tpu.trace_start"() <{level = 10 : i32, message = "hqd,hkd->hqk"}> : () -> ()
    %cst_34 = arith.constant dense<0.000000e+00> : vector<8x8x8xf32>
    %50 = tpu.matmul %48, %49, %cst_34 {dimension_numbers = #tpu.dot_dimension_numbers<[2], [2], [1], [1], [0, 0, 0, 1, 1, 1], [0], [0]>} : vector<8x8x16xbf16>, vector<8x8x16xbf16>, vector<8x8x8xf32> -> vector<8x8x8xf32>
    "tpu.trace_stop"() : () -> ()
    %cst_35 = arith.constant 2.500000e-01 : f32
    %51 = vector.broadcast %cst_35 : f32 to vector<8x8x8xf32>
    %52 = arith.mulf %50, %51 : vector<8x8x8xf32>
    %53 = tpu.iota {dimensions = array<i32: 1>} : vector<8x8x8xi32>
    %54 = tpu.iota {dimensions = array<i32: 2>} : vector<8x8x8xi32>
    %55 = arith.cmpi sle, %54, %53 : vector<8x8x8xi32>
    %cst_36 = arith.constant -1.000000e+30 : f32
    %56 = vector.broadcast %cst_36 : f32 to vector<8x8x8xf32>
    %57 = arith.select %55, %52, %56 : vector<8x8x8xi1>, vector<8x8x8xf32>
    %cst_37 = arith.constant dense<0xFF800000> : vector<8x8xf32>
    %58 = vector.multi_reduction <maximumf>, %57, %cst_37 [2] : vector<8x8x8xf32> to vector<8x8xf32>
    %59 = vector.shape_cast %58 : vector<8x8xf32> to vector<8x8x1xf32>
    %60 = vector.broadcast %59 : vector<8x8x1xf32> to vector<8x8x8xf32>
    %61 = arith.subf %57, %60 : vector<8x8x8xf32>
    %62 = math.exp %61 : vector<8x8x8xf32>
    %cst_38 = arith.constant dense<0.000000e+00> : vector<8x8xf32>
    %63 = vector.multi_reduction <add>, %62, %cst_38 [2] : vector<8x8x8xf32> to vector<8x8xf32>
    %64 = vector.shape_cast %63 : vector<8x8xf32> to vector<8x8x1xf32>
    %65 = tpu.reciprocal %64 {approx = true} : vector<8x8x1xf32> -> vector<8x8x1xf32>
    %66 = vector.broadcast %65 : vector<8x8x1xf32> to vector<8x8x8xf32>
    %67 = arith.mulf %62, %66 : vector<8x8x8xf32>
    %68 = arith.truncf %67 : vector<8x8x8xf32> to vector<8x8x8xbf16>
    %69 = arith.truncf %47 : vector<8x8x16xf32> to vector<8x8x16xbf16>
    "tpu.trace_start"() <{level = 10 : i32, message = "hqk,hkd->hqd"}> : () -> ()
    %cst_39 = arith.constant dense<0.000000e+00> : vector<8x8x16xf32>
    %70 = tpu.matmul %68, %69, %cst_39 {dimension_numbers = #tpu.dot_dimension_numbers<[2], [1], [1], [2], [0, 0, 0, 1, 1, 2], [0], [0]>} : vector<8x8x8xbf16>, vector<8x8x16xbf16>, vector<8x8x16xf32> -> vector<8x8x16xf32>
    "tpu.trace_stop"() : () -> ()
    %71 = arith.truncf %70 : vector<8x8x16xf32> to vector<8x8x16xbf16>
    %c0_40 = arith.constant 0 : index
    %c0_41 = arith.constant 0 : index
    %c0_42 = arith.constant 0 : index
    %72 = vector.load %arg11[%c0_40, %c0_41, %c0_42] : memref<8x16x128xbf16, #tpu.memory_space<vmem>>, vector<8x16x128xbf16>
    "tpu.trace_start"() <{level = 10 : i32, message = "htd,hdc->htc"}> : () -> ()
    %cst_43 = arith.constant dense<0.000000e+00> : vector<8x8x128xf32>
    %73 = tpu.matmul %71, %72, %cst_43 {dimension_numbers = #tpu.dot_dimension_numbers<[2], [1], [1], [2], [0, 0, 0, 1, 1, 2], [0], [0]>} : vector<8x8x16xbf16>, vector<8x16x128xbf16>, vector<8x8x128xf32> -> vector<8x8x128xf32>
    "tpu.trace_stop"() : () -> ()
    %cst_44 = arith.constant dense<0.000000e+00> : vector<8x128xf32>
    %74 = vector.multi_reduction <add>, %73, %cst_44 [0] : vector<8x8x128xf32> to vector<8x128xf32>
    %75 = arith.addf %13, %74 : vector<8x128xf32>
    %c0_45 = arith.constant 0 : index
    %c0_46 = arith.constant 0 : index
    %76 = vector.load %arg12[%c0_45, %c0_46] : memref<1x128xf32, #tpu.memory_space<vmem>>, vector<1x128xf32>
    %77 = vector.broadcast %76 : vector<1x128xf32> to vector<8x128xf32>
    %78 = arith.addf %75, %77 : vector<8x128xf32>
    %c0_47 = arith.constant 0 : index
    %c0_48 = arith.constant 0 : index
    %79 = vector.load %arg13[%c0_47, %c0_48] : memref<1x128xf32, #tpu.memory_space<vmem>>, vector<1x128xf32>
    %c0_49 = arith.constant 0 : index
    %c0_50 = arith.constant 0 : index
    %80 = vector.load %arg14[%c0_49, %c0_50] : memref<1x128xf32, #tpu.memory_space<vmem>>, vector<1x128xf32>
    %cst_51 = arith.constant dense<0.000000e+00> : vector<8xf32>
    %81 = vector.multi_reduction <add>, %78, %cst_51 [1] : vector<8x128xf32> to vector<8xf32>
    %82 = vector.shape_cast %81 : vector<8xf32> to vector<8x1xf32>
    %cst_52 = arith.constant 1.280000e+02 : f32
    %83 = vector.broadcast %cst_52 : f32 to vector<8x1xf32>
    %84 = arith.divf %82, %83 : vector<8x1xf32>
    %85 = vector.broadcast %84 : vector<8x1xf32> to vector<8x128xf32>
    %86 = arith.subf %78, %85 : vector<8x128xf32>
    %87 = arith.mulf %86, %86 : vector<8x128xf32>
    %cst_53 = arith.constant dense<0.000000e+00> : vector<8xf32>
    %88 = vector.multi_reduction <add>, %87, %cst_53 [1] : vector<8x128xf32> to vector<8xf32>
    %89 = vector.shape_cast %88 : vector<8xf32> to vector<8x1xf32>
    %cst_54 = arith.constant 1.280000e+02 : f32
    %90 = vector.broadcast %cst_54 : f32 to vector<8x1xf32>
    %91 = arith.divf %89, %90 : vector<8x1xf32>
    %92 = vector.broadcast %84 : vector<8x1xf32> to vector<8x128xf32>
    %93 = arith.subf %78, %92 : vector<8x128xf32>
    %cst_55 = arith.constant 9.99999974E-6 : f32
    %94 = vector.broadcast %cst_55 : f32 to vector<8x1xf32>
    %95 = arith.addf %91, %94 : vector<8x1xf32>
    %96 = math.rsqrt %95 : vector<8x1xf32>
    %97 = vector.broadcast %96 : vector<8x1xf32> to vector<8x128xf32>
    %98 = arith.mulf %93, %97 : vector<8x128xf32>
    %99 = vector.broadcast %79 : vector<1x128xf32> to vector<8x128xf32>
    %100 = arith.mulf %98, %99 : vector<8x128xf32>
    %101 = vector.broadcast %80 : vector<1x128xf32> to vector<8x128xf32>
    %102 = arith.addf %100, %101 : vector<8x128xf32>
    %103 = arith.truncf %102 : vector<8x128xf32> to vector<8x128xbf16>
    %c0_56 = arith.constant 0 : index
    %c0_57 = arith.constant 0 : index
    %104 = vector.load %arg15[%c0_56, %c0_57] : memref<128x512xbf16, #tpu.memory_space<vmem>>, vector<128x512xbf16>
    %cst_58 = arith.constant dense<0.000000e+00> : vector<8x512xf32>
    %105 = tpu.matmul %103, %104, %cst_58 {dimension_numbers = #tpu.dot_dimension_numbers<[1], [0], [0], [1], [0, 0, 1, 1], [], []>} : vector<8x128xbf16>, vector<128x512xbf16>, vector<8x512xf32> -> vector<8x512xf32>
    %c0_59 = arith.constant 0 : index
    %c0_60 = arith.constant 0 : index
    %106 = vector.load %arg16[%c0_59, %c0_60] : memref<1x512xf32, #tpu.memory_space<vmem>>, vector<1x512xf32>
    %107 = vector.broadcast %106 : vector<1x512xf32> to vector<8x512xf32>
    %108 = arith.addf %105, %107 : vector<8x512xf32>
    %cst_61 = arith.constant 0.000000e+00 : f32
    %109 = vector.broadcast %cst_61 : f32 to vector<8x512xf32>
    %110 = arith.maximumf %108, %109 : vector<8x512xf32>
    %111 = arith.truncf %110 : vector<8x512xf32> to vector<8x512xbf16>
    %c0_62 = arith.constant 0 : index
    %c0_63 = arith.constant 0 : index
    %112 = vector.load %arg17[%c0_62, %c0_63] : memref<512x128xbf16, #tpu.memory_space<vmem>>, vector<512x128xbf16>
    %cst_64 = arith.constant dense<0.000000e+00> : vector<8x128xf32>
    %113 = tpu.matmul %111, %112, %cst_64 {dimension_numbers = #tpu.dot_dimension_numbers<[1], [0], [0], [1], [0, 0, 1, 1], [], []>} : vector<8x512xbf16>, vector<512x128xbf16>, vector<8x128xf32> -> vector<8x128xf32>
    %c0_65 = arith.constant 0 : index
    %c0_66 = arith.constant 0 : index
    %114 = vector.load %arg18[%c0_65, %c0_66] : memref<1x128xf32, #tpu.memory_space<vmem>>, vector<1x128xf32>
    %115 = vector.broadcast %114 : vector<1x128xf32> to vector<8x128xf32>
    %116 = arith.addf %113, %115 : vector<8x128xf32>
    %117 = arith.addf %78, %116 : vector<8x128xf32>
    %118 = arith.truncf %117 : vector<8x128xf32> to vector<8x128xbf16>
    %c0_67 = arith.constant 0 : index
    %c0_68 = arith.constant 0 : index
    %119 = vector.load %arg19[%c0_67, %c0_68] : memref<128x128xbf16, #tpu.memory_space<vmem>>, vector<128x128xbf16>
    %cst_69 = arith.constant dense<0.000000e+00> : vector<8x128xf32>
    %120 = tpu.matmul %118, %119, %cst_69 {dimension_numbers = #tpu.dot_dimension_numbers<[1], [0], [0], [1], [0, 0, 1, 1], [], []>} : vector<8x128xbf16>, vector<128x128xbf16>, vector<8x128xf32> -> vector<8x128xf32>
    %c0_70 = arith.constant 0 : index
    %c0_71 = arith.constant 0 : index
    %121 = vector.load %arg20[%c0_70, %c0_71] : memref<1x128xf32, #tpu.memory_space<vmem>>, vector<1x128xf32>
    %122 = vector.broadcast %121 : vector<1x128xf32> to vector<8x128xf32>
    %123 = arith.addf %120, %122 : vector<8x128xf32>
    %cst_72 = arith.constant 0.000000e+00 : f32
    %124 = vector.broadcast %cst_72 : f32 to vector<8x128xf32>
    %125 = arith.maximumf %123, %124 : vector<8x128xf32>
    %c0_73 = arith.constant 0 : index
    %c0_74 = arith.constant 0 : index
    %126 = vector.load %arg21[%c0_73, %c0_74] : memref<1x128xf32, #tpu.memory_space<vmem>>, vector<1x128xf32>
    %c0_75 = arith.constant 0 : index
    %c0_76 = arith.constant 0 : index
    %127 = vector.load %arg22[%c0_75, %c0_76] : memref<1x128xf32, #tpu.memory_space<vmem>>, vector<1x128xf32>
    %cst_77 = arith.constant dense<0.000000e+00> : vector<8xf32>
    %128 = vector.multi_reduction <add>, %125, %cst_77 [1] : vector<8x128xf32> to vector<8xf32>
    %129 = vector.shape_cast %128 : vector<8xf32> to vector<8x1xf32>
    %cst_78 = arith.constant 1.280000e+02 : f32
    %130 = vector.broadcast %cst_78 : f32 to vector<8x1xf32>
    %131 = arith.divf %129, %130 : vector<8x1xf32>
    %132 = vector.broadcast %131 : vector<8x1xf32> to vector<8x128xf32>
    %133 = arith.subf %125, %132 : vector<8x128xf32>
    %134 = arith.mulf %133, %133 : vector<8x128xf32>
    %cst_79 = arith.constant dense<0.000000e+00> : vector<8xf32>
    %135 = vector.multi_reduction <add>, %134, %cst_79 [1] : vector<8x128xf32> to vector<8xf32>
    %136 = vector.shape_cast %135 : vector<8xf32> to vector<8x1xf32>
    %cst_80 = arith.constant 1.280000e+02 : f32
    %137 = vector.broadcast %cst_80 : f32 to vector<8x1xf32>
    %138 = arith.divf %136, %137 : vector<8x1xf32>
    %139 = vector.broadcast %131 : vector<8x1xf32> to vector<8x128xf32>
    %140 = arith.subf %125, %139 : vector<8x128xf32>
    %cst_81 = arith.constant 9.99999974E-6 : f32
    %141 = vector.broadcast %cst_81 : f32 to vector<8x1xf32>
    %142 = arith.addf %138, %141 : vector<8x1xf32>
    %143 = math.rsqrt %142 : vector<8x1xf32>
    %144 = vector.broadcast %143 : vector<8x1xf32> to vector<8x128xf32>
    %145 = arith.mulf %140, %144 : vector<8x128xf32>
    %146 = vector.broadcast %126 : vector<1x128xf32> to vector<8x128xf32>
    %147 = arith.mulf %145, %146 : vector<8x128xf32>
    %148 = vector.broadcast %127 : vector<1x128xf32> to vector<8x128xf32>
    %149 = arith.addf %147, %148 : vector<8x128xf32>
    %150 = arith.truncf %149 : vector<8x128xf32> to vector<8x128xbf16>
    %151 = vector.shape_cast %150 : vector<8x128xbf16> to vector<1x8x128xbf16>
    %152 = vector.shape_cast %151 : vector<1x8x128xbf16> to vector<1x8x128xbf16>
    %153 = vector.broadcast %152 : vector<1x8x128xbf16> to vector<8x8x128xbf16>
    %c0_82 = arith.constant 0 : index
    %c0_83 = arith.constant 0 : index
    %c0_84 = arith.constant 0 : index
    %154 = vector.load %arg23[%c0_82, %c0_83, %c0_84] : memref<8x128x16xbf16, #tpu.memory_space<vmem>>, vector<8x128x16xbf16>
    "tpu.trace_start"() <{level = 10 : i32, message = "htc,hcd->htd"}> : () -> ()
    %cst_85 = arith.constant dense<0.000000e+00> : vector<8x8x16xf32>
    %155 = tpu.matmul %153, %154, %cst_85 {dimension_numbers = #tpu.dot_dimension_numbers<[2], [1], [1], [2], [0, 0, 0, 1, 1, 2], [0], [0]>} : vector<8x8x128xbf16>, vector<8x128x16xbf16>, vector<8x8x16xf32> -> vector<8x8x16xf32>
    "tpu.trace_stop"() : () -> ()
    %c0_86 = arith.constant 0 : index
    %c0_87 = arith.constant 0 : index
    %c0_88 = arith.constant 0 : index
    %156 = vector.load %arg24[%c0_86, %c0_87, %c0_88] : memref<8x128x16xbf16, #tpu.memory_space<vmem>>, vector<8x128x16xbf16>
    "tpu.trace_start"() <{level = 10 : i32, message = "htc,hcd->htd"}> : () -> ()
    %cst_89 = arith.constant dense<0.000000e+00> : vector<8x8x16xf32>
    %157 = tpu.matmul %153, %156, %cst_89 {dimension_numbers = #tpu.dot_dimension_numbers<[2], [1], [1], [2], [0, 0, 0, 1, 1, 2], [0], [0]>} : vector<8x8x128xbf16>, vector<8x128x16xbf16>, vector<8x8x16xf32> -> vector<8x8x16xf32>
    "tpu.trace_stop"() : () -> ()
    %c0_90 = arith.constant 0 : index
    %c0_91 = arith.constant 0 : index
    %c0_92 = arith.constant 0 : index
    %158 = vector.load %arg25[%c0_90, %c0_91, %c0_92] : memref<8x128x16xbf16, #tpu.memory_space<vmem>>, vector<8x128x16xbf16>
    "tpu.trace_start"() <{level = 10 : i32, message = "htc,hcd->htd"}> : () -> ()
    %cst_93 = arith.constant dense<0.000000e+00> : vector<8x8x16xf32>
    %159 = tpu.matmul %153, %158, %cst_93 {dimension_numbers = #tpu.dot_dimension_numbers<[2], [1], [1], [2], [0, 0, 0, 1, 1, 2], [0], [0]>} : vector<8x8x128xbf16>, vector<8x128x16xbf16>, vector<8x8x16xf32> -> vector<8x8x16xf32>
    "tpu.trace_stop"() : () -> ()
    %160 = arith.truncf %155 : vector<8x8x16xf32> to vector<8x8x16xbf16>
    %161 = arith.truncf %157 : vector<8x8x16xf32> to vector<8x8x16xbf16>
    "tpu.trace_start"() <{level = 10 : i32, message = "hqd,hkd->hqk"}> : () -> ()
    %cst_94 = arith.constant dense<0.000000e+00> : vector<8x8x8xf32>
    %162 = tpu.matmul %160, %161, %cst_94 {dimension_numbers = #tpu.dot_dimension_numbers<[2], [2], [1], [1], [0, 0, 0, 1, 1, 1], [0], [0]>} : vector<8x8x16xbf16>, vector<8x8x16xbf16>, vector<8x8x8xf32> -> vector<8x8x8xf32>
    "tpu.trace_stop"() : () -> ()
    %cst_95 = arith.constant 2.500000e-01 : f32
    %163 = vector.broadcast %cst_95 : f32 to vector<8x8x8xf32>
    %164 = arith.mulf %162, %163 : vector<8x8x8xf32>
    %165 = tpu.iota {dimensions = array<i32: 1>} : vector<8x8x8xi32>
    %166 = tpu.iota {dimensions = array<i32: 2>} : vector<8x8x8xi32>
    %167 = arith.cmpi sle, %166, %165 : vector<8x8x8xi32>
    %cst_96 = arith.constant -1.000000e+30 : f32
    %168 = vector.broadcast %cst_96 : f32 to vector<8x8x8xf32>
    %169 = arith.select %167, %164, %168 : vector<8x8x8xi1>, vector<8x8x8xf32>
    %cst_97 = arith.constant dense<0xFF800000> : vector<8x8xf32>
    %170 = vector.multi_reduction <maximumf>, %169, %cst_97 [2] : vector<8x8x8xf32> to vector<8x8xf32>
    %171 = vector.shape_cast %170 : vector<8x8xf32> to vector<8x8x1xf32>
    %172 = vector.broadcast %171 : vector<8x8x1xf32> to vector<8x8x8xf32>
    %173 = arith.subf %169, %172 : vector<8x8x8xf32>
    %174 = math.exp %173 : vector<8x8x8xf32>
    %cst_98 = arith.constant dense<0.000000e+00> : vector<8x8xf32>
    %175 = vector.multi_reduction <add>, %174, %cst_98 [2] : vector<8x8x8xf32> to vector<8x8xf32>
    %176 = vector.shape_cast %175 : vector<8x8xf32> to vector<8x8x1xf32>
    %177 = tpu.reciprocal %176 {approx = true} : vector<8x8x1xf32> -> vector<8x8x1xf32>
    %178 = vector.broadcast %177 : vector<8x8x1xf32> to vector<8x8x8xf32>
    %179 = arith.mulf %174, %178 : vector<8x8x8xf32>
    %180 = arith.truncf %179 : vector<8x8x8xf32> to vector<8x8x8xbf16>
    %181 = arith.truncf %159 : vector<8x8x16xf32> to vector<8x8x16xbf16>
    "tpu.trace_start"() <{level = 10 : i32, message = "hqk,hkd->hqd"}> : () -> ()
    %cst_99 = arith.constant dense<0.000000e+00> : vector<8x8x16xf32>
    %182 = tpu.matmul %180, %181, %cst_99 {dimension_numbers = #tpu.dot_dimension_numbers<[2], [1], [1], [2], [0, 0, 0, 1, 1, 2], [0], [0]>} : vector<8x8x8xbf16>, vector<8x8x16xbf16>, vector<8x8x16xf32> -> vector<8x8x16xf32>
    "tpu.trace_stop"() : () -> ()
    %183 = arith.truncf %182 : vector<8x8x16xf32> to vector<8x8x16xbf16>
    %c0_100 = arith.constant 0 : index
    %c0_101 = arith.constant 0 : index
    %c0_102 = arith.constant 0 : index
    %184 = vector.load %arg26[%c0_100, %c0_101, %c0_102] : memref<8x16x128xbf16, #tpu.memory_space<vmem>>, vector<8x16x128xbf16>
    "tpu.trace_start"() <{level = 10 : i32, message = "htd,hdc->htc"}> : () -> ()
    %cst_103 = arith.constant dense<0.000000e+00> : vector<8x8x128xf32>
    %185 = tpu.matmul %183, %184, %cst_103 {dimension_numbers = #tpu.dot_dimension_numbers<[2], [1], [1], [2], [0, 0, 0, 1, 1, 2], [0], [0]>} : vector<8x8x16xbf16>, vector<8x16x128xbf16>, vector<8x8x128xf32> -> vector<8x8x128xf32>
    "tpu.trace_stop"() : () -> ()
    %cst_104 = arith.constant dense<0.000000e+00> : vector<8x128xf32>
    %186 = vector.multi_reduction <add>, %185, %cst_104 [0] : vector<8x8x128xf32> to vector<8x128xf32>
    %187 = arith.addf %125, %186 : vector<8x128xf32>
    %c0_105 = arith.constant 0 : index
    %c0_106 = arith.constant 0 : index
    %188 = vector.load %arg27[%c0_105, %c0_106] : memref<1x128xf32, #tpu.memory_space<vmem>>, vector<1x128xf32>
    %189 = vector.broadcast %188 : vector<1x128xf32> to vector<8x128xf32>
    %190 = arith.addf %187, %189 : vector<8x128xf32>
    %c0_107 = arith.constant 0 : index
    %c0_108 = arith.constant 0 : index
    %191 = vector.load %arg28[%c0_107, %c0_108] : memref<1x128xf32, #tpu.memory_space<vmem>>, vector<1x128xf32>
    %c0_109 = arith.constant 0 : index
    %c0_110 = arith.constant 0 : index
    %192 = vector.load %arg29[%c0_109, %c0_110] : memref<1x128xf32, #tpu.memory_space<vmem>>, vector<1x128xf32>
    %cst_111 = arith.constant dense<0.000000e+00> : vector<8xf32>
    %193 = vector.multi_reduction <add>, %190, %cst_111 [1] : vector<8x128xf32> to vector<8xf32>
    %194 = vector.shape_cast %193 : vector<8xf32> to vector<8x1xf32>
    %cst_112 = arith.constant 1.280000e+02 : f32
    %195 = vector.broadcast %cst_112 : f32 to vector<8x1xf32>
    %196 = arith.divf %194, %195 : vector<8x1xf32>
    %197 = vector.broadcast %196 : vector<8x1xf32> to vector<8x128xf32>
    %198 = arith.subf %190, %197 : vector<8x128xf32>
    %199 = arith.mulf %198, %198 : vector<8x128xf32>
    %cst_113 = arith.constant dense<0.000000e+00> : vector<8xf32>
    %200 = vector.multi_reduction <add>, %199, %cst_113 [1] : vector<8x128xf32> to vector<8xf32>
    %201 = vector.shape_cast %200 : vector<8xf32> to vector<8x1xf32>
    %cst_114 = arith.constant 1.280000e+02 : f32
    %202 = vector.broadcast %cst_114 : f32 to vector<8x1xf32>
    %203 = arith.divf %201, %202 : vector<8x1xf32>
    %204 = vector.broadcast %196 : vector<8x1xf32> to vector<8x128xf32>
    %205 = arith.subf %190, %204 : vector<8x128xf32>
    %cst_115 = arith.constant 9.99999974E-6 : f32
    %206 = vector.broadcast %cst_115 : f32 to vector<8x1xf32>
    %207 = arith.addf %203, %206 : vector<8x1xf32>
    %208 = math.rsqrt %207 : vector<8x1xf32>
    %209 = vector.broadcast %208 : vector<8x1xf32> to vector<8x128xf32>
    %210 = arith.mulf %205, %209 : vector<8x128xf32>
    %211 = vector.broadcast %191 : vector<1x128xf32> to vector<8x128xf32>
    %212 = arith.mulf %210, %211 : vector<8x128xf32>
    %213 = vector.broadcast %192 : vector<1x128xf32> to vector<8x128xf32>
    %214 = arith.addf %212, %213 : vector<8x128xf32>
    %215 = arith.truncf %214 : vector<8x128xf32> to vector<8x128xbf16>
    %c0_116 = arith.constant 0 : index
    %c0_117 = arith.constant 0 : index
    %216 = vector.load %arg30[%c0_116, %c0_117] : memref<128x512xbf16, #tpu.memory_space<vmem>>, vector<128x512xbf16>
    %cst_118 = arith.constant dense<0.000000e+00> : vector<8x512xf32>
    %217 = tpu.matmul %215, %216, %cst_118 {dimension_numbers = #tpu.dot_dimension_numbers<[1], [0], [0], [1], [0, 0, 1, 1], [], []>} : vector<8x128xbf16>, vector<128x512xbf16>, vector<8x512xf32> -> vector<8x512xf32>
    %c0_119 = arith.constant 0 : index
    %c0_120 = arith.constant 0 : index
    %218 = vector.load %arg31[%c0_119, %c0_120] : memref<1x512xf32, #tpu.memory_space<vmem>>, vector<1x512xf32>
    %219 = vector.broadcast %218 : vector<1x512xf32> to vector<8x512xf32>
    %220 = arith.addf %217, %219 : vector<8x512xf32>
    %cst_121 = arith.constant 0.000000e+00 : f32
    %221 = vector.broadcast %cst_121 : f32 to vector<8x512xf32>
    %222 = arith.maximumf %220, %221 : vector<8x512xf32>
    %223 = arith.truncf %222 : vector<8x512xf32> to vector<8x512xbf16>
    %c0_122 = arith.constant 0 : index
    %c0_123 = arith.constant 0 : index
    %224 = vector.load %arg32[%c0_122, %c0_123] : memref<512x128xbf16, #tpu.memory_space<vmem>>, vector<512x128xbf16>
    %cst_124 = arith.constant dense<0.000000e+00> : vector<8x128xf32>
    %225 = tpu.matmul %223, %224, %cst_124 {dimension_numbers = #tpu.dot_dimension_numbers<[1], [0], [0], [1], [0, 0, 1, 1], [], []>} : vector<8x512xbf16>, vector<512x128xbf16>, vector<8x128xf32> -> vector<8x128xf32>
    %c0_125 = arith.constant 0 : index
    %c0_126 = arith.constant 0 : index
    %226 = vector.load %arg33[%c0_125, %c0_126] : memref<1x128xf32, #tpu.memory_space<vmem>>, vector<1x128xf32>
    %227 = vector.broadcast %226 : vector<1x128xf32> to vector<8x128xf32>
    %228 = arith.addf %225, %227 : vector<8x128xf32>
    %229 = arith.addf %190, %228 : vector<8x128xf32>
    %230 = arith.truncf %229 : vector<8x128xf32> to vector<8x128xbf16>
    %c0_127 = arith.constant 0 : index
    %c0_128 = arith.constant 0 : index
    %231 = vector.load %arg34[%c0_127, %c0_128] : memref<128x128xbf16, #tpu.memory_space<vmem>>, vector<128x128xbf16>
    %cst_129 = arith.constant dense<0.000000e+00> : vector<8x128xf32>
    %232 = tpu.matmul %230, %231, %cst_129 {dimension_numbers = #tpu.dot_dimension_numbers<[1], [0], [0], [1], [0, 0, 1, 1], [], []>} : vector<8x128xbf16>, vector<128x128xbf16>, vector<8x128xf32> -> vector<8x128xf32>
    %c0_130 = arith.constant 0 : index
    %c0_131 = arith.constant 0 : index
    %233 = vector.load %arg35[%c0_130, %c0_131] : memref<1x128xf32, #tpu.memory_space<vmem>>, vector<1x128xf32>
    %234 = vector.broadcast %233 : vector<1x128xf32> to vector<8x128xf32>
    %235 = arith.addf %232, %234 : vector<8x128xf32>
    %c0_132 = arith.constant 0 : index
    %c0_133 = arith.constant 0 : index
    %236 = vector.load %arg36[%c0_132, %c0_133] : memref<1x128xf32, #tpu.memory_space<vmem>>, vector<1x128xf32>
    %c0_134 = arith.constant 0 : index
    %c0_135 = arith.constant 0 : index
    %237 = vector.load %arg37[%c0_134, %c0_135] : memref<1x128xf32, #tpu.memory_space<vmem>>, vector<1x128xf32>
    %cst_136 = arith.constant dense<0.000000e+00> : vector<8xf32>
    %238 = vector.multi_reduction <add>, %235, %cst_136 [1] : vector<8x128xf32> to vector<8xf32>
    %239 = vector.shape_cast %238 : vector<8xf32> to vector<8x1xf32>
    %cst_137 = arith.constant 1.280000e+02 : f32
    %240 = vector.broadcast %cst_137 : f32 to vector<8x1xf32>
    %241 = arith.divf %239, %240 : vector<8x1xf32>
    %242 = vector.broadcast %241 : vector<8x1xf32> to vector<8x128xf32>
    %243 = arith.subf %235, %242 : vector<8x128xf32>
    %244 = arith.mulf %243, %243 : vector<8x128xf32>
    %cst_138 = arith.constant dense<0.000000e+00> : vector<8xf32>
    %245 = vector.multi_reduction <add>, %244, %cst_138 [1] : vector<8x128xf32> to vector<8xf32>
    %246 = vector.shape_cast %245 : vector<8xf32> to vector<8x1xf32>
    %cst_139 = arith.constant 1.280000e+02 : f32
    %247 = vector.broadcast %cst_139 : f32 to vector<8x1xf32>
    %248 = arith.divf %246, %247 : vector<8x1xf32>
    %249 = vector.broadcast %241 : vector<8x1xf32> to vector<8x128xf32>
    %250 = arith.subf %235, %249 : vector<8x128xf32>
    %cst_140 = arith.constant 9.99999974E-6 : f32
    %251 = vector.broadcast %cst_140 : f32 to vector<8x1xf32>
    %252 = arith.addf %248, %251 : vector<8x1xf32>
    %253 = math.rsqrt %252 : vector<8x1xf32>
    %254 = vector.broadcast %253 : vector<8x1xf32> to vector<8x128xf32>
    %255 = arith.mulf %250, %254 : vector<8x128xf32>
    %256 = vector.broadcast %236 : vector<1x128xf32> to vector<8x128xf32>
    %257 = arith.mulf %255, %256 : vector<8x128xf32>
    %258 = vector.broadcast %237 : vector<1x128xf32> to vector<8x128xf32>
    %259 = arith.addf %257, %258 : vector<8x128xf32>
    %260 = arith.truncf %259 : vector<8x128xf32> to vector<8x128xbf16>
    %261 = vector.shape_cast %260 : vector<8x128xbf16> to vector<1x8x128xbf16>
    %262 = vector.shape_cast %261 : vector<1x8x128xbf16> to vector<1x8x128xbf16>
    %263 = vector.broadcast %262 : vector<1x8x128xbf16> to vector<8x8x128xbf16>
    %c0_141 = arith.constant 0 : index
    %c0_142 = arith.constant 0 : index
    %c0_143 = arith.constant 0 : index
    %264 = vector.load %arg38[%c0_141, %c0_142, %c0_143] : memref<8x128x16xbf16, #tpu.memory_space<vmem>>, vector<8x128x16xbf16>
    "tpu.trace_start"() <{level = 10 : i32, message = "htc,hcd->htd"}> : () -> ()
    %cst_144 = arith.constant dense<0.000000e+00> : vector<8x8x16xf32>
    %265 = tpu.matmul %263, %264, %cst_144 {dimension_numbers = #tpu.dot_dimension_numbers<[2], [1], [1], [2], [0, 0, 0, 1, 1, 2], [0], [0]>} : vector<8x8x128xbf16>, vector<8x128x16xbf16>, vector<8x8x16xf32> -> vector<8x8x16xf32>
    "tpu.trace_stop"() : () -> ()
    %c0_145 = arith.constant 0 : index
    %c0_146 = arith.constant 0 : index
    %c0_147 = arith.constant 0 : index
    %266 = vector.load %arg39[%c0_145, %c0_146, %c0_147] : memref<8x128x16xbf16, #tpu.memory_space<vmem>>, vector<8x128x16xbf16>
    "tpu.trace_start"() <{level = 10 : i32, message = "htc,hcd->htd"}> : () -> ()
    %cst_148 = arith.constant dense<0.000000e+00> : vector<8x8x16xf32>
    %267 = tpu.matmul %263, %266, %cst_148 {dimension_numbers = #tpu.dot_dimension_numbers<[2], [1], [1], [2], [0, 0, 0, 1, 1, 2], [0], [0]>} : vector<8x8x128xbf16>, vector<8x128x16xbf16>, vector<8x8x16xf32> -> vector<8x8x16xf32>
    "tpu.trace_stop"() : () -> ()
    %c0_149 = arith.constant 0 : index
    %c0_150 = arith.constant 0 : index
    %c0_151 = arith.constant 0 : index
    %268 = vector.load %arg40[%c0_149, %c0_150, %c0_151] : memref<8x128x16xbf16, #tpu.memory_space<vmem>>, vector<8x128x16xbf16>
    "tpu.trace_start"() <{level = 10 : i32, message = "htc,hcd->htd"}> : () -> ()
    %cst_152 = arith.constant dense<0.000000e+00> : vector<8x8x16xf32>
    %269 = tpu.matmul %263, %268, %cst_152 {dimension_numbers = #tpu.dot_dimension_numbers<[2], [1], [1], [2], [0, 0, 0, 1, 1, 2], [0], [0]>} : vector<8x8x128xbf16>, vector<8x128x16xbf16>, vector<8x8x16xf32> -> vector<8x8x16xf32>
    "tpu.trace_stop"() : () -> ()
    %270 = arith.truncf %265 : vector<8x8x16xf32> to vector<8x8x16xbf16>
    %271 = arith.truncf %267 : vector<8x8x16xf32> to vector<8x8x16xbf16>
    "tpu.trace_start"() <{level = 10 : i32, message = "hqd,hkd->hqk"}> : () -> ()
    %cst_153 = arith.constant dense<0.000000e+00> : vector<8x8x8xf32>
    %272 = tpu.matmul %270, %271, %cst_153 {dimension_numbers = #tpu.dot_dimension_numbers<[2], [2], [1], [1], [0, 0, 0, 1, 1, 1], [0], [0]>} : vector<8x8x16xbf16>, vector<8x8x16xbf16>, vector<8x8x8xf32> -> vector<8x8x8xf32>
    "tpu.trace_stop"() : () -> ()
    %cst_154 = arith.constant 2.500000e-01 : f32
    %273 = vector.broadcast %cst_154 : f32 to vector<8x8x8xf32>
    %274 = arith.mulf %272, %273 : vector<8x8x8xf32>
    %275 = tpu.iota {dimensions = array<i32: 1>} : vector<8x8x8xi32>
    %276 = tpu.iota {dimensions = array<i32: 2>} : vector<8x8x8xi32>
    %277 = arith.cmpi sle, %276, %275 : vector<8x8x8xi32>
    %cst_155 = arith.constant -1.000000e+30 : f32
    %278 = vector.broadcast %cst_155 : f32 to vector<8x8x8xf32>
    %279 = arith.select %277, %274, %278 : vector<8x8x8xi1>, vector<8x8x8xf32>
    %cst_156 = arith.constant dense<0xFF800000> : vector<8x8xf32>
    %280 = vector.multi_reduction <maximumf>, %279, %cst_156 [2] : vector<8x8x8xf32> to vector<8x8xf32>
    %281 = vector.shape_cast %280 : vector<8x8xf32> to vector<8x8x1xf32>
    %282 = vector.broadcast %281 : vector<8x8x1xf32> to vector<8x8x8xf32>
    %283 = arith.subf %279, %282 : vector<8x8x8xf32>
    %284 = math.exp %283 : vector<8x8x8xf32>
    %cst_157 = arith.constant dense<0.000000e+00> : vector<8x8xf32>
    %285 = vector.multi_reduction <add>, %284, %cst_157 [2] : vector<8x8x8xf32> to vector<8x8xf32>
    %286 = vector.shape_cast %285 : vector<8x8xf32> to vector<8x8x1xf32>
    %287 = tpu.reciprocal %286 {approx = true} : vector<8x8x1xf32> -> vector<8x8x1xf32>
    %288 = vector.broadcast %287 : vector<8x8x1xf32> to vector<8x8x8xf32>
    %289 = arith.mulf %284, %288 : vector<8x8x8xf32>
    %290 = arith.truncf %289 : vector<8x8x8xf32> to vector<8x8x8xbf16>
    %291 = arith.truncf %269 : vector<8x8x16xf32> to vector<8x8x16xbf16>
    "tpu.trace_start"() <{level = 10 : i32, message = "hqk,hkd->hqd"}> : () -> ()
    %cst_158 = arith.constant dense<0.000000e+00> : vector<8x8x16xf32>
    %292 = tpu.matmul %290, %291, %cst_158 {dimension_numbers = #tpu.dot_dimension_numbers<[2], [1], [1], [2], [0, 0, 0, 1, 1, 2], [0], [0]>} : vector<8x8x8xbf16>, vector<8x8x16xbf16>, vector<8x8x16xf32> -> vector<8x8x16xf32>
    "tpu.trace_stop"() : () -> ()
    %293 = arith.truncf %292 : vector<8x8x16xf32> to vector<8x8x16xbf16>
    %c0_159 = arith.constant 0 : index
    %c0_160 = arith.constant 0 : index
    %c0_161 = arith.constant 0 : index
    %294 = vector.load %arg41[%c0_159, %c0_160, %c0_161] : memref<8x16x128xbf16, #tpu.memory_space<vmem>>, vector<8x16x128xbf16>
    "tpu.trace_start"() <{level = 10 : i32, message = "htd,hdc->htc"}> : () -> ()
    %cst_162 = arith.constant dense<0.000000e+00> : vector<8x8x128xf32>
    %295 = tpu.matmul %293, %294, %cst_162 {dimension_numbers = #tpu.dot_dimension_numbers<[2], [1], [1], [2], [0, 0, 0, 1, 1, 2], [0], [0]>} : vector<8x8x16xbf16>, vector<8x16x128xbf16>, vector<8x8x128xf32> -> vector<8x8x128xf32>
    "tpu.trace_stop"() : () -> ()
    %cst_163 = arith.constant dense<0.000000e+00> : vector<8x128xf32>
    %296 = vector.multi_reduction <add>, %295, %cst_163 [0] : vector<8x8x128xf32> to vector<8x128xf32>
    %297 = arith.addf %235, %296 : vector<8x128xf32>
    %c0_164 = arith.constant 0 : index
    %c0_165 = arith.constant 0 : index
    %298 = vector.load %arg42[%c0_164, %c0_165] : memref<1x128xf32, #tpu.memory_space<vmem>>, vector<1x128xf32>
    %299 = vector.broadcast %298 : vector<1x128xf32> to vector<8x128xf32>
    %300 = arith.addf %297, %299 : vector<8x128xf32>
    %c0_166 = arith.constant 0 : index
    %c0_167 = arith.constant 0 : index
    %301 = vector.load %arg43[%c0_166, %c0_167] : memref<1x128xf32, #tpu.memory_space<vmem>>, vector<1x128xf32>
    %c0_168 = arith.constant 0 : index
    %c0_169 = arith.constant 0 : index
    %302 = vector.load %arg44[%c0_168, %c0_169] : memref<1x128xf32, #tpu.memory_space<vmem>>, vector<1x128xf32>
    %cst_170 = arith.constant dense<0.000000e+00> : vector<8xf32>
    %303 = vector.multi_reduction <add>, %300, %cst_170 [1] : vector<8x128xf32> to vector<8xf32>
    %304 = vector.shape_cast %303 : vector<8xf32> to vector<8x1xf32>
    %cst_171 = arith.constant 1.280000e+02 : f32
    %305 = vector.broadcast %cst_171 : f32 to vector<8x1xf32>
    %306 = arith.divf %304, %305 : vector<8x1xf32>
    %307 = vector.broadcast %306 : vector<8x1xf32> to vector<8x128xf32>
    %308 = arith.subf %300, %307 : vector<8x128xf32>
    %309 = arith.mulf %308, %308 : vector<8x128xf32>
    %cst_172 = arith.constant dense<0.000000e+00> : vector<8xf32>
    %310 = vector.multi_reduction <add>, %309, %cst_172 [1] : vector<8x128xf32> to vector<8xf32>
    %311 = vector.shape_cast %310 : vector<8xf32> to vector<8x1xf32>
    %cst_173 = arith.constant 1.280000e+02 : f32
    %312 = vector.broadcast %cst_173 : f32 to vector<8x1xf32>
    %313 = arith.divf %311, %312 : vector<8x1xf32>
    %314 = vector.broadcast %306 : vector<8x1xf32> to vector<8x128xf32>
    %315 = arith.subf %300, %314 : vector<8x128xf32>
    %cst_174 = arith.constant 9.99999974E-6 : f32
    %316 = vector.broadcast %cst_174 : f32 to vector<8x1xf32>
    %317 = arith.addf %313, %316 : vector<8x1xf32>
    %318 = math.rsqrt %317 : vector<8x1xf32>
    %319 = vector.broadcast %318 : vector<8x1xf32> to vector<8x128xf32>
    %320 = arith.mulf %315, %319 : vector<8x128xf32>
    %321 = vector.broadcast %301 : vector<1x128xf32> to vector<8x128xf32>
    %322 = arith.mulf %320, %321 : vector<8x128xf32>
    %323 = vector.broadcast %302 : vector<1x128xf32> to vector<8x128xf32>
    %324 = arith.addf %322, %323 : vector<8x128xf32>
    %325 = arith.truncf %324 : vector<8x128xf32> to vector<8x128xbf16>
    %c0_175 = arith.constant 0 : index
    %c0_176 = arith.constant 0 : index
    %326 = vector.load %arg45[%c0_175, %c0_176] : memref<128x512xbf16, #tpu.memory_space<vmem>>, vector<128x512xbf16>
    %cst_177 = arith.constant dense<0.000000e+00> : vector<8x512xf32>
    %327 = tpu.matmul %325, %326, %cst_177 {dimension_numbers = #tpu.dot_dimension_numbers<[1], [0], [0], [1], [0, 0, 1, 1], [], []>} : vector<8x128xbf16>, vector<128x512xbf16>, vector<8x512xf32> -> vector<8x512xf32>
    %c0_178 = arith.constant 0 : index
    %c0_179 = arith.constant 0 : index
    %328 = vector.load %arg46[%c0_178, %c0_179] : memref<1x512xf32, #tpu.memory_space<vmem>>, vector<1x512xf32>
    %329 = vector.broadcast %328 : vector<1x512xf32> to vector<8x512xf32>
    %330 = arith.addf %327, %329 : vector<8x512xf32>
    %cst_180 = arith.constant 0.000000e+00 : f32
    %331 = vector.broadcast %cst_180 : f32 to vector<8x512xf32>
    %332 = arith.maximumf %330, %331 : vector<8x512xf32>
    %333 = arith.truncf %332 : vector<8x512xf32> to vector<8x512xbf16>
    %c0_181 = arith.constant 0 : index
    %c0_182 = arith.constant 0 : index
    %334 = vector.load %arg47[%c0_181, %c0_182] : memref<512x128xbf16, #tpu.memory_space<vmem>>, vector<512x128xbf16>
    %cst_183 = arith.constant dense<0.000000e+00> : vector<8x128xf32>
    %335 = tpu.matmul %333, %334, %cst_183 {dimension_numbers = #tpu.dot_dimension_numbers<[1], [0], [0], [1], [0, 0, 1, 1], [], []>} : vector<8x512xbf16>, vector<512x128xbf16>, vector<8x128xf32> -> vector<8x128xf32>
    %c0_184 = arith.constant 0 : index
    %c0_185 = arith.constant 0 : index
    %336 = vector.load %arg48[%c0_184, %c0_185] : memref<1x128xf32, #tpu.memory_space<vmem>>, vector<1x128xf32>
    %337 = vector.broadcast %336 : vector<1x128xf32> to vector<8x128xf32>
    %338 = arith.addf %335, %337 : vector<8x128xf32>
    %339 = arith.addf %300, %338 : vector<8x128xf32>
    %340 = arith.truncf %339 : vector<8x128xf32> to vector<8x128xbf16>
    %c0_186 = arith.constant 0 : index
    %c0_187 = arith.constant 0 : index
    %341 = vector.load %arg49[%c0_186, %c0_187] : memref<128x1xbf16, #tpu.memory_space<vmem>>, vector<128x1xbf16>
    %cst_188 = arith.constant dense<0.000000e+00> : vector<8x1xf32>
    %342 = tpu.matmul %340, %341, %cst_188 {dimension_numbers = #tpu.dot_dimension_numbers<[1], [0], [0], [1], [0, 0, 1, 1], [], []>} : vector<8x128xbf16>, vector<128x1xbf16>, vector<8x1xf32> -> vector<8x1xf32>
    %c0_189 = arith.constant 0 : index
    %c0_190 = arith.constant 0 : index
    %343 = vector.load %arg50[%c0_189, %c0_190] : memref<1x1xf32, #tpu.memory_space<vmem>>, vector<1x1xf32>
    %344 = vector.broadcast %343 : vector<1x1xf32> to vector<8x1xf32>
    %345 = arith.addf %342, %344 : vector<8x1xf32>
    %c0_191 = arith.constant 0 : index
    %c0_192 = arith.constant 0 : index
    %c0_193 = arith.constant 0 : index
    %346 = vector.load %arg51[%c0_191, %c0_192, %c0_193] : memref<1x8x1xf32, #tpu.memory_space<vmem>>, vector<1x8x1xf32>
    %347 = vector.shape_cast %346 : vector<1x8x1xf32> to vector<8x1xf32>
    %348 = vector.shape_cast %345 : vector<8x1xf32> to vector<1x8x1xf32>
    tpu.vector_store %arg51[%c0_191, %c0_192, %c0_193], %348 {strides = array<i32>} : memref<1x8x1xf32, #tpu.memory_space<vmem>>, vector<1x8x1xf32>,
    return
  }
  func.func @transform_0(%arg0: i32) -> (i32, i32, i32) {
    %c0_i32 = arith.constant 0 : i32
    %c0_i32_0 = arith.constant 0 : i32
    %c0_i32_1 = arith.constant 0 : i32
    return %arg0, %c0_i32, %c0_i32_0 : i32, i32, i32
  }
  func.func @transform_1(%arg0: i32) -> (i32, i32, i32) {
    %c0_i32 = arith.constant 0 : i32
    %c0_i32_0 = arith.constant 0 : i32
    %c0_i32_1 = arith.constant 0 : i32
    return %arg0, %c0_i32, %c0_i32_0 : i32, i32, i32
  }
  func.func @transform_2(%arg0: i32) -> (i32, i32) {
    %c0_i32 = arith.constant 0 : i32
    %c0_i32_0 = arith.constant 0 : i32
    %c0_i32_1 = arith.constant 0 : i32
    return %c0_i32, %c0_i32_0 : i32, i32
  }
  func.func @transform_3(%arg0: i32) -> (i32, i32) {
    %c0_i32 = arith.constant 0 : i32
    %c0_i32_0 = arith.constant 0 : i32
    %c0_i32_1 = arith.constant 0 : i32
    return %c0_i32, %c0_i32_0 : i32, i32
  }
  func.func @transform_4(%arg0: i32) -> (i32, i32) {
    %c0_i32 = arith.constant 0 : i32
    %c0_i32_0 = arith.constant 0 : i32
    %c0_i32_1 = arith.constant 0 : i32
    return %c0_i32, %c0_i32_0 : i32, i32
  }
  func.func @transform_5(%arg0: i32) -> (i32, i32) {
    %c0_i32 = arith.constant 0 : i32
    %c0_i32_0 = arith.constant 0 : i32
    %c0_i32_1 = arith.constant 0 : i32
    return %c0_i32, %c0_i32_0 : i32, i32
  }
  func.func @transform_6(%arg0: i32) -> (i32, i32) {
    %c0_i32 = arith.constant 0 : i32
    %c0_i32_0 = arith.constant 0 : i32
    %c0_i32_1 = arith.constant 0 : i32
    return %c0_i32, %c0_i32_0 : i32, i32
  }
  func.func @transform_7(%arg0: i32) -> (i32, i32, i32) {
    %c0_i32 = arith.constant 0 : i32
    %c0_i32_0 = arith.constant 0 : i32
    %c0_i32_1 = arith.constant 0 : i32
    %c0_i32_2 = arith.constant 0 : i32
    return %c0_i32, %c0_i32_0, %c0_i32_1 : i32, i32, i32
  }
  func.func @transform_8(%arg0: i32) -> (i32, i32, i32) {
    %c0_i32 = arith.constant 0 : i32
    %c0_i32_0 = arith.constant 0 : i32
    %c0_i32_1 = arith.constant 0 : i32
    %c0_i32_2 = arith.constant 0 : i32
    return %c0_i32, %c0_i32_0, %c0_i32_1 : i32, i32, i32
  }
  func.func @transform_9(%arg0: i32) -> (i32, i32, i32) {
    %c0_i32 = arith.constant 0 : i32
    %c0_i32_0 = arith.constant 0 : i32
    %c0_i32_1 = arith.constant 0 : i32
    %c0_i32_2 = arith.constant 0 : i32
    return %c0_i32, %c0_i32_0, %c0_i32_1 : i32, i32, i32
  }
  func.func @transform_10(%arg0: i32) -> (i32, i32, i32) {
    %c0_i32 = arith.constant 0 : i32
    %c0_i32_0 = arith.constant 0 : i32
    %c0_i32_1 = arith.constant 0 : i32
    %c0_i32_2 = arith.constant 0 : i32
    return %c0_i32, %c0_i32_0, %c0_i32_1 : i32, i32, i32
  }
  func.func @transform_11(%arg0: i32) -> (i32, i32) {
    %c0_i32 = arith.constant 0 : i32
    %c0_i32_0 = arith.constant 0 : i32
    %c0_i32_1 = arith.constant 0 : i32
    return %c0_i32, %c0_i32_0 : i32, i32
  }
  func.func @transform_12(%arg0: i32) -> (i32, i32) {
    %c0_i32 = arith.constant 0 : i32
    %c0_i32_0 = arith.constant 0 : i32
    %c0_i32_1 = arith.constant 0 : i32
    return %c0_i32, %c0_i32_0 : i32, i32
  }
  func.func @transform_13(%arg0: i32) -> (i32, i32) {
    %c0_i32 = arith.constant 0 : i32
    %c0_i32_0 = arith.constant 0 : i32
    %c0_i32_1 = arith.constant 0 : i32
    return %c0_i32, %c0_i32_0 : i32, i32
  }
  func.func @transform_14(%arg0: i32) -> (i32, i32) {
    %c0_i32 = arith.constant 0 : i32
    %c0_i32_0 = arith.constant 0 : i32
    %c0_i32_1 = arith.constant 0 : i32
    return %c0_i32, %c0_i32_0 : i32, i32
  }
  func.func @transform_15(%arg0: i32) -> (i32, i32) {
    %c0_i32 = arith.constant 0 : i32
    %c0_i32_0 = arith.constant 0 : i32
    %c0_i32_1 = arith.constant 0 : i32
    return %c0_i32, %c0_i32_0 : i32, i32
  }
  func.func @transform_16(%arg0: i32) -> (i32, i32) {
    %c0_i32 = arith.constant 0 : i32
    %c0_i32_0 = arith.constant 0 : i32
    %c0_i32_1 = arith.constant 0 : i32
    return %c0_i32, %c0_i32_0 : i32, i32
  }
  func.func @transform_17(%arg0: i32) -> (i32, i32) {
    %c0_i32 = arith.constant 0 : i32
    %c0_i32_0 = arith.constant 0 : i32
    %c0_i32_1 = arith.constant 0 : i32
    return %c0_i32, %c0_i32_0 : i32, i32
  }
  func.func @transform_18(%arg0: i32) -> (i32, i32) {
    %c0_i32 = arith.constant 0 : i32
    %c0_i32_0 = arith.constant 0 : i32
    %c0_i32_1 = arith.constant 0 : i32
    return %c0_i32, %c0_i32_0 : i32, i32
  }
  func.func @transform_19(%arg0: i32) -> (i32, i32) {
    %c0_i32 = arith.constant 0 : i32
    %c0_i32_0 = arith.constant 0 : i32
    %c0_i32_1 = arith.constant 0 : i32
    return %c0_i32, %c0_i32_0 : i32, i32
  }
  func.func @transform_20(%arg0: i32) -> (i32, i32) {
    %c0_i32 = arith.constant 0 : i32
    %c0_i32_0 = arith.constant 0 : i32
    %c0_i32_1 = arith.constant 0 : i32
    return %c0_i32, %c0_i32_0 : i32, i32
  }
  func.func @transform_21(%arg0: i32) -> (i32, i32) {
    %c0_i32 = arith.constant 0 : i32
    %c0_i32_0 = arith.constant 0 : i32
    %c0_i32_1 = arith.constant 0 : i32
    return %c0_i32, %c0_i32_0 : i32, i32
  }
  func.func @transform_22(%arg0: i32) -> (i32, i32, i32) {
    %c0_i32 = arith.constant 0 : i32
    %c0_i32_0 = arith.constant 0 : i32
    %c0_i32_1 = arith.constant 0 : i32
    %c0_i32_2 = arith.constant 0 : i32
    return %c0_i32, %c0_i32_0, %c0_i32_1 : i32, i32, i32
  }
  func.func @transform_23(%arg0: i32) -> (i32, i32, i32) {
    %c0_i32 = arith.constant 0 : i32
    %c0_i32_0 = arith.constant 0 : i32
    %c0_i32_1 = arith.constant 0 : i32
    %c0_i32_2 = arith.constant 0 : i32
    return %c0_i32, %c0_i32_0, %c0_i32_1 : i32, i32, i32
  }
  func.func @transform_24(%arg0: i32) -> (i32, i32, i32) {
    %c0_i32 = arith.constant 0 : i32
    %c0_i32_0 = arith.constant 0 : i32
    %c0_i32_1 = arith.constant 0 : i32
    %c0_i32_2 = arith.constant 0 : i32
    return %c0_i32, %c0_i32_0, %c0_i32_1 : i32, i32, i32
  }
  func.func @transform_25(%arg0: i32) -> (i32, i32, i32) {
    %c0_i32 = arith.constant 0 : i32
    %c0_i32_0 = arith.constant 0 : i32
    %c0_i32_1 = arith.constant 0 : i32
    %c0_i32_2 = arith.constant 0 : i32
    return %c0_i32, %c0_i32_0, %c0_i32_1 : i32, i32, i32
  }
  func.func @transform_26(%arg0: i32) -> (i32, i32) {
    %c0_i32 = arith.constant 0 : i32
    %c0_i32_0 = arith.constant 0 : i32
    %c0_i32_1 = arith.constant 0 : i32
    return %c0_i32, %c0_i32_0 : i32, i32
  }
  func.func @transform_27(%arg0: i32) -> (i32, i32) {
    %c0_i32 = arith.constant 0 : i32
    %c0_i32_0 = arith.constant 0 : i32
    %c0_i32_1 = arith.constant 0 : i32
    return %c0_i32, %c0_i32_0 : i32, i32
  }
  func.func @transform_28(%arg0: i32) -> (i32, i32) {
    %c0_i32 = arith.constant 0 : i32
    %c0_i32_0 = arith.constant 0 : i32
    %c0_i32_1 = arith.constant 0 : i32
    return %c0_i32, %c0_i32_0 : i32, i32
  }
  func.func @transform_29(%arg0: i32) -> (i32, i32) {
    %c0_i32 = arith.constant 0 : i32
    %c0_i32_0 = arith.constant 0 : i32
    %c0_i32_1 = arith.constant 0 : i32
    return %c0_i32, %c0_i32_0 : i32, i32
  }
  func.func @transform_30(%arg0: i32) -> (i32, i32) {
    %c0_i32 = arith.constant 0 : i32
    %c0_i32_0 = arith.constant 0 : i32
    %c0_i32_1 = arith.constant 0 : i32
    return %c0_i32, %c0_i32_0 : i32, i32
  }
  func.func @transform_31(%arg0: i32) -> (i32, i32) {
    %c0_i32 = arith.constant 0 : i32
    %c0_i32_0 = arith.constant 0 : i32
    %c0_i32_1 = arith.constant 0 : i32
    return %c0_i32, %c0_i32_0 : i32, i32
  }
  func.func @transform_32(%arg0: i32) -> (i32, i32) {
    %c0_i32 = arith.constant 0 : i32
    %c0_i32_0 = arith.constant 0 : i32
    %c0_i32_1 = arith.constant 0 : i32
    return %c0_i32, %c0_i32_0 : i32, i32
  }
  func.func @transform_33(%arg0: i32) -> (i32, i32) {
    %c0_i32 = arith.constant 0 : i32
    %c0_i32_0 = arith.constant 0 : i32
    %c0_i32_1 = arith.constant 0 : i32
    return %c0_i32, %c0_i32_0 : i32, i32
  }
  func.func @transform_34(%arg0: i32) -> (i32, i32) {
    %c0_i32 = arith.constant 0 : i32
    %c0_i32_0 = arith.constant 0 : i32
    %c0_i32_1 = arith.constant 0 : i32
    return %c0_i32, %c0_i32_0 : i32, i32
  }
  func.func @transform_35(%arg0: i32) -> (i32, i32) {
    %c0_i32 = arith.constant 0 : i32
    %c0_i32_0 = arith.constant 0 : i32
    %c0_i32_1 = arith.constant 0 : i32
    return %c0_i32, %c0_i32_0 : i32, i32
  }
  func.func @transform_36(%arg0: i32) -> (i32, i32) {
    %c0_i32 = arith.constant 0 : i32
    %c0_i32_0 = arith.constant 0 : i32
    %c0_i32_1 = arith.constant 0 : i32
    return %c0_i32, %c0_i32_0 : i32, i32
  }
  func.func @transform_37(%arg0: i32) -> (i32, i32, i32) {
    %c0_i32 = arith.constant 0 : i32
    %c0_i32_0 = arith.constant 0 : i32
    %c0_i32_1 = arith.constant 0 : i32
    %c0_i32_2 = arith.constant 0 : i32
    return %c0_i32, %c0_i32_0, %c0_i32_1 : i32, i32, i32
  }
  func.func @transform_38(%arg0: i32) -> (i32, i32, i32) {
    %c0_i32 = arith.constant 0 : i32
    %c0_i32_0 = arith.constant 0 : i32
    %c0_i32_1 = arith.constant 0 : i32
    %c0_i32_2 = arith.constant 0 : i32
    return %c0_i32, %c0_i32_0, %c0_i32_1 : i32, i32, i32
  }
  func.func @transform_39(%arg0: i32) -> (i32, i32, i32) {
    %c0_i32 = arith.constant 0 : i32
    %c0_i32_0 = arith.constant 0 : i32
    %c0_i32_1 = arith.constant 0 : i32
    %c0_i32_2 = arith.constant 0 : i32
    return %c0_i32, %c0_i32_0, %c0_i32_1 : i32, i32, i32
  }
  func.func @transform_40(%arg0: i32) -> (i32, i32, i32) {
    %c0_i32 = arith.constant 0 : i32
    %c0_i32_0 = arith.constant 0 : i32
    %c0_i32_1 = arith.constant 0 : i32
    %c0_i32_2 = arith.constant 0 : i32
    return %c0_i32, %c0_i32_0, %c0_i32_1 : i32, i32, i32
  }
  func.func @transform_41(%arg0: i32) -> (i32, i32) {
    %c0_i32 = arith.constant 0 : i32
    %c0_i32_0 = arith.constant 0 : i32
    %c0_i32_1 = arith.constant 0 : i32
    return %c0_i32, %c0_i32_0 : i32, i32
  }
  func.func @transform_42(%arg0: i32) -> (i32, i32) {
    %c0_i32 = arith.constant 0 : i32
    %c0_i32_0 = arith.constant 0 : i32
    %c0_i32_1 = arith.constant 0 : i32
    return %c0_i32, %c0_i32_0 : i32, i32
  }
  func.func @transform_43(%arg0: i32) -> (i32, i32) {
    %c0_i32 = arith.constant 0 : i32
    %c0_i32_0 = arith.constant 0 : i32
    %c0_i32_1 = arith.constant 0 : i32
    return %c0_i32, %c0_i32_0 : i32, i32
  }
  func.func @transform_44(%arg0: i32) -> (i32, i32) {
    %c0_i32 = arith.constant 0 : i32
    %c0_i32_0 = arith.constant 0 : i32
    %c0_i32_1 = arith.constant 0 : i32
    return %c0_i32, %c0_i32_0 : i32, i32
  }
  func.func @transform_45(%arg0: i32) -> (i32, i32) {
    %c0_i32 = arith.constant 0 : i32
    %c0_i32_0 = arith.constant 0 : i32
    %c0_i32_1 = arith.constant 0 : i32
    return %c0_i32, %c0_i32_0 : i32, i32
  }
  func.func @transform_46(%arg0: i32) -> (i32, i32) {
    %c0_i32 = arith.constant 0 : i32
    %c0_i32_0 = arith.constant 0 : i32
    %c0_i32_1 = arith.constant 0 : i32
    return %c0_i32, %c0_i32_0 : i32, i32
  }
  func.func @transform_47(%arg0: i32) -> (i32, i32) {
    %c0_i32 = arith.constant 0 : i32
    %c0_i32_0 = arith.constant 0 : i32
    %c0_i32_1 = arith.constant 0 : i32
    return %c0_i32, %c0_i32_0 : i32, i32
  }
  func.func @transform_48(%arg0: i32) -> (i32, i32) {
    %c0_i32 = arith.constant 0 : i32
    %c0_i32_0 = arith.constant 0 : i32
    %c0_i32_1 = arith.constant 0 : i32
    return %c0_i32, %c0_i32_0 : i32, i32
  }
  func.func @transform_49(%arg0: i32) -> (i32, i32) {
    %c0_i32 = arith.constant 0 : i32
    %c0_i32_0 = arith.constant 0 : i32
    %c0_i32_1 = arith.constant 0 : i32
    return %c0_i32, %c0_i32_0 : i32, i32
  }
  func.func @transform_50(%arg0: i32) -> (i32, i32, i32) {
    %c0_i32 = arith.constant 0 : i32
    %c0_i32_0 = arith.constant 0 : i32
    %c0_i32_1 = arith.constant 0 : i32
    return %arg0, %c0_i32, %c0_i32_0 : i32, i32, i32
  }
}

</mosaic_0001>

<bundles_post_ra>
// kernel: mlpq_forward.1
= control target key start
LH: loop header
LB: loop body
LE: loop exit
PB: predicated region body
PF: predicated region fallthrough
CT: control target
= control target key end

     0   :  { %s20522_s6 = smov 1   ;;  %s20523_s10 = smov 2   ;;  %s23257_s0 = inlined_call_operand.smem [shape: u32[51], index: -1, kind: input, shape index: {}] }
   0x1   :  { %s20585_s5 = sld [smem:[%s23257_s0]]   ;;  %s20524_s14 = smov 3  }
   0x2   :  { %s20590_s9 = sld [smem:[%s23257_s0 + %s20522_s6]]   ;;  %s20525_s18 = smov 4  }
   0x3   :  { %s20595_s13 = sld [smem:[%s23257_s0 + %s20523_s10]]   ;;  %s20526_s22 = smov 5  }
   0x4   :  { %s20600_s17 = sld [smem:[%s23257_s0 + %s20524_s14]]   ;;  %s20527_s26 = smov 6  }
   0x5   :  { %s20605_s21 = sld [smem:[%s23257_s0 + %s20525_s18]]   ;;  %s20528_s30 = smov 7  }
   0x6   :  { %s20610_s25 = sld [smem:[%s23257_s0 + %s20526_s22]]   ;;  %s20529_s4 = smov 8  }
   0x7   :  { %s20615_s29 = sld [smem:[%s23257_s0 + %s20527_s26]]   ;;  %s20530_s10 = smov 9  }
   0x8   :  { %s20620_s3 = sld [smem:[%s23257_s0 + %s20528_s30]]   ;;  %s20531_s15 = smov 10  }
   0x9   :  { %s20625_s8 = sld [smem:[%s23257_s0 + %s20529_s4]]   ;;  %s20532_s20 = smov 11  }
   0xa   :  { %s20630_s14 = sld [smem:[%s23257_s0 + %s20530_s10]]   ;;  %s20533_s26 = smov 12  }
   0xb   :  { %s20635_s19 = sld [smem:[%s23257_s0 + %s20531_s15]]   ;;  %s20534_s1 = smov 13  }
   0xc   :  { %s20640_s24 = sld [smem:[%s23257_s0 + %s20532_s20]]   ;;  %s20535_s7 = smov 14  }
   0xd   :  { %s20645_s30 = sld [smem:[%s23257_s0 + %s20533_s26]]   ;;  %s20536_s15 = smov 15  }
   0xe   :  { %23276 = sst [smem:[#allocation3_spill]] %s20620_s3  ;;  %s20537_s22 = smov 16  }
   0xf   :  { %s20650_s6 = sld [smem:[%s23257_s0 + %s20534_s1]]   ;;  %s20538_s28 = smov 17  }
  0x10   :  { %s20655_s12 = sld [smem:[%s23257_s0 + %s20535_s7]]   ;;  %s20539_s7 = smov 18  }
  0x11   :  { %s20660_s20 = sld [smem:[%s23257_s0 + %s20536_s15]]   ;;  %s20540_s15 = smov 19  }
  0x12   :  { %s20665_s27 = sld [smem:[%s23257_s0 + %s20537_s22]]   ;;  %s20541_s22 = smov 20  }
  0x13   :  { %23277 = sst [smem:[#allocation4_spill]] %s20645_s30  ;;  %s20571_s10 = smov 50  }
  0x14   :  { %s20670_s4 = sld [smem:[%s23257_s0 + %s20538_s28]]   ;;  %s20542_s28 = smov 21  }
  0x15   :  { %23278 = sst [smem:[#allocation5_spill]] %s20650_s6 }
  0x16   :  { %s20675_s6 = sld [smem:[%s23257_s0 + %s20539_s7]]   ;;  %s20543_s7 = smov 22  }
  0x17   :  { %23279 = sst [smem:[#allocation6_spill]] %s20660_s20 }
  0x18   :  { %s20680_s20 = sld [smem:[%s23257_s0 + %s20540_s15]]   ;;  %s20544_s15 = smov 23  }
  0x19   :  { %s20685_s30 = sld [smem:[%s23257_s0 + %s20541_s22]]   ;;  %s20545_s22 = smov 24  }
  0x1a   :  { %23280 = sst [smem:[#allocation7_spill]] %s20670_s4 }
  0x1b   :  { %s20690_s4 = sld [smem:[%s23257_s0 + %s20542_s28]]   ;;  %s20546_s28 = smov 25  }
  0x1c   :  { %23281 = sst [smem:[#allocation8_spill]] %s20675_s6 }
  0x1d   :  { %s20695_s6 = sld [smem:[%s23257_s0 + %s20543_s7]]   ;;  %s20547_s7 = smov 26  }
  0x1e   :  { %23282 = sst [smem:[#allocation9_spill]] %s20680_s20 }
  0x1f   :  { %23283 = sst [smem:[#allocation10_spill]] %s20685_s30 }
  0x20   :  { %s20700_s20 = sld [smem:[%s23257_s0 + %s20544_s15]]   ;;  %s20548_s15 = smov 27  }
  0x21   :  { %23284 = sst [smem:[#allocation11_spill]] %s20690_s4 }
  0x22   :  { %s20705_s30 = sld [smem:[%s23257_s0 + %s20545_s22]]   ;;  %s20549_s22 = smov 28  }
  0x23   :  { %23285 = sst [smem:[#allocation12_spill]] %s20695_s6 }
  0x24   :  { %s20710_s4 = sld [smem:[%s23257_s0 + %s20546_s28]]   ;;  %s20550_s28 = smov 29  }
  0x25   :  { %s20715_s6 = sld [smem:[%s23257_s0 + %s20547_s7]]   ;;  %s20551_s7 = smov 30  }
  0x26   :  { %23286 = sst [smem:[#allocation13_spill]] %s20700_s20 }
  0x27   :  { %s20720_s20 = sld [smem:[%s23257_s0 + %s20548_s15]]   ;;  %s20552_s15 = smov 31  }
  0x28   :  { %23287 = sst [smem:[#allocation14_spill]] %s20705_s30 }
  0x29   :  { %s20725_s30 = sld [smem:[%s23257_s0 + %s20549_s22]]   ;;  %s20553_s22 = smov 32  }
  0x2a   :  { %23288 = sst [smem:[#allocation15_spill]] %s20710_s4 }
  0x2b   :  { %23289 = sst [smem:[#allocation16_spill]] %s20715_s6 }
  0x2c   :  { %s20730_s4 = sld [smem:[%s23257_s0 + %s20550_s28]]   ;;  %s20554_s28 = smov 33  }
  0x2d   :  { %23290 = sst [smem:[#allocation17_spill]] %s20720_s20 }
  0x2e   :  { %s20735_s6 = sld [smem:[%s23257_s0 + %s20551_s7]]   ;;  %s20555_s7 = smov 34  }
  0x2f   :  { %23291 = sst [smem:[#allocation18_spill]] %s20725_s30 }
  0x30   :  { %s20740_s20 = sld [smem:[%s23257_s0 + %s20552_s15]]   ;;  %s20556_s15 = smov 35  }
  0x31   :  { %s20745_s30 = sld [smem:[%s23257_s0 + %s20553_s22]]   ;;  %s20557_s22 = smov 36  }
  0x32   :  { %23292 = sst [smem:[#allocation19_spill]] %s20730_s4 }
  0x33   :  { %s20750_s4 = sld [smem:[%s23257_s0 + %s20554_s28]]   ;;  %s20558_s28 = smov 37  }
  0x34   :  { %23293 = sst [smem:[#allocation20_spill]] %s20735_s6 }
  0x35   :  { %s20755_s6 = sld [smem:[%s23257_s0 + %s20555_s7]]   ;;  %s20559_s7 = smov 38  }
  0x36   :  { %23294 = sst [smem:[#allocation21_spill]] %s20740_s20 }
  0x37   :  { %23295 = sst [smem:[#allocation22_spill]] %s20745_s30 }
  0x38   :  { %s20760_s20 = sld [smem:[%s23257_s0 + %s20556_s15]]   ;;  %s20560_s15 = smov 39  }
  0x39   :  { %23296 = sst [smem:[#allocation23_spill]] %s20750_s4 }
  0x3a   :  { %s20765_s30 = sld [smem:[%s23257_s0 + %s20557_s22]]   ;;  %s20561_s22 = smov 40  }
  0x3b   :  { %23297 = sst [smem:[#allocation24_spill]] %s20755_s6 }
  0x3c   :  { %s20770_s4 = sld [smem:[%s23257_s0 + %s20558_s28]]   ;;  %s20562_s28 = smov 41  }
  0x3d   :  { %s20775_s6 = sld [smem:[%s23257_s0 + %s20559_s7]]   ;;  %s20563_s7 = smov 42  }
  0x3e   :  { %23298 = sst [smem:[#allocation25_spill]] %s20760_s20 }
  0x3f   :  { %s20780_s20 = sld [smem:[%s23257_s0 + %s20560_s15]]   ;;  %s20564_s15 = smov 43  }
  0x40   :  { %23299 = sst [smem:[#allocation26_spill]] %s20765_s30 }
  0x41   :  { %s20785_s30 = sld [smem:[%s23257_s0 + %s20561_s22]]   ;;  %s20565_s22 = smov 44  }
  0x42   :  { %23300 = sst [smem:[#allocation27_spill]] %s20770_s4 }
  0x43   :  { %23301 = sst [smem:[#allocation28_spill]] %s20775_s6 }
  0x44   :  { %s20790_s4 = sld [smem:[%s23257_s0 + %s20562_s28]]   ;;  %s20566_s28 = smov 45  }
  0x45   :  { %23302 = sst [smem:[#allocation29_spill]] %s20780_s20 }
  0x46   :  { %s20795_s6 = sld [smem:[%s23257_s0 + %s20563_s7]]   ;;  %s20567_s7 = smov 46  }
  0x47   :  { %23303 = sst [smem:[#allocation30_spill]] %s20785_s30 }
  0x48   :  { %s20800_s20 = sld [smem:[%s23257_s0 + %s20564_s15]]   ;;  %s20568_s15 = smov 47  }
  0x49   :  { %s20805_s30 = sld [smem:[%s23257_s0 + %s20565_s22]]   ;;  %s20569_s22 = smov 48  }
  0x4a   :  { %23304 = sst [smem:[#allocation31_spill]] %s20790_s4 }
  0x4b   :  { %s20810_s4 = sld [smem:[%s23257_s0 + %s20566_s28]]   ;;  %s20570_s28 = smov 49  }
  0x4c   :  { %23305 = sst [smem:[#allocation32_spill]] %s20795_s6 }
  0x4d   :  { %s20815_s6 = sld [smem:[%s23257_s0 + %s20567_s7]]  }
  0x4e   :  { %23306 = sst [smem:[#allocation33_spill]] %s20800_s20 }
  0x4f   :  { %23307 = sst [smem:[#allocation34_spill]] %s20805_s30 }
  0x50   :  { %s20820_s20 = sld [smem:[%s23257_s0 + %s20568_s15]]   ;;  %s20835_s15 = smov 0  }
  0x51   :  { %23308 = sst [smem:[#allocation35_spill]] %s20810_s4 }
  0x52   :  { %s20825_s30 = sld [smem:[%s23257_s0 + %s20569_s22]]  }
  0x53   :  { %23309 = sst [smem:[#allocation36_spill]] %s20815_s6 }
  0x54   :  { %s15649_s4 = sld [smem:[%s23257_s0 + %s20570_s28]]  }
  0x55   :  { %s20833_s6 = sld [smem:[%s23257_s0 + %s20571_s10]]  }
  0x5a   :  { %v106_v0 = vstv %s15649_s4 }
  0x5b   :  { %107 = vst [vmem:[#allocation2] sm:$0x1] %v106_v0 }
  0x5c LB: > { %s23310_s3 = sld [smem:[#allocation3_spill]]  ;;  %s15651_s16 = sadd.s32 4294967295, %s20520_s15   ;;  %s20520_s15 = sphi %s20835_s15, %s113_s15  }
  0x5d   : > { %p15655_p0 = scmp.ge.s32.totalorder %s20520_s15, 1  ;;  %p1373_p1 = scmp.lt.s32.totalorder %s20520_s15, 3 }
  0x5f   : > { %p1374_p2 = pnand %p15655_p0, %p1373_p1 }
  0x60   : > { %v1508_v1 = vld [vmem:[%s20595_s13] sm:$0xff] (!%p1374_p2)  ;;  %v1509_v2 = vld [vmem:[%s20595_s13 + $0x8] sm:$0x3] (!%p1374_p2)  ;;  %vm1593_vm0 = vcmask (!%p1374_p2), 1041408   ;;  %v20572_v3 = vmov (!%p1374_p2), 0.0|0.0   ;;  %vm20573_vm1 = vmmov (!%p1374_p2), 1  }
  0x61   : > { %1377 = sbr.rel (%p1374_p2) target bundleno = 8414 (0x20de), region = 220  ;;  %19475 = vmatprep.subr.bf16.mxu1 (!%p1374_p2), %v20572_v3  ;;  %v19476_v4 = vpack.c.bf16 (!%p1374_p2), %v1509_v2, %v1508_v1  ;;  %vm19477_vm2 = vmpackc.low (!%p1374_p2), %vm1593_vm0, %vm20573_vm1  ;;  %v1510_v5 = vld [vmem:[%s20600_s17] sm:$0x3f] (!%p1374_p2)  ;;  %vm1515_vm3 = vcmask (!%p1374_p2), 1045504   ;;  %p1493_p3 = scmp.lt.s32.totalorder (!%p1374_p2), %s15651_s16, 1  ;;  %v20574_v6 = vmov (!%p1374_p2), 0.0  }
  0x62   : > { %17531 = vmatprep.subr.mxu0 (!%p1374_p2), %v20574_v6  ;;  %vm20575_vm4 = vmmov (!%p1374_p2), 0   ;;  %vm1511_vm5 = vcmask (!%p1374_p2), 48128   ;;  %vm1589_vm6 = vcmask (!%p1374_p2), 80896   ;;  %v15663_v9 = vld [vmem:[%s20605_s21] ss:$0 sm:$0xff] (!%p1374_p2)  ;;  %v19544_v19 = vld [vmem:[%s23310_s3 + $0x8] sm:$0xff] (!%p1374_p2)  }
  0x63   : > { %17533 = vmatprep.mubr.msk.f32.mxu0 (!%p1374_p2), %vm20575_vm4, %v20574_v6  ;;  %19478 = vmatpush3.bf16.msk.msra.mxu1 (!%p1374_p2), %vm19477_vm2, %v19476_v4  ;;  %v19542_v17 = vld [vmem:[%s23310_s3] sm:$0xff] (!%p1374_p2)   ;;  %v19545_v20 = vld [vmem:[%s23310_s3 + $0x48] sm:$0xff] (!%p1374_p2)   ;;  %v19546_v21 = vld [vmem:[%s23310_s3 + $0x10] sm:$0xff] (!%p1374_p2)   ;;  %vm4217_vm7 = vcmask (!%p1374_p2), 130048   ;;  %vm4715_vm8 = vcmask (!%p1374_p2), 1043456   ;;  %vm4607_vm10 = vcmask (!%p1374_p2), 64512  }
  0x64   : > { %17532 = vmatpush3.msk.msra.mxu0 (!%p1374_p2), %vm1515_vm3, %v1510_v5  ;;  %17540 = vmatprep.mubr.msk.f32.mxu1 (!%p1374_p2), %vm20575_vm4, %v20574_v6  ;;  %v19543_v18 = vld [vmem:[%s23310_s3 + $0x40] sm:$0xff] (!%p1374_p2)   ;;  %v19547_v22 = vld [vmem:[%s23310_s3 + $0x50] sm:$0xff] (!%p1374_p2)   ;;  %v19548_v27 = vld [vmem:[%s23310_s3 + $0x18] sm:$0xff] (!%p1374_p2)   ;;  %s23313_s22 = sld [smem:[#allocation4_spill]] (!%p1374_p2)  ;;  %s23314_s23 = sld [smem:[#allocation5_spill]] (!%p1374_p2)  ;;  %vm15534_vm11 = vcmask (!%p1374_p2), 7168  }
  0x65   : > { %17543 = vmatprep.subr.bf16.mxu0 (!%p1374_p2), %v20574_v6  ;;  %17563 = vmatprep.subr.bf16.mxu1 (!%p1374_p2), %v20574_v6  ;;  %v19549_v28 = vld [vmem:[%s23310_s3 + $0x58] sm:$0xff] (!%p1374_p2)   ;;  %v19550_v29 = vld [vmem:[%s23310_s3 + $0x20] sm:$0xff] (!%p1374_p2)   ;;  %v19552_v31 = vld [vmem:[%s23310_s3 + $0x28] sm:$0xff] (!%p1374_p2)   ;;  %s23315_s26 = sld [smem:[#allocation6_spill]] (!%p1374_p2)  ;;  %s23316_s28 = sld [smem:[#allocation8_spill]] (!%p1374_p2) }
  0x66   : > { %v19551_v30 = vld [vmem:[%s23310_s3 + $0x60] sm:$0xff] (!%p1374_p2)   ;;  %v19553_v32 = vld [vmem:[%s23310_s3 + $0x68] sm:$0xff] (!%p1374_p2)   ;;  %v19554_v33 = vld [vmem:[%s23310_s3 + $0x30] sm:$0xff] (!%p1374_p2)   ;;  %s23317_s1 = sld [smem:[#allocation7_spill]] (!%p1374_p2)  ;;  %s23318_s2 = sld [smem:[#allocation9_spill]] (!%p1374_p2) }
  0x67   : > { %v19555_v34 = vld [vmem:[%s23310_s3 + $0x70] sm:$0xff] (!%p1374_p2)   ;;  %v19556_v35 = vld [vmem:[%s23310_s3 + $0x38] sm:$0xff] (!%p1374_p2)   ;;  %v15664_v40 = vld [vmem:[%s20610_s25] ss:$0 sm:$0xff] (!%p1374_p2)  ;;  %s23319_s10 = sld [smem:[#allocation12_spill]] (!%p1374_p2)  ;;  %s23320_s7 = sld [smem:[#allocation10_spill]] (!%p1374_p2) }
  0x68   : > { %s23347_s16 = smov (!%p1493_p3, %s15651_s16), 1  ;;  %v19557_v36 = vld [vmem:[%s23310_s3 + $0x78] sm:$0xff]   ;;  %v15665_v42 = vld [vmem:[%s20615_s29] ss:$0 sm:$0xff]  ;;  %v19560_v49 = vld [vmem:[%s23310_s3 + $0x88] sm:$0xff]   ;;  %s23321_s11 = sld [smem:[#allocation11_spill]] }
  0x69   : > { %s20852_s0 = sshll.u32 %s23347_s16, 3  ;;  %v19558_v45 = vld [vmem:[%s23310_s3 + $0x80] sm:$0xff]   ;;  %v19561_v50 = vld [vmem:[%s23310_s3 + $0xc8] sm:$0xff]   ;;  %v19562_v51 = vld [vmem:[%s23310_s3 + $0x90] sm:$0xff]   ;;  %s23322_s16 = sld [smem:[#allocation13_spill]] }
  0x6a   : > { %s1500_s4 = scalar_lea.vmem %s20590_s9, %s20852_s0  ;;  %s1496_s18 = scalar_lea.vmem %s20585_s5, %s20852_s0  ;;  %v19559_v46 = vld [vmem:[%s23310_s3 + $0xc0] sm:$0xff]   ;;  %v19563_v52 = vld [vmem:[%s23310_s3 + $0xd0] sm:$0xff]   ;;  %v19564_v53 = vld [vmem:[%s23310_s3 + $0x98] sm:$0xff]  }
  0x6b   : > { %v1507_v7 = vld [vmem:[%s1500_s4] sm:$0xff]  ;;  %v19565_v54 = vld [vmem:[%s23310_s3 + $0xd8] sm:$0xff]   ;;  %v19568_v57 = vld [vmem:[%s23310_s3 + $0xa8] sm:$0xff]   ;;  %s23323_s4 = sld [smem:[#allocation14_spill]] }
  0x6c   : > { %v1506_v8 = vld [vmem:[%s1496_s18] sm:$0xff]  ;;  %17534 = vmatmul.mubr.msk.f32.vlgmr.msra.gmra.mrb[0].mxu0 %vm1511_vm5, %v1507_v7  ;;  %v19569_v58 = vld [vmem:[%s23310_s3 + $0xe8] sm:$0xff]   ;;  %v19570_v59 = vld [vmem:[%s23310_s3 + $0xb0] sm:$0xff]   ;;  %s23324_s18 = sld [smem:[#allocation15_spill]] }
  0x6d   : > { %17541 = vmatmul.mubr.msk.f32.vlgmr.msra.gmra.mrb[0].mxu1 %vm1589_vm6, %v1506_v8  ;;  %17559 = vmatprep.mubr.msk.bf16.mxu0 %vm20575_vm4, %v20574_v6  ;;  %v19566_v55 = vld [vmem:[%s23310_s3 + $0xa0] sm:$0xff]   ;;  %v19571_v60 = vld [vmem:[%s23310_s3 + $0xf0] sm:$0xff]   ;;  %v19572_v61 = vld [vmem:[%s23310_s3 + $0xb8] sm:$0xff]  }
  0x6e   : > { %17579 = vmatprep.mubr.msk.bf16.mxu1 %vm20575_vm4, %v20574_v6  ;;  %17544 = vmatpush3.bf16.msra.mxu0 %v19542_v17  ;;  %v19567_v56 = vld [vmem:[%s23310_s3 + $0xe0] sm:$0xff]   ;;  %v19573_v62 = vld [vmem:[%s23310_s3 + $0xf8] sm:$0xff]   ;;  %v19576_v1 = vld [vmem:[%s23310_s3 + $0x108] sm:$0xff]  }
  0x6f   : > { %17564 = vmatpush3.bf16.msra.mxu1 %v19543_v18  ;;  %17545 = vmatprep.subr.bf16.mxu0 %v20574_v6  ;;  %v19574_v63 = vld [vmem:[%s23310_s3 + $0x100] sm:$0xff]   ;;  %v19577_v2 = vld [vmem:[%s23310_s3 + $0x148] sm:$0xff]   ;;  %v19578_v3 = vld [vmem:[%s23310_s3 + $0x110] sm:$0xff]  }
  0x70   : > { %17565 = vmatprep.subr.bf16.mxu1 %v20574_v6  ;;  %v19575_v0 = vld [vmem:[%s23310_s3 + $0x140] sm:$0xff]   ;;  %v19579_v4 = vld [vmem:[%s23310_s3 + $0x150] sm:$0xff]   ;;  %v19580_v5 = vld [vmem:[%s23310_s3 + $0x118] sm:$0xff]  }
  0x71   : > { %v19581_v7 = vld [vmem:[%s23310_s3 + $0x158] sm:$0xff]   ;;  %v19582_v8 = vld [vmem:[%s23310_s3 + $0x120] sm:$0xff]  }
  0x72   : > { %17546 = vmatpush3.bf16.msra.mxu0 %v19544_v19  ;;  %v19590_v17 = vld [vmem:[%s23310_s3 + $0x180] sm:$0xff]   ;;  %v19592_v19 = vld [vmem:[%s23310_s3 + $0x188] sm:$0xff]  }
  0x73   : > { %17566 = vmatpush3.bf16.msra.mxu1 %v19545_v20  ;;  %17547 = vmatprep.subr.bf16.mxu0 %v20574_v6  ;;  %v19591_v18 = vld [vmem:[%s23310_s3 + $0x1c0] sm:$0xff]   ;;  %v19593_v20 = vld [vmem:[%s23310_s3 + $0x1c8] sm:$0xff]  }
  0x74   : > { %17567 = vmatprep.subr.bf16.mxu1 %v20574_v6 }
  0x76   : > { %17548 = vmatpush3.bf16.msra.mxu0 %v19546_v21  ;;  %v19594_v21 = vld [vmem:[%s23310_s3 + $0x190] sm:$0xff]  }
  0x77   : > { %17568 = vmatpush3.bf16.msra.mxu1 %v19547_v22  ;;  %17549 = vmatprep.subr.bf16.mxu0 %v20574_v6  ;;  %v19595_v22 = vld [vmem:[%s23310_s3 + $0x1d0] sm:$0xff]  }
  0x78   : > { %17569 = vmatprep.subr.bf16.mxu1 %v20574_v6 }
  0x7a   : > { %17550 = vmatpush3.bf16.msra.mxu0 %v19548_v27  ;;  %v19600_v27 = vld [vmem:[%s23310_s3 + $0x1a8] sm:$0xff]  }
  0x7b   : > { %17570 = vmatpush3.bf16.msra.mxu1 %v19549_v28  ;;  %17551 = vmatprep.subr.bf16.mxu0 %v20574_v6  ;;  %v19601_v28 = vld [vmem:[%s23310_s3 + $0x1e8] sm:$0xff]  }
  0x7c   : > { %17571 = vmatprep.subr.bf16.mxu1 %v20574_v6 }
  0x7e   : > { %17552 = vmatpush3.bf16.msra.mxu0 %v19550_v29  ;;  %v19602_v29 = vld [vmem:[%s23310_s3 + $0x1b0] sm:$0xff]  }
  0x7f   : > { %17572 = vmatpush3.bf16.msra.mxu1 %v19551_v30  ;;  %17553 = vmatprep.subr.bf16.mxu0 %v20574_v6  ;;  %v19603_v30 = vld [vmem:[%s23310_s3 + $0x1f0] sm:$0xff]  }
  0x80   : > { %17573 = vmatprep.subr.bf16.mxu1 %v20574_v6 }
  0x82   : > { %17554 = vmatpush3.bf16.msra.mxu0 %v19552_v31  ;;  %v19604_v31 = vld [vmem:[%s23310_s3 + $0x1b8] sm:$0xff]  }
  0x83   : > { %17574 = vmatpush3.bf16.msra.mxu1 %v19553_v32  ;;  %17555 = vmatprep.subr.bf16.mxu0 %v20574_v6  ;;  %v19605_v32 = vld [vmem:[%s23310_s3 + $0x1f8] sm:$0xff]  }
  0x84   : > { %17575 = vmatprep.subr.bf16.mxu1 %v20574_v6 }
  0x86   : > { %17556 = vmatpush3.bf16.msra.mxu0 %v19554_v33  ;;  %v19606_v33 = vld [vmem:[%s20625_s8] sm:$0xff]  }
  0x87   : > { %17576 = vmatpush3.bf16.msra.mxu1 %v19555_v34  ;;  %17557 = vmatprep.subr.bf16.mxu0 %v20574_v6  ;;  %v19607_v34 = vld [vmem:[%s20625_s8 + $0x40] sm:$0xff]  }
  0x88   : > { %17577 = vmatprep.subr.bf16.mxu1 %v20574_v6 }
  0x8a   : > { %17558 = vmatpush3.bf16.msra.mxu0 %v19556_v35  ;;  %v19608_v35 = vld [vmem:[%s20625_s8 + $0x8] sm:$0xff]  }
  0x8b   : > { %17578 = vmatpush3.bf16.msra.mxu1 %v19557_v36  ;;  %17583 = vmatprep.subr.bf16.mxu0 %v20574_v6  ;;  %v19609_v36 = vld [vmem:[%s20625_s8 + $0x48] sm:$0xff]  }
  0x8c   : > { %17603 = vmatprep.subr.bf16.mxu1 %v20574_v6 }
 0x13f   : > { %v1585_v10 = vpop.f32.mrb[0].mxu0 }
 0x140   : > { %v1663_v11 = vpop.f32.mrb[0].mxu1  ;;  %v17535_v13 = vpop.f32.mrb[1].mxu0 }
 0x141   : > { %v1664_v12 = vadd.f32 %v1663_v11, %v1585_v10  ;;  %v17542_v14 = vpop.f32.mrb[1].mxu1  ;;  %v19584_v10 = vld [vmem:[%s23310_s3 + $0x128] sm:$0xff]   ;;  %v19587_v13 = vld [vmem:[%s23310_s3 + $0x170] sm:$0xff]  }
 0x142   : > { %v19585_v11 = vld [vmem:[%s23310_s3 + $0x168] sm:$0xff]   ;;  %v19588_v14 = vld [vmem:[%s23310_s3 + $0x138] sm:$0xff]  }
 0x143   : > { %v1674_v15 = vadd.f32 %v15663_v9, %v1664_v12  ;;  %v19583_v9 = vld [vmem:[%s23310_s3 + $0x160] sm:$0xff]   ;;  %v19586_v12 = vld [vmem:[%s23310_s3 + $0x130] sm:$0xff]  }
 0x145   : > { %v20864_v16 = vmax.f32 %v1674_v15, 0.0  ;;  %v19589_v15 = vld [vmem:[%s23310_s3 + $0x178] sm:$0xff]  }
 0x147   : > { %1678 = vadd.xlane.f32.xlu0 %v20864_v16 }
 0x1d4   : > { %v1679_v23 = vpop.xlane.xlu0 %1678 }
 0x1d5   : > { %v1681_v24 = vmul.f32 0.0078125, %v1679_v23  ;;  %v19596_v23 = vld [vmem:[%s23310_s3 + $0x198] sm:$0xff]  }
 0x1d7   : > { %v1682_v25 = vsub.f32 %v20864_v16, %v1681_v24  ;;  %v19597_v24 = vld [vmem:[%s23310_s3 + $0x1d8] sm:$0xff]  }
 0x1d9   : > { %v1683_v26 = vmul.f32 %v1682_v25, %v1682_v25 }
 0x1db   : > { %1684 = vadd.xlane.f32.xlu0 %v1683_v26  ;;  %v19599_v26 = vld [vmem:[%s23310_s3 + $0x1e0] sm:$0xff]  }
 0x268   : > { %v1685_v37 = vpop.xlane.xlu0 %1684 }
 0x269   : > { %v1686_v38 = vmul.f32 0.0078125, %v1685_v37  ;;  %v19610_v37 = vld [vmem:[%s20625_s8 + $0x10] sm:$0xff]  }
 0x26b   : > { %v1687_v39 = vadd.f32 1e-05, %v1686_v38  ;;  %v19611_v38 = vld [vmem:[%s20625_s8 + $0x50] sm:$0xff]  }
 0x26d   : > { %20406 = vrsqrt.f32 %v1687_v39  ;;  %v19612_v39 = vld [vmem:[%s20625_s8 + $0x18] sm:$0xff]  }
 0x277   : > { %v20407_v41 = vpop.eup %20406 }
 0x278   : > { %v1689_v43 = vmul.f32 %v20407_v41, %v1682_v25  ;;  %v19598_v25 = vld [vmem:[%s23310_s3 + $0x1a0] sm:$0xff]   ;;  %s23343_s3 = sld [smem:[#allocation32_spill]] }
 0x279   : > { %v19614_v41 = vld [vmem:[%s20625_s8 + $0x20] sm:$0xff]  }
 0x27a   : > { %v1696_v44 = vmul.f32 %v15664_v40, %v1689_v43  ;;  %v19613_v40 = vld [vmem:[%s20625_s8 + $0x58] sm:$0xff]   ;;  %v19616_v43 = vld [vmem:[%s20625_s8 + $0x28] sm:$0xff]  }
 0x27c   : > { %v1703_v47 = vadd.f32 %v15665_v42, %v1696_v44  ;;  %v19615_v42 = vld [vmem:[%s20625_s8 + $0x60] sm:$0xff]   ;;  %v19617_v44 = vld [vmem:[%s20625_s8 + $0x68] sm:$0xff]  }
 0x27e   : > { %v20904_v48 = vpack.c.bf16 %v1703_v47, %v1703_v47  ;;  %v19620_v47 = vld [vmem:[%s20625_s8 + $0x38] sm:$0xff]  }
 0x280   : > { %17560 = vmatmul.mubr.bf16.vlgmr.msra.gmra.mrb[4].mxu0 %v20904_v48  ;;  %17580 = vmatmul.mubr.bf16.vlgmr.msra.gmra.mrb[4].mxu1 %v20904_v48 }
 0x281   : > { %17584 = vmatpush3.bf16.msra.mxu0 %v19558_v45  ;;  %17604 = vmatpush3.bf16.msra.mxu1 %v19559_v46  ;;  %v19618_v45 = vld [vmem:[%s20625_s8 + $0x30] sm:$0xff]  }
 0x282   : > { %17585 = vmatprep.subr.bf16.mxu0 %v20574_v6  ;;  %17605 = vmatprep.subr.bf16.mxu1 %v20574_v6  ;;  %v19619_v46 = vld [vmem:[%s20625_s8 + $0x70] sm:$0xff]  }
 0x283   : > { %17599 = vmatprep.mubr.msk.bf16.mxu0 %vm20575_vm4, %v20574_v6  ;;  %17619 = vmatprep.mubr.msk.bf16.mxu1 %vm20575_vm4, %v20574_v6 }
 0x285   : > { %17586 = vmatpush3.bf16.msra.mxu0 %v19560_v49  ;;  %17606 = vmatpush3.bf16.msra.mxu1 %v19561_v50  ;;  %v19621_v49 = vld [vmem:[%s20625_s8 + $0x78] sm:$0xff]   ;;  %v19622_v50 = vld [vmem:[%s20625_s8 + $0x80] sm:$0xff]  }
 0x286   : > { %17587 = vmatprep.subr.bf16.mxu0 %v20574_v6  ;;  %17607 = vmatprep.subr.bf16.mxu1 %v20574_v6 }
 0x289   : > { %17588 = vmatpush3.bf16.msra.mxu0 %v19562_v51  ;;  %17608 = vmatpush3.bf16.msra.mxu1 %v19563_v52  ;;  %v19623_v51 = vld [vmem:[%s20625_s8 + $0xc0] sm:$0xff]   ;;  %v19624_v52 = vld [vmem:[%s20625_s8 + $0x88] sm:$0xff]  }
 0x28a   : > { %17589 = vmatprep.subr.bf16.mxu0 %v20574_v6  ;;  %17609 = vmatprep.subr.bf16.mxu1 %v20574_v6 }
 0x28d   : > { %17590 = vmatpush3.bf16.msra.mxu0 %v19564_v53  ;;  %17610 = vmatpush3.bf16.msra.mxu1 %v19565_v54  ;;  %v19625_v53 = vld [vmem:[%s20625_s8 + $0xc8] sm:$0xff]   ;;  %v19626_v54 = vld [vmem:[%s20625_s8 + $0x90] sm:$0xff]  }
 0x28e   : > { %17591 = vmatprep.subr.bf16.mxu0 %v20574_v6  ;;  %17611 = vmatprep.subr.bf16.mxu1 %v20574_v6 }
 0x291   : > { %17592 = vmatpush3.bf16.msra.mxu0 %v19566_v55  ;;  %17612 = vmatpush3.bf16.msra.mxu1 %v19567_v56  ;;  %v19627_v55 = vld [vmem:[%s20625_s8 + $0xd0] sm:$0xff]   ;;  %v19628_v56 = vld [vmem:[%s20625_s8 + $0x98] sm:$0xff]  }
 0x292   : > { %17593 = vmatprep.subr.bf16.mxu0 %v20574_v6  ;;  %17613 = vmatprep.subr.bf16.mxu1 %v20574_v6 }
 0x295   : > { %17594 = vmatpush3.bf16.msra.mxu0 %v19568_v57  ;;  %17614 = vmatpush3.bf16.msra.mxu1 %v19569_v58  ;;  %v19629_v57 = vld [vmem:[%s20625_s8 + $0xd8] sm:$0xff]   ;;  %v19630_v58 = vld [vmem:[%s20625_s8 + $0xa0] sm:$0xff]  }
 0x296   : > { %17595 = vmatprep.subr.bf16.mxu0 %v20574_v6  ;;  %17615 = vmatprep.subr.bf16.mxu1 %v20574_v6 }
 0x299   : > { %17596 = vmatpush3.bf16.msra.mxu0 %v19570_v59  ;;  %17616 = vmatpush3.bf16.msra.mxu1 %v19571_v60  ;;  %v19631_v59 = vld [vmem:[%s20625_s8 + $0xe0] sm:$0xff]   ;;  %v19632_v60 = vld [vmem:[%s20625_s8 + $0xa8] sm:$0xff]  }
 0x29a   : > { %17597 = vmatprep.subr.bf16.mxu0 %v20574_v6  ;;  %17617 = vmatprep.subr.bf16.mxu1 %v20574_v6 }
 0x29d   : > { %17598 = vmatpush3.bf16.msra.mxu0 %v19572_v61  ;;  %17618 = vmatpush3.bf16.msra.mxu1 %v19573_v62  ;;  %v19633_v61 = vld [vmem:[%s20625_s8 + $0xe8] sm:$0xff]   ;;  %v19634_v62 = vld [vmem:[%s20625_s8 + $0xb0] sm:$0xff]  }
 0x29e   : > { %17623 = vmatprep.subr.bf16.mxu0 %v20574_v6  ;;  %17643 = vmatprep.subr.bf16.mxu1 %v20574_v6 }
 0x2a0   : > { %17600 = vmatmul.mubr.bf16.vlgmr.msra.gmra.mrb[8].mxu0 %v20904_v48  ;;  %17620 = vmatmul.mubr.bf16.vlgmr.msra.gmra.mrb[8].mxu1 %v20904_v48 }
 0x2a1   : > { %17624 = vmatpush3.bf16.msra.mxu0 %v19574_v63  ;;  %17644 = vmatpush3.bf16.msra.mxu1 %v19575_v0  ;;  %v19635_v63 = vld [vmem:[%s20625_s8 + $0xf0] sm:$0xff]   ;;  %v19636_v0 = vld [vmem:[%s20625_s8 + $0xb8] sm:$0xff]  }
 0x2a2   : > { %17625 = vmatprep.subr.bf16.mxu0 %v20574_v6  ;;  %17645 = vmatprep.subr.bf16.mxu1 %v20574_v6 }
 0x2a3   : > { %17639 = vmatprep.mubr.msk.bf16.mxu0 %vm20575_vm4, %v20574_v6  ;;  %17659 = vmatprep.mubr.msk.bf16.mxu1 %vm20575_vm4, %v20574_v6 }
 0x2a5   : > { %17626 = vmatpush3.bf16.msra.mxu0 %v19576_v1  ;;  %17646 = vmatpush3.bf16.msra.mxu1 %v19577_v2  ;;  %v19637_v1 = vld [vmem:[%s20625_s8 + $0xf8] sm:$0xff]   ;;  %v19638_v2 = vld [vmem:[%s20625_s8 + $0x100] sm:$0xff]  }
 0x2a6   : > { %17627 = vmatprep.subr.bf16.mxu0 %v20574_v6  ;;  %17647 = vmatprep.subr.bf16.mxu1 %v20574_v6 }
 0x2a9   : > { %17628 = vmatpush3.bf16.msra.mxu0 %v19578_v3  ;;  %17648 = vmatpush3.bf16.msra.mxu1 %v19579_v4  ;;  %v19639_v3 = vld [vmem:[%s20625_s8 + $0x140] sm:$0xff]   ;;  %v19640_v4 = vld [vmem:[%s20625_s8 + $0x108] sm:$0xff]  }
 0x2aa   : > { %17629 = vmatprep.subr.bf16.mxu0 %v20574_v6  ;;  %17649 = vmatprep.subr.bf16.mxu1 %v20574_v6 }
 0x2ad   : > { %17630 = vmatpush3.bf16.msra.mxu0 %v19580_v5  ;;  %17650 = vmatpush3.bf16.msra.mxu1 %v19581_v7  ;;  %v19641_v5 = vld [vmem:[%s20625_s8 + $0x148] sm:$0xff]   ;;  %v19642_v7 = vld [vmem:[%s20625_s8 + $0x110] sm:$0xff]  }
 0x2ae   : > { %17631 = vmatprep.subr.bf16.mxu0 %v20574_v6  ;;  %17651 = vmatprep.subr.bf16.mxu1 %v20574_v6 }
 0x2b1   : > { %17632 = vmatpush3.bf16.msra.mxu0 %v19582_v8  ;;  %17652 = vmatpush3.bf16.msra.mxu1 %v19583_v9  ;;  %v19643_v8 = vld [vmem:[%s20625_s8 + $0x150] sm:$0xff]   ;;  %v19644_v9 = vld [vmem:[%s20625_s8 + $0x118] sm:$0xff]  }
 0x2b2   : > { %17633 = vmatprep.subr.bf16.mxu0 %v20574_v6  ;;  %17653 = vmatprep.subr.bf16.mxu1 %v20574_v6 }
 0x2b5   : > { %17634 = vmatpush3.bf16.msra.mxu0 %v19584_v10  ;;  %17654 = vmatpush3.bf16.msra.mxu1 %v19585_v11  ;;  %v19645_v10 = vld [vmem:[%s20625_s8 + $0x158] sm:$0xff]   ;;  %v19646_v11 = vld [vmem:[%s20625_s8 + $0x120] sm:$0xff]  }
 0x2b6   : > { %17635 = vmatprep.subr.bf16.mxu0 %v20574_v6  ;;  %17655 = vmatprep.subr.bf16.mxu1 %v20574_v6 }
 0x2b9   : > { %17636 = vmatpush3.bf16.msra.mxu0 %v19586_v12  ;;  %17656 = vmatpush3.bf16.msra.mxu1 %v19587_v13  ;;  %v19647_v12 = vld [vmem:[%s20625_s8 + $0x160] sm:$0xff]   ;;  %v19648_v13 = vld [vmem:[%s20625_s8 + $0x128] sm:$0xff]  }
 0x2ba   : > { %17637 = vmatprep.subr.bf16.mxu0 %v20574_v6  ;;  %17657 = vmatprep.subr.bf16.mxu1 %v20574_v6 }
 0x2bd   : > { %17638 = vmatpush3.bf16.msra.mxu0 %v19588_v14  ;;  %17658 = vmatpush3.bf16.msra.mxu1 %v19589_v15  ;;  %v19649_v14 = vld [vmem:[%s20625_s8 + $0x168] sm:$0xff]   ;;  %v19650_v15 = vld [vmem:[%s20625_s8 + $0x130] sm:$0xff]  }
 0x2be   : > { %17663 = vmatprep.subr.bf16.mxu0 %v20574_v6  ;;  %17683 = vmatprep.subr.bf16.mxu1 %v20574_v6 }
 0x2c0   : > { %17640 = vmatmul.mubr.bf16.vlgmr.msra.gmra.mrb[12].mxu0 %v20904_v48  ;;  %17660 = vmatmul.mubr.bf16.vlgmr.msra.gmra.mrb[12].mxu1 %v20904_v48 }
 0x2c1   : > { %17664 = vmatpush3.bf16.msra.mxu0 %v19590_v17  ;;  %17684 = vmatpush3.bf16.msra.mxu1 %v19591_v18  ;;  %v19651_v17 = vld [vmem:[%s20625_s8 + $0x170] sm:$0xff]   ;;  %v19652_v18 = vld [vmem:[%s20625_s8 + $0x138] sm:$0xff]  }
 0x2c2   : > { %17665 = vmatprep.subr.bf16.mxu0 %v20574_v6  ;;  %17685 = vmatprep.subr.bf16.mxu1 %v20574_v6 }
 0x2c3   : > { %17679 = vmatprep.mubr.msk.bf16.mxu0 %vm20575_vm4, %v20574_v6  ;;  %17699 = vmatprep.mubr.msk.bf16.mxu1 %vm20575_vm4, %v20574_v6 }
 0x2c5   : > { %17666 = vmatpush3.bf16.msra.mxu0 %v19592_v19  ;;  %17686 = vmatpush3.bf16.msra.mxu1 %v19593_v20  ;;  %v19653_v19 = vld [vmem:[%s20625_s8 + $0x178] sm:$0xff]   ;;  %v19654_v20 = vld [vmem:[%s20625_s8 + $0x180] sm:$0xff]  }
 0x2c6   : > { %17667 = vmatprep.subr.bf16.mxu0 %v20574_v6  ;;  %17687 = vmatprep.subr.bf16.mxu1 %v20574_v6 }
 0x2c9   : > { %17668 = vmatpush3.bf16.msra.mxu0 %v19594_v21  ;;  %17688 = vmatpush3.bf16.msra.mxu1 %v19595_v22  ;;  %v19655_v21 = vld [vmem:[%s20625_s8 + $0x1c0] sm:$0xff]   ;;  %v19656_v22 = vld [vmem:[%s20625_s8 + $0x188] sm:$0xff]  }
 0x2ca   : > { %17669 = vmatprep.subr.bf16.mxu0 %v20574_v6  ;;  %17689 = vmatprep.subr.bf16.mxu1 %v20574_v6 }
 0x2cd   : > { %17670 = vmatpush3.bf16.msra.mxu0 %v19596_v23  ;;  %17690 = vmatpush3.bf16.msra.mxu1 %v19597_v24  ;;  %v19657_v23 = vld [vmem:[%s20625_s8 + $0x1c8] sm:$0xff]   ;;  %v19658_v24 = vld [vmem:[%s20625_s8 + $0x190] sm:$0xff]  }
 0x2ce   : > { %17671 = vmatprep.subr.bf16.mxu0 %v20574_v6  ;;  %17691 = vmatprep.subr.bf16.mxu1 %v20574_v6 }
 0x2d1   : > { %17672 = vmatpush3.bf16.msra.mxu0 %v19598_v25  ;;  %17692 = vmatpush3.bf16.msra.mxu1 %v19599_v26  ;;  %v19659_v25 = vld [vmem:[%s20625_s8 + $0x1d0] sm:$0xff]   ;;  %v19660_v26 = vld [vmem:[%s20625_s8 + $0x198] sm:$0xff]  }
 0x2d2   : > { %17673 = vmatprep.subr.bf16.mxu0 %v20574_v6  ;;  %17693 = vmatprep.subr.bf16.mxu1 %v20574_v6 }
 0x2d5   : > { %17674 = vmatpush3.bf16.msra.mxu0 %v19600_v27  ;;  %17694 = vmatpush3.bf16.msra.mxu1 %v19601_v28  ;;  %v19661_v27 = vld [vmem:[%s20625_s8 + $0x1d8] sm:$0xff]   ;;  %v19662_v28 = vld [vmem:[%s20625_s8 + $0x1a0] sm:$0xff]  }
 0x2d6   : > { %17675 = vmatprep.subr.bf16.mxu0 %v20574_v6  ;;  %17695 = vmatprep.subr.bf16.mxu1 %v20574_v6 }
 0x2d9   : > { %17676 = vmatpush3.bf16.msra.mxu0 %v19602_v29  ;;  %17696 = vmatpush3.bf16.msra.mxu1 %v19603_v30  ;;  %v19663_v29 = vld [vmem:[%s20625_s8 + $0x1e0] sm:$0xff]   ;;  %v19664_v30 = vld [vmem:[%s20625_s8 + $0x1a8] sm:$0xff]  }
 0x2da   : > { %17677 = vmatprep.subr.bf16.mxu0 %v20574_v6  ;;  %17697 = vmatprep.subr.bf16.mxu1 %v20574_v6 }
 0x2dd   : > { %17678 = vmatpush3.bf16.msra.mxu0 %v19604_v31  ;;  %17698 = vmatpush3.bf16.msra.mxu1 %v19605_v32  ;;  %v19665_v31 = vld [vmem:[%s20625_s8 + $0x1e8] sm:$0xff]  }
 0x2de   : > { %17703 = vmatprep.subr.bf16.mxu0 %v20574_v6  ;;  %17723 = vmatprep.subr.bf16.mxu1 %v20574_v6 }
 0x2e0   : > { %17680 = vmatmul.mubr.bf16.vlgmr.msra.gmra.mrb[16].mxu0 %v20904_v48  ;;  %17700 = vmatmul.mubr.bf16.vlgmr.msra.gmra.mrb[16].mxu1 %v20904_v48 }
 0x2e1   : > { %17704 = vmatpush3.bf16.msra.mxu0 %v19606_v33  ;;  %17724 = vmatpush3.bf16.msra.mxu1 %v19607_v34 }
 0x2e2   : > { %17705 = vmatprep.subr.bf16.mxu0 %v20574_v6  ;;  %17725 = vmatprep.subr.bf16.mxu1 %v20574_v6 }
 0x2e3   : > { %17719 = vmatprep.mubr.msk.bf16.mxu0 %vm20575_vm4, %v20574_v6  ;;  %17739 = vmatprep.mubr.msk.bf16.mxu1 %vm20575_vm4, %v20574_v6 }
 0x2e5   : > { %17706 = vmatpush3.bf16.msra.mxu0 %v19608_v35  ;;  %17726 = vmatpush3.bf16.msra.mxu1 %v19609_v36 }
 0x2e6   : > { %17707 = vmatprep.subr.bf16.mxu0 %v20574_v6  ;;  %17727 = vmatprep.subr.bf16.mxu1 %v20574_v6 }
 0x2e9   : > { %17708 = vmatpush3.bf16.msra.mxu0 %v19610_v37  ;;  %17728 = vmatpush3.bf16.msra.mxu1 %v19611_v38  ;;  %v19666_v38 = vld [vmem:[%s20625_s8 + $0x1b0] sm:$0xff]  }
 0x2ea   : > { %17709 = vmatprep.subr.bf16.mxu0 %v20574_v6  ;;  %17729 = vmatprep.subr.bf16.mxu1 %v20574_v6 }
 0x2ed   : > { %17710 = vmatpush3.bf16.msra.mxu0 %v19612_v39  ;;  %17730 = vmatpush3.bf16.msra.mxu1 %v19613_v40  ;;  %v19667_v39 = vld [vmem:[%s20625_s8 + $0x1f0] sm:$0xff]  }
 0x2ee   : > { %17711 = vmatprep.subr.bf16.mxu0 %v20574_v6  ;;  %17731 = vmatprep.subr.bf16.mxu1 %v20574_v6 }
 0x2f1   : > { %17712 = vmatpush3.bf16.msra.mxu0 %v19614_v41  ;;  %17732 = vmatpush3.bf16.msra.mxu1 %v19615_v42  ;;  %v19668_v42 = vld [vmem:[%s20625_s8 + $0x1b8] sm:$0xff]  }
 0x2f2   : > { %17713 = vmatprep.subr.bf16.mxu0 %v20574_v6  ;;  %17733 = vmatprep.subr.bf16.mxu1 %v20574_v6 }
 0x2f5   : > { %17714 = vmatpush3.bf16.msra.mxu0 %v19616_v43  ;;  %17734 = vmatpush3.bf16.msra.mxu1 %v19617_v44  ;;  %v19669_v43 = vld [vmem:[%s20625_s8 + $0x1f8] sm:$0xff]   ;;  %v19670_v44 = vld [vmem:[%s20630_s14] sm:$0xff]  }
 0x2f6   : > { %17715 = vmatprep.subr.bf16.mxu0 %v20574_v6  ;;  %17735 = vmatprep.subr.bf16.mxu1 %v20574_v6 }
 0x2f9   : > { %17716 = vmatpush3.bf16.msra.mxu0 %v19618_v45  ;;  %17736 = vmatpush3.bf16.msra.mxu1 %v19619_v46  ;;  %v19671_v45 = vld [vmem:[%s20630_s14 + $0x40] sm:$0xff]   ;;  %v19672_v46 = vld [vmem:[%s20630_s14 + $0x8] sm:$0xff]  }
 0x2fa   : > { %17717 = vmatprep.subr.bf16.mxu0 %v20574_v6  ;;  %17737 = vmatprep.subr.bf16.mxu1 %v20574_v6 }
 0x2fd   : > { %17718 = vmatpush3.bf16.msra.mxu0 %v19620_v47  ;;  %17738 = vmatpush3.bf16.msra.mxu1 %v19621_v49  ;;  %v19673_v47 = vld [vmem:[%s20630_s14 + $0x48] sm:$0xff]   ;;  %v19674_v49 = vld [vmem:[%s20630_s14 + $0x10] sm:$0xff]  }
 0x2fe   : > { %17743 = vmatprep.subr.bf16.mxu0 %v20574_v6  ;;  %17763 = vmatprep.subr.bf16.mxu1 %v20574_v6 }
 0x300   : > { %17720 = vmatmul.mubr.bf16.vlgmr.msra.gmra.mrb[20].mxu0 %v20904_v48  ;;  %17740 = vmatmul.mubr.bf16.vlgmr.msra.gmra.mrb[20].mxu1 %v20904_v48 }
 0x301   : > { %17744 = vmatpush3.bf16.msra.mxu0 %v19622_v50  ;;  %17764 = vmatpush3.bf16.msra.mxu1 %v19623_v51  ;;  %v19675_v50 = vld [vmem:[%s20630_s14 + $0x50] sm:$0xff]   ;;  %v19676_v51 = vld [vmem:[%s20630_s14 + $0x18] sm:$0xff]  }
 0x302   : > { %17745 = vmatprep.subr.bf16.mxu0 %v20574_v6  ;;  %17765 = vmatprep.subr.bf16.mxu1 %v20574_v6 }
 0x303   : > { %17759 = vmatprep.mubr.msk.bf16.mxu0 %vm20575_vm4, %v20574_v6  ;;  %17779 = vmatprep.mubr.msk.bf16.mxu1 %vm20575_vm4, %v20574_v6 }
 0x305   : > { %17746 = vmatpush3.bf16.msra.mxu0 %v19624_v52  ;;  %17766 = vmatpush3.bf16.msra.mxu1 %v19625_v53  ;;  %v19677_v52 = vld [vmem:[%s20630_s14 + $0x58] sm:$0xff]   ;;  %v19678_v53 = vld [vmem:[%s20630_s14 + $0x20] sm:$0xff]  }
 0x306   : > { %17747 = vmatprep.subr.bf16.mxu0 %v20574_v6  ;;  %17767 = vmatprep.subr.bf16.mxu1 %v20574_v6 }
 0x309   : > { %17748 = vmatpush3.bf16.msra.mxu0 %v19626_v54  ;;  %17768 = vmatpush3.bf16.msra.mxu1 %v19627_v55  ;;  %v19679_v54 = vld [vmem:[%s20630_s14 + $0x60] sm:$0xff]   ;;  %v19680_v55 = vld [vmem:[%s20630_s14 + $0x28] sm:$0xff]  }
 0x30a   : > { %17749 = vmatprep.subr.bf16.mxu0 %v20574_v6  ;;  %17769 = vmatprep.subr.bf16.mxu1 %v20574_v6 }
 0x30d   : > { %17750 = vmatpush3.bf16.msra.mxu0 %v19628_v56  ;;  %17770 = vmatpush3.bf16.msra.mxu1 %v19629_v57  ;;  %v19681_v56 = vld [vmem:[%s20630_s14 + $0x68] sm:$0xff]  }
 0x30e   : > { %17751 = vmatprep.subr.bf16.mxu0 %v20574_v6  ;;  %17771 = vmatprep.subr.bf16.mxu1 %v20574_v6 }
 0x311   : > { %17752 = vmatpush3.bf16.msra.mxu0 %v19630_v58  ;;  %17772 = vmatpush3.bf16.msra.mxu1 %v19631_v59 }
 0x312   : > { %17753 = vmatprep.subr.bf16.mxu0 %v20574_v6  ;;  %17773 = vmatprep.subr.bf16.mxu1 %v20574_v6 }
 0x315   : > { %17754 = vmatpush3.bf16.msra.mxu0 %v19632_v60  ;;  %17774 = vmatpush3.bf16.msra.mxu1 %v19633_v61 }
 0x316   : > { %17755 = vmatprep.subr.bf16.mxu0 %v20574_v6  ;;  %17775 = vmatprep.subr.bf16.mxu1 %v20574_v6 }
 0x319   : > { %17756 = vmatpush3.bf16.msra.mxu0 %v19634_v62  ;;  %17776 = vmatpush3.bf16.msra.mxu1 %v19635_v63  ;;  %v19682_v63 = vld [vmem:[%s20630_s14 + $0x30] sm:$0xff]  }
 0x31a   : > { %17757 = vmatprep.subr.bf16.mxu0 %v20574_v6  ;;  %17777 = vmatprep.subr.bf16.mxu1 %v20574_v6 }
 0x31d   : > { %17758 = vmatpush3.bf16.msra.mxu0 %v19636_v0  ;;  %17778 = vmatpush3.bf16.msra.mxu1 %v19637_v1  ;;  %v19683_v0 = vld [vmem:[%s20630_s14 + $0x70] sm:$0xff]  }
 0x31e   : > { %17783 = vmatprep.subr.bf16.mxu0 %v20574_v6  ;;  %17803 = vmatprep.subr.bf16.mxu1 %v20574_v6 }
 0x320   : > { %17760 = vmatmul.mubr.bf16.vlgmr.msra.gmra.mrb[24].mxu0 %v20904_v48  ;;  %17780 = vmatmul.mubr.bf16.vlgmr.msra.gmra.mrb[24].mxu1 %v20904_v48 }
 0x321   : > { %17784 = vmatpush3.bf16.msra.mxu0 %v19638_v2  ;;  %17804 = vmatpush3.bf16.msra.mxu1 %v19639_v3  ;;  %v19684_v3 = vld [vmem:[%s20630_s14 + $0x38] sm:$0xff]  }
 0x322   : > { %17785 = vmatprep.subr.bf16.mxu0 %v20574_v6  ;;  %17805 = vmatprep.subr.bf16.mxu1 %v20574_v6 }
 0x323   : > { %17799 = vmatprep.mubr.msk.bf16.mxu0 %vm20575_vm4, %v20574_v6  ;;  %17819 = vmatprep.mubr.msk.bf16.mxu1 %vm20575_vm4, %v20574_v6 }
 0x325   : > { %17786 = vmatpush3.bf16.msra.mxu0 %v19640_v4  ;;  %17806 = vmatpush3.bf16.msra.mxu1 %v19641_v5  ;;  %v19685_v4 = vld [vmem:[%s20630_s14 + $0x78] sm:$0xff]   ;;  %v19686_v5 = vld [vmem:[%s20630_s14 + $0x80] sm:$0xff]  }
 0x326   : > { %17787 = vmatprep.subr.bf16.mxu0 %v20574_v6  ;;  %17807 = vmatprep.subr.bf16.mxu1 %v20574_v6 }
 0x329   : > { %17788 = vmatpush3.bf16.msra.mxu0 %v19642_v7  ;;  %17808 = vmatpush3.bf16.msra.mxu1 %v19643_v8  ;;  %v19687_v7 = vld [vmem:[%s20630_s14 + $0xc0] sm:$0xff]   ;;  %v19688_v8 = vld [vmem:[%s20630_s14 + $0x88] sm:$0xff]  }
 0x32a   : > { %17789 = vmatprep.subr.bf16.mxu0 %v20574_v6  ;;  %17809 = vmatprep.subr.bf16.mxu1 %v20574_v6 }
 0x32d   : > { %17790 = vmatpush3.bf16.msra.mxu0 %v19644_v9  ;;  %17810 = vmatpush3.bf16.msra.mxu1 %v19645_v10  ;;  %v19689_v9 = vld [vmem:[%s20630_s14 + $0xc8] sm:$0xff]   ;;  %v19690_v10 = vld [vmem:[%s20630_s14 + $0x90] sm:$0xff]  }
 0x32e   : > { %17791 = vmatprep.subr.bf16.mxu0 %v20574_v6  ;;  %17811 = vmatprep.subr.bf16.mxu1 %v20574_v6 }
 0x331   : > { %17792 = vmatpush3.bf16.msra.mxu0 %v19646_v11  ;;  %17812 = vmatpush3.bf16.msra.mxu1 %v19647_v12  ;;  %v19691_v11 = vld [vmem:[%s20630_s14 + $0xd0] sm:$0xff]   ;;  %v19692_v12 = vld [vmem:[%s20630_s14 + $0x98] sm:$0xff]  }
 0x332   : > { %17793 = vmatprep.subr.bf16.mxu0 %v20574_v6  ;;  %17813 = vmatprep.subr.bf16.mxu1 %v20574_v6 }
 0x335   : > { %17794 = vmatpush3.bf16.msra.mxu0 %v19648_v13  ;;  %17814 = vmatpush3.bf16.msra.mxu1 %v19649_v14  ;;  %v19693_v13 = vld [vmem:[%s20630_s14 + $0xd8] sm:$0xff]   ;;  %v19694_v14 = vld [vmem:[%s20630_s14 + $0xa0] sm:$0xff]  }
 0x336   : > { %17795 = vmatprep.subr.bf16.mxu0 %v20574_v6  ;;  %17815 = vmatprep.subr.bf16.mxu1 %v20574_v6 }
 0x339   : > { %17796 = vmatpush3.bf16.msra.mxu0 %v19650_v15  ;;  %17816 = vmatpush3.bf16.msra.mxu1 %v19651_v17  ;;  %v19695_v15 = vld [vmem:[%s20630_s14 + $0xe0] sm:$0xff]   ;;  %v19696_v17 = vld [vmem:[%s20630_s14 + $0xa8] sm:$0xff]  }
 0x33a   : > { %17797 = vmatprep.subr.bf16.mxu0 %v20574_v6  ;;  %17817 = vmatprep.subr.bf16.mxu1 %v20574_v6 }
 0x33d   : > { %17798 = vmatpush3.bf16.msra.mxu0 %v19652_v18  ;;  %17818 = vmatpush3.bf16.msra.mxu1 %v19653_v19  ;;  %v19697_v18 = vld [vmem:[%s20630_s14 + $0xe8] sm:$0xff]  }
 0x33e   : > { %17823 = vmatprep.subr.bf16.mxu0 %v20574_v6  ;;  %17843 = vmatprep.subr.bf16.mxu1 %v20574_v6 }
 0x340   : > { %17800 = vmatmul.mubr.bf16.vlgmr.msra.gmra.mrb[28].mxu0 %v20904_v48  ;;  %17820 = vmatmul.mubr.bf16.vlgmr.msra.gmra.mrb[28].mxu1 %v20904_v48 }
 0x341   : > { %17824 = vmatpush3.bf16.msra.mxu0 %v19654_v20  ;;  %17844 = vmatpush3.bf16.msra.mxu1 %v19655_v21 }
 0x342   : > { %17825 = vmatprep.subr.bf16.mxu0 %v20574_v6  ;;  %17845 = vmatprep.subr.bf16.mxu1 %v20574_v6 }
 0x343   : > { %17839 = vmatprep.mubr.msk.bf16.mxu0 %vm20575_vm4, %v20574_v6  ;;  %17859 = vmatprep.mubr.msk.bf16.mxu1 %vm20575_vm4, %v20574_v6 }
 0x345   : > { %17826 = vmatpush3.bf16.msra.mxu0 %v19656_v22  ;;  %17846 = vmatpush3.bf16.msra.mxu1 %v19657_v23 }
 0x346   : > { %17827 = vmatprep.subr.bf16.mxu0 %v20574_v6  ;;  %17847 = vmatprep.subr.bf16.mxu1 %v20574_v6 }
 0x349   : > { %17828 = vmatpush3.bf16.msra.mxu0 %v19658_v24  ;;  %17848 = vmatpush3.bf16.msra.mxu1 %v19659_v25  ;;  %v19698_v25 = vld [vmem:[%s20630_s14 + $0xb0] sm:$0xff]  }
 0x34a   : > { %17829 = vmatprep.subr.bf16.mxu0 %v20574_v6  ;;  %17849 = vmatprep.subr.bf16.mxu1 %v20574_v6 }
 0x34d   : > { %17830 = vmatpush3.bf16.msra.mxu0 %v19660_v26  ;;  %17850 = vmatpush3.bf16.msra.mxu1 %v19661_v27  ;;  %v19699_v26 = vld [vmem:[%s20630_s14 + $0xf0] sm:$0xff]  }
 0x34e   : > { %17831 = vmatprep.subr.bf16.mxu0 %v20574_v6  ;;  %17851 = vmatprep.subr.bf16.mxu1 %v20574_v6 }
 0x351   : > { %17832 = vmatpush3.bf16.msra.mxu0 %v19662_v28  ;;  %17852 = vmatpush3.bf16.msra.mxu1 %v19663_v29  ;;  %v19700_v29 = vld [vmem:[%s20630_s14 + $0xb8] sm:$0xff]  }
 0x352   : > { %17833 = vmatprep.subr.bf16.mxu0 %v20574_v6  ;;  %17853 = vmatprep.subr.bf16.mxu1 %v20574_v6 }
 0x353   : > { %v21160_v32 = vpop.f32.mrb[4].mxu0  ;;  %v21162_v33 = vpop.f32.mrb[4].mxu1 }
 0x354   : > { %v17561_v34 = vpop.f32.mrb[5].mxu0  ;;  %v17581_v35 = vpop.f32.mrb[5].mxu1 }
 0x355   : > { %17834 = vmatpush3.bf16.msra.mxu0 %v19664_v30  ;;  %17854 = vmatpush3.bf16.msra.mxu1 %v19665_v31  ;;  %v1918_v36 = vpop.f32.mrb[6].mxu0  ;;  %v2006_v37 = vpop.f32.mrb[6].mxu1  ;;  %v19701_v30 = vld [vmem:[%s20630_s14 + $0xf8] sm:$0xff]   ;;  %v19702_v31 = vld [vmem:[%s20630_s14 + $0x100] sm:$0xff]   ;;  %v19704_v35 = vld [vmem:[%s20630_s14 + $0x108] sm:$0xff]  }
 0x356   : > { %v17562_v40 = vpop.f32.mrb[7].mxu0  ;;  %v17582_v41 = vpop.f32.mrb[7].mxu1  ;;  %17835 = vmatprep.subr.bf16.mxu0 %v20574_v6  ;;  %17855 = vmatprep.subr.bf16.mxu1 %v20574_v6  ;;  %v19703_v34 = vld [vmem:[%s20630_s14 + $0x140] sm:$0xff]   ;;  %v19705_v36 = vld [vmem:[%s20630_s14 + $0x148] sm:$0xff]   ;;  %v19706_v37 = vld [vmem:[%s20630_s14 + $0x110] sm:$0xff]  }
 0x357   : > { %v19709_v40 = vld [vmem:[%s20630_s14 + $0x158] sm:$0xff]   ;;  %v19710_v41 = vld [vmem:[%s20630_s14 + $0x120] sm:$0xff]  }
 0x359   : > { %17836 = vmatpush3.bf16.msra.mxu0 %v19666_v38  ;;  %17856 = vmatpush3.bf16.msra.mxu1 %v19667_v39  ;;  %v19707_v38 = vld [vmem:[%s20630_s14 + $0x150] sm:$0xff]   ;;  %v19708_v39 = vld [vmem:[%s20630_s14 + $0x118] sm:$0xff]  }
 0x35a   : > { %17837 = vmatprep.subr.bf16.mxu0 %v20574_v6  ;;  %17857 = vmatprep.subr.bf16.mxu1 %v20574_v6 }
 0x35d   : > { %17838 = vmatpush3.bf16.msra.mxu0 %v19668_v42  ;;  %17858 = vmatpush3.bf16.msra.mxu1 %v19669_v43  ;;  %v19711_v42 = vld [vmem:[%s20630_s14 + $0x160] sm:$0xff]   ;;  %v19712_v43 = vld [vmem:[%s20630_s14 + $0x128] sm:$0xff]  }
 0x35e   : > { %17863 = vmatprep.subr.bf16.mxu0 %v20574_v6  ;;  %17883 = vmatprep.subr.bf16.mxu1 %v20574_v6 }
 0x360   : > { %17840 = vmatmul.mubr.bf16.vlgmr.msra.gmra.mrb[32].mxu0 %v20904_v48  ;;  %17860 = vmatmul.mubr.bf16.vlgmr.msra.gmra.mrb[32].mxu1 %v20904_v48 }
 0x361   : > { %17864 = vmatpush3.bf16.msra.mxu0 %v19670_v44  ;;  %17884 = vmatpush3.bf16.msra.mxu1 %v19671_v45  ;;  %v19713_v44 = vld [vmem:[%s20630_s14 + $0x168] sm:$0xff]  }
 0x362   : > { %17865 = vmatprep.subr.bf16.mxu0 %v20574_v6  ;;  %17885 = vmatprep.subr.bf16.mxu1 %v20574_v6 }
 0x363   : > { %17879 = vmatprep.mubr.msk.bf16.mxu0 %vm20575_vm4, %v20574_v6  ;;  %17899 = vmatprep.mubr.msk.bf16.mxu1 %vm20575_vm4, %v20574_v6 }
 0x365   : > { %17866 = vmatpush3.bf16.msra.mxu0 %v19672_v46  ;;  %17886 = vmatpush3.bf16.msra.mxu1 %v19673_v47 }
 0x366   : > { %17867 = vmatprep.subr.bf16.mxu0 %v20574_v6  ;;  %17887 = vmatprep.subr.bf16.mxu1 %v20574_v6 }
 0x369   : > { %17868 = vmatpush3.bf16.msra.mxu0 %v19674_v49  ;;  %17888 = vmatpush3.bf16.msra.mxu1 %v19675_v50 }
 0x36a   : > { %17869 = vmatprep.subr.bf16.mxu0 %v20574_v6  ;;  %17889 = vmatprep.subr.bf16.mxu1 %v20574_v6 }
 0x36d   : > { %17870 = vmatpush3.bf16.msra.mxu0 %v19676_v51  ;;  %17890 = vmatpush3.bf16.msra.mxu1 %v19677_v52  ;;  %v19714_v52 = vld [vmem:[%s20630_s14 + $0x130] sm:$0xff]  }
 0x36e   : > { %17871 = vmatprep.subr.bf16.mxu0 %v20574_v6  ;;  %17891 = vmatprep.subr.bf16.mxu1 %v20574_v6 }
 0x371   : > { %17872 = vmatpush3.bf16.msra.mxu0 %v19678_v53  ;;  %17892 = vmatpush3.bf16.msra.mxu1 %v19679_v54  ;;  %v19715_v53 = vld [vmem:[%s20630_s14 + $0x170] sm:$0xff]  }
 0x372   : > { %17873 = vmatprep.subr.bf16.mxu0 %v20574_v6  ;;  %17893 = vmatprep.subr.bf16.mxu1 %v20574_v6 }
 0x373   : > { %v21202_v57 = vpop.f32.mrb[8].mxu0  ;;  %v21204_v58 = vpop.f32.mrb[8].mxu1 }
 0x374   : > { %v17601_v59 = vpop.f32.mrb[9].mxu0  ;;  %v17621_v60 = vpop.f32.mrb[9].mxu1 }
 0x375   : > { %v2094_v61 = vpop.f32.mrb[10].mxu0  ;;  %v2182_v62 = vpop.f32.mrb[10].mxu1  ;;  %17874 = vmatpush3.bf16.msra.mxu0 %v19680_v55  ;;  %17894 = vmatpush3.bf16.msra.mxu1 %v19681_v56  ;;  %v19716_v56 = vld [vmem:[%s20630_s14 + $0x138] sm:$0xff]   ;;  %v19718_v60 = vld [vmem:[%s20630_s14 + $0x180] sm:$0xff]  }
 0x376   : > { %v17602_v1 = vpop.f32.mrb[11].mxu0  ;;  %v17622_v2 = vpop.f32.mrb[11].mxu1  ;;  %17875 = vmatprep.subr.bf16.mxu0 %v20574_v6  ;;  %17895 = vmatprep.subr.bf16.mxu1 %v20574_v6  ;;  %v19717_v59 = vld [vmem:[%s20630_s14 + $0x178] sm:$0xff]   ;;  %v19719_v61 = vld [vmem:[%s20630_s14 + $0x1c0] sm:$0xff]   ;;  %v19720_v62 = vld [vmem:[%s20630_s14 + $0x188] sm:$0xff]  }
 0x377   : > { %v19723_v1 = vld [vmem:[%s20630_s14 + $0x1d0] sm:$0xff]   ;;  %v19724_v2 = vld [vmem:[%s20630_s14 + $0x198] sm:$0xff]  }
 0x379   : > { %17876 = vmatpush3.bf16.msra.mxu0 %v19682_v63  ;;  %17896 = vmatpush3.bf16.msra.mxu1 %v19683_v0  ;;  %v19721_v63 = vld [vmem:[%s20630_s14 + $0x1c8] sm:$0xff]   ;;  %v19722_v0 = vld [vmem:[%s20630_s14 + $0x190] sm:$0xff]  }
 0x37a   : > { %17877 = vmatprep.subr.bf16.mxu0 %v20574_v6  ;;  %17897 = vmatprep.subr.bf16.mxu1 %v20574_v6 }
 0x37d   : > { %17878 = vmatpush3.bf16.msra.mxu0 %v19684_v3  ;;  %17898 = vmatpush3.bf16.msra.mxu1 %v19685_v4  ;;  %v19725_v3 = vld [vmem:[%s20630_s14 + $0x1d8] sm:$0xff]   ;;  %v19726_v4 = vld [vmem:[%s20630_s14 + $0x1a0] sm:$0xff]  }
 0x37e   : > { %17903 = vmatprep.subr.bf16.mxu0 %v20574_v6  ;;  %17923 = vmatprep.subr.bf16.mxu1 %v20574_v6 }
 0x380   : > { %17880 = vmatmul.mubr.bf16.vlgmr.msra.gmra.mrb[36].mxu0 %v20904_v48  ;;  %17900 = vmatmul.mubr.bf16.vlgmr.msra.gmra.mrb[36].mxu1 %v20904_v48 }
 0x381   : > { %17904 = vmatpush3.bf16.msra.mxu0 %v19686_v5  ;;  %17924 = vmatpush3.bf16.msra.mxu1 %v19687_v7  ;;  %v19727_v5 = vld [vmem:[%s20630_s14 + $0x1e0] sm:$0xff]   ;;  %v19728_v7 = vld [vmem:[%s20630_s14 + $0x1a8] sm:$0xff]  }
 0x382   : > { %17905 = vmatprep.subr.bf16.mxu0 %v20574_v6  ;;  %17925 = vmatprep.subr.bf16.mxu1 %v20574_v6 }
 0x383   : > { %17919 = vmatprep.mubr.msk.bf16.mxu0 %vm20575_vm4, %v20574_v6  ;;  %17939 = vmatprep.mubr.msk.bf16.mxu1 %vm20575_vm4, %v20574_v6 }
 0x385   : > { %17906 = vmatpush3.bf16.msra.mxu0 %v19688_v8  ;;  %17926 = vmatpush3.bf16.msra.mxu1 %v19689_v9  ;;  %v19729_v8 = vld [vmem:[%s20630_s14 + $0x1e8] sm:$0xff]  }
 0x386   : > { %17907 = vmatprep.subr.bf16.mxu0 %v20574_v6  ;;  %17927 = vmatprep.subr.bf16.mxu1 %v20574_v6 }
 0x389   : > { %17908 = vmatpush3.bf16.msra.mxu0 %v19690_v10  ;;  %17928 = vmatpush3.bf16.msra.mxu1 %v19691_v11 }
 0x38a   : > { %17909 = vmatprep.subr.bf16.mxu0 %v20574_v6  ;;  %17929 = vmatprep.subr.bf16.mxu1 %v20574_v6 }
 0x38d   : > { %17910 = vmatpush3.bf16.msra.mxu0 %v19692_v12  ;;  %17930 = vmatpush3.bf16.msra.mxu1 %v19693_v13 }
 0x38e   : > { %17911 = vmatprep.subr.bf16.mxu0 %v20574_v6  ;;  %17931 = vmatprep.subr.bf16.mxu1 %v20574_v6 }
 0x391   : > { %17912 = vmatpush3.bf16.msra.mxu0 %v19694_v14  ;;  %17932 = vmatpush3.bf16.msra.mxu1 %v19695_v15  ;;  %v19730_v15 = vld [vmem:[%s20630_s14 + $0x1b0] sm:$0xff]  }
 0x392   : > { %17913 = vmatprep.subr.bf16.mxu0 %v20574_v6  ;;  %17933 = vmatprep.subr.bf16.mxu1 %v20574_v6 }
 0x393   : > { %v21244_v19 = vpop.f32.mrb[12].mxu0  ;;  %v21246_v20 = vpop.f32.mrb[12].mxu1 }
 0x394   : > { %v17641_v21 = vpop.f32.mrb[13].mxu0  ;;  %v17661_v22 = vpop.f32.mrb[13].mxu1 }
 0x395   : > { %v2270_v23 = vpop.f32.mrb[14].mxu0  ;;  %v2358_v24 = vpop.f32.mrb[14].mxu1  ;;  %17914 = vmatpush3.bf16.msra.mxu0 %v19696_v17  ;;  %17934 = vmatpush3.bf16.msra.mxu1 %v19697_v18  ;;  %v19731_v17 = vld [vmem:[%s20630_s14 + $0x1f0] sm:$0xff]   ;;  %v19732_v22 = vld [vmem:[%s20630_s14 + $0x1b8] sm:$0xff]  }
 0x396   : > { %v17642_v27 = vpop.f32.mrb[15].mxu0  ;;  %v17662_v28 = vpop.f32.mrb[15].mxu1  ;;  %17915 = vmatprep.subr.bf16.mxu0 %v20574_v6  ;;  %17935 = vmatprep.subr.bf16.mxu1 %v20574_v6  ;;  %v19733_v23 = vld [vmem:[%s20630_s14 + $0x1f8] sm:$0xff]  }
 0x397   : > { %v4201_v27 = vpack.c.bf16 %v21160_v32, %v21160_v32  ;;  %v4202_v28 = vpack.c.bf16 %v21162_v33, %v21162_v33 }
 0x399   : > { %17916 = vmatpush3.bf16.msra.mxu0 %v19698_v25  ;;  %17936 = vmatpush3.bf16.msra.mxu1 %v19699_v26 }
 0x39a   : > { %17917 = vmatprep.subr.bf16.mxu0 %v20574_v6  ;;  %17937 = vmatprep.subr.bf16.mxu1 %v20574_v6 }
 0x39d   : > { %17918 = vmatpush3.bf16.msra.mxu0 %v19700_v29  ;;  %17938 = vmatpush3.bf16.msra.mxu1 %v19701_v30 }
 0x39e   : > { %17943 = vmatprep.subr.bf16.mxu0 %v20574_v6  ;;  %17963 = vmatprep.subr.bf16.mxu1 %v20574_v6 }
 0x3a0   : > { %17920 = vmatmul.mubr.bf16.vlgmr.msra.gmra.mrb[40].mxu0 %v20904_v48  ;;  %17940 = vmatmul.mubr.bf16.vlgmr.msra.gmra.mrb[40].mxu1 %v20904_v48 }
 0x3a1   : > { %17944 = vmatpush3.bf16.msra.mxu0 %v19702_v31  ;;  %17964 = vmatpush3.bf16.msra.mxu1 %v19703_v34 }
 0x3a2   : > { %17945 = vmatprep.subr.bf16.mxu0 %v20574_v6  ;;  %17965 = vmatprep.subr.bf16.mxu1 %v20574_v6 }
 0x3a3   : > { %17959 = vmatprep.mubr.msk.bf16.mxu0 %vm20575_vm4, %v20574_v6  ;;  %17979 = vmatprep.mubr.msk.bf16.mxu1 %vm20575_vm4, %v20574_v6 }
 0x3a5   : > { %17946 = vmatpush3.bf16.msra.mxu0 %v19704_v35  ;;  %17966 = vmatpush3.bf16.msra.mxu1 %v19705_v36 }
 0x3a6   : > { %17947 = vmatprep.subr.bf16.mxu0 %v20574_v6  ;;  %17967 = vmatprep.subr.bf16.mxu1 %v20574_v6 }
 0x3a9   : > { %17948 = vmatpush3.bf16.msra.mxu0 %v19706_v37  ;;  %17968 = vmatpush3.bf16.msra.mxu1 %v19707_v38 }
 0x3aa   : > { %17949 = vmatprep.subr.bf16.mxu0 %v20574_v6  ;;  %17969 = vmatprep.subr.bf16.mxu1 %v20574_v6 }
 0x3ad   : > { %17950 = vmatpush3.bf16.msra.mxu0 %v19708_v39  ;;  %17970 = vmatpush3.bf16.msra.mxu1 %v19709_v40  ;;  %v4203_v40 = vpack.c.bf16 %v21202_v57, %v21202_v57 }
 0x3ae   : > { %17951 = vmatprep.subr.bf16.mxu0 %v20574_v6  ;;  %17971 = vmatprep.subr.bf16.mxu1 %v20574_v6 }
 0x3b1   : > { %17952 = vmatpush3.bf16.msra.mxu0 %v19710_v41  ;;  %17972 = vmatpush3.bf16.msra.mxu1 %v19711_v42  ;;  %v4204_v42 = vpack.c.bf16 %v21204_v58, %v21204_v58  ;;  %v4205_v58 = vpack.c.bf16 %v21244_v19, %v21244_v19 }
 0x3b2   : > { %17953 = vmatprep.subr.bf16.mxu0 %v20574_v6  ;;  %17973 = vmatprep.subr.bf16.mxu1 %v20574_v6 }
 0x3b3   : > { %v21286_v45 = vpop.f32.mrb[16].mxu0  ;;  %v21288_v46 = vpop.f32.mrb[16].mxu1 }
 0x3b4   : > { %v17681_v47 = vpop.f32.mrb[17].mxu0  ;;  %v17701_v49 = vpop.f32.mrb[17].mxu1 }
 0x3b5   : > { %v2446_v50 = vpop.f32.mrb[18].mxu0  ;;  %v2534_v51 = vpop.f32.mrb[18].mxu1  ;;  %17954 = vmatpush3.bf16.msra.mxu0 %v19712_v43  ;;  %17974 = vmatpush3.bf16.msra.mxu1 %v19713_v44 }
 0x3b6   : > { %v17682_v54 = vpop.f32.mrb[19].mxu0  ;;  %v17702_v55 = vpop.f32.mrb[19].mxu1  ;;  %17955 = vmatprep.subr.bf16.mxu0 %v20574_v6  ;;  %17975 = vmatprep.subr.bf16.mxu1 %v20574_v6 }
 0x3b9   : > { %17956 = vmatpush3.bf16.msra.mxu0 %v19714_v52  ;;  %17976 = vmatpush3.bf16.msra.mxu1 %v19715_v53 }
 0x3ba   : > { %17957 = vmatprep.subr.bf16.mxu0 %v20574_v6  ;;  %17977 = vmatprep.subr.bf16.mxu1 %v20574_v6 }
 0x3bd   : > { %17958 = vmatpush3.bf16.msra.mxu0 %v19716_v56  ;;  %17978 = vmatpush3.bf16.msra.mxu1 %v19717_v59  ;;  %v4206_v59 = vpack.c.bf16 %v21246_v20, %v21246_v20 }
 0x3be   : > { %17983 = vmatprep.subr.bf16.mxu0 %v20574_v6  ;;  %18003 = vmatprep.subr.bf16.mxu1 %v20574_v6 }
 0x3c0   : > { %17960 = vmatmul.mubr.bf16.vlgmr.msra.gmra.mrb[44].mxu0 %v20904_v48  ;;  %17980 = vmatmul.mubr.bf16.vlgmr.msra.gmra.mrb[44].mxu1 %v20904_v48 }
 0x3c1   : > { %17984 = vmatpush3.bf16.msra.mxu0 %v19718_v60  ;;  %18004 = vmatpush3.bf16.msra.mxu1 %v19719_v61 }
 0x3c2   : > { %17985 = vmatprep.subr.bf16.mxu0 %v20574_v6  ;;  %18005 = vmatprep.subr.bf16.mxu1 %v20574_v6 }
 0x3c3   : > { %17999 = vmatprep.mubr.msk.bf16.mxu0 %vm20575_vm4, %v20574_v6  ;;  %18019 = vmatprep.mubr.msk.bf16.mxu1 %vm20575_vm4, %v20574_v6 }
 0x3c5   : > { %17986 = vmatpush3.bf16.msra.mxu0 %v19720_v62  ;;  %18006 = vmatpush3.bf16.msra.mxu1 %v19721_v63 }
 0x3c6   : > { %17987 = vmatprep.subr.bf16.mxu0 %v20574_v6  ;;  %18007 = vmatprep.subr.bf16.mxu1 %v20574_v6 }
 0x3c9   : > { %17988 = vmatpush3.bf16.msra.mxu0 %v19722_v0  ;;  %18008 = vmatpush3.bf16.msra.mxu1 %v19723_v1 }
 0x3ca   : > { %17989 = vmatprep.subr.bf16.mxu0 %v20574_v6  ;;  %18009 = vmatprep.subr.bf16.mxu1 %v20574_v6 }
 0x3cd   : > { %17990 = vmatpush3.bf16.msra.mxu0 %v19724_v2  ;;  %18010 = vmatpush3.bf16.msra.mxu1 %v19725_v3 }
 0x3ce   : > { %17991 = vmatprep.subr.bf16.mxu0 %v20574_v6  ;;  %18011 = vmatprep.subr.bf16.mxu1 %v20574_v6 }
 0x3d1   : > { %17992 = vmatpush3.bf16.msra.mxu0 %v19726_v4  ;;  %18012 = vmatpush3.bf16.msra.mxu1 %v19727_v5 }
 0x3d2   : > { %17993 = vmatprep.subr.bf16.mxu0 %v20574_v6  ;;  %18013 = vmatprep.subr.bf16.mxu1 %v20574_v6 }
 0x3d3   : > { %v2747_v9 = vpop.f32.mrb[20].mxu0  ;;  %v2835_v10 = vpop.f32.mrb[20].mxu1 }
 0x3d4   : > { %v17721_v11 = vpop.f32.mrb[21].mxu0  ;;  %v17741_v12 = vpop.f32.mrb[21].mxu1  ;;  %v4209_v24 = vpack.c.bf16 %v2747_v9, %v2747_v9  ;;  %v4210_v26 = vpack.c.bf16 %v2835_v10, %v2835_v10 }
 0x3d5   : > { %v2750_v13 = vpop.f32.mrb[22].mxu0  ;;  %v2838_v14 = vpop.f32.mrb[22].mxu1  ;;  %17994 = vmatpush3.bf16.msra.mxu0 %v19728_v7  ;;  %18014 = vmatpush3.bf16.msra.mxu1 %v19729_v8  ;;  %v4207_v7 = vpack.c.bf16 %v21286_v45, %v21286_v45  ;;  %v4208_v8 = vpack.c.bf16 %v21288_v46, %v21288_v46 }
 0x3d6   : > { %v17722_v18 = vpop.f32.mrb[23].mxu0  ;;  %v17742_v21 = vpop.f32.mrb[23].mxu1  ;;  %17995 = vmatprep.subr.bf16.mxu0 %v20574_v6  ;;  %18015 = vmatprep.subr.bf16.mxu1 %v20574_v6  ;;  %v4222_v25 = vsel %vm4217_vm7, %v4209_v24, 0 }
 0x3d9   : > { %17996 = vmatpush3.bf16.msra.mxu0 %v19730_v15  ;;  %18016 = vmatpush3.bf16.msra.mxu1 %v19731_v17 }
 0x3da   : > { %17997 = vmatprep.subr.bf16.mxu0 %v20574_v6  ;;  %18017 = vmatprep.subr.bf16.mxu1 %v20574_v6 }
 0x3dd   : > { %17998 = vmatpush3.bf16.msra.mxu0 %v19732_v22  ;;  %18018 = vmatpush3.bf16.msra.mxu1 %v19733_v23 }
 0x3de   : > { %18023 = vmatprep.subr.bf16.mxu1 %v20574_v6  ;;  %18047 = vmatprep.subr.bf16.mxu0 %v20574_v6 }
 0x3e0   : > { %18000 = vmatmul.mubr.bf16.vlgmr.msra.gmra.mrb[48].mxu0 %v20904_v48  ;;  %18020 = vmatmul.mubr.bf16.vlgmr.msra.gmra.mrb[48].mxu1 %v20904_v48  ;;  %v4268_v48 = vsel %vm4217_vm7, %v4210_v26, 0 }
 0x3e1   : > { %18025 = vmatprep.mubr.msk.bf16.mxu1 %vm20575_vm4, %v20574_v6  ;;  %18049 = vmatprep.mubr.msk.bf16.mxu0 %vm20575_vm4, %v20574_v6 }
 0x3e6   : > { %18024 = vmatpush3.bf16.xpose.msra.mxu1 %v4222_v25 }
 0x3e7   : > { %18029 = vmatprep.subr.bf16.mxu1 %v20574_v6 }
 0x3ed   : > { %18026 = vmatmul.mubr.msk.bf16.vlgmr.msra.gmra.mrb[52].mxu1 %vm4217_vm7, %v4201_v27 }
 0x3ee   : > { %18030 = vmatpush3.bf16.xpose.msra.mxu1 %v4268_v48  ;;  %18031 = vmatprep.mubr.msk.bf16.mxu1 %vm20575_vm4, %v20574_v6 }
 0x3ef   : > { %18035 = vmatprep.subr.bf16.mxu1 %v20574_v6 }
 0x3f3   : > { %v2923_v29 = vpop.f32.mrb[24].mxu0  ;;  %v3011_v30 = vpop.f32.mrb[24].mxu1 }
 0x3f4   : > { %v4211_v31 = vpack.c.bf16 %v2923_v29, %v2923_v29  ;;  %v17761_v34 = vpop.f32.mrb[25].mxu0  ;;  %v17781_v35 = vpop.f32.mrb[25].mxu1  ;;  %v4212_v33 = vpack.c.bf16 %v3011_v30, %v3011_v30 }
 0x3f5   : > { %v2926_v36 = vpop.f32.mrb[26].mxu0  ;;  %v3014_v32 = vpop.f32.mrb[26].mxu1  ;;  %18032 = vmatmul.mubr.msk.bf16.vlgmr.msra.gmra.mrb[56].mxu1 %vm4217_vm7, %v4202_v28 }
 0x3f6   : > { %v17762_v37 = vpop.f32.mrb[27].mxu0  ;;  %v17782_v38 = vpop.f32.mrb[27].mxu1  ;;  %v4314_v39 = vsel %vm4217_vm7, %v4211_v31, 0  ;;  %18037 = vmatprep.mubr.msk.bf16.mxu1 %vm20575_vm4, %v20574_v6  ;;  %v4360_v41 = vsel %vm4217_vm7, %v4212_v33, 0 }
 0x3f7   : > { %18036 = vmatpush3.bf16.xpose.msra.mxu1 %v4314_v39 }
 0x3f8   : > { %18041 = vmatprep.subr.bf16.mxu1 %v20574_v6 }
 0x3fe   : > { %18038 = vmatmul.mubr.msk.bf16.vlgmr.msra.gmra.mrb[60].mxu1 %vm4217_vm7, %v4203_v40 }
 0x3ff   : > { %18042 = vmatpush3.bf16.xpose.msra.mxu1 %v4360_v41  ;;  %18043 = vmatprep.mubr.msk.bf16.mxu1 %vm20575_vm4, %v20574_v6 }
 0x400   : > { %18053 = vmatprep.subr.bf16.mxu1 %v20574_v6 }
 0x406   : > { %18044 = vmatmul.mubr.msk.bf16.vlgmr.msra.gmra.mrb[64].mxu1 %vm4217_vm7, %v4204_v42 }
 0x407   : > { %18055 = vmatprep.mubr.msk.bf16.mxu1 %vm20575_vm4, %v20574_v6 }
 0x413   : > { %v3099_v43 = vpop.f32.mrb[28].mxu0  ;;  %v3187_v57 = vpop.f32.mrb[28].mxu1 }
 0x414   : > { %v4213_v44 = vpack.c.bf16 %v3099_v43, %v3099_v43  ;;  %v4214_v47 = vpack.c.bf16 %v3187_v57, %v3187_v57  ;;  %v17801_v49 = vpop.f32.mrb[29].mxu0  ;;  %v17821_v50 = vpop.f32.mrb[29].mxu1 }
 0x415   : > { %v3102_v51 = vpop.f32.mrb[30].mxu0  ;;  %v3190_v52 = vpop.f32.mrb[30].mxu1 }
 0x416   : > { %v17802_v53 = vpop.f32.mrb[31].mxu0  ;;  %v17822_v54 = vpop.f32.mrb[31].mxu1  ;;  %v4406_v55 = vsel %vm4217_vm7, %v4213_v44, 0  ;;  %v4452_v56 = vsel %vm4217_vm7, %v4214_v47, 0  ;;  %v4594_v44 = vlaneseq }
 0x417   : > { %18048 = vmatpush3.bf16.xpose.msra.mxu0 %v4406_v55  ;;  %18054 = vmatpush3.bf16.xpose.msra.mxu1 %v4452_v56 }
 0x418   : > { %18059 = vmatprep.subr.bf16.mxu0 %v20574_v6  ;;  %18065 = vmatprep.subr.bf16.mxu1 %v20574_v6  ;;  %v21416_v47 = vshrl.u32 %v4594_v44, 7  ;;  %v4597_v49 = vand.u32 127, %v4594_v44 }
 0x41a   : > { %vm21419_vm9 = vcmp.le.s32.totalorder %v4597_v49, %v21416_v47 }
 0x41e   : > { %18050 = vmatmul.mubr.msk.bf16.vlgmr.msra.gmra.mrb[52].mxu0 %vm4217_vm7, %v4205_v58  ;;  %18056 = vmatmul.mubr.msk.bf16.vlgmr.msra.gmra.mrb[68].mxu1 %vm4217_vm7, %v4206_v59 }
 0x41f   : > { %18061 = vmatprep.mubr.msk.bf16.mxu0 %vm20575_vm4, %v20574_v6  ;;  %18067 = vmatprep.mubr.msk.bf16.mxu1 %vm20575_vm4, %v20574_v6 }
 0x433   : > { %v3275_v60 = vpop.f32.mrb[32].mxu0  ;;  %v3363_v61 = vpop.f32.mrb[32].mxu1 }
 0x434   : > { %v4215_v62 = vpack.c.bf16 %v3275_v60, %v3275_v60  ;;  %v4216_v63 = vpack.c.bf16 %v3363_v61, %v3363_v61  ;;  %v17841_v0 = vpop.f32.mrb[33].mxu0  ;;  %v17861_v1 = vpop.f32.mrb[33].mxu1 }
 0x435   : > { %v3278_v19 = vpop.f32.mrb[34].mxu0  ;;  %v3366_v2 = vpop.f32.mrb[34].mxu1 }
 0x436   : > { %v17842_v3 = vpop.f32.mrb[35].mxu0  ;;  %v17862_v20 = vpop.f32.mrb[35].mxu1  ;;  %v4498_v4 = vsel %vm4217_vm7, %v4215_v62, 0  ;;  %v4544_v5 = vsel %vm4217_vm7, %v4216_v63, 0 }
 0x437   : > { %18060 = vmatpush3.bf16.xpose.msra.mxu0 %v4498_v4  ;;  %18066 = vmatpush3.bf16.xpose.msra.mxu1 %v4544_v5 }
 0x438   : > { %18071 = vmatprep.subr.bf16.mxu0 %v20574_v6  ;;  %18077 = vmatprep.subr.bf16.mxu1 %v20574_v6 }
 0x43e   : > { %18062 = vmatmul.mubr.msk.bf16.vlgmr.msra.gmra.mrb[56].mxu0 %vm4217_vm7, %v4207_v7  ;;  %18068 = vmatmul.mubr.msk.bf16.vlgmr.msra.gmra.mrb[72].mxu1 %vm4217_vm7, %v4208_v8 }
 0x43f   : > { %18073 = vmatprep.mubr.msk.bf16.mxu0 %vm20575_vm4, %v20574_v6  ;;  %18079 = vmatprep.mubr.msk.bf16.mxu1 %vm20575_vm4, %v20574_v6 }
 0x453   : > { %v3579_v9 = vpop.f32.mrb[36].mxu0  ;;  %v3667_v10 = vpop.f32.mrb[36].mxu1 }
 0x454   : > { %v4704_v11 = vpack.c.bf16 %v3579_v9, %v3579_v9  ;;  %v4705_v12 = vpack.c.bf16 %v3667_v10, %v3667_v10  ;;  %v17881_v13 = vpop.f32.mrb[37].mxu0  ;;  %v17901_v45 = vpop.f32.mrb[37].mxu1 }
 0x455   : > { %v3582_v14 = vpop.f32.mrb[38].mxu0  ;;  %v3670_v15 = vpop.f32.mrb[38].mxu1 }
 0x456   : > { %v17882_v46 = vpop.f32.mrb[39].mxu0  ;;  %v17902_v17 = vpop.f32.mrb[39].mxu1  ;;  %v4717_v18 = vsel %vm4715_vm8, %v4704_v11, 0  ;;  %v4763_v21 = vsel %vm4715_vm8, %v4705_v12, 0 }
 0x457   : > { %18072 = vmatpush3.bf16.msra.mxu0 %v4717_v18  ;;  %18078 = vmatpush3.bf16.msra.mxu1 %v4763_v21 }
 0x458   : > { %18083 = vmatprep.subr.bf16.mxu0 %v20574_v6  ;;  %18089 = vmatprep.subr.bf16.mxu1 %v20574_v6 }
 0x473   : > { %v21404_v22 = vpop.f32.mrb[40].mxu0  ;;  %v21406_v23 = vpop.f32.mrb[40].mxu1 }
 0x474   : > { %v17921_v24 = vpop.f32.mrb[41].mxu0  ;;  %v17941_v25 = vpop.f32.mrb[41].mxu1 }
 0x475   : > { %v3758_v26 = vpop.f32.mrb[42].mxu0  ;;  %v3846_v27 = vpop.f32.mrb[42].mxu1 }
 0x476   : > { %v17922_v48 = vpop.f32.mrb[43].mxu0  ;;  %v17942_v28 = vpop.f32.mrb[43].mxu1 }
 0x493   : > { %v21408_v29 = vpop.f32.mrb[44].mxu0  ;;  %v21410_v30 = vpop.f32.mrb[44].mxu1 }
 0x494   : > { %v17961_v31 = vpop.f32.mrb[45].mxu0  ;;  %v17981_v34 = vpop.f32.mrb[45].mxu1 }
 0x495   : > { %v3934_v35 = vpop.f32.mrb[46].mxu0  ;;  %v4022_v36 = vpop.f32.mrb[46].mxu1 }
 0x496   : > { %v17962_v32 = vpop.f32.mrb[47].mxu0  ;;  %v17982_v37 = vpop.f32.mrb[47].mxu1 }
 0x4b3   : > { %v21412_v38 = vpop.f32.mrb[48].mxu0  ;;  %v21414_v39 = vpop.f32.mrb[48].mxu1 }
 0x4b4   : > { %v18001_v33 = vpop.f32.mrb[49].mxu0  ;;  %v18021_v40 = vpop.f32.mrb[49].mxu1 }
 0x4b5   : > { %v4110_v41 = vpop.f32.mrb[50].mxu0  ;;  %v4198_v42 = vpop.f32.mrb[50].mxu1 }
 0x4b6   : > { %v18002_v43 = vpop.f32.mrb[51].mxu0  ;;  %v18022_v57 = vpop.f32.mrb[51].mxu1 }
 0x4c0   : > { %v4258_v50 = vpop.f32.mrb[52].mxu1 }
 0x4c1   : > { %v18027_v52 = vpop.f32.mrb[53].mxu1  ;;  %v4586_v53 = vmul.f32 0.25, %v4258_v50 }
 0x4c2   : > { %v4261_v54 = vpop.f32.mrb[54].mxu1 }
 0x4c3   : > { %v18028_v55 = vpop.f32.mrb[55].mxu1  ;;  %v4599_v56 = vsel %vm21419_vm9, %v4586_v53, -1e+30 }
 0x4c4   : > { %v4608_v58 = vsel %vm4607_vm10, %v4599_v56, -inf }
 0x4c5   : > { %4609 = vmax.xlane.f32.xlu1 %v4608_v58 }
 0x4c8   : > { %v4304_v59 = vpop.f32.mrb[56].mxu1 }
 0x4c9   : > { %v18033_v60 = vpop.f32.mrb[57].mxu1  ;;  %v4587_v61 = vmul.f32 0.25, %v4304_v59 }
 0x4ca   : > { %v4307_v62 = vpop.f32.mrb[58].mxu1 }
 0x4cb   : > { %v18034_v63 = vpop.f32.mrb[59].mxu1  ;;  %v4600_v0 = vsel %vm21419_vm9, %v4587_v61, -1e+30 }
 0x4cc   : > { %v4611_v1 = vsel %vm4607_vm10, %v4600_v0, -inf }
 0x4cd   : > { %4612 = vmax.xlane.f32.xlu1 %v4611_v1 }
 0x4d1   : > { %v4350_v19 = vpop.f32.mrb[60].mxu1 }
 0x4d2   : > { %v18039_v2 = vpop.f32.mrb[61].mxu1  ;;  %v4588_v3 = vmul.f32 0.25, %v4350_v19 }
 0x4d3   : > { %v4353_v20 = vpop.f32.mrb[62].mxu1 }
 0x4d4   : > { %v18040_v4 = vpop.f32.mrb[63].mxu1  ;;  %v4601_v5 = vsel %vm21419_vm9, %v4588_v3, -1e+30 }
 0x4d5   : > { %v4614_v7 = vsel %vm4607_vm10, %v4601_v5, -inf }
 0x4d6   : > { %4615 = vmax.xlane.f32.xlu0 %v4614_v7 }
 0x4d9   : > { %v4396_v8 = vpop.f32.mrb[64].mxu1 }
 0x4da   : > { %v18045_v9 = vpop.f32.mrb[65].mxu1  ;;  %v4589_v10 = vmul.f32 0.25, %v4396_v8 }
 0x4db   : > { %v4399_v11 = vpop.f32.mrb[66].mxu1 }
 0x4dc   : > { %v18046_v12 = vpop.f32.mrb[67].mxu1  ;;  %v4602_v13 = vsel %vm21419_vm9, %v4589_v10, -1e+30 }
 0x4dd   : > { %v4617_v45 = vsel %vm4607_vm10, %v4602_v13, -inf }
 0x4de   : > { %4618 = vmax.xlane.f32.xlu1 %v4617_v45 }
 0x4f1   : > { %v4442_v14 = vpop.f32.mrb[52].mxu0  ;;  %v4488_v15 = vpop.f32.mrb[68].mxu1 }
 0x4f2   : > { %v4590_v46 = vmul.f32 0.25, %v4442_v14  ;;  %v18051_v17 = vpop.f32.mrb[53].mxu0  ;;  %v18057_v18 = vpop.f32.mrb[69].mxu1  ;;  %v4591_v21 = vmul.f32 0.25, %v4488_v15 }
 0x4f3   : > { %v4445_v24 = vpop.f32.mrb[54].mxu0  ;;  %v4491_v25 = vpop.f32.mrb[70].mxu1 }
 0x4f4   : > { %v18052_v26 = vpop.f32.mrb[55].mxu0  ;;  %v18058_v27 = vpop.f32.mrb[71].mxu1  ;;  %v4603_v48 = vsel %vm21419_vm9, %v4590_v46, -1e+30  ;;  %v4604_v28 = vsel %vm21419_vm9, %v4591_v21, -1e+30 }
 0x4f5   : > { %v4620_v31 = vsel %vm4607_vm10, %v4603_v48, -inf  ;;  %v4623_v34 = vsel %vm4607_vm10, %v4604_v28, -inf }
 0x4f6   : > { %4621 = vmax.xlane.f32.xlu0 %v4620_v31  ;;  %4624 = vmax.xlane.f32.xlu1 %v4623_v34 }
 0x511   : > { %v4534_v35 = vpop.f32.mrb[56].mxu0  ;;  %v4580_v36 = vpop.f32.mrb[72].mxu1 }
 0x512   : > { %v4592_v32 = vmul.f32 0.25, %v4534_v35  ;;  %v18063_v37 = vpop.f32.mrb[57].mxu0  ;;  %v18069_v33 = vpop.f32.mrb[73].mxu1  ;;  %v4593_v40 = vmul.f32 0.25, %v4580_v36 }
 0x513   : > { %v4537_v41 = vpop.f32.mrb[58].mxu0  ;;  %v4583_v42 = vpop.f32.mrb[74].mxu1  ;;  %v4706_v37 = vpack.c.bf16 %v21404_v22, %v21404_v22 }
 0x514   : > { %v18064_v43 = vpop.f32.mrb[59].mxu0  ;;  %v18070_v57 = vpop.f32.mrb[75].mxu1  ;;  %v4605_v44 = vsel %vm21419_vm9, %v4592_v32, -1e+30  ;;  %v4606_v49 = vsel %vm21419_vm9, %v4593_v40, -1e+30 }
 0x515   : > { %v4626_v50 = vsel %vm4607_vm10, %v4605_v44, -inf  ;;  %v4629_v52 = vsel %vm4607_vm10, %v4606_v49, -inf  ;;  %v4809_v41 = vsel %vm4715_vm8, %v4706_v37, 0  ;;  %v4707_v57 = vpack.c.bf16 %v21406_v23, %v21406_v23 }
 0x516   : > { %4627 = vmax.xlane.f32.xlu0 %v4626_v50  ;;  %4630 = vmax.xlane.f32.xlu1 %v4629_v52 }
 0x552   : > { %v4610_v53 = vpop.xlane.xlu1 %4609 }
 0x553   : > { %v4632_v54 = vsub.f32 %v4599_v56, %v4610_v53  ;;  %v4708_v53 = vpack.c.bf16 %v21408_v29, %v21408_v29 }
 0x555   : > { %v4640_v55 = vmul.f32 1.442695, %v4632_v54 }
 0x557   : > { %20408 = vpow2.f32 %v4640_v55  ;;  %v4901_v55 = vsel %vm4715_vm8, %v4708_v53, 0  ;;  %v19741_v53 = vld [vmem:[%s20635_s19 + $0x38] sm:$0xff]  }
 0x55a   : > { %v4613_v58 = vpop.xlane.xlu1 %4612 }
 0x55b   : > { %v4633_v59 = vsub.f32 %v4600_v0, %v4613_v58 }
 0x55d   : > { %v4642_v60 = vmul.f32 1.442695, %v4633_v59  ;;  %v4709_v59 = vpack.c.bf16 %v21410_v30, %v21410_v30  ;;  %v4710_v30 = vpack.c.bf16 %v21412_v38, %v21412_v38 }
 0x55f   : > { %20410 = vpow2.f32 %v4642_v60  ;;  %v4947_v29 = vsel %vm4715_vm8, %v4709_v59, 0 }
 0x561   : > { %v20409_v61 = vpop.eup %20408 }
 0x562   : > { %v4656_v62 = vsel %vm4607_vm10, %v20409_v61, 0.0 }
 0x563   : > { %4657 = vadd.xlane.f32.xlu0 %v4656_v62  ;;  %v4616_v63 = vpop.xlane.xlu0 %4615 }
 0x564   : > { %v4634_v1 = vsub.f32 %v4601_v5, %v4616_v63 }
 0x566   : > { %v4644_v19 = vmul.f32 1.442695, %v4634_v1 }
 0x568   : > { %20412 = vpow2.f32 %v4644_v19 }
 0x569   : > { %v20411_v2 = vpop.eup %20410 }
 0x56a   : > { %v4659_v3 = vsel %vm4607_vm10, %v20411_v2, 0.0 }
 0x56b   : > { %v4619_v20 = vpop.xlane.xlu1 %4618  ;;  %4660 = vadd.xlane.f32.xlu1 %v4659_v3  ;;  %v4711_v3 = vpack.c.bf16 %v21414_v39, %v21414_v39 }
 0x56c   : > { %v4635_v56 = vsub.f32 %v4602_v13, %v4619_v20 }
 0x56e   : > { %v4646_v4 = vmul.f32 1.442695, %v4635_v56 }
 0x570   : > { %20414 = vpow2.f32 %v4646_v4 }
 0x572   : > { %v20413_v7 = vpop.eup %20412 }
 0x573   : > { %v4662_v0 = vsel %vm4607_vm10, %v20413_v7, 0.0 }
 0x574   : > { %4663 = vadd.xlane.f32.xlu0 %v4662_v0  ;;  %v5039_v0 = vsel %vm4715_vm8, %v4711_v3, 0 }
 0x57a   : > { %v21450_v8 = vpop.eup %20414 }
 0x57b   : > { %v4665_v9 = vsel %vm4607_vm10, %v21450_v8, 0.0 }
 0x57c   : > { %4666 = vadd.xlane.f32.xlu1 %v4665_v9 }
 0x583   : > { %v4622_v5 = vpop.xlane.xlu0 %4621  ;;  %v4625_v10 = vpop.xlane.xlu1 %4624 }
 0x584   : > { %v4636_v11 = vsub.f32 %v4603_v48, %v4622_v5  ;;  %v4637_v12 = vsub.f32 %v4604_v28, %v4625_v10 }
 0x586   : > { %v4648_v45 = vmul.f32 1.442695, %v4636_v11  ;;  %v4650_v14 = vmul.f32 1.442695, %v4637_v12 }
 0x588   : > { %20416 = vpow2.f32 %v4648_v45  ;;  %v19734_v45 = vld [vmem:[%s20635_s19] sm:$0xff]  }
 0x589   : > { %20418 = vpow2.f32 %v4650_v14  ;;  %v19735_v14 = vld [vmem:[%s20635_s19 + $0x8] sm:$0xff]  }
 0x592   : > { %v21454_v13 = vpop.eup %20416 }
 0x593   : > { %v21456_v15 = vpop.eup %20418  ;;  %v4668_v46 = vsel %vm4607_vm10, %v21454_v13, 0.0 }
 0x594   : > { %4669 = vadd.xlane.f32.xlu0 %v4668_v46  ;;  %v4671_v17 = vsel %vm4607_vm10, %v21456_v15, 0.0 }
 0x595   : > { %4672 = vadd.xlane.f32.xlu1 %v4671_v17 }
 0x5a3   : > { %v4628_v18 = vpop.xlane.xlu0 %4627  ;;  %v4631_v21 = vpop.xlane.xlu1 %4630 }
 0x5a4   : > { %v4638_v24 = vsub.f32 %v4605_v44, %v4628_v18  ;;  %v4639_v25 = vsub.f32 %v4606_v49, %v4631_v21  ;;  %v4855_v49 = vsel %vm4715_vm8, %v4707_v57, 0 }
 0x5a6   : > { %v4652_v26 = vmul.f32 1.442695, %v4638_v24  ;;  %v4654_v27 = vmul.f32 1.442695, %v4639_v25  ;;  %v19737_v25 = vld [vmem:[%s20635_s19 + $0x18] sm:$0xff]  }
 0x5a8   : > { %20420 = vpow2.f32 %v4652_v26 }
 0x5a9   : > { %20422 = vpow2.f32 %v4654_v27 }
 0x5b2   : > { %v21462_v48 = vpop.eup %20420 }
 0x5b3   : > { %v21464_v28 = vpop.eup %20422  ;;  %v4674_v31 = vsel %vm4607_vm10, %v21462_v48, 0.0 }
 0x5b4   : > { %4675 = vadd.xlane.f32.xlu0 %v4674_v31  ;;  %v4677_v34 = vsel %vm4607_vm10, %v21464_v28, 0.0 }
 0x5b5   : > { %4678 = vadd.xlane.f32.xlu1 %v4677_v34  ;;  %v19738_v34 = vld [vmem:[%s20635_s19 + $0x20] sm:$0xff]  }
 0x5f0   : > { %v4658_v35 = vpop.xlane.xlu0 %4657 }
 0x5f1   : > { %20424 = vrcp.f32 %v4658_v35 }
 0x5f8   : > { %v4661_v36 = vpop.xlane.xlu1 %4660 }
 0x5f9   : > { %20426 = vrcp.f32 %v4661_v36 }
 0x5fb   : > { %v20425_v32 = vpop.eup %20424 }
 0x5fc   : > { %v4688_v33 = vmul.f32 %v20425_v32, %v20409_v61 }
 0x5fe   : > { %v4696_v40 = vpack.c.bf16 %v4688_v33, %v4688_v33 }
 0x600   : > { %18074 = vmatmul.mubr.msk.bf16.vlgmr.msra.gmra.mrb[60].mxu0 %vm4607_vm10, %v4696_v40  ;;  %v19739_v40 = vld [vmem:[%s20635_s19 + $0x28] sm:$0xff]  }
 0x601   : > { %18084 = vmatpush3.bf16.msra.mxu0 %v4809_v41  ;;  %v4664_v42 = vpop.xlane.xlu0 %4663  ;;  %18085 = vmatprep.mubr.msk.bf16.mxu0 %vm20575_vm4, %v20574_v6 }
 0x602   : > { %20428 = vrcp.f32 %v4664_v42  ;;  %18095 = vmatprep.subr.bf16.mxu0 %v20574_v6 }
 0x603   : > { %v20427_v43 = vpop.eup %20426 }
 0x604   : > { %v4689_v44 = vmul.f32 %v20427_v43, %v20411_v2 }
 0x606   : > { %v4697_v22 = vpack.c.bf16 %v4689_v44, %v4689_v44 }
 0x608   : > { %18080 = vmatmul.mubr.msk.bf16.vlgmr.msra.gmra.mrb[76].mxu1 %vm4607_vm10, %v4697_v22  ;;  %v19740_v22 = vld [vmem:[%s20635_s19 + $0x30] sm:$0xff]  }
 0x609   : > { %18090 = vmatpush3.bf16.msra.mxu1 %v4855_v49  ;;  %v4667_v50 = vpop.xlane.xlu1 %4666  ;;  %18091 = vmatprep.mubr.msk.bf16.mxu1 %vm20575_vm4, %v20574_v6 }
 0x60a   : > { %20430 = vrcp.f32 %v4667_v50  ;;  %18101 = vmatprep.subr.bf16.mxu1 %v20574_v6 }
 0x60c   : > { %v20429_v52 = vpop.eup %20428 }
 0x60d   : > { %v4690_v54 = vmul.f32 %v20429_v52, %v20413_v7  ;;  %v4993_v7 = vsel %vm4715_vm8, %v4710_v30, 0 }
 0x60f   : > { %v4698_v23 = vpack.c.bf16 %v4690_v54, %v4690_v54 }
 0x611   : > { %18086 = vmatmul.mubr.msk.bf16.vlgmr.msra.gmra.mrb[64].mxu0 %vm4607_vm10, %v4698_v23 }
 0x612   : > { %18096 = vmatpush3.bf16.msra.mxu0 %v4901_v55  ;;  %18097 = vmatprep.mubr.msk.bf16.mxu0 %vm20575_vm4, %v20574_v6 }
 0x613   : > { %18107 = vmatprep.subr.bf16.mxu0 %v20574_v6 }
 0x614   : > { %v20431_v58 = vpop.eup %20430 }
 0x615   : > { %v4691_v60 = vmul.f32 %v20431_v58, %v21450_v8 }
 0x617   : > { %v4699_v61 = vpack.c.bf16 %v4691_v60, %v4691_v60 }
 0x619   : > { %18092 = vmatmul.mubr.msk.bf16.vlgmr.msra.gmra.mrb[80].mxu1 %vm4607_vm10, %v4699_v61 }
 0x61a   : > { %18102 = vmatpush3.bf16.msra.mxu1 %v4947_v29  ;;  %18103 = vmatprep.mubr.msk.bf16.mxu1 %vm20575_vm4, %v20574_v6 }
 0x61b   : > { %18113 = vmatprep.subr.bf16.mxu1 %v20574_v6 }
 0x621   : > { %v4670_v62 = vpop.xlane.xlu0 %4669 }
 0x622   : > { %20432 = vrcp.f32 %v4670_v62  ;;  %v4673_v63 = vpop.xlane.xlu1 %4672 }
 0x623   : > { %20434 = vrcp.f32 %v4673_v63 }
 0x62c   : > { %v20433_v1 = vpop.eup %20432 }
 0x62d   : > { %v20435_v19 = vpop.eup %20434  ;;  %v4692_v2 = vmul.f32 %v20433_v1, %v21454_v13 }
 0x62e   : > { %v4693_v20 = vmul.f32 %v20435_v19, %v21456_v15  ;;  %v19736_v15 = vld [vmem:[%s20635_s19 + $0x10] sm:$0xff]  }
 0x62f   : > { %v4700_v56 = vpack.c.bf16 %v4692_v2, %v4692_v2 }
 0x630   : > { %v4701_v4 = vpack.c.bf16 %v4693_v20, %v4693_v20 }
 0x631   : > { %18098 = vmatmul.mubr.msk.bf16.vlgmr.msra.gmra.mrb[68].mxu0 %vm4607_vm10, %v4700_v56 }
 0x632   : > { %18104 = vmatmul.mubr.msk.bf16.vlgmr.msra.gmra.mrb[84].mxu1 %vm4607_vm10, %v4701_v4  ;;  %18108 = vmatpush3.bf16.msra.mxu0 %v4993_v7 }
 0x633   : > { %18114 = vmatpush3.bf16.msra.mxu1 %v5039_v0  ;;  %18109 = vmatprep.mubr.msk.bf16.mxu0 %vm20575_vm4, %v20574_v6 }
 0x634   : > { %18115 = vmatprep.mubr.msk.bf16.mxu1 %vm20575_vm4, %v20574_v6  ;;  %18119 = vmatprep.subr.bf16.mxu0 %v20574_v6 }
 0x635   : > { %18125 = vmatprep.subr.bf16.mxu1 %v20574_v6 }
 0x641   : > { %v4676_v38 = vpop.xlane.xlu0 %4675 }
 0x642   : > { %20436 = vrcp.f32 %v4676_v38  ;;  %v4679_v39 = vpop.xlane.xlu1 %4678 }
 0x643   : > { %20438 = vrcp.f32 %v4679_v39 }
 0x64c   : > { %v20437_v8 = vpop.eup %20436 }
 0x64d   : > { %v20439_v9 = vpop.eup %20438  ;;  %v4694_v5 = vmul.f32 %v20437_v8, %v21462_v48 }
 0x64e   : > { %v4695_v10 = vmul.f32 %v20439_v9, %v21464_v28 }
 0x64f   : > { %v4702_v11 = vpack.c.bf16 %v4694_v5, %v4694_v5 }
 0x650   : > { %v4703_v12 = vpack.c.bf16 %v4695_v10, %v4695_v10 }
 0x651   : > { %18110 = vmatmul.mubr.msk.bf16.vlgmr.msra.gmra.mrb[72].mxu0 %vm4607_vm10, %v4702_v11 }
 0x652   : > { %18116 = vmatmul.mubr.msk.bf16.vlgmr.msra.gmra.mrb[88].mxu1 %vm4607_vm10, %v4703_v12  ;;  %18121 = vmatprep.mubr.msk.bf16.mxu0 %vm20575_vm4, %v20574_v6 }
 0x653   : > { %18127 = vmatprep.mubr.msk.bf16.mxu1 %vm20575_vm4, %v20574_v6  ;;  %18120 = vmatpush3.bf16.msra.mxu0 %v19734_v45 }
 0x654   : > { %18131 = vmatprep.subr.bf16.mxu0 %v20574_v6  ;;  %18126 = vmatpush3.bf16.msra.mxu1 %v19735_v14 }
 0x655   : > { %18137 = vmatprep.subr.bf16.mxu1 %v20574_v6 }
 0x6d3   : > { %v4753_v13 = vpop.f32.mrb[60].mxu0 }
 0x6d4   : > { %v5081_v46 = vpack.c.bf16 %v4753_v13, %v4753_v13  ;;  %v18075_v17 = vpop.f32.mrb[61].mxu0 }
 0x6d5   : > { %v4756_v18 = vpop.f32.mrb[62].mxu0 }
 0x6d6   : > { %v18076_v21 = vpop.f32.mrb[63].mxu0  ;;  %18122 = vmatmul.mubr.msk.bf16.vlgmr.msra.gmra.mrb[76].mxu0 %vm4217_vm7, %v5081_v46 }
 0x6d7   : > { %18132 = vmatpush3.bf16.msra.mxu0 %v19736_v15  ;;  %18133 = vmatprep.mubr.msk.bf16.mxu0 %vm20575_vm4, %v20574_v6 }
 0x6d8   : > { %18143 = vmatprep.subr.bf16.mxu0 %v20574_v6 }
 0x6db   : > { %v4799_v24 = vpop.f32.mrb[76].mxu1 }
 0x6dc   : > { %v5082_v26 = vpack.c.bf16 %v4799_v24, %v4799_v24  ;;  %v18081_v27 = vpop.f32.mrb[77].mxu1 }
 0x6dd   : > { %v4802_v48 = vpop.f32.mrb[78].mxu1 }
 0x6de   : > { %v18082_v28 = vpop.f32.mrb[79].mxu1  ;;  %18128 = vmatmul.mubr.msk.bf16.vlgmr.msra.gmra.mrb[92].mxu1 %vm4217_vm7, %v5082_v26 }
 0x6df   : > { %18138 = vmatpush3.bf16.msra.mxu1 %v19737_v25  ;;  %18139 = vmatprep.mubr.msk.bf16.mxu1 %vm20575_vm4, %v20574_v6 }
 0x6e0   : > { %18149 = vmatprep.subr.bf16.mxu1 %v20574_v6 }
 0x6e4   : > { %v4845_v31 = vpop.f32.mrb[64].mxu0 }
 0x6e5   : > { %v5083_v35 = vpack.c.bf16 %v4845_v31, %v4845_v31  ;;  %v18087_v36 = vpop.f32.mrb[65].mxu0 }
 0x6e6   : > { %v4848_v32 = vpop.f32.mrb[66].mxu0 }
 0x6e7   : > { %v18088_v37 = vpop.f32.mrb[67].mxu0  ;;  %18134 = vmatmul.mubr.msk.bf16.vlgmr.msra.gmra.mrb[80].mxu0 %vm4217_vm7, %v5083_v35 }
 0x6e8   : > { %18144 = vmatpush3.bf16.msra.mxu0 %v19738_v34  ;;  %18145 = vmatprep.mubr.msk.bf16.mxu0 %vm20575_vm4, %v20574_v6 }
 0x6e9   : > { %18155 = vmatprep.subr.bf16.mxu0 %v20574_v6 }
 0x6ec   : > { %v4891_v33 = vpop.f32.mrb[80].mxu1 }
 0x6ed   : > { %v5084_v41 = vpack.c.bf16 %v4891_v33, %v4891_v33  ;;  %v18093_v42 = vpop.f32.mrb[81].mxu1 }
 0x6ee   : > { %v4894_v43 = vpop.f32.mrb[82].mxu1 }
 0x6ef   : > { %v18094_v57 = vpop.f32.mrb[83].mxu1  ;;  %18140 = vmatmul.mubr.msk.bf16.vlgmr.msra.gmra.mrb[96].mxu1 %vm4217_vm7, %v5084_v41 }
 0x6f0   : > { %18150 = vmatpush3.bf16.msra.mxu1 %v19739_v40  ;;  %18151 = vmatprep.mubr.msk.bf16.mxu1 %vm20575_vm4, %v20574_v6 }
 0x6f1   : > { %18161 = vmatprep.subr.bf16.mxu1 %v20574_v6 }
 0x704   : > { %v4937_v44 = vpop.f32.mrb[68].mxu0 }
 0x705   : > { %v5085_v49 = vpack.c.bf16 %v4937_v44, %v4937_v44  ;;  %v4983_v50 = vpop.f32.mrb[84].mxu1  ;;  %v18099_v52 = vpop.f32.mrb[69].mxu0 }
 0x706   : > { %v5086_v54 = vpack.c.bf16 %v4983_v50, %v4983_v50  ;;  %v18105_v23 = vpop.f32.mrb[85].mxu1  ;;  %v4940_v55 = vpop.f32.mrb[70].mxu0  ;;  %v19742_v52 = vld [vmem:[%s20655_s12] ss:$16 sps:$4 sm:$0xff]  }
 0x707   : > { %v4986_v58 = vpop.f32.mrb[86].mxu1  ;;  %v18100_v59 = vpop.f32.mrb[71].mxu0  ;;  %18146 = vmatmul.mubr.msk.bf16.vlgmr.msra.gmra.mrb[84].mxu0 %vm4217_vm7, %v5085_v49  ;;  %v19747_v23 = vld [vmem:[%s20655_s12 + $0xc] ss:$16 sps:$4 sm:$0xff]   ;;  %v19750_v55 = vld [vmem:[%s20655_s12 + $0x24] ss:$16 sps:$4 sm:$0xff]  }
 0x708   : > { %v18106_v60 = vpop.f32.mrb[87].mxu1  ;;  %18152 = vmatmul.mubr.msk.bf16.vlgmr.msra.gmra.mrb[100].mxu1 %vm4217_vm7, %v5086_v54  ;;  %18156 = vmatpush3.bf16.msra.mxu0 %v19740_v22  ;;  %v15890_v22 = vld [vmem:[%s20640_s24] ss:$0 sm:$0xff]  ;;  %v19745_v54 = vld [vmem:[%s20655_s12 + $0x8] ss:$16 sps:$4 sm:$0xff]  }
 0x709   : > { %18162 = vmatpush3.bf16.msra.mxu1 %v19741_v53  ;;  %18157 = vmatprep.mubr.msk.bf16.mxu0 %vm20575_vm4, %v20574_v6  ;;  %v19744_v53 = vld [vmem:[%s20655_s12 + $0x4] ss:$16 sps:$4 sm:$0xff]   ;;  %v19753_v58 = vld [vmem:[%s20655_s12 + $0x2c] ss:$16 sps:$4 sm:$0xff]   ;;  %v19748_v59 = vld [vmem:[%s20655_s12 + $0x20] ss:$16 sps:$4 sm:$0xff]  }
 0x70a   : > { %18163 = vmatprep.mubr.msk.bf16.mxu1 %vm20575_vm4, %v20574_v6  ;;  %5755 = vmatprep.subr.bf16.mxu0 %v19744_v53  ;;  %v19756_v60 = vld [vmem:[%s20655_s12 + $0x44] ss:$16 sps:$4 sm:$0xff]   ;;  %v19804_v53 = vld [vmem:[%s20665_s27 + $0x18] sm:$0xff]  }
 0x70b   : > { %5796 = vmatprep.subr.bf16.mxu1 %v19747_v23  ;;  %v19806_v23 = vld [vmem:[%s20665_s27 + $0x60] sm:$0xff]  }
 0x724   : > { %v5029_v61 = vpop.f32.mrb[72].mxu0 }
 0x725   : > { %v5087_v29 = vpack.c.bf16 %v5029_v61, %v5029_v61  ;;  %v5075_v62 = vpop.f32.mrb[88].mxu1  ;;  %v18111_v63 = vpop.f32.mrb[73].mxu0  ;;  %v19759_v61 = vld [vmem:[%s20655_s12 + $0x4c] ss:$16 sps:$4 sm:$0xff]  }
 0x726   : > { %v5088_v1 = vpack.c.bf16 %v5075_v62, %v5075_v62  ;;  %v18117_v19 = vpop.f32.mrb[89].mxu1  ;;  %v5032_v30 = vpop.f32.mrb[74].mxu0  ;;  %v19757_v62 = vld [vmem:[%s20655_s12 + $0x48] ss:$16 sps:$4 sm:$0xff]  }
 0x727   : > { %v5078_v2 = vpop.f32.mrb[90].mxu1  ;;  %v18112_v3 = vpop.f32.mrb[75].mxu0  ;;  %18158 = vmatmul.mubr.msk.bf16.vlgmr.msra.gmra.mrb[88].mxu0 %vm4217_vm7, %v5087_v29  ;;  %v19754_v29 = vld [vmem:[%s20655_s12 + $0x40] ss:$16 sps:$4 sm:$0xff]  }
 0x728   : > { %v18118_v20 = vpop.f32.mrb[91].mxu1  ;;  %18164 = vmatmul.mubr.msk.bf16.vlgmr.msra.gmra.mrb[104].mxu1 %vm4217_vm7, %v5088_v1  ;;  %5756 = vmatpush1.bf16.msra.mxu0 %v19742_v52  ;;  %v19762_v2 = vld [vmem:[%s20655_s12 + $0x64] ss:$16 sps:$4 sm:$0xff]   ;;  %v19765_v3 = vld [vmem:[%s20655_s12 + $0x6c] ss:$16 sps:$4 sm:$0xff]  }
 0x729   : > { %5797 = vmatpush1.bf16.msra.mxu1 %v19745_v54  ;;  %5757 = vmatprep.subr.bf16.mxu0 %v19750_v55  ;;  %v19760_v20 = vld [vmem:[%s20655_s12 + $0x60] ss:$16 sps:$4 sm:$0xff]   ;;  %v19803_v52 = vld [vmem:[%s20665_s27 + $0xd8] sm:$0xff]  }
 0x72a   : > { %5798 = vmatprep.subr.bf16.mxu1 %v19753_v58  ;;  %v19805_v54 = vld [vmem:[%s20665_s27 + $0x98] sm:$0xff]   ;;  %v19807_v55 = vld [vmem:[%s20665_s27 + $0xe0] sm:$0xff]  }
 0x72b   : > { %v19808_v58 = vld [vmem:[%s20665_s27 + $0x20] sm:$0xff]  }
 0x72c   : > { %5758 = vmatpush1.bf16.msra.mxu0 %v19748_v59  ;;  %v19809_v59 = vld [vmem:[%s20665_s27 + $0xa0] sm:$0xff]  }
 0x72d   : > { %5759 = vmatprep.subr.bf16.mxu0 %v19756_v60  ;;  %v19811_v60 = vld [vmem:[%s20665_s27 + $0xe8] sm:$0xff]  }
 0x730   : > { %5760 = vmatpush1.bf16.msra.mxu0 %v19754_v29  ;;  %v19813_v29 = vld [vmem:[%s20665_s27 + $0xa8] sm:$0xff]  }
 0x731   : > { %5761 = vmatprep.subr.bf16.mxu0 %v19762_v2  ;;  %v19819_v2 = vld [vmem:[%s20665_s27 + $0xf8] sm:$0xff]  }
 0x734   : > { %5762 = vmatpush1.bf16.msra.mxu0 %v19760_v20  ;;  %v19821_v20 = vld [vmem:[%s20665_s27 + $0xb8] sm:$0xff]  }
 0x7a9   : > { %v5148_v56 = vpop.f32.mrb[76].mxu0 }
 0x7aa   : > { %v18123_v4 = vpop.f32.mrb[77].mxu0 }
 0x7ab   : > { %v5151_v7 = vpop.f32.mrb[78].mxu0  ;;  %v19768_v4 = vld [vmem:[%s20655_s12 + $0x84] ss:$16 sps:$4 sm:$0xff]  }
 0x7ac   : > { %v18124_v0 = vpop.f32.mrb[79].mxu0  ;;  %v19771_v7 = vld [vmem:[%s20655_s12 + $0x8c] ss:$16 sps:$4 sm:$0xff]   ;;  %5763 = vmatprep.subr.bf16.mxu0 %v19768_v4  ;;  %v21637_v4 = vsub.s32 2, %v21416_v47 }
 0x7ad   : > { %v19766_v0 = vld [vmem:[%s20655_s12 + $0x80] ss:$16 sps:$4 sm:$0xff]  }
 0x7ae   : > { %5764 = vmatpush1.bf16.msra.mxu0 %v19766_v0  ;;  %v21641_v0 = vsub.s32 1, %v21416_v47 }
 0x7b1   : > { %v5197_v38 = vpop.f32.mrb[92].mxu1 }
 0x7b2   : > { %v5497_v39 = vadd.f32 %v5197_v38, %v5148_v56  ;;  %v18129_v8 = vpop.f32.mrb[93].mxu1  ;;  %v19763_v56 = vld [vmem:[%s20655_s12 + $0x68] ss:$16 sps:$4 sm:$0xff]  }
 0x7b3   : > { %v5200_v9 = vpop.f32.mrb[94].mxu1  ;;  %v19769_v38 = vld [vmem:[%s20655_s12 + $0x88] ss:$16 sps:$4 sm:$0xff]   ;;  %v19777_v8 = vld [vmem:[%s20655_s12 + $0xac] ss:$16 sps:$4 sm:$0xff]  }
 0x7b4   : > { %v18130_v5 = vpop.f32.mrb[95].mxu1  ;;  %v19772_v9 = vld [vmem:[%s20655_s12 + $0xa0] ss:$16 sps:$4 sm:$0xff]  }
 0x7b5   : > { %v19775_v5 = vld [vmem:[%s20655_s12 + $0xa8] ss:$16 sps:$4 sm:$0xff]  }
 0x7ba   : > { %v5246_v10 = vpop.f32.mrb[80].mxu0 }
 0x7bb   : > { %v5498_v11 = vadd.f32 %v5497_v39, %v5246_v10  ;;  %v18135_v12 = vpop.f32.mrb[81].mxu0  ;;  %v19774_v39 = vld [vmem:[%s20655_s12 + $0xa4] ss:$16 sps:$4 sm:$0xff]  }
 0x7bc   : > { %v5249_v45 = vpop.f32.mrb[82].mxu0  ;;  %5765 = vmatprep.subr.bf16.mxu0 %v19774_v39  ;;  %v19780_v10 = vld [vmem:[%s20655_s12 + $0xc4] ss:$16 sps:$4 sm:$0xff]   ;;  %v20576_v12 = vmov 0  }
 0x7bd   : > { %v18136_v14 = vpop.f32.mrb[83].mxu0  ;;  %5787 = vmatprep.mubr.bf16.mxu0 %v20576_v12  ;;  %5828 = vmatprep.mubr.bf16.mxu1 %v20576_v12  ;;  %v19778_v45 = vld [vmem:[%s20655_s12 + $0xc0] ss:$16 sps:$4 sm:$0xff]  }
 0x7be   : > { %5766 = vmatpush1.bf16.msra.mxu0 %v19772_v9  ;;  %v19781_v14 = vld [vmem:[%s20655_s12 + $0xc8] ss:$16 sps:$4 sm:$0xff]  }
 0x7bf   : > { %5767 = vmatprep.subr.bf16.mxu0 %v19780_v10 }
 0x7c2   : > { %v5295_v13 = vpop.f32.mrb[96].mxu1  ;;  %5768 = vmatpush1.bf16.msra.mxu0 %v19778_v45 }
 0x7c3   : > { %v5499_v15 = vadd.f32 %v5498_v11, %v5295_v13  ;;  %v18141_v46 = vpop.f32.mrb[97].mxu1  ;;  %v19783_v11 = vld [vmem:[%s20655_s12 + $0xcc] ss:$16 sps:$4 sm:$0xff]   ;;  %v19786_v13 = vld [vmem:[%s20655_s12 + $0xe4] ss:$16 sps:$4 sm:$0xff]  }
 0x7c4   : > { %v5298_v17 = vpop.f32.mrb[98].mxu1  ;;  %v19784_v46 = vld [vmem:[%s20655_s12 + $0xe0] ss:$16 sps:$4 sm:$0xff]   ;;  %5769 = vmatprep.subr.bf16.mxu0 %v19786_v13 }
 0x7c5   : > { %v18142_v18 = vpop.f32.mrb[99].mxu1  ;;  %v19787_v17 = vld [vmem:[%s20655_s12 + $0xe8] ss:$16 sps:$4 sm:$0xff]  }
 0x7c6   : > { %5770 = vmatpush1.bf16.msra.mxu0 %v19784_v46  ;;  %v19790_v18 = vld [vmem:[%s20665_s27 + $0x40] sm:$0xff]  }
 0x7c7   : > { %16844 = vmatprep.subr.bf16.mxu0 %v19790_v18 }
 0x7da   : > { %v5344_v21 = vpop.f32.mrb[84].mxu0 }
 0x7db   : > { %v5500_v24 = vadd.f32 %v5499_v15, %v5344_v21  ;;  %v5393_v25 = vpop.f32.mrb[100].mxu1  ;;  %v18147_v26 = vpop.f32.mrb[85].mxu0  ;;  %v19789_v15 = vld [vmem:[%s20655_s12 + $0xec] ss:$16 sps:$4 sm:$0xff]   ;;  %v19791_v21 = vld [vmem:[%s20665_s27 + $0xc0] sm:$0xff]  }
 0x7dc   : > { %v18153_v27 = vpop.f32.mrb[101].mxu1  ;;  %v5347_v48 = vpop.f32.mrb[86].mxu0 }
 0x7dd   : > { %v5501_v28 = vadd.f32 %v5500_v24, %v5393_v25  ;;  %v5396_v31 = vpop.f32.mrb[102].mxu1  ;;  %v18148_v34 = vpop.f32.mrb[87].mxu0  ;;  %v15891_v48 = vld [vmem:[%s23313_s22] ss:$0 sm:$0xff]  ;;  %s23325_s22 = sld [smem:[#allocation16_spill]] }
 0x7de   : > { %v18154_v35 = vpop.f32.mrb[103].mxu1  ;;  %v15892_v31 = vld [vmem:[%s23314_s23] ss:$0 sm:$0xff]  ;;  %s23326_s23 = sld [smem:[#allocation19_spill]] }
 0x7fa   : > { %v5442_v36 = vpop.f32.mrb[88].mxu0 }
 0x7fb   : > { %v5502_v32 = vadd.f32 %v5501_v28, %v5442_v36  ;;  %v5491_v37 = vpop.f32.mrb[104].mxu1  ;;  %v18159_v33 = vpop.f32.mrb[89].mxu0  ;;  %v19792_v36 = vld [vmem:[%s20665_s27] sm:$0xff]  }
 0x7fc   : > { %v18165_v40 = vpop.f32.mrb[105].mxu1  ;;  %v5445_v41 = vpop.f32.mrb[90].mxu0  ;;  %v19794_v33 = vld [vmem:[%s20665_s27 + $0x48] sm:$0xff]  }
 0x7fd   : > { %v5503_v42 = vadd.f32 %v5502_v32, %v5491_v37  ;;  %v5494_v43 = vpop.f32.mrb[106].mxu1  ;;  %v18160_v57 = vpop.f32.mrb[91].mxu0  ;;  %v19793_v32 = vld [vmem:[%s20665_s27 + $0x80] sm:$0xff]   ;;  %v19795_v40 = vld [vmem:[%s20665_s27 + $0xc8] sm:$0xff]  }
 0x7fe   : > { %v18166_v44 = vpop.f32.mrb[107].mxu1  ;;  %v19796_v41 = vld [vmem:[%s20665_s27 + $0x8] sm:$0xff]   ;;  %v19798_v43 = vld [vmem:[%s20665_s27 + $0x50] sm:$0xff]  }
 0x7ff   : > { %v5504_v49 = vadd.f32 %v5503_v42, %v20864_v16  ;;  %v19751_v16 = vld [vmem:[%s20655_s12 + $0x28] ss:$16 sps:$4 sm:$0xff]   ;;  %v19799_v57 = vld [vmem:[%s20665_s27 + $0xd0] sm:$0xff]  }
 0x800   : > { %5799 = vmatpush1.bf16.msra.mxu1 %v19751_v16  ;;  %v19797_v42 = vld [vmem:[%s20665_s27 + $0x88] sm:$0xff]   ;;  %v19800_v44 = vld [vmem:[%s20665_s27 + $0x10] sm:$0xff]  }
 0x801   : > { %v21559_v50 = vadd.f32 %v15890_v22, %v5504_v49  ;;  %5800 = vmatprep.subr.bf16.mxu1 %v19759_v61  ;;  %v19801_v22 = vld [vmem:[%s20665_s27 + $0x90] sm:$0xff]   ;;  %v19802_v49 = vld [vmem:[%s20665_s27 + $0x58] sm:$0xff]   ;;  %v19810_v16 = vld [vmem:[%s20665_s27 + $0x68] sm:$0xff]  }
 0x802   : > { %v19812_v61 = vld [vmem:[%s20665_s27 + $0x28] sm:$0xff]  }
 0x803   : > { %5515 = vadd.xlane.f32.xlu0 %v21559_v50 }
 0x804   : > { %5801 = vmatpush1.bf16.msra.mxu1 %v19757_v62  ;;  %v19814_v62 = vld [vmem:[%s20665_s27 + $0x70] sm:$0xff]  }
 0x805   : > { %5802 = vmatprep.subr.bf16.mxu1 %v19765_v3  ;;  %v19820_v3 = vld [vmem:[%s20665_s27 + $0x38] sm:$0xff]  }
 0x808   : > { %5803 = vmatpush1.bf16.msra.mxu1 %v19763_v56  ;;  %v21634_v56 = vsub.s32 0, %v21416_v47 }
 0x809   : > { %5804 = vmatprep.subr.bf16.mxu1 %v19771_v7  ;;  %v5573_v7 = vld [vmem:[%s23315_s26] sm:$0xf]  ;;  %s23327_s26 = sld [smem:[#allocation21_spill]] }
 0x80a   : > { %v5578_v39 = vrot.slane %v5573_v7, %v21634_v56  ;;  %v5582_v9 = vrot.slane %v5573_v7, %v21641_v0 }
 0x80c   : > { %5805 = vmatpush1.bf16.msra.mxu1 %v19769_v38  ;;  %v21644_v38 = vsub.s32 3, %v21416_v47 }
 0x80d   : > { %5806 = vmatprep.subr.bf16.mxu1 %v19777_v8  ;;  %v5586_v8 = vrot.slane %v5573_v7, %v21637_v4 }
 0x810   : > { %5807 = vmatpush1.bf16.msra.mxu1 %v19775_v5  ;;  %v5590_v5 = vrot.slane %v5573_v7, %v21644_v38  ;;  %v19832_v7 = vld [vmem:[%s23319_s10 + $0x8] sm:$0xff]  }
 0x811   : > { %5808 = vmatprep.subr.bf16.mxu1 %v19783_v11 }
 0x814   : > { %5809 = vmatpush1.bf16.msra.mxu1 %v19781_v14 }
 0x815   : > { %5810 = vmatprep.subr.bf16.mxu1 %v19789_v15 }
 0x818   : > { %5811 = vmatpush1.bf16.msra.mxu1 %v19787_v17 }
 0x819   : > { %16866 = vmatprep.subr.bf16.mxu1 %v19791_v21 }
 0x890   : > { %v5516_v63 = vpop.xlane.xlu0 %5515 }
 0x891   : > { %v5517_v1 = vmul.f32 0.0078125, %v5516_v63  ;;  %v19815_v63 = vld [vmem:[%s20665_s27 + $0xf0] sm:$0xff]  }
 0x893   : > { %v5518_v19 = vsub.f32 %v21559_v50, %v5517_v1  ;;  %v19816_v1 = vld [vmem:[%s20665_s27 + $0x30] sm:$0xff]  }
 0x895   : > { %v5519_v30 = vmul.f32 %v5518_v19, %v5518_v19 }
 0x897   : > { %5520 = vadd.xlane.f32.xlu1 %v5519_v30  ;;  %v19818_v30 = vld [vmem:[%s20665_s27 + $0x78] sm:$0xff]  }
 0x924   : > { %v5521_v24 = vpop.xlane.xlu1 %5520 }
 0x925   : > { %v5522_v25 = vmul.f32 0.0078125, %v5521_v24 }
 0x927   : > { %v5523_v26 = vadd.f32 1e-05, %v5522_v25 }
 0x929   : > { %20440 = vrsqrt.f32 %v5523_v26 }
 0x933   : > { %v20441_v27 = vpop.eup %20440 }
 0x934   : > { %v5525_v28 = vmul.f32 %v20441_v27, %v5518_v19  ;;  %v19817_v19 = vld [vmem:[%s20665_s27 + $0xb0] sm:$0xff]  }
 0x936   : > { %v5532_v34 = vmul.f32 %v15891_v48, %v5525_v28 }
 0x938   : > { %v5539_v35 = vadd.f32 %v15892_v31, %v5532_v34  ;;  %v19822_v34 = vld [vmem:[%s23316_s28] sm:$0xff]  }
 0x93a   : > { %v5540_v37 = vpack.c.bf16 %v5539_v35, %v5539_v35 }
 0x93c   : > { %5788 = vmatmul.mubr.bf16.vlgmr.msra.gmra.mrb[92].mxu0 %v5540_v37  ;;  %5829 = vmatmul.mubr.bf16.vlgmr.msra.gmra.mrb[108].mxu1 %v5540_v37  ;;  %v19824_v37 = vld [vmem:[%s23316_s28 + $0x10] sm:$0xff]  }
 0x93d   : > { %16845 = vmatpush3.bf16.msra.mxu0 %v19792_v36  ;;  %16867 = vmatpush3.bf16.msra.mxu1 %v19793_v32  ;;  %v19823_v32 = vld [vmem:[%s23316_s28 + $0x8] sm:$0xff]  }
 0x93e   : > { %16846 = vmatprep.subr.bf16.mxu0 %v19794_v33  ;;  %16868 = vmatprep.subr.bf16.mxu1 %v19795_v40  ;;  %v19825_v33 = vld [vmem:[%s23316_s28 + $0x18] sm:$0xff]   ;;  %v19826_v40 = vld [vmem:[%s23316_s28 + $0x20] sm:$0xff]  }
 0x941   : > { %16847 = vmatpush3.bf16.msra.mxu0 %v19796_v41  ;;  %16869 = vmatpush3.bf16.msra.mxu1 %v19797_v42  ;;  %v19827_v41 = vld [vmem:[%s23316_s28 + $0x28] sm:$0xff]   ;;  %v19828_v42 = vld [vmem:[%s23316_s28 + $0x30] sm:$0xff]  }
 0x942   : > { %16848 = vmatprep.subr.bf16.mxu0 %v19798_v43  ;;  %16870 = vmatprep.subr.bf16.mxu1 %v19799_v57  ;;  %v19829_v43 = vld [vmem:[%s23316_s28 + $0x38] sm:$0xff]  }
 0x945   : > { %16849 = vmatpush3.bf16.msra.mxu0 %v19800_v44  ;;  %16871 = vmatpush3.bf16.msra.mxu1 %v19801_v22  ;;  %v15925_v22 = vld [vmem:[%s23317_s1] ss:$0 sm:$0xff]  ;;  %s23328_s1 = sld [smem:[#allocation17_spill]] }
 0x946   : > { %16850 = vmatprep.subr.bf16.mxu0 %v19802_v49  ;;  %16872 = vmatprep.subr.bf16.mxu1 %v19803_v52 }
 0x949   : > { %16851 = vmatpush3.bf16.msra.mxu0 %v19804_v53  ;;  %16873 = vmatpush3.bf16.msra.mxu1 %v19805_v54 }
 0x94a   : > { %16852 = vmatprep.subr.bf16.mxu0 %v19806_v23  ;;  %16874 = vmatprep.subr.bf16.mxu1 %v19807_v55 }
 0x94d   : > { %16853 = vmatpush3.bf16.msra.mxu0 %v19808_v58  ;;  %16875 = vmatpush3.bf16.msra.mxu1 %v19809_v59 }
 0x94e   : > { %16854 = vmatprep.subr.bf16.mxu0 %v19810_v16  ;;  %16876 = vmatprep.subr.bf16.mxu1 %v19811_v60 }
 0x951   : > { %16855 = vmatpush3.bf16.msra.mxu0 %v19812_v61  ;;  %16877 = vmatpush3.bf16.msra.mxu1 %v19813_v29 }
 0x952   : > { %16856 = vmatprep.subr.bf16.mxu0 %v19814_v62  ;;  %16878 = vmatprep.subr.bf16.mxu1 %v19815_v63  ;;  %v15958_v62 = vld [vmem:[%s23318_s2] ss:$0 sm:$0xff]  ;;  %s23329_s2 = sld [smem:[#allocation18_spill]] }
 0x955   : > { %16857 = vmatpush3.bf16.msra.mxu0 %v19816_v1  ;;  %16879 = vmatpush3.bf16.msra.mxu1 %v19817_v19 }
 0x956   : > { %16858 = vmatprep.subr.bf16.mxu0 %v19818_v30  ;;  %16880 = vmatprep.subr.bf16.mxu1 %v19819_v2 }
 0x959   : > { %16859 = vmatpush3.bf16.msra.mxu0 %v19820_v3  ;;  %16881 = vmatpush3.bf16.msra.mxu1 %v19821_v20  ;;  %v19831_v20 = vld [vmem:[%s23319_s10 + $0x40] sm:$0xff]  }
 0x95a   : > { %18167 = vmatprep.subr.bf16.mxu0 %v20574_v6  ;;  %18187 = vmatprep.subr.bf16.mxu1 %v20574_v6 }
 0xa0f   : > { %v5789_v10 = vpop.f32.mrb[92].mxu0  ;;  %v5830_v11 = vpop.f32.mrb[108].mxu1 }
 0xa10   : > { %v5790_v45 = vadd.f32 %v5789_v10, %v5578_v39  ;;  %v5831_v14 = vadd.f32 %v5830_v11, %v5586_v8  ;;  %v5791_v13 = vpop.f32.mrb[93].mxu0  ;;  %v5832_v15 = vpop.f32.mrb[109].mxu1  ;;  %v19833_v39 = vld [vmem:[%s23319_s10 + $0x48] sm:$0xff]   ;;  %v19834_v8 = vld [vmem:[%s23319_s10 + $0x10] sm:$0xff]  }
 0xa11   : > { %v5792_v46 = vadd.f32 %v5791_v13, %v5582_v9  ;;  %v5833_v17 = vadd.f32 %v5832_v15, %v5590_v5  ;;  %v5793_v18 = vpop.f32.mrb[94].mxu0  ;;  %v5834_v47 = vpop.f32.mrb[110].mxu1  ;;  %v19835_v9 = vld [vmem:[%s23319_s10 + $0x50] sm:$0xff]   ;;  %v19837_v13 = vld [vmem:[%s23319_s10 + $0x58] sm:$0xff]   ;;  %v19838_v15 = vld [vmem:[%s23319_s10 + $0x20] sm:$0xff]  }
 0xa12   : > { %v5837_v21 = vmax.f32 %v5790_v45, 0.0  ;;  %v5839_v24 = vmax.f32 %v5831_v14, 0.0  ;;  %v5794_v25 = vpop.f32.mrb[95].mxu0  ;;  %v5835_v26 = vpop.f32.mrb[111].mxu1  ;;  %v19836_v14 = vld [vmem:[%s23319_s10 + $0x18] sm:$0xff]   ;;  %v19841_v18 = vld [vmem:[%s23319_s10 + $0x68] sm:$0xff]  }
 0xa13   : > { %v5838_v27 = vmax.f32 %v5792_v46, 0.0  ;;  %v5840_v48 = vmax.f32 %v5833_v17, 0.0  ;;  %v19839_v46 = vld [vmem:[%s23319_s10 + $0x60] sm:$0xff]   ;;  %v19840_v17 = vld [vmem:[%s23319_s10 + $0x28] sm:$0xff]   ;;  %v19842_v47 = vld [vmem:[%s23319_s10 + $0x30] sm:$0xff]  }
 0xa14   : > { %v5841_v35 = vpack.c.bf16 %v5837_v21, %v5837_v21  ;;  %v5843_v36 = vpack.c.bf16 %v5839_v24, %v5839_v24  ;;  %v19843_v21 = vld [vmem:[%s23319_s10 + $0x70] sm:$0xff]   ;;  %v19844_v24 = vld [vmem:[%s23319_s10 + $0x38] sm:$0xff]  }
 0xa15   : > { %v5842_v28 = vpack.c.bf16 %v5838_v27, %v5838_v27  ;;  %v5844_v31 = vpack.c.bf16 %v5840_v48, %v5840_v48  ;;  %v19845_v25 = vld [vmem:[%s23319_s10 + $0x78] sm:$0xff]  }
 0xa17   : > { %6140 = vmatprep.mubr.bf16.mxu0 %v5842_v28  ;;  %6180 = vmatprep.mubr.bf16.mxu1 %v5844_v31  ;;  %v15967_v31 = vld [vmem:[%s23320_s7] ss:$0 sm:$0xff]  ;;  %s23330_s7 = sld [smem:[#allocation20_spill]] }
 0xa18   : > { %6141 = vmatmul.mubr.bf16.vlgmr.msra.gmra.mrb[96].mxu0 %v5841_v35  ;;  %6181 = vmatmul.mubr.bf16.vlgmr.msra.gmra.mrb[112].mxu1 %v5843_v36  ;;  %v15968_v35 = vld [vmem:[%s23321_s11] ss:$0 sm:$0xff]  ;;  %s23331_s11 = sld [smem:[#allocation23_spill]] }
 0xa19   : > { %18168 = vmatpush3.bf16.msra.mxu0 %v19822_v34  ;;  %18183 = vmatprep.mubr.msk.bf16.mxu0 %vm20575_vm4, %v20574_v6 }
 0xa1a   : > { %18169 = vmatprep.subr.bf16.mxu0 %v20574_v6  ;;  %18203 = vmatprep.mubr.msk.bf16.mxu1 %vm20575_vm4, %v20574_v6 }
 0xa1d   : > { %18170 = vmatpush3.bf16.msra.mxu0 %v19823_v32 }
 0xa1e   : > { %18171 = vmatprep.subr.bf16.mxu0 %v20574_v6 }
 0xa21   : > { %18172 = vmatpush3.bf16.msra.mxu0 %v19824_v37  ;;  %v19846_v37 = vld [vmem:[%s23319_s10 + $0x80] sm:$0xff]  }
 0xa22   : > { %18173 = vmatprep.subr.bf16.mxu0 %v20574_v6 }
 0xa25   : > { %18174 = vmatpush3.bf16.msra.mxu0 %v19825_v33  ;;  %v19847_v33 = vld [vmem:[%s23319_s10 + $0xc0] sm:$0xff]  }
 0xa26   : > { %18175 = vmatprep.subr.bf16.mxu0 %v20574_v6 }
 0xa29   : > { %18176 = vmatpush3.bf16.msra.mxu0 %v19826_v40 }
 0xa2a   : > { %18177 = vmatprep.subr.bf16.mxu0 %v20574_v6 }
 0xa2d   : > { %18178 = vmatpush3.bf16.msra.mxu0 %v19827_v41  ;;  %v19848_v41 = vld [vmem:[%s23319_s10 + $0x88] sm:$0xff]  }
 0xa2e   : > { %18179 = vmatprep.subr.bf16.mxu0 %v20574_v6 }
 0xa31   : > { %18180 = vmatpush3.bf16.msra.mxu0 %v19828_v42  ;;  %v19849_v42 = vld [vmem:[%s23319_s10 + $0xc8] sm:$0xff]  }
 0xa32   : > { %18181 = vmatprep.subr.bf16.mxu0 %v20574_v6 }
 0xa35   : > { %18182 = vmatpush3.bf16.msra.mxu0 %v19829_v43  ;;  %v19850_v43 = vld [vmem:[%s23319_s10 + $0x90] sm:$0xff]  }
 0xa36   : > { %18207 = vmatprep.subr.bf16.mxu0 %v20574_v6 }
 0xaeb   : > { %v16860_v57 = vpop.f32.mrb[96].mxu0  ;;  %v16882_v44 = vpop.f32.mrb[112].mxu1 }
 0xaec   : > { %v16861_v49 = vpop.f32.mrb[97].mxu0  ;;  %v16883_v52 = vpop.f32.mrb[113].mxu1 }
 0xaed   : > { %v16862_v53 = vadd.f32 %v16861_v49, %v16860_v57  ;;  %v16884_v54 = vadd.f32 %v16883_v52, %v16882_v44  ;;  %v16863_v23 = vpop.f32.mrb[98].mxu0  ;;  %v16885_v55 = vpop.f32.mrb[114].mxu1  ;;  %v19851_v57 = vld [vmem:[%s23319_s10 + $0xd0] sm:$0xff]   ;;  %v19852_v44 = vld [vmem:[%s23319_s10 + $0x98] sm:$0xff]   ;;  %v19854_v49 = vld [vmem:[%s23319_s10 + $0xa0] sm:$0xff]  }
 0xaee   : > { %v16864_v58 = vpop.f32.mrb[99].mxu0  ;;  %v16886_v59 = vpop.f32.mrb[115].mxu1  ;;  %v19855_v52 = vld [vmem:[%s23319_s10 + $0xe0] sm:$0xff]   ;;  %v19858_v23 = vld [vmem:[%s23319_s10 + $0xb0] sm:$0xff]  }
 0xaef   : > { %v6143_v16 = vadd.f32 %v16862_v53, %v15925_v22  ;;  %v19853_v22 = vld [vmem:[%s23319_s10 + $0xd8] sm:$0xff]   ;;  %v19856_v53 = vld [vmem:[%s23319_s10 + $0xa8] sm:$0xff]   ;;  %v19859_v55 = vld [vmem:[%s23319_s10 + $0xf0] sm:$0xff]  }
 0xaf0   : > { %v19860_v58 = vld [vmem:[%s23319_s10 + $0xb8] sm:$0xff]  }
 0xaf1   : > { %v6183_v60 = vadd.f32 %v16884_v54, %v6143_v16  ;;  %v19857_v54 = vld [vmem:[%s23319_s10 + $0xe8] sm:$0xff]   ;;  %v19861_v59 = vld [vmem:[%s23319_s10 + $0xf8] sm:$0xff]   ;;  %v19862_v16 = vld [vmem:[%s23319_s10 + $0x100] sm:$0xff]  }
 0xaf3   : > { %v6188_v61 = vadd.f32 %v6183_v60, %v21559_v50  ;;  %v19830_v50 = vld [vmem:[%s23319_s10] sm:$0xff]  }
 0xaf4   : > { %18188 = vmatpush3.bf16.msra.mxu1 %v19830_v50  ;;  %v19863_v60 = vld [vmem:[%s23319_s10 + $0x140] sm:$0xff]   ;;  %v19872_v50 = vld [vmem:[%s23319_s10 + $0x128] sm:$0xff]  }
 0xaf5   : > { %v6189_v29 = vpack.c.bf16 %v6188_v61, %v6188_v61  ;;  %18189 = vmatprep.subr.bf16.mxu1 %v20574_v6  ;;  %v19864_v61 = vld [vmem:[%s23319_s10 + $0x108] sm:$0xff]  }
 0xaf7   : > { %18184 = vmatmul.mubr.bf16.vlgmr.msra.gmra.mrb[100].mxu0 %v6189_v29  ;;  %v19865_v29 = vld [vmem:[%s23319_s10 + $0x148] sm:$0xff]  }
 0xaf8   : > { %18223 = vmatprep.mubr.msk.bf16.mxu0 %vm20575_vm4, %v20574_v6  ;;  %18208 = vmatpush3.bf16.msra.mxu0 %v19831_v20  ;;  %v19873_v20 = vld [vmem:[%s23319_s10 + $0x168] sm:$0xff]  }
 0xaf9   : > { %18209 = vmatprep.subr.bf16.mxu0 %v20574_v6  ;;  %18190 = vmatpush3.bf16.msra.mxu1 %v19832_v7  ;;  %v19874_v7 = vld [vmem:[%s23319_s10 + $0x130] sm:$0xff]  }
 0xafa   : > { %18191 = vmatprep.subr.bf16.mxu1 %v20574_v6 }
 0xafc   : > { %18210 = vmatpush3.bf16.msra.mxu0 %v19833_v39  ;;  %v19875_v39 = vld [vmem:[%s23319_s10 + $0x170] sm:$0xff]  }
 0xafd   : > { %18211 = vmatprep.subr.bf16.mxu0 %v20574_v6  ;;  %18192 = vmatpush3.bf16.msra.mxu1 %v19834_v8  ;;  %v19876_v8 = vld [vmem:[%s23319_s10 + $0x138] sm:$0xff]  }
 0xafe   : > { %18193 = vmatprep.subr.bf16.mxu1 %v20574_v6 }
 0xb00   : > { %18212 = vmatpush3.bf16.msra.mxu0 %v19835_v9  ;;  %v19877_v9 = vld [vmem:[%s23319_s10 + $0x178] sm:$0xff]  }
 0xb01   : > { %18213 = vmatprep.subr.bf16.mxu0 %v20574_v6  ;;  %18194 = vmatpush3.bf16.msra.mxu1 %v19836_v14  ;;  %v19882_v14 = vld [vmem:[%s23319_s10 + $0x190] sm:$0xff]  }
 0xb02   : > { %18195 = vmatprep.subr.bf16.mxu1 %v20574_v6 }
 0xb04   : > { %18214 = vmatpush3.bf16.msra.mxu0 %v19837_v13  ;;  %v19883_v13 = vld [vmem:[%s23319_s10 + $0x1d0] sm:$0xff]  }
 0xb05   : > { %18215 = vmatprep.subr.bf16.mxu0 %v20574_v6  ;;  %18196 = vmatpush3.bf16.msra.mxu1 %v19838_v15  ;;  %v19884_v15 = vld [vmem:[%s23319_s10 + $0x198] sm:$0xff]  }
 0xb06   : > { %18197 = vmatprep.subr.bf16.mxu1 %v20574_v6 }
 0xb08   : > { %18216 = vmatpush3.bf16.msra.mxu0 %v19839_v46  ;;  %v19885_v46 = vld [vmem:[%s23319_s10 + $0x1d8] sm:$0xff]  }
 0xb09   : > { %18217 = vmatprep.subr.bf16.mxu0 %v20574_v6  ;;  %18198 = vmatpush3.bf16.msra.mxu1 %v19840_v17  ;;  %v19886_v17 = vld [vmem:[%s23319_s10 + $0x1a0] sm:$0xff]  }
 0xb0a   : > { %18199 = vmatprep.subr.bf16.mxu1 %v20574_v6 }
 0xb0c   : > { %18218 = vmatpush3.bf16.msra.mxu0 %v19841_v18  ;;  %v19887_v18 = vld [vmem:[%s23319_s10 + $0x1e0] sm:$0xff]  }
 0xb0d   : > { %18219 = vmatprep.subr.bf16.mxu0 %v20574_v6  ;;  %18200 = vmatpush3.bf16.msra.mxu1 %v19842_v47  ;;  %v19888_v47 = vld [vmem:[%s23319_s10 + $0x1a8] sm:$0xff]  }
 0xb0e   : > { %18201 = vmatprep.subr.bf16.mxu1 %v20574_v6 }
 0xb10   : > { %18220 = vmatpush3.bf16.msra.mxu0 %v19843_v21  ;;  %v19889_v21 = vld [vmem:[%s23319_s10 + $0x1e8] sm:$0xff]  }
 0xb11   : > { %18221 = vmatprep.subr.bf16.mxu0 %v20574_v6  ;;  %18202 = vmatpush3.bf16.msra.mxu1 %v19844_v24  ;;  %v19890_v24 = vld [vmem:[%s23319_s10 + $0x1b0] sm:$0xff]  }
 0xb12   : > { %18227 = vmatprep.subr.bf16.mxu1 %v20574_v6 }
 0xb14   : > { %18222 = vmatpush3.bf16.msra.mxu0 %v19845_v25  ;;  %v19891_v25 = vld [vmem:[%s23319_s10 + $0x1f0] sm:$0xff]  }
 0xb15   : > { %18247 = vmatprep.subr.bf16.mxu0 %v20574_v6 }
 0xbca   : > { %v6295_v63 = vpop.f32.mrb[100].mxu0 }
 0xbcb   : > { %v6296_v1 = vadd.f32 %v15958_v62, %v6295_v63  ;;  %v18185_v19 = vpop.f32.mrb[101].mxu0  ;;  %v19866_v62 = vld [vmem:[%s23319_s10 + $0x110] sm:$0xff]  }
 0xbcc   : > { %v6298_v30 = vpop.f32.mrb[102].mxu0  ;;  %v19867_v63 = vld [vmem:[%s23319_s10 + $0x150] sm:$0xff]   ;;  %v19869_v19 = vld [vmem:[%s23319_s10 + $0x158] sm:$0xff]  }
 0xbcd   : > { %v21675_v2 = vmax.f32 %v6296_v1, 0.0  ;;  %v18186_v3 = vpop.f32.mrb[103].mxu0  ;;  %v19868_v1 = vld [vmem:[%s23319_s10 + $0x118] sm:$0xff]   ;;  %v19870_v30 = vld [vmem:[%s23319_s10 + $0x120] sm:$0xff]  }
 0xbce   : > { %v19871_v3 = vld [vmem:[%s23319_s10 + $0x160] sm:$0xff]  }
 0xbcf   : > { %6304 = vadd.xlane.f32.xlu0 %v21675_v2 }
 0xc5c   : > { %v6305_v5 = vpop.xlane.xlu0 %6304 }
 0xc5d   : > { %v6306_v10 = vmul.f32 0.0078125, %v6305_v5  ;;  %v19878_v5 = vld [vmem:[%s23319_s10 + $0x180] sm:$0xff]  }
 0xc5f   : > { %v6307_v11 = vsub.f32 %v21675_v2, %v6306_v10  ;;  %v19879_v10 = vld [vmem:[%s23319_s10 + $0x1c0] sm:$0xff]  }
 0xc61   : > { %v6308_v45 = vmul.f32 %v6307_v11, %v6307_v11 }
 0xc63   : > { %6309 = vadd.xlane.f32.xlu1 %v6308_v45  ;;  %v19881_v45 = vld [vmem:[%s23319_s10 + $0x1c8] sm:$0xff]  }
 0xcf0   : > { %v6310_v26 = vpop.xlane.xlu1 %6309 }
 0xcf1   : > { %v6311_v27 = vmul.f32 0.0078125, %v6310_v26  ;;  %v19892_v26 = vld [vmem:[%s23319_s10 + $0x1b8] sm:$0xff]  }
 0xcf3   : > { %v6312_v48 = vadd.f32 1e-05, %v6311_v27  ;;  %v19893_v27 = vld [vmem:[%s23319_s10 + $0x1f8] sm:$0xff]  }
 0xcf5   : > { %20442 = vrsqrt.f32 %v6312_v48  ;;  %v19894_v48 = vld [vmem:[%s23322_s16] sm:$0xff]  }
 0xcff   : > { %v20443_v28 = vpop.eup %20442 }
 0xd00   : > { %v6314_v34 = vmul.f32 %v20443_v28, %v6307_v11  ;;  %v19880_v11 = vld [vmem:[%s23319_s10 + $0x188] sm:$0xff]   ;;  %v19895_v28 = vld [vmem:[%s23322_s16 + $0x40] sm:$0xff]  }
 0xd02   : > { %v6321_v36 = vmul.f32 %v15967_v31, %v6314_v34  ;;  %v19896_v31 = vld [vmem:[%s23322_s16 + $0x8] sm:$0xff]  }
 0xd03   : > { %v19897_v34 = vld [vmem:[%s23322_s16 + $0x48] sm:$0xff]  }
 0xd04   : > { %v6328_v32 = vadd.f32 %v15968_v35, %v6321_v36  ;;  %v19898_v35 = vld [vmem:[%s23322_s16 + $0x10] sm:$0xff]  }
 0xd05   : > { %v19899_v36 = vld [vmem:[%s23322_s16 + $0x50] sm:$0xff]  }
 0xd06   : > { %v21715_v40 = vpack.c.bf16 %v6328_v32, %v6328_v32  ;;  %v19900_v32 = vld [vmem:[%s23322_s16 + $0x18] sm:$0xff]  }
 0xd08   : > { %18204 = vmatmul.mubr.bf16.vlgmr.msra.gmra.mrb[116].mxu1 %v21715_v40  ;;  %18224 = vmatmul.mubr.bf16.vlgmr.msra.gmra.mrb[104].mxu0 %v21715_v40 }
 0xd09   : > { %18228 = vmatpush3.bf16.msra.mxu1 %v19846_v37  ;;  %18248 = vmatpush3.bf16.msra.mxu0 %v19847_v33  ;;  %v19901_v37 = vld [vmem:[%s23322_s16 + $0x58] sm:$0xff]   ;;  %v19902_v33 = vld [vmem:[%s23322_s16 + $0x20] sm:$0xff]  }
 0xd0a   : > { %18229 = vmatprep.subr.bf16.mxu1 %v20574_v6  ;;  %18249 = vmatprep.subr.bf16.mxu0 %v20574_v6 }
 0xd0b   : > { %18243 = vmatprep.mubr.msk.bf16.mxu1 %vm20575_vm4, %v20574_v6  ;;  %18263 = vmatprep.mubr.msk.bf16.mxu0 %vm20575_vm4, %v20574_v6 }
 0xd0d   : > { %18230 = vmatpush3.bf16.msra.mxu1 %v19848_v41  ;;  %18250 = vmatpush3.bf16.msra.mxu0 %v19849_v42  ;;  %v19903_v41 = vld [vmem:[%s23322_s16 + $0x60] sm:$0xff]   ;;  %v19904_v42 = vld [vmem:[%s23322_s16 + $0x28] sm:$0xff]  }
 0xd0e   : > { %18231 = vmatprep.subr.bf16.mxu1 %v20574_v6  ;;  %18251 = vmatprep.subr.bf16.mxu0 %v20574_v6 }
 0xd11   : > { %18232 = vmatpush3.bf16.msra.mxu1 %v19850_v43  ;;  %18252 = vmatpush3.bf16.msra.mxu0 %v19851_v57  ;;  %v19905_v43 = vld [vmem:[%s23322_s16 + $0x68] sm:$0xff]   ;;  %v19906_v57 = vld [vmem:[%s23322_s16 + $0x30] sm:$0xff]  }
 0xd12   : > { %18233 = vmatprep.subr.bf16.mxu1 %v20574_v6  ;;  %18253 = vmatprep.subr.bf16.mxu0 %v20574_v6 }
 0xd15   : > { %18234 = vmatpush3.bf16.msra.mxu1 %v19852_v44  ;;  %18254 = vmatpush3.bf16.msra.mxu0 %v19853_v22  ;;  %v19907_v44 = vld [vmem:[%s23322_s16 + $0x70] sm:$0xff]   ;;  %v19908_v22 = vld [vmem:[%s23322_s16 + $0x38] sm:$0xff]  }
 0xd16   : > { %18235 = vmatprep.subr.bf16.mxu1 %v20574_v6  ;;  %18255 = vmatprep.subr.bf16.mxu0 %v20574_v6 }
 0xd19   : > { %18236 = vmatpush3.bf16.msra.mxu1 %v19854_v49  ;;  %18256 = vmatpush3.bf16.msra.mxu0 %v19855_v52  ;;  %v19909_v49 = vld [vmem:[%s23322_s16 + $0x78] sm:$0xff]   ;;  %v19910_v52 = vld [vmem:[%s23322_s16 + $0x80] sm:$0xff]  }
 0xd1a   : > { %18237 = vmatprep.subr.bf16.mxu1 %v20574_v6  ;;  %18257 = vmatprep.subr.bf16.mxu0 %v20574_v6 }
 0xd1d   : > { %18238 = vmatpush3.bf16.msra.mxu1 %v19856_v53  ;;  %18258 = vmatpush3.bf16.msra.mxu0 %v19857_v54  ;;  %v19911_v53 = vld [vmem:[%s23322_s16 + $0xc0] sm:$0xff]   ;;  %v19912_v54 = vld [vmem:[%s23322_s16 + $0x88] sm:$0xff]  }
 0xd1e   : > { %18239 = vmatprep.subr.bf16.mxu1 %v20574_v6  ;;  %18259 = vmatprep.subr.bf16.mxu0 %v20574_v6 }
 0xd21   : > { %18240 = vmatpush3.bf16.msra.mxu1 %v19858_v23  ;;  %18260 = vmatpush3.bf16.msra.mxu0 %v19859_v55  ;;  %v19913_v23 = vld [vmem:[%s23322_s16 + $0xc8] sm:$0xff]   ;;  %v19914_v55 = vld [vmem:[%s23322_s16 + $0x90] sm:$0xff]  }
 0xd22   : > { %18241 = vmatprep.subr.bf16.mxu1 %v20574_v6  ;;  %18261 = vmatprep.subr.bf16.mxu0 %v20574_v6 }
 0xd25   : > { %18242 = vmatpush3.bf16.msra.mxu1 %v19860_v58  ;;  %18262 = vmatpush3.bf16.msra.mxu0 %v19861_v59  ;;  %v19915_v58 = vld [vmem:[%s23322_s16 + $0xd0] sm:$0xff]   ;;  %v19916_v59 = vld [vmem:[%s23322_s16 + $0x98] sm:$0xff]  }
 0xd26   : > { %18267 = vmatprep.subr.bf16.mxu1 %v20574_v6  ;;  %18287 = vmatprep.subr.bf16.mxu0 %v20574_v6 }
 0xd28   : > { %18244 = vmatmul.mubr.bf16.vlgmr.msra.gmra.mrb[120].mxu1 %v21715_v40  ;;  %18264 = vmatmul.mubr.bf16.vlgmr.msra.gmra.mrb[108].mxu0 %v21715_v40 }
 0xd29   : > { %18268 = vmatpush3.bf16.msra.mxu1 %v19862_v16  ;;  %18288 = vmatpush3.bf16.msra.mxu0 %v19863_v60  ;;  %v19917_v16 = vld [vmem:[%s23322_s16 + $0xd8] sm:$0xff]   ;;  %v19918_v60 = vld [vmem:[%s23322_s16 + $0xa0] sm:$0xff]  }
 0xd2a   : > { %18269 = vmatprep.subr.bf16.mxu1 %v20574_v6  ;;  %18289 = vmatprep.subr.bf16.mxu0 %v20574_v6 }
 0xd2b   : > { %18283 = vmatprep.mubr.msk.bf16.mxu1 %vm20575_vm4, %v20574_v6  ;;  %18303 = vmatprep.mubr.msk.bf16.mxu0 %vm20575_vm4, %v20574_v6 }
 0xd2d   : > { %18270 = vmatpush3.bf16.msra.mxu1 %v19864_v61  ;;  %18290 = vmatpush3.bf16.msra.mxu0 %v19865_v29  ;;  %v19919_v61 = vld [vmem:[%s23322_s16 + $0xe0] sm:$0xff]   ;;  %v19920_v29 = vld [vmem:[%s23322_s16 + $0xa8] sm:$0xff]  }
 0xd2e   : > { %18271 = vmatprep.subr.bf16.mxu1 %v20574_v6  ;;  %18291 = vmatprep.subr.bf16.mxu0 %v20574_v6 }
 0xd31   : > { %18272 = vmatpush3.bf16.msra.mxu1 %v19866_v62  ;;  %18292 = vmatpush3.bf16.msra.mxu0 %v19867_v63  ;;  %v19921_v62 = vld [vmem:[%s23322_s16 + $0xe8] sm:$0xff]   ;;  %v19922_v63 = vld [vmem:[%s23322_s16 + $0xb0] sm:$0xff]  }
 0xd32   : > { %18273 = vmatprep.subr.bf16.mxu1 %v20574_v6  ;;  %18293 = vmatprep.subr.bf16.mxu0 %v20574_v6 }
 0xd35   : > { %18274 = vmatpush3.bf16.msra.mxu1 %v19868_v1  ;;  %18294 = vmatpush3.bf16.msra.mxu0 %v19869_v19  ;;  %v19923_v1 = vld [vmem:[%s23322_s16 + $0xf0] sm:$0xff]   ;;  %v19924_v19 = vld [vmem:[%s23322_s16 + $0xb8] sm:$0xff]  }
 0xd36   : > { %18275 = vmatprep.subr.bf16.mxu1 %v20574_v6  ;;  %18295 = vmatprep.subr.bf16.mxu0 %v20574_v6 }
 0xd39   : > { %18276 = vmatpush3.bf16.msra.mxu1 %v19870_v30  ;;  %18296 = vmatpush3.bf16.msra.mxu0 %v19871_v3  ;;  %v19925_v30 = vld [vmem:[%s23322_s16 + $0xf8] sm:$0xff]   ;;  %v19926_v3 = vld [vmem:[%s23322_s16 + $0x100] sm:$0xff]  }
 0xd3a   : > { %18277 = vmatprep.subr.bf16.mxu1 %v20574_v6  ;;  %18297 = vmatprep.subr.bf16.mxu0 %v20574_v6 }
 0xd3d   : > { %18278 = vmatpush3.bf16.msra.mxu1 %v19872_v50  ;;  %18298 = vmatpush3.bf16.msra.mxu0 %v19873_v20  ;;  %v19927_v50 = vld [vmem:[%s23322_s16 + $0x140] sm:$0xff]   ;;  %v19928_v20 = vld [vmem:[%s23322_s16 + $0x108] sm:$0xff]  }
 0xd3e   : > { %18279 = vmatprep.subr.bf16.mxu1 %v20574_v6  ;;  %18299 = vmatprep.subr.bf16.mxu0 %v20574_v6 }
 0xd41   : > { %18280 = vmatpush3.bf16.msra.mxu1 %v19874_v7  ;;  %18300 = vmatpush3.bf16.msra.mxu0 %v19875_v39  ;;  %v19929_v7 = vld [vmem:[%s23322_s16 + $0x148] sm:$0xff]   ;;  %v19930_v39 = vld [vmem:[%s23322_s16 + $0x110] sm:$0xff]  }
 0xd42   : > { %18281 = vmatprep.subr.bf16.mxu1 %v20574_v6  ;;  %18301 = vmatprep.subr.bf16.mxu0 %v20574_v6 }
 0xd45   : > { %18282 = vmatpush3.bf16.msra.mxu1 %v19876_v8  ;;  %18302 = vmatpush3.bf16.msra.mxu0 %v19877_v9  ;;  %v19931_v8 = vld [vmem:[%s23322_s16 + $0x150] sm:$0xff]   ;;  %v19932_v9 = vld [vmem:[%s23322_s16 + $0x118] sm:$0xff]  }
 0xd46   : > { %18307 = vmatprep.subr.bf16.mxu1 %v20574_v6  ;;  %18327 = vmatprep.subr.bf16.mxu0 %v20574_v6 }
 0xd48   : > { %18284 = vmatmul.mubr.bf16.vlgmr.msra.gmra.mrb[124].mxu1 %v21715_v40  ;;  %18304 = vmatmul.mubr.bf16.vlgmr.msra.gmra.mrb[112].mxu0 %v21715_v40 }
 0xd49   : > { %18308 = vmatpush3.bf16.msra.mxu1 %v19878_v5  ;;  %18328 = vmatpush3.bf16.msra.mxu0 %v19879_v10  ;;  %v19933_v5 = vld [vmem:[%s23322_s16 + $0x158] sm:$0xff]   ;;  %v19934_v10 = vld [vmem:[%s23322_s16 + $0x120] sm:$0xff]  }
 0xd4a   : > { %18309 = vmatprep.subr.bf16.mxu1 %v20574_v6  ;;  %18329 = vmatprep.subr.bf16.mxu0 %v20574_v6 }
 0xd4b   : > { %18323 = vmatprep.mubr.msk.bf16.mxu1 %vm20575_vm4, %v20574_v6  ;;  %18343 = vmatprep.mubr.msk.bf16.mxu0 %vm20575_vm4, %v20574_v6 }
 0xd4d   : > { %18310 = vmatpush3.bf16.msra.mxu1 %v19880_v11  ;;  %18330 = vmatpush3.bf16.msra.mxu0 %v19881_v45  ;;  %v19935_v11 = vld [vmem:[%s23322_s16 + $0x160] sm:$0xff]   ;;  %v19936_v45 = vld [vmem:[%s23322_s16 + $0x128] sm:$0xff]  }
 0xd4e   : > { %18311 = vmatprep.subr.bf16.mxu1 %v20574_v6  ;;  %18331 = vmatprep.subr.bf16.mxu0 %v20574_v6 }
 0xd51   : > { %18312 = vmatpush3.bf16.msra.mxu1 %v19882_v14  ;;  %18332 = vmatpush3.bf16.msra.mxu0 %v19883_v13  ;;  %v19937_v14 = vld [vmem:[%s23322_s16 + $0x168] sm:$0xff]   ;;  %v19938_v13 = vld [vmem:[%s23322_s16 + $0x130] sm:$0xff]  }
 0xd52   : > { %18313 = vmatprep.subr.bf16.mxu1 %v20574_v6  ;;  %18333 = vmatprep.subr.bf16.mxu0 %v20574_v6 }
 0xd55   : > { %18314 = vmatpush3.bf16.msra.mxu1 %v19884_v15  ;;  %18334 = vmatpush3.bf16.msra.mxu0 %v19885_v46  ;;  %v19939_v15 = vld [vmem:[%s23322_s16 + $0x170] sm:$0xff]   ;;  %v19940_v46 = vld [vmem:[%s23322_s16 + $0x138] sm:$0xff]  }
 0xd56   : > { %18315 = vmatprep.subr.bf16.mxu1 %v20574_v6  ;;  %18335 = vmatprep.subr.bf16.mxu0 %v20574_v6 }
 0xd59   : > { %18316 = vmatpush3.bf16.msra.mxu1 %v19886_v17  ;;  %18336 = vmatpush3.bf16.msra.mxu0 %v19887_v18  ;;  %v19941_v17 = vld [vmem:[%s23322_s16 + $0x178] sm:$0xff]   ;;  %v19942_v18 = vld [vmem:[%s23322_s16 + $0x180] sm:$0xff]  }
 0xd5a   : > { %18317 = vmatprep.subr.bf16.mxu1 %v20574_v6  ;;  %18337 = vmatprep.subr.bf16.mxu0 %v20574_v6 }
 0xd5d   : > { %18318 = vmatpush3.bf16.msra.mxu1 %v19888_v47  ;;  %18338 = vmatpush3.bf16.msra.mxu0 %v19889_v21  ;;  %v19943_v47 = vld [vmem:[%s23322_s16 + $0x1c0] sm:$0xff]   ;;  %v19944_v21 = vld [vmem:[%s23322_s16 + $0x188] sm:$0xff]  }
 0xd5e   : > { %18319 = vmatprep.subr.bf16.mxu1 %v20574_v6  ;;  %18339 = vmatprep.subr.bf16.mxu0 %v20574_v6 }
 0xd61   : > { %18320 = vmatpush3.bf16.msra.mxu1 %v19890_v24  ;;  %18340 = vmatpush3.bf16.msra.mxu0 %v19891_v25  ;;  %v19945_v24 = vld [vmem:[%s23322_s16 + $0x1c8] sm:$0xff]   ;;  %v19946_v25 = vld [vmem:[%s23322_s16 + $0x190] sm:$0xff]  }
 0xd62   : > { %18321 = vmatprep.subr.bf16.mxu1 %v20574_v6  ;;  %18341 = vmatprep.subr.bf16.mxu0 %v20574_v6 }
 0xd65   : > { %18322 = vmatpush3.bf16.msra.mxu1 %v19892_v26  ;;  %18342 = vmatpush3.bf16.msra.mxu0 %v19893_v27  ;;  %v19947_v26 = vld [vmem:[%s23322_s16 + $0x1d0] sm:$0xff]   ;;  %v19948_v27 = vld [vmem:[%s23322_s16 + $0x198] sm:$0xff]  }
 0xd66   : > { %18347 = vmatprep.subr.bf16.mxu1 %v20574_v6  ;;  %18367 = vmatprep.subr.bf16.mxu0 %v20574_v6 }
 0xd68   : > { %18324 = vmatmul.mubr.bf16.vlgmr.msra.gmra.mrb[128].mxu1 %v21715_v40  ;;  %18344 = vmatmul.mubr.bf16.vlgmr.msra.gmra.mrb[116].mxu0 %v21715_v40 }
 0xd69   : > { %18348 = vmatpush3.bf16.msra.mxu1 %v19894_v48  ;;  %18368 = vmatpush3.bf16.msra.mxu0 %v19895_v28  ;;  %v19949_v48 = vld [vmem:[%s23322_s16 + $0x1d8] sm:$0xff]   ;;  %v19950_v28 = vld [vmem:[%s23322_s16 + $0x1a0] sm:$0xff]  }
 0xd6a   : > { %18349 = vmatprep.subr.bf16.mxu1 %v20574_v6  ;;  %18369 = vmatprep.subr.bf16.mxu0 %v20574_v6 }
 0xd6b   : > { %18363 = vmatprep.mubr.msk.bf16.mxu1 %vm20575_vm4, %v20574_v6  ;;  %18383 = vmatprep.mubr.msk.bf16.mxu0 %vm20575_vm4, %v20574_v6 }
 0xd6d   : > { %18350 = vmatpush3.bf16.msra.mxu1 %v19896_v31  ;;  %18370 = vmatpush3.bf16.msra.mxu0 %v19897_v34  ;;  %v19951_v31 = vld [vmem:[%s23322_s16 + $0x1e0] sm:$0xff]   ;;  %v19952_v34 = vld [vmem:[%s23322_s16 + $0x1a8] sm:$0xff]  }
 0xd6e   : > { %18351 = vmatprep.subr.bf16.mxu1 %v20574_v6  ;;  %18371 = vmatprep.subr.bf16.mxu0 %v20574_v6 }
 0xd71   : > { %18352 = vmatpush3.bf16.msra.mxu1 %v19898_v35  ;;  %18372 = vmatpush3.bf16.msra.mxu0 %v19899_v36  ;;  %v19953_v35 = vld [vmem:[%s23322_s16 + $0x1e8] sm:$0xff]  }
 0xd72   : > { %18353 = vmatprep.subr.bf16.mxu1 %v20574_v6  ;;  %18373 = vmatprep.subr.bf16.mxu0 %v20574_v6 }
 0xd75   : > { %18354 = vmatpush3.bf16.msra.mxu1 %v19900_v32  ;;  %18374 = vmatpush3.bf16.msra.mxu0 %v19901_v37 }
 0xd76   : > { %18355 = vmatprep.subr.bf16.mxu1 %v20574_v6  ;;  %18375 = vmatprep.subr.bf16.mxu0 %v20574_v6 }
 0xd79   : > { %18356 = vmatpush3.bf16.msra.mxu1 %v19902_v33  ;;  %18376 = vmatpush3.bf16.msra.mxu0 %v19903_v41 }
 0xd7a   : > { %18357 = vmatprep.subr.bf16.mxu1 %v20574_v6  ;;  %18377 = vmatprep.subr.bf16.mxu0 %v20574_v6 }
 0xd7d   : > { %18358 = vmatpush3.bf16.msra.mxu1 %v19904_v42  ;;  %18378 = vmatpush3.bf16.msra.mxu0 %v19905_v43  ;;  %v19954_v43 = vld [vmem:[%s23322_s16 + $0x1b0] sm:$0xff]  }
 0xd7e   : > { %18359 = vmatprep.subr.bf16.mxu1 %v20574_v6  ;;  %18379 = vmatprep.subr.bf16.mxu0 %v20574_v6 }
 0xd81   : > { %18360 = vmatpush3.bf16.msra.mxu1 %v19906_v57  ;;  %18380 = vmatpush3.bf16.msra.mxu0 %v19907_v44  ;;  %v19955_v57 = vld [vmem:[%s23322_s16 + $0x1f0] sm:$0xff]  }
 0xd82   : > { %18361 = vmatprep.subr.bf16.mxu1 %v20574_v6  ;;  %18381 = vmatprep.subr.bf16.mxu0 %v20574_v6 }
 0xd85   : > { %18362 = vmatpush3.bf16.msra.mxu1 %v19908_v22  ;;  %18382 = vmatpush3.bf16.msra.mxu0 %v19909_v49  ;;  %v19956_v49 = vld [vmem:[%s23322_s16 + $0x1b8] sm:$0xff]  }
 0xd86   : > { %18387 = vmatprep.subr.bf16.mxu1 %v20574_v6  ;;  %18407 = vmatprep.subr.bf16.mxu0 %v20574_v6 }
 0xd88   : > { %18364 = vmatmul.mubr.bf16.vlgmr.msra.gmra.mrb[132].mxu1 %v21715_v40  ;;  %18384 = vmatmul.mubr.bf16.vlgmr.msra.gmra.mrb[120].mxu0 %v21715_v40 }
 0xd89   : > { %18388 = vmatpush3.bf16.msra.mxu1 %v19910_v52  ;;  %18408 = vmatpush3.bf16.msra.mxu0 %v19911_v53  ;;  %v19957_v52 = vld [vmem:[%s23322_s16 + $0x1f8] sm:$0xff]   ;;  %v19958_v53 = vld [vmem:[%s23323_s4] sm:$0xff]  }
 0xd8a   : > { %18389 = vmatprep.subr.bf16.mxu1 %v20574_v6  ;;  %18409 = vmatprep.subr.bf16.mxu0 %v20574_v6 }
 0xd8b   : > { %18403 = vmatprep.mubr.msk.bf16.mxu1 %vm20575_vm4, %v20574_v6  ;;  %18423 = vmatprep.mubr.msk.bf16.mxu0 %vm20575_vm4, %v20574_v6 }
 0xd8d   : > { %18390 = vmatpush3.bf16.msra.mxu1 %v19912_v54  ;;  %18410 = vmatpush3.bf16.msra.mxu0 %v19913_v23  ;;  %v19959_v54 = vld [vmem:[%s23323_s4 + $0x40] sm:$0xff]   ;;  %v19960_v23 = vld [vmem:[%s23323_s4 + $0x8] sm:$0xff]  }
 0xd8e   : > { %18391 = vmatprep.subr.bf16.mxu1 %v20574_v6  ;;  %18411 = vmatprep.subr.bf16.mxu0 %v20574_v6 }
 0xd91   : > { %18392 = vmatpush3.bf16.msra.mxu1 %v19914_v55  ;;  %18412 = vmatpush3.bf16.msra.mxu0 %v19915_v58  ;;  %v19961_v55 = vld [vmem:[%s23323_s4 + $0x48] sm:$0xff]   ;;  %v19962_v58 = vld [vmem:[%s23323_s4 + $0x10] sm:$0xff]  }
 0xd92   : > { %18393 = vmatprep.subr.bf16.mxu1 %v20574_v6  ;;  %18413 = vmatprep.subr.bf16.mxu0 %v20574_v6 }
 0xd95   : > { %18394 = vmatpush3.bf16.msra.mxu1 %v19916_v59  ;;  %18414 = vmatpush3.bf16.msra.mxu0 %v19917_v16  ;;  %v19963_v59 = vld [vmem:[%s23323_s4 + $0x50] sm:$0xff]   ;;  %v19964_v16 = vld [vmem:[%s23323_s4 + $0x18] sm:$0xff]  }
 0xd96   : > { %18395 = vmatprep.subr.bf16.mxu1 %v20574_v6  ;;  %18415 = vmatprep.subr.bf16.mxu0 %v20574_v6 }
 0xd99   : > { %18396 = vmatpush3.bf16.msra.mxu1 %v19918_v60  ;;  %18416 = vmatpush3.bf16.msra.mxu0 %v19919_v61  ;;  %v19965_v60 = vld [vmem:[%s23323_s4 + $0x58] sm:$0xff]   ;;  %v19966_v61 = vld [vmem:[%s23323_s4 + $0x20] sm:$0xff]  }
 0xd9a   : > { %18397 = vmatprep.subr.bf16.mxu1 %v20574_v6  ;;  %18417 = vmatprep.subr.bf16.mxu0 %v20574_v6 }
 0xd9d   : > { %18398 = vmatpush3.bf16.msra.mxu1 %v19920_v29  ;;  %18418 = vmatpush3.bf16.msra.mxu0 %v19921_v62  ;;  %v19967_v29 = vld [vmem:[%s23323_s4 + $0x60] sm:$0xff]   ;;  %v19968_v62 = vld [vmem:[%s23323_s4 + $0x28] sm:$0xff]  }
 0xd9e   : > { %18399 = vmatprep.subr.bf16.mxu1 %v20574_v6  ;;  %18419 = vmatprep.subr.bf16.mxu0 %v20574_v6 }
 0xda1   : > { %18400 = vmatpush3.bf16.msra.mxu1 %v19922_v63  ;;  %18420 = vmatpush3.bf16.msra.mxu0 %v19923_v1  ;;  %v19969_v63 = vld [vmem:[%s23323_s4 + $0x68] sm:$0xff]  }
 0xda2   : > { %18401 = vmatprep.subr.bf16.mxu1 %v20574_v6  ;;  %18421 = vmatprep.subr.bf16.mxu0 %v20574_v6 }
 0xda5   : > { %18402 = vmatpush3.bf16.msra.mxu1 %v19924_v19  ;;  %18422 = vmatpush3.bf16.msra.mxu0 %v19925_v30 }
 0xda6   : > { %18427 = vmatprep.subr.bf16.mxu1 %v20574_v6  ;;  %18447 = vmatprep.subr.bf16.mxu0 %v20574_v6 }
 0xda8   : > { %18404 = vmatmul.mubr.bf16.vlgmr.msra.gmra.mrb[136].mxu1 %v21715_v40  ;;  %18424 = vmatmul.mubr.bf16.vlgmr.msra.gmra.mrb[124].mxu0 %v21715_v40 }
 0xda9   : > { %18428 = vmatpush3.bf16.msra.mxu1 %v19926_v3  ;;  %18448 = vmatpush3.bf16.msra.mxu0 %v19927_v50 }
 0xdaa   : > { %18429 = vmatprep.subr.bf16.mxu1 %v20574_v6  ;;  %18449 = vmatprep.subr.bf16.mxu0 %v20574_v6 }
 0xdab   : > { %18443 = vmatprep.mubr.msk.bf16.mxu1 %vm20575_vm4, %v20574_v6  ;;  %18463 = vmatprep.mubr.msk.bf16.mxu0 %vm20575_vm4, %v20574_v6 }
 0xdad   : > { %18430 = vmatpush3.bf16.msra.mxu1 %v19928_v20  ;;  %18450 = vmatpush3.bf16.msra.mxu0 %v19929_v7  ;;  %v19970_v7 = vld [vmem:[%s23323_s4 + $0x30] sm:$0xff]  }
 0xdae   : > { %18431 = vmatprep.subr.bf16.mxu1 %v20574_v6  ;;  %18451 = vmatprep.subr.bf16.mxu0 %v20574_v6 }
 0xdb1   : > { %18432 = vmatpush3.bf16.msra.mxu1 %v19930_v39  ;;  %18452 = vmatpush3.bf16.msra.mxu0 %v19931_v8  ;;  %v19971_v39 = vld [vmem:[%s23323_s4 + $0x70] sm:$0xff]  }
 0xdb2   : > { %18433 = vmatprep.subr.bf16.mxu1 %v20574_v6  ;;  %18453 = vmatprep.subr.bf16.mxu0 %v20574_v6 }
 0xdb5   : > { %18434 = vmatpush3.bf16.msra.mxu1 %v19932_v9  ;;  %18454 = vmatpush3.bf16.msra.mxu0 %v19933_v5  ;;  %v19972_v5 = vld [vmem:[%s23323_s4 + $0x38] sm:$0xff]  }
 0xdb6   : > { %18435 = vmatprep.subr.bf16.mxu1 %v20574_v6  ;;  %18455 = vmatprep.subr.bf16.mxu0 %v20574_v6 }
 0xdb9   : > { %18436 = vmatpush3.bf16.msra.mxu1 %v19934_v10  ;;  %18456 = vmatpush3.bf16.msra.mxu0 %v19935_v11  ;;  %v19973_v10 = vld [vmem:[%s23323_s4 + $0x78] sm:$0xff]   ;;  %v19974_v11 = vld [vmem:[%s23323_s4 + $0x80] sm:$0xff]  }
 0xdba   : > { %18437 = vmatprep.subr.bf16.mxu1 %v20574_v6  ;;  %18457 = vmatprep.subr.bf16.mxu0 %v20574_v6 }
 0xdbd   : > { %18438 = vmatpush3.bf16.msra.mxu1 %v19936_v45  ;;  %18458 = vmatpush3.bf16.msra.mxu0 %v19937_v14  ;;  %v19975_v45 = vld [vmem:[%s23323_s4 + $0xc0] sm:$0xff]   ;;  %v19976_v14 = vld [vmem:[%s23323_s4 + $0x88] sm:$0xff]  }
 0xdbe   : > { %18439 = vmatprep.subr.bf16.mxu1 %v20574_v6  ;;  %18459 = vmatprep.subr.bf16.mxu0 %v20574_v6 }
 0xdc1   : > { %18440 = vmatpush3.bf16.msra.mxu1 %v19938_v13  ;;  %18460 = vmatpush3.bf16.msra.mxu0 %v19939_v15  ;;  %v19977_v13 = vld [vmem:[%s23323_s4 + $0xc8] sm:$0xff]   ;;  %v19978_v15 = vld [vmem:[%s23323_s4 + $0x90] sm:$0xff]  }
 0xdc2   : > { %18441 = vmatprep.subr.bf16.mxu1 %v20574_v6  ;;  %18461 = vmatprep.subr.bf16.mxu0 %v20574_v6 }
 0xdc5   : > { %18442 = vmatpush3.bf16.msra.mxu1 %v19940_v46  ;;  %18462 = vmatpush3.bf16.msra.mxu0 %v19941_v17  ;;  %v19979_v46 = vld [vmem:[%s23323_s4 + $0xd0] sm:$0xff]   ;;  %v19980_v17 = vld [vmem:[%s23323_s4 + $0x98] sm:$0xff]  }
 0xdc6   : > { %18467 = vmatprep.subr.bf16.mxu1 %v20574_v6  ;;  %18487 = vmatprep.subr.bf16.mxu0 %v20574_v6 }
 0xdc8   : > { %18444 = vmatmul.mubr.bf16.vlgmr.msra.gmra.mrb[140].mxu1 %v21715_v40  ;;  %18464 = vmatmul.mubr.bf16.vlgmr.msra.gmra.mrb[128].mxu0 %v21715_v40 }
 0xdc9   : > { %18468 = vmatpush3.bf16.msra.mxu1 %v19942_v18  ;;  %18488 = vmatpush3.bf16.msra.mxu0 %v19943_v47  ;;  %v19981_v18 = vld [vmem:[%s23323_s4 + $0xd8] sm:$0xff]   ;;  %v19982_v47 = vld [vmem:[%s23323_s4 + $0xa0] sm:$0xff]  }
 0xdca   : > { %18469 = vmatprep.subr.bf16.mxu1 %v20574_v6  ;;  %18489 = vmatprep.subr.bf16.mxu0 %v20574_v6 }
 0xdcb   : > { %18483 = vmatprep.mubr.msk.bf16.mxu1 %vm20575_vm4, %v20574_v6  ;;  %18503 = vmatprep.mubr.msk.bf16.mxu0 %vm20575_vm4, %v20574_v6 }
 0xdcd   : > { %18470 = vmatpush3.bf16.msra.mxu1 %v19944_v21  ;;  %18490 = vmatpush3.bf16.msra.mxu0 %v19945_v24  ;;  %v19983_v21 = vld [vmem:[%s23323_s4 + $0xe0] sm:$0xff]   ;;  %v19984_v24 = vld [vmem:[%s23323_s4 + $0xa8] sm:$0xff]  }
 0xdce   : > { %18471 = vmatprep.subr.bf16.mxu1 %v20574_v6  ;;  %18491 = vmatprep.subr.bf16.mxu0 %v20574_v6 }
 0xdd1   : > { %18472 = vmatpush3.bf16.msra.mxu1 %v19946_v25  ;;  %18492 = vmatpush3.bf16.msra.mxu0 %v19947_v26  ;;  %v19985_v25 = vld [vmem:[%s23323_s4 + $0xe8] sm:$0xff]  }
 0xdd2   : > { %18473 = vmatprep.subr.bf16.mxu1 %v20574_v6  ;;  %18493 = vmatprep.subr.bf16.mxu0 %v20574_v6 }
 0xdd5   : > { %18474 = vmatpush3.bf16.msra.mxu1 %v19948_v27  ;;  %18494 = vmatpush3.bf16.msra.mxu0 %v19949_v48 }
 0xdd6   : > { %18475 = vmatprep.subr.bf16.mxu1 %v20574_v6  ;;  %18495 = vmatprep.subr.bf16.mxu0 %v20574_v6 }
 0xdd9   : > { %18476 = vmatpush3.bf16.msra.mxu1 %v19950_v28  ;;  %18496 = vmatpush3.bf16.msra.mxu0 %v19951_v31 }
 0xdda   : > { %18477 = vmatprep.subr.bf16.mxu1 %v20574_v6  ;;  %18497 = vmatprep.subr.bf16.mxu0 %v20574_v6 }
 0xddb   : > { %v21971_v36 = vpop.f32.mrb[116].mxu1  ;;  %v21973_v32 = vpop.f32.mrb[104].mxu0 }
 0xddc   : > { %v18205_v37 = vpop.f32.mrb[117].mxu1  ;;  %v18225_v33 = vpop.f32.mrb[105].mxu0 }
 0xddd   : > { %18478 = vmatpush3.bf16.msra.mxu1 %v19952_v34  ;;  %18498 = vmatpush3.bf16.msra.mxu0 %v19953_v35  ;;  %v6543_v41 = vpop.f32.mrb[118].mxu1  ;;  %v6631_v42 = vpop.f32.mrb[106].mxu0  ;;  %v19986_v35 = vld [vmem:[%s23323_s4 + $0xb0] sm:$0xff]  }
 0xdde   : > { %v18206_v44 = vpop.f32.mrb[119].mxu1  ;;  %v18226_v22 = vpop.f32.mrb[107].mxu0  ;;  %18479 = vmatprep.subr.bf16.mxu1 %v20574_v6  ;;  %18499 = vmatprep.subr.bf16.mxu0 %v20574_v6  ;;  %v19987_v37 = vld [vmem:[%s23323_s4 + $0xf0] sm:$0xff]   ;;  %v19988_v42 = vld [vmem:[%s23323_s4 + $0xb8] sm:$0xff]  }
 0xddf   : > { %v19991_v44 = vld [vmem:[%s23323_s4 + $0x140] sm:$0xff]   ;;  %v19992_v22 = vld [vmem:[%s23323_s4 + $0x108] sm:$0xff]  }
 0xde1   : > { %18480 = vmatpush3.bf16.msra.mxu1 %v19954_v43  ;;  %18500 = vmatpush3.bf16.msra.mxu0 %v19955_v57  ;;  %v19989_v43 = vld [vmem:[%s23323_s4 + $0xf8] sm:$0xff]   ;;  %v19990_v57 = vld [vmem:[%s23323_s4 + $0x100] sm:$0xff]  }
 0xde2   : > { %18481 = vmatprep.subr.bf16.mxu1 %v20574_v6  ;;  %18501 = vmatprep.subr.bf16.mxu0 %v20574_v6 }
 0xde5   : > { %18482 = vmatpush3.bf16.msra.mxu1 %v19956_v49  ;;  %18502 = vmatpush3.bf16.msra.mxu0 %v19957_v52  ;;  %v19993_v49 = vld [vmem:[%s23323_s4 + $0x148] sm:$0xff]   ;;  %v19994_v52 = vld [vmem:[%s23323_s4 + $0x110] sm:$0xff]  }
 0xde6   : > { %18507 = vmatprep.subr.bf16.mxu1 %v20574_v6  ;;  %18527 = vmatprep.subr.bf16.mxu0 %v20574_v6 }
 0xde8   : > { %18484 = vmatmul.mubr.bf16.vlgmr.msra.gmra.mrb[144].mxu1 %v21715_v40  ;;  %18504 = vmatmul.mubr.bf16.vlgmr.msra.gmra.mrb[132].mxu0 %v21715_v40 }
 0xde9   : > { %18508 = vmatpush3.bf16.msra.mxu1 %v19958_v53  ;;  %18528 = vmatpush3.bf16.msra.mxu0 %v19959_v54  ;;  %v19995_v53 = vld [vmem:[%s23323_s4 + $0x150] sm:$0xff]   ;;  %v19996_v54 = vld [vmem:[%s23323_s4 + $0x118] sm:$0xff]  }
 0xdea   : > { %18509 = vmatprep.subr.bf16.mxu1 %v20574_v6  ;;  %18529 = vmatprep.subr.bf16.mxu0 %v20574_v6 }
 0xdeb   : > { %18523 = vmatprep.mubr.msk.bf16.mxu1 %vm20575_vm4, %v20574_v6  ;;  %18543 = vmatprep.mubr.msk.bf16.mxu0 %vm20575_vm4, %v20574_v6 }
 0xded   : > { %18510 = vmatpush3.bf16.msra.mxu1 %v19960_v23  ;;  %18530 = vmatpush3.bf16.msra.mxu0 %v19961_v55  ;;  %v19997_v23 = vld [vmem:[%s23323_s4 + $0x158] sm:$0xff]   ;;  %v19998_v55 = vld [vmem:[%s23323_s4 + $0x120] sm:$0xff]  }
 0xdee   : > { %18511 = vmatprep.subr.bf16.mxu1 %v20574_v6  ;;  %18531 = vmatprep.subr.bf16.mxu0 %v20574_v6 }
 0xdf1   : > { %18512 = vmatpush3.bf16.msra.mxu1 %v19962_v58  ;;  %18532 = vmatpush3.bf16.msra.mxu0 %v19963_v59  ;;  %v19999_v58 = vld [vmem:[%s23323_s4 + $0x160] sm:$0xff]   ;;  %v20000_v59 = vld [vmem:[%s23323_s4 + $0x128] sm:$0xff]  }
 0xdf2   : > { %18513 = vmatprep.subr.bf16.mxu1 %v20574_v6  ;;  %18533 = vmatprep.subr.bf16.mxu0 %v20574_v6 }
 0xdf5   : > { %18514 = vmatpush3.bf16.msra.mxu1 %v19964_v16  ;;  %18534 = vmatpush3.bf16.msra.mxu0 %v19965_v60  ;;  %v20001_v16 = vld [vmem:[%s23323_s4 + $0x168] sm:$0xff]  }
 0xdf6   : > { %18515 = vmatprep.subr.bf16.mxu1 %v20574_v6  ;;  %18535 = vmatprep.subr.bf16.mxu0 %v20574_v6 }
 0xdf9   : > { %18516 = vmatpush3.bf16.msra.mxu1 %v19966_v61  ;;  %18536 = vmatpush3.bf16.msra.mxu0 %v19967_v29 }
 0xdfa   : > { %18517 = vmatprep.subr.bf16.mxu1 %v20574_v6  ;;  %18537 = vmatprep.subr.bf16.mxu0 %v20574_v6 }
 0xdfb   : > { %v22013_v1 = vpop.f32.mrb[120].mxu1  ;;  %v22015_v19 = vpop.f32.mrb[108].mxu0 }
 0xdfc   : > { %v18245_v30 = vpop.f32.mrb[121].mxu1  ;;  %v18265_v3 = vpop.f32.mrb[109].mxu0 }
 0xdfd   : > { %v6719_v50 = vpop.f32.mrb[122].mxu1  ;;  %v6807_v20 = vpop.f32.mrb[110].mxu0  ;;  %18518 = vmatpush3.bf16.msra.mxu1 %v19968_v62  ;;  %18538 = vmatpush3.bf16.msra.mxu0 %v19969_v63  ;;  %v20002_v3 = vld [vmem:[%s23323_s4 + $0x130] sm:$0xff]  }
 0xdfe   : > { %v18246_v8 = vpop.f32.mrb[123].mxu1  ;;  %v18266_v9 = vpop.f32.mrb[111].mxu0  ;;  %18519 = vmatprep.subr.bf16.mxu1 %v20574_v6  ;;  %18539 = vmatprep.subr.bf16.mxu0 %v20574_v6  ;;  %v20003_v50 = vld [vmem:[%s23323_s4 + $0x170] sm:$0xff]  }
 0xdff   : > { %v20005_v8 = vld [vmem:[%s23323_s4 + $0x178] sm:$0xff]   ;;  %v20006_v9 = vld [vmem:[%s23323_s4 + $0x180] sm:$0xff]  }
 0xe01   : > { %18520 = vmatpush3.bf16.msra.mxu1 %v19970_v7  ;;  %18540 = vmatpush3.bf16.msra.mxu0 %v19971_v39  ;;  %v20004_v39 = vld [vmem:[%s23323_s4 + $0x138] sm:$0xff]  }
 0xe02   : > { %18521 = vmatprep.subr.bf16.mxu1 %v20574_v6  ;;  %18541 = vmatprep.subr.bf16.mxu0 %v20574_v6 }
 0xe05   : > { %18522 = vmatpush3.bf16.msra.mxu1 %v19972_v5  ;;  %18542 = vmatpush3.bf16.msra.mxu0 %v19973_v10  ;;  %v20007_v5 = vld [vmem:[%s23323_s4 + $0x1c0] sm:$0xff]   ;;  %v20008_v10 = vld [vmem:[%s23323_s4 + $0x188] sm:$0xff]  }
 0xe06   : > { %18547 = vmatprep.subr.bf16.mxu1 %v20574_v6  ;;  %18567 = vmatprep.subr.bf16.mxu0 %v20574_v6 }
 0xe08   : > { %18524 = vmatmul.mubr.bf16.vlgmr.msra.gmra.mrb[148].mxu1 %v21715_v40  ;;  %18544 = vmatmul.mubr.bf16.vlgmr.msra.gmra.mrb[136].mxu0 %v21715_v40 }
 0xe09   : > { %18548 = vmatpush3.bf16.msra.mxu1 %v19974_v11  ;;  %18568 = vmatpush3.bf16.msra.mxu0 %v19975_v45  ;;  %v20009_v11 = vld [vmem:[%s23323_s4 + $0x1c8] sm:$0xff]   ;;  %v20010_v45 = vld [vmem:[%s23323_s4 + $0x190] sm:$0xff]  }
 0xe0a   : > { %18549 = vmatprep.subr.bf16.mxu1 %v20574_v6  ;;  %18569 = vmatprep.subr.bf16.mxu0 %v20574_v6 }
 0xe0b   : > { %18563 = vmatprep.mubr.msk.bf16.mxu1 %vm20575_vm4, %v20574_v6  ;;  %18583 = vmatprep.mubr.msk.bf16.mxu0 %vm20575_vm4, %v20574_v6 }
 0xe0d   : > { %18550 = vmatpush3.bf16.msra.mxu1 %v19976_v14  ;;  %18570 = vmatpush3.bf16.msra.mxu0 %v19977_v13  ;;  %v20011_v14 = vld [vmem:[%s23323_s4 + $0x1d0] sm:$0xff]   ;;  %v20012_v13 = vld [vmem:[%s23323_s4 + $0x198] sm:$0xff]  }
 0xe0e   : > { %18551 = vmatprep.subr.bf16.mxu1 %v20574_v6  ;;  %18571 = vmatprep.subr.bf16.mxu0 %v20574_v6 }
 0xe11   : > { %18552 = vmatpush3.bf16.msra.mxu1 %v19978_v15  ;;  %18572 = vmatpush3.bf16.msra.mxu0 %v19979_v46  ;;  %v20013_v15 = vld [vmem:[%s23323_s4 + $0x1d8] sm:$0xff]   ;;  %v20014_v46 = vld [vmem:[%s23323_s4 + $0x1a0] sm:$0xff]  }
 0xe12   : > { %18553 = vmatprep.subr.bf16.mxu1 %v20574_v6  ;;  %18573 = vmatprep.subr.bf16.mxu0 %v20574_v6 }
 0xe15   : > { %18554 = vmatpush3.bf16.msra.mxu1 %v19980_v17  ;;  %18574 = vmatpush3.bf16.msra.mxu0 %v19981_v18  ;;  %v20015_v17 = vld [vmem:[%s23323_s4 + $0x1e0] sm:$0xff]   ;;  %v20016_v18 = vld [vmem:[%s23323_s4 + $0x1a8] sm:$0xff]  }
 0xe16   : > { %18555 = vmatprep.subr.bf16.mxu1 %v20574_v6  ;;  %18575 = vmatprep.subr.bf16.mxu0 %v20574_v6 }
 0xe19   : > { %18556 = vmatpush3.bf16.msra.mxu1 %v19982_v47  ;;  %18576 = vmatpush3.bf16.msra.mxu0 %v19983_v21  ;;  %v20017_v47 = vld [vmem:[%s23323_s4 + $0x1e8] sm:$0xff]  }
 0xe1a   : > { %18557 = vmatprep.subr.bf16.mxu1 %v20574_v6  ;;  %18577 = vmatprep.subr.bf16.mxu0 %v20574_v6 }
 0xe1b   : > { %v22055_v26 = vpop.f32.mrb[124].mxu1  ;;  %v22057_v27 = vpop.f32.mrb[112].mxu0 }
 0xe1c   : > { %v18285_v48 = vpop.f32.mrb[125].mxu1  ;;  %v18305_v28 = vpop.f32.mrb[113].mxu0 }
 0xe1d   : > { %v6895_v31 = vpop.f32.mrb[126].mxu1  ;;  %v6983_v34 = vpop.f32.mrb[114].mxu0  ;;  %18558 = vmatpush3.bf16.msra.mxu1 %v19984_v24  ;;  %18578 = vmatpush3.bf16.msra.mxu0 %v19985_v25 }
 0xe1e   : > { %v18286_v33 = vpop.f32.mrb[127].mxu1  ;;  %v18306_v41 = vpop.f32.mrb[115].mxu0  ;;  %18559 = vmatprep.subr.bf16.mxu1 %v20574_v6  ;;  %18579 = vmatprep.subr.bf16.mxu0 %v20574_v6  ;;  %v20018_v34 = vld [vmem:[%s23323_s4 + $0x1b0] sm:$0xff]  }
 0xe1f   : > { %v20020_v41 = vld [vmem:[%s23323_s4 + $0x1b8] sm:$0xff]  }
 0xe21   : > { %18560 = vmatpush3.bf16.msra.mxu1 %v19986_v35  ;;  %18580 = vmatpush3.bf16.msra.mxu0 %v19987_v37  ;;  %v20019_v35 = vld [vmem:[%s23323_s4 + $0x1f0] sm:$0xff]  }
 0xe22   : > { %18561 = vmatprep.subr.bf16.mxu1 %v20574_v6  ;;  %18581 = vmatprep.subr.bf16.mxu0 %v20574_v6 }
 0xe25   : > { %18562 = vmatpush3.bf16.msra.mxu1 %v19988_v42  ;;  %18582 = vmatpush3.bf16.msra.mxu0 %v19989_v43  ;;  %v20021_v42 = vld [vmem:[%s23323_s4 + $0x1f8] sm:$0xff]   ;;  %s23344_s4 = sld [smem:[#allocation33_spill]] }
 0xe26   : > { %18587 = vmatprep.subr.bf16.mxu1 %v20574_v6  ;;  %18607 = vmatprep.subr.bf16.mxu0 %v20574_v6 }
 0xe28   : > { %18564 = vmatmul.mubr.bf16.vlgmr.msra.gmra.mrb[152].mxu1 %v21715_v40  ;;  %18584 = vmatmul.mubr.bf16.vlgmr.msra.gmra.mrb[140].mxu0 %v21715_v40 }
 0xe29   : > { %18588 = vmatpush3.bf16.msra.mxu1 %v19990_v57  ;;  %18608 = vmatpush3.bf16.msra.mxu0 %v19991_v44 }
 0xe2a   : > { %18589 = vmatprep.subr.bf16.mxu1 %v20574_v6  ;;  %18609 = vmatprep.subr.bf16.mxu0 %v20574_v6 }
 0xe2b   : > { %18603 = vmatprep.mubr.msk.bf16.mxu1 %vm20575_vm4, %v20574_v6  ;;  %18623 = vmatprep.mubr.msk.bf16.mxu0 %vm20575_vm4, %v20574_v6 }
 0xe2d   : > { %18590 = vmatpush3.bf16.msra.mxu1 %v19992_v22  ;;  %18610 = vmatpush3.bf16.msra.mxu0 %v19993_v49  ;;  %v8826_v22 = vpack.c.bf16 %v21971_v36, %v21971_v36 }
 0xe2e   : > { %18591 = vmatprep.subr.bf16.mxu1 %v20574_v6  ;;  %18611 = vmatprep.subr.bf16.mxu0 %v20574_v6 }
 0xe31   : > { %18592 = vmatpush3.bf16.msra.mxu1 %v19994_v52  ;;  %18612 = vmatpush3.bf16.msra.mxu0 %v19995_v53 }
 0xe32   : > { %18593 = vmatprep.subr.bf16.mxu1 %v20574_v6  ;;  %18613 = vmatprep.subr.bf16.mxu0 %v20574_v6 }
 0xe35   : > { %18594 = vmatpush3.bf16.msra.mxu1 %v19996_v54  ;;  %18614 = vmatpush3.bf16.msra.mxu0 %v19997_v23 }
 0xe36   : > { %18595 = vmatprep.subr.bf16.mxu1 %v20574_v6  ;;  %18615 = vmatprep.subr.bf16.mxu0 %v20574_v6 }
 0xe39   : > { %18596 = vmatpush3.bf16.msra.mxu1 %v19998_v55  ;;  %18616 = vmatpush3.bf16.msra.mxu0 %v19999_v58 }
 0xe3a   : > { %18597 = vmatprep.subr.bf16.mxu1 %v20574_v6  ;;  %18617 = vmatprep.subr.bf16.mxu0 %v20574_v6 }
 0xe3b   : > { %v22097_v60 = vpop.f32.mrb[128].mxu1  ;;  %v22099_v61 = vpop.f32.mrb[116].mxu0 }
 0xe3c   : > { %v18325_v29 = vpop.f32.mrb[129].mxu1  ;;  %v18345_v62 = vpop.f32.mrb[117].mxu0 }
 0xe3d   : > { %v7071_v63 = vpop.f32.mrb[130].mxu1  ;;  %v7159_v30 = vpop.f32.mrb[118].mxu0  ;;  %18598 = vmatpush3.bf16.msra.mxu1 %v20000_v59  ;;  %18618 = vmatpush3.bf16.msra.mxu0 %v20001_v16  ;;  %v8828_v62 = vpack.c.bf16 %v22013_v1, %v22013_v1 }
 0xe3e   : > { %v18326_v20 = vpop.f32.mrb[131].mxu1  ;;  %v18346_v7 = vpop.f32.mrb[119].mxu0  ;;  %18599 = vmatprep.subr.bf16.mxu1 %v20574_v6  ;;  %18619 = vmatprep.subr.bf16.mxu0 %v20574_v6  ;;  %v8829_v30 = vpack.c.bf16 %v22015_v19, %v22015_v19  ;;  %v8830_v19 = vpack.c.bf16 %v22055_v26, %v22055_v26 }
 0xe41   : > { %18600 = vmatpush3.bf16.msra.mxu1 %v20002_v3  ;;  %18620 = vmatpush3.bf16.msra.mxu0 %v20003_v50 }
 0xe42   : > { %18601 = vmatprep.subr.bf16.mxu1 %v20574_v6  ;;  %18621 = vmatprep.subr.bf16.mxu0 %v20574_v6 }
 0xe45   : > { %18602 = vmatpush3.bf16.msra.mxu1 %v20004_v39  ;;  %18622 = vmatpush3.bf16.msra.mxu0 %v20005_v8 }
 0xe46   : > { %18627 = vmatprep.subr.bf16.mxu1 %v20574_v6  ;;  %18647 = vmatprep.subr.bf16.mxu0 %v20574_v6 }
 0xe48   : > { %18604 = vmatmul.mubr.bf16.vlgmr.msra.gmra.mrb[156].mxu1 %v21715_v40  ;;  %18624 = vmatmul.mubr.bf16.vlgmr.msra.gmra.mrb[144].mxu0 %v21715_v40 }
 0xe49   : > { %18628 = vmatpush3.bf16.msra.mxu1 %v20006_v9  ;;  %18648 = vmatpush3.bf16.msra.mxu0 %v20007_v5 }
 0xe4a   : > { %18629 = vmatprep.subr.bf16.mxu1 %v20574_v6  ;;  %18649 = vmatprep.subr.bf16.mxu0 %v20574_v6 }
 0xe4b   : > { %18643 = vmatprep.mubr.msk.bf16.mxu1 %vm20575_vm4, %v20574_v6  ;;  %18663 = vmatprep.mubr.msk.bf16.mxu0 %vm20575_vm4, %v20574_v6 }
 0xe4d   : > { %18630 = vmatpush3.bf16.msra.mxu1 %v20008_v10  ;;  %18650 = vmatpush3.bf16.msra.mxu0 %v20009_v11 }
 0xe4e   : > { %18631 = vmatprep.subr.bf16.mxu1 %v20574_v6  ;;  %18651 = vmatprep.subr.bf16.mxu0 %v20574_v6 }
 0xe51   : > { %18632 = vmatpush3.bf16.msra.mxu1 %v20010_v45  ;;  %18652 = vmatpush3.bf16.msra.mxu0 %v20011_v14  ;;  %v8831_v14 = vpack.c.bf16 %v22057_v27, %v22057_v27 }
 0xe52   : > { %18633 = vmatprep.subr.bf16.mxu1 %v20574_v6  ;;  %18653 = vmatprep.subr.bf16.mxu0 %v20574_v6 }
 0xe55   : > { %18634 = vmatpush3.bf16.msra.mxu1 %v20012_v13  ;;  %18654 = vmatpush3.bf16.msra.mxu0 %v20013_v15 }
 0xe56   : > { %18635 = vmatprep.subr.bf16.mxu1 %v20574_v6  ;;  %18655 = vmatprep.subr.bf16.mxu0 %v20574_v6 }
 0xe59   : > { %18636 = vmatpush3.bf16.msra.mxu1 %v20014_v46  ;;  %18656 = vmatpush3.bf16.msra.mxu0 %v20015_v17 }
 0xe5a   : > { %18637 = vmatprep.subr.bf16.mxu1 %v20574_v6  ;;  %18657 = vmatprep.subr.bf16.mxu0 %v20574_v6 }
 0xe5b   : > { %v7372_v21 = vpop.f32.mrb[132].mxu1  ;;  %v7460_v24 = vpop.f32.mrb[120].mxu0 }
 0xe5c   : > { %v18365_v25 = vpop.f32.mrb[133].mxu1  ;;  %v18385_v48 = vpop.f32.mrb[121].mxu0  ;;  %v8834_v43 = vpack.c.bf16 %v7372_v21, %v7372_v21  ;;  %v8835_v44 = vpack.c.bf16 %v7460_v24, %v7460_v24 }
 0xe5d   : > { %v7375_v28 = vpop.f32.mrb[134].mxu1  ;;  %v7463_v31 = vpop.f32.mrb[122].mxu0  ;;  %18638 = vmatpush3.bf16.msra.mxu1 %v20016_v18  ;;  %18658 = vmatpush3.bf16.msra.mxu0 %v20017_v47 }
 0xe5e   : > { %v18366_v37 = vpop.f32.mrb[135].mxu1  ;;  %v18386_v33 = vpop.f32.mrb[123].mxu0  ;;  %18639 = vmatprep.subr.bf16.mxu1 %v20574_v6  ;;  %18659 = vmatprep.subr.bf16.mxu0 %v20574_v6  ;;  %v8846_v57 = vsel %vm4217_vm7, %v8834_v43, 0  ;;  %v8892_v49 = vsel %vm4217_vm7, %v8835_v44, 0  ;;  %v8832_v28 = vpack.c.bf16 %v22097_v60, %v22097_v60  ;;  %v8833_v31 = vpack.c.bf16 %v22099_v61, %v22099_v61 }
 0xe61   : > { %18640 = vmatpush3.bf16.msra.mxu1 %v20018_v34  ;;  %18660 = vmatpush3.bf16.msra.mxu0 %v20019_v35 }
 0xe62   : > { %18641 = vmatprep.subr.bf16.mxu1 %v20574_v6  ;;  %18661 = vmatprep.subr.bf16.mxu0 %v20574_v6 }
 0xe65   : > { %18642 = vmatpush3.bf16.msra.mxu1 %v20020_v41  ;;  %18662 = vmatpush3.bf16.msra.mxu0 %v20021_v42 }
 0xe66   : > { %18667 = vmatprep.subr.bf16.mxu1 %v20574_v6  ;;  %18691 = vmatprep.subr.bf16.mxu0 %v20574_v6 }
 0xe68   : > { %18644 = vmatmul.mubr.bf16.vlgmr.msra.gmra.mrb[160].mxu1 %v21715_v40  ;;  %18664 = vmatmul.mubr.bf16.vlgmr.msra.gmra.mrb[148].mxu0 %v21715_v40  ;;  %v8827_v40 = vpack.c.bf16 %v21973_v32, %v21973_v32 }
 0xe69   : > { %18669 = vmatprep.mubr.msk.bf16.mxu1 %vm20575_vm4, %v20574_v6  ;;  %18693 = vmatprep.mubr.msk.bf16.mxu0 %vm20575_vm4, %v20574_v6 }
 0xe6e   : > { %18668 = vmatpush3.bf16.xpose.msra.mxu1 %v8846_v57 }
 0xe6f   : > { %18673 = vmatprep.subr.bf16.mxu1 %v20574_v6 }
 0xe75   : > { %18670 = vmatmul.mubr.msk.bf16.vlgmr.msra.gmra.mrb[164].mxu1 %vm4217_vm7, %v8826_v22 }
 0xe76   : > { %18674 = vmatpush3.bf16.xpose.msra.mxu1 %v8892_v49  ;;  %18675 = vmatprep.mubr.msk.bf16.mxu1 %vm20575_vm4, %v20574_v6 }
 0xe77   : > { %18679 = vmatprep.subr.bf16.mxu1 %v20574_v6 }
 0xe7b   : > { %v7548_v52 = vpop.f32.mrb[136].mxu1  ;;  %v7636_v53 = vpop.f32.mrb[124].mxu0 }
 0xe7c   : > { %v8836_v54 = vpack.c.bf16 %v7548_v52, %v7548_v52  ;;  %v18405_v23 = vpop.f32.mrb[137].mxu1  ;;  %v18425_v55 = vpop.f32.mrb[125].mxu0  ;;  %v8837_v32 = vpack.c.bf16 %v7636_v53, %v7636_v53 }
 0xe7d   : > { %v7551_v58 = vpop.f32.mrb[138].mxu1  ;;  %v7639_v36 = vpop.f32.mrb[126].mxu0  ;;  %18676 = vmatmul.mubr.msk.bf16.vlgmr.msra.gmra.mrb[168].mxu1 %vm4217_vm7, %v8827_v40 }
 0xe7e   : > { %v8938_v59 = vsel %vm4217_vm7, %v8836_v54, 0  ;;  %v18406_v16 = vpop.f32.mrb[139].mxu1  ;;  %v18426_v29 = vpop.f32.mrb[127].mxu0  ;;  %18681 = vmatprep.mubr.msk.bf16.mxu1 %vm20575_vm4, %v20574_v6  ;;  %v8984_v63 = vsel %vm4217_vm7, %v8837_v32, 0 }
 0xe7f   : > { %18680 = vmatpush3.bf16.xpose.msra.mxu1 %v8938_v59 }
 0xe80   : > { %18685 = vmatprep.subr.bf16.mxu1 %v20574_v6 }
 0xe86   : > { %18682 = vmatmul.mubr.msk.bf16.vlgmr.msra.gmra.mrb[172].mxu1 %vm4217_vm7, %v8828_v62 }
 0xe87   : > { %18686 = vmatpush3.bf16.xpose.msra.mxu1 %v8984_v63  ;;  %18687 = vmatprep.mubr.msk.bf16.mxu1 %vm20575_vm4, %v20574_v6 }
 0xe88   : > { %18697 = vmatprep.subr.bf16.mxu1 %v20574_v6 }
 0xe8e   : > { %18688 = vmatmul.mubr.msk.bf16.vlgmr.msra.gmra.mrb[176].mxu1 %vm4217_vm7, %v8829_v30 }
 0xe8f   : > { %18699 = vmatprep.mubr.msk.bf16.mxu1 %vm20575_vm4, %v20574_v6 }
 0xe9b   : > { %v7724_v3 = vpop.f32.mrb[140].mxu1  ;;  %v7812_v1 = vpop.f32.mrb[128].mxu0 }
 0xe9c   : > { %v8838_v50 = vpack.c.bf16 %v7724_v3, %v7724_v3  ;;  %v8839_v20 = vpack.c.bf16 %v7812_v1, %v7812_v1  ;;  %v18445_v7 = vpop.f32.mrb[141].mxu1  ;;  %v18465_v39 = vpop.f32.mrb[129].mxu0 }
 0xe9d   : > { %v7727_v8 = vpop.f32.mrb[142].mxu1  ;;  %v7815_v9 = vpop.f32.mrb[130].mxu0 }
 0xe9e   : > { %v9030_v5 = vsel %vm4217_vm7, %v8838_v50, 0  ;;  %v9076_v10 = vsel %vm4217_vm7, %v8839_v20, 0  ;;  %v18446_v11 = vpop.f32.mrb[143].mxu1  ;;  %v18466_v45 = vpop.f32.mrb[131].mxu0 }
 0xe9f   : > { %18692 = vmatpush3.bf16.xpose.msra.mxu0 %v9030_v5  ;;  %18698 = vmatpush3.bf16.xpose.msra.mxu1 %v9076_v10 }
 0xea0   : > { %18703 = vmatprep.subr.bf16.mxu0 %v20574_v6  ;;  %18709 = vmatprep.subr.bf16.mxu1 %v20574_v6 }
 0xea6   : > { %18694 = vmatmul.mubr.msk.bf16.vlgmr.msra.gmra.mrb[152].mxu0 %vm4217_vm7, %v8830_v19  ;;  %18700 = vmatmul.mubr.msk.bf16.vlgmr.msra.gmra.mrb[180].mxu1 %vm4217_vm7, %v8831_v14 }
 0xea7   : > { %18705 = vmatprep.mubr.msk.bf16.mxu0 %vm20575_vm4, %v20574_v6  ;;  %18711 = vmatprep.mubr.msk.bf16.mxu1 %vm20575_vm4, %v20574_v6 }
 0xebb   : > { %v7900_v13 = vpop.f32.mrb[144].mxu1  ;;  %v7988_v15 = vpop.f32.mrb[132].mxu0 }
 0xebc   : > { %v8840_v46 = vpack.c.bf16 %v7900_v13, %v7900_v13  ;;  %v8841_v17 = vpack.c.bf16 %v7988_v15, %v7988_v15  ;;  %v18485_v18 = vpop.f32.mrb[145].mxu1  ;;  %v18505_v47 = vpop.f32.mrb[133].mxu0 }
 0xebd   : > { %v7903_v26 = vpop.f32.mrb[146].mxu1  ;;  %v7991_v21 = vpop.f32.mrb[134].mxu0 }
 0xebe   : > { %v9122_v27 = vsel %vm4217_vm7, %v8840_v46, 0  ;;  %v9168_v24 = vsel %vm4217_vm7, %v8841_v17, 0  ;;  %v18486_v25 = vpop.f32.mrb[147].mxu1  ;;  %v18506_v48 = vpop.f32.mrb[135].mxu0 }
 0xebf   : > { %18704 = vmatpush3.bf16.xpose.msra.mxu0 %v9122_v27  ;;  %18710 = vmatpush3.bf16.xpose.msra.mxu1 %v9168_v24 }
 0xec0   : > { %18715 = vmatprep.subr.bf16.mxu0 %v20574_v6  ;;  %18721 = vmatprep.subr.bf16.mxu1 %v20574_v6 }
 0xec6   : > { %18706 = vmatmul.mubr.msk.bf16.vlgmr.msra.gmra.mrb[156].mxu0 %vm4217_vm7, %v8832_v28  ;;  %18712 = vmatmul.mubr.msk.bf16.vlgmr.msra.gmra.mrb[184].mxu1 %vm4217_vm7, %v8833_v31 }
 0xec7   : > { %18717 = vmatprep.mubr.msk.bf16.mxu0 %vm20575_vm4, %v20574_v6  ;;  %18723 = vmatprep.mubr.msk.bf16.mxu1 %vm20575_vm4, %v20574_v6 }
 0xedb   : > { %v8204_v34 = vpop.f32.mrb[148].mxu1  ;;  %v8292_v35 = vpop.f32.mrb[136].mxu0 }
 0xedc   : > { %v9322_v37 = vpack.c.bf16 %v8204_v34, %v8204_v34  ;;  %v9323_v33 = vpack.c.bf16 %v8292_v35, %v8292_v35  ;;  %v18525_v41 = vpop.f32.mrb[149].mxu1  ;;  %v18545_v42 = vpop.f32.mrb[137].mxu0 }
 0xedd   : > { %v8207_v60 = vpop.f32.mrb[150].mxu1  ;;  %v8295_v43 = vpop.f32.mrb[138].mxu0 }
 0xede   : > { %v9334_v61 = vsel %vm4715_vm8, %v9322_v37, 0  ;;  %v9380_v57 = vsel %vm4715_vm8, %v9323_v33, 0  ;;  %v18526_v44 = vpop.f32.mrb[151].mxu1  ;;  %v18546_v22 = vpop.f32.mrb[139].mxu0 }
 0xedf   : > { %18716 = vmatpush3.bf16.msra.mxu0 %v9334_v61  ;;  %18722 = vmatpush3.bf16.msra.mxu1 %v9380_v57 }
 0xee0   : > { %18727 = vmatprep.subr.bf16.mxu0 %v20574_v6  ;;  %18733 = vmatprep.subr.bf16.mxu1 %v20574_v6 }
 0xefb   : > { %v22215_v49 = vpop.f32.mrb[152].mxu1  ;;  %v22217_v40 = vpop.f32.mrb[140].mxu0 }
 0xefc   : > { %v18565_v52 = vpop.f32.mrb[153].mxu1  ;;  %v18585_v53 = vpop.f32.mrb[141].mxu0 }
 0xefd   : > { %v8383_v54 = vpop.f32.mrb[154].mxu1  ;;  %v8471_v23 = vpop.f32.mrb[142].mxu0 }
 0xefe   : > { %v18566_v55 = vpop.f32.mrb[155].mxu1  ;;  %v18586_v58 = vpop.f32.mrb[143].mxu0 }
 0xf1b   : > { %v22219_v36 = vpop.f32.mrb[156].mxu1  ;;  %v22221_v59 = vpop.f32.mrb[144].mxu0 }
 0xf1c   : > { %v18605_v16 = vpop.f32.mrb[157].mxu1  ;;  %v18625_v29 = vpop.f32.mrb[145].mxu0 }
 0xf1d   : > { %v8559_v32 = vpop.f32.mrb[158].mxu1  ;;  %v8647_v62 = vpop.f32.mrb[146].mxu0 }
 0xf1e   : > { %v18606_v63 = vpop.f32.mrb[159].mxu1  ;;  %v18626_v30 = vpop.f32.mrb[147].mxu0 }
 0xf3b   : > { %v22223_v3 = vpop.f32.mrb[160].mxu1  ;;  %v22225_v1 = vpop.f32.mrb[148].mxu0 }
 0xf3c   : > { %v18645_v50 = vpop.f32.mrb[161].mxu1  ;;  %v18665_v20 = vpop.f32.mrb[149].mxu0 }
 0xf3d   : > { %v8735_v7 = vpop.f32.mrb[162].mxu1  ;;  %v8823_v39 = vpop.f32.mrb[150].mxu0 }
 0xf3e   : > { %v18646_v8 = vpop.f32.mrb[163].mxu1  ;;  %v18666_v9 = vpop.f32.mrb[151].mxu0 }
 0xf48   : > { %v8882_v5 = vpop.f32.mrb[164].mxu1 }
 0xf49   : > { %v9210_v10 = vmul.f32 0.25, %v8882_v5  ;;  %v18671_v11 = vpop.f32.mrb[165].mxu1 }
 0xf4a   : > { %v8885_v45 = vpop.f32.mrb[166].mxu1 }
 0xf4b   : > { %v18672_v19 = vpop.f32.mrb[167].mxu1  ;;  %v9218_v14 = vsel %vm21419_vm9, %v9210_v10, -1e+30 }
 0xf4c   : > { %v9226_v13 = vsel %vm4607_vm10, %v9218_v14, -inf }
 0xf4d   : > { %9227 = vmax.xlane.f32.xlu0 %v9226_v13 }
 0xf50   : > { %v8928_v15 = vpop.f32.mrb[168].mxu1 }
 0xf51   : > { %v9211_v46 = vmul.f32 0.25, %v8928_v15  ;;  %v18677_v17 = vpop.f32.mrb[169].mxu1 }
 0xf52   : > { %v8931_v18 = vpop.f32.mrb[170].mxu1 }
 0xf53   : > { %v18678_v47 = vpop.f32.mrb[171].mxu1  ;;  %v9219_v26 = vsel %vm21419_vm9, %v9211_v46, -1e+30 }
 0xf54   : > { %v9229_v21 = vsel %vm4607_vm10, %v9219_v26, -inf }
 0xf55   : > { %9230 = vmax.xlane.f32.xlu1 %v9229_v21 }
 0xf59   : > { %v8974_v27 = vpop.f32.mrb[172].mxu1 }
 0xf5a   : > { %v9212_v24 = vmul.f32 0.25, %v8974_v27  ;;  %v18683_v25 = vpop.f32.mrb[173].mxu1 }
 0xf5b   : > { %v8977_v48 = vpop.f32.mrb[174].mxu1 }
 0xf5c   : > { %v18684_v28 = vpop.f32.mrb[175].mxu1  ;;  %v9220_v31 = vsel %vm21419_vm9, %v9212_v24, -1e+30 }
 0xf5d   : > { %v9232_v34 = vsel %vm4607_vm10, %v9220_v31, -inf }
 0xf5e   : > { %9233 = vmax.xlane.f32.xlu0 %v9232_v34 }
 0xf61   : > { %v9020_v35 = vpop.f32.mrb[176].mxu1 }
 0xf62   : > { %v9213_v37 = vmul.f32 0.25, %v9020_v35  ;;  %v18689_v33 = vpop.f32.mrb[177].mxu1 }
 0xf63   : > { %v9023_v41 = vpop.f32.mrb[178].mxu1 }
 0xf64   : > { %v18690_v42 = vpop.f32.mrb[179].mxu1  ;;  %v9221_v60 = vsel %vm21419_vm9, %v9213_v37, -1e+30 }
 0xf65   : > { %v9235_v43 = vsel %vm4607_vm10, %v9221_v60, -inf }
 0xf66   : > { %9236 = vmax.xlane.f32.xlu1 %v9235_v43 }
 0xf79   : > { %v9066_v61 = vpop.f32.mrb[152].mxu0  ;;  %v9112_v57 = vpop.f32.mrb[180].mxu1 }
 0xf7a   : > { %v9214_v44 = vmul.f32 0.25, %v9066_v61  ;;  %v9215_v22 = vmul.f32 0.25, %v9112_v57  ;;  %v18695_v52 = vpop.f32.mrb[153].mxu0  ;;  %v18701_v53 = vpop.f32.mrb[181].mxu1 }
 0xf7b   : > { %v9069_v54 = vpop.f32.mrb[154].mxu0  ;;  %v9115_v23 = vpop.f32.mrb[182].mxu1 }
 0xf7c   : > { %v18696_v55 = vpop.f32.mrb[155].mxu0  ;;  %v18702_v58 = vpop.f32.mrb[183].mxu1  ;;  %v9223_v16 = vsel %vm21419_vm9, %v9215_v22, -1e+30  ;;  %v9222_v29 = vsel %vm21419_vm9, %v9214_v44, -1e+30 }
 0xf7d   : > { %v9241_v32 = vsel %vm4607_vm10, %v9223_v16, -inf  ;;  %v9238_v62 = vsel %vm4607_vm10, %v9222_v29, -inf }
 0xf7e   : > { %9242 = vmax.xlane.f32.xlu1 %v9241_v32  ;;  %9239 = vmax.xlane.f32.xlu0 %v9238_v62 }
 0xf99   : > { %v9158_v63 = vpop.f32.mrb[156].mxu0  ;;  %v9204_v30 = vpop.f32.mrb[184].mxu1 }
 0xf9a   : > { %v9216_v50 = vmul.f32 0.25, %v9158_v63  ;;  %v9217_v20 = vmul.f32 0.25, %v9204_v30  ;;  %v18707_v7 = vpop.f32.mrb[157].mxu0  ;;  %v18713_v39 = vpop.f32.mrb[185].mxu1 }
 0xf9b   : > { %v9161_v8 = vpop.f32.mrb[158].mxu0  ;;  %v9207_v9 = vpop.f32.mrb[186].mxu1 }
 0xf9c   : > { %v18708_v5 = vpop.f32.mrb[159].mxu0  ;;  %v18714_v10 = vpop.f32.mrb[187].mxu1  ;;  %v9225_v11 = vsel %vm21419_vm9, %v9217_v20, -1e+30  ;;  %v9224_v45 = vsel %vm21419_vm9, %v9216_v50, -1e+30  ;;  %v9324_v9 = vpack.c.bf16 %v22215_v49, %v22215_v49 }
 0xf9d   : > { %v9247_v19 = vsel %vm4607_vm10, %v9225_v11, -inf  ;;  %v9244_v13 = vsel %vm4607_vm10, %v9224_v45, -inf }
 0xf9e   : > { %9248 = vmax.xlane.f32.xlu1 %v9247_v19  ;;  %9245 = vmax.xlane.f32.xlu0 %v9244_v13  ;;  %v9325_v13 = vpack.c.bf16 %v22217_v40, %v22217_v40 }
 0xfda   : > { %v9228_v15 = vpop.xlane.xlu0 %9227 }
 0xfdb   : > { %v9250_v46 = vsub.f32 %v9218_v14, %v9228_v15 }
 0xfdd   : > { %v9258_v17 = vmul.f32 1.442695, %v9250_v46  ;;  %v9472_v46 = vsel %vm4715_vm8, %v9325_v13, 0  ;;  %v20027_v13 = vld [vmem:[%s23324_s18 + $0x28] sm:$0xff]  }
 0xfdf   : > { %20444 = vpow2.f32 %v9258_v17 }
 0xfe2   : > { %v9231_v18 = vpop.xlane.xlu1 %9230 }
 0xfe3   : > { %v9251_v47 = vsub.f32 %v9219_v26, %v9231_v18 }
 0xfe5   : > { %v9260_v21 = vmul.f32 1.442695, %v9251_v47  ;;  %v9326_v47 = vpack.c.bf16 %v22219_v36, %v22219_v36 }
 0xfe7   : > { %20446 = vpow2.f32 %v9260_v21 }
 0xfe9   : > { %v20445_v27 = vpop.eup %20444 }
 0xfea   : > { %v9274_v24 = vsel %vm4607_vm10, %v20445_v27, 0.0 }
 0xfeb   : > { %v9234_v25 = vpop.xlane.xlu0 %9233  ;;  %9275 = vadd.xlane.f32.xlu0 %v9274_v24 }
 0xfec   : > { %v9252_v48 = vsub.f32 %v9220_v31, %v9234_v25  ;;  %v9327_v25 = vpack.c.bf16 %v22221_v59, %v22221_v59  ;;  %v9329_v59 = vpack.c.bf16 %v22225_v1, %v22225_v1 }
 0xfee   : > { %v9262_v28 = vmul.f32 1.442695, %v9252_v48  ;;  %v9564_v36 = vsel %vm4715_vm8, %v9327_v25, 0 }
 0xff0   : > { %20448 = vpow2.f32 %v9262_v28 }
 0xff1   : > { %v20447_v34 = vpop.eup %20446 }
 0xff2   : > { %v9277_v35 = vsel %vm4607_vm10, %v20447_v34, 0.0 }
 0xff3   : > { %v9237_v37 = vpop.xlane.xlu1 %9236  ;;  %9278 = vadd.xlane.f32.xlu1 %v9277_v35 }
 0xff4   : > { %v9253_v14 = vsub.f32 %v9221_v60, %v9237_v37 }
 0xff6   : > { %v9264_v33 = vmul.f32 1.442695, %v9253_v14 }
 0xff8   : > { %20450 = vpow2.f32 %v9264_v33 }
 0xffa   : > { %v20449_v41 = vpop.eup %20448 }
 0xffb   : > { %v9280_v26 = vsel %vm4607_vm10, %v20449_v41, 0.0 }
 0xffc   : > { %9281 = vadd.xlane.f32.xlu0 %v9280_v26 }
0x1002   : > { %v22254_v42 = vpop.eup %20450 }
0x1003   : > { %v9283_v43 = vsel %vm4607_vm10, %v22254_v42, 0.0 }
0x1004   : > { %9284 = vadd.xlane.f32.xlu1 %v9283_v43 }
0x100b   : > { %v9243_v31 = vpop.xlane.xlu1 %9242  ;;  %v9240_v61 = vpop.xlane.xlu0 %9239 }
0x100c   : > { %v9255_v57 = vsub.f32 %v9223_v16, %v9243_v31  ;;  %v9254_v44 = vsub.f32 %v9222_v29, %v9240_v61  ;;  %v9656_v31 = vsel %vm4715_vm8, %v9329_v59, 0 }
0x100e   : > { %v9268_v22 = vmul.f32 1.442695, %v9255_v57  ;;  %v9266_v52 = vmul.f32 1.442695, %v9254_v44 }
0x1010   : > { %20452 = vpow2.f32 %v9268_v22 }
0x1011   : > { %20454 = vpow2.f32 %v9266_v52 }
0x101a   : > { %v22258_v60 = vpop.eup %20452 }
0x101b   : > { %v22260_v53 = vpop.eup %20454  ;;  %v9289_v54 = vsel %vm4607_vm10, %v22258_v60, 0.0 }
0x101c   : > { %9290 = vadd.xlane.f32.xlu1 %v9289_v54  ;;  %v9286_v23 = vsel %vm4607_vm10, %v22260_v53, 0.0  ;;  %v20022_v54 = vld [vmem:[%s23324_s18] sm:$0xff]  }
0x101d   : > { %9287 = vadd.xlane.f32.xlu0 %v9286_v23  ;;  %v20023_v23 = vld [vmem:[%s23324_s18 + $0x8] sm:$0xff]  }
0x102b   : > { %v9249_v55 = vpop.xlane.xlu1 %9248  ;;  %v9246_v58 = vpop.xlane.xlu0 %9245 }
0x102c   : > { %v9257_v16 = vsub.f32 %v9225_v11, %v9249_v55  ;;  %v9256_v29 = vsub.f32 %v9224_v45, %v9246_v58  ;;  %v9426_v11 = vsel %vm4715_vm8, %v9324_v9, 0  ;;  %v20024_v58 = vld [vmem:[%s23324_s18 + $0x10] sm:$0xff]   ;;  %v20026_v9 = vld [vmem:[%s23324_s18 + $0x20] sm:$0xff]  }
0x102e   : > { %v9272_v32 = vmul.f32 1.442695, %v9257_v16  ;;  %v9270_v62 = vmul.f32 1.442695, %v9256_v29 }
0x1030   : > { %20456 = vpow2.f32 %v9272_v32 }
0x1031   : > { %20458 = vpow2.f32 %v9270_v62 }
0x103a   : > { %v22266_v63 = vpop.eup %20456 }
0x103b   : > { %v22268_v30 = vpop.eup %20458  ;;  %v9295_v50 = vsel %vm4607_vm10, %v22266_v63, 0.0 }
0x103c   : > { %9296 = vadd.xlane.f32.xlu1 %v9295_v50  ;;  %v9292_v20 = vsel %vm4607_vm10, %v22268_v30, 0.0 }
0x103d   : > { %9293 = vadd.xlane.f32.xlu0 %v9292_v20 }
0x1078   : > { %v9276_v7 = vpop.xlane.xlu0 %9275 }
0x1079   : > { %20460 = vrcp.f32 %v9276_v7 }
0x1080   : > { %v9279_v39 = vpop.xlane.xlu1 %9278 }
0x1081   : > { %20462 = vrcp.f32 %v9279_v39 }
0x1083   : > { %v20461_v8 = vpop.eup %20460 }
0x1084   : > { %v9306_v5 = vmul.f32 %v20461_v8, %v20445_v27  ;;  %v9518_v27 = vsel %vm4715_vm8, %v9326_v47, 0  ;;  %v20029_v47 = vld [vmem:[%s23324_s18 + $0x38] sm:$0xff]  }
0x1086   : > { %v9314_v10 = vpack.c.bf16 %v9306_v5, %v9306_v5 }
0x1088   : > { %18718 = vmatmul.mubr.msk.bf16.vlgmr.msra.gmra.mrb[160].mxu0 %vm4607_vm10, %v9314_v10 }
0x1089   : > { %18728 = vmatpush3.bf16.msra.mxu0 %v9426_v11  ;;  %v9282_v45 = vpop.xlane.xlu0 %9281  ;;  %18729 = vmatprep.mubr.msk.bf16.mxu0 %vm20575_vm4, %v20574_v6 }
0x108a   : > { %20464 = vrcp.f32 %v9282_v45  ;;  %18739 = vmatprep.subr.bf16.mxu0 %v20574_v6 }
0x108b   : > { %v20463_v19 = vpop.eup %20462 }
0x108c   : > { %v9307_v15 = vmul.f32 %v20463_v19, %v20447_v34 }
0x108e   : > { %v9315_v49 = vpack.c.bf16 %v9307_v15, %v9307_v15 }
0x1090   : > { %18724 = vmatmul.mubr.msk.bf16.vlgmr.msra.gmra.mrb[188].mxu1 %vm4607_vm10, %v9315_v49 }
0x1091   : > { %18734 = vmatpush3.bf16.msra.mxu1 %v9472_v46  ;;  %v9285_v17 = vpop.xlane.xlu1 %9284  ;;  %18735 = vmatprep.mubr.msk.bf16.mxu1 %vm20575_vm4, %v20574_v6 }
0x1092   : > { %20466 = vrcp.f32 %v9285_v17  ;;  %18745 = vmatprep.subr.bf16.mxu1 %v20574_v6 }
0x1094   : > { %v20465_v18 = vpop.eup %20464 }
0x1095   : > { %v9308_v21 = vmul.f32 %v20465_v18, %v20449_v41  ;;  %v9328_v41 = vpack.c.bf16 %v22223_v3, %v22223_v3 }
0x1097   : > { %v9316_v40 = vpack.c.bf16 %v9308_v21, %v9308_v21  ;;  %v9610_v61 = vsel %vm4715_vm8, %v9328_v41, 0 }
0x1099   : > { %18730 = vmatmul.mubr.msk.bf16.vlgmr.msra.gmra.mrb[164].mxu0 %vm4607_vm10, %v9316_v40 }
0x109a   : > { %18740 = vmatpush3.bf16.msra.mxu0 %v9518_v27  ;;  %18741 = vmatprep.mubr.msk.bf16.mxu0 %vm20575_vm4, %v20574_v6 }
0x109b   : > { %18751 = vmatprep.subr.bf16.mxu0 %v20574_v6 }
0x109c   : > { %v20467_v24 = vpop.eup %20466 }
0x109d   : > { %v9309_v48 = vmul.f32 %v20467_v24, %v22254_v42  ;;  %v20028_v24 = vld [vmem:[%s23324_s18 + $0x30] sm:$0xff]  }
0x109f   : > { %v9317_v28 = vpack.c.bf16 %v9309_v48, %v9309_v48 }
0x10a1   : > { %18736 = vmatmul.mubr.msk.bf16.vlgmr.msra.gmra.mrb[192].mxu1 %vm4607_vm10, %v9317_v28 }
0x10a2   : > { %18746 = vmatpush3.bf16.msra.mxu1 %v9564_v36  ;;  %18747 = vmatprep.mubr.msk.bf16.mxu1 %vm20575_vm4, %v20574_v6 }
0x10a3   : > { %18757 = vmatprep.subr.bf16.mxu1 %v20574_v6 }
0x10a9   : > { %v9291_v34 = vpop.xlane.xlu1 %9290 }
0x10aa   : > { %20468 = vrcp.f32 %v9291_v34  ;;  %v9288_v35 = vpop.xlane.xlu0 %9287 }
0x10ab   : > { %20470 = vrcp.f32 %v9288_v35 }
0x10b4   : > { %v20469_v37 = vpop.eup %20468 }
0x10b5   : > { %v20471_v14 = vpop.eup %20470  ;;  %v9311_v33 = vmul.f32 %v20469_v37, %v22258_v60 }
0x10b6   : > { %v9310_v26 = vmul.f32 %v20471_v14, %v22260_v53 }
0x10b7   : > { %v9319_v42 = vpack.c.bf16 %v9311_v33, %v9311_v33 }
0x10b8   : > { %v9318_v43 = vpack.c.bf16 %v9310_v26, %v9310_v26 }
0x10b9   : > { %18748 = vmatmul.mubr.msk.bf16.vlgmr.msra.gmra.mrb[196].mxu1 %vm4607_vm10, %v9319_v42 }
0x10ba   : > { %18742 = vmatmul.mubr.msk.bf16.vlgmr.msra.gmra.mrb[168].mxu0 %vm4607_vm10, %v9318_v43  ;;  %18758 = vmatpush3.bf16.msra.mxu1 %v9656_v31 }
0x10bb   : > { %18752 = vmatpush3.bf16.msra.mxu0 %v9610_v61  ;;  %18753 = vmatprep.mubr.msk.bf16.mxu0 %vm20575_vm4, %v20574_v6 }
0x10bc   : > { %18759 = vmatprep.mubr.msk.bf16.mxu1 %vm20575_vm4, %v20574_v6  ;;  %18763 = vmatprep.subr.bf16.mxu0 %v20574_v6 }
0x10bd   : > { %18769 = vmatprep.subr.bf16.mxu1 %v20574_v6 }
0x10c9   : > { %v9297_v3 = vpop.xlane.xlu1 %9296 }
0x10ca   : > { %20472 = vrcp.f32 %v9297_v3  ;;  %v9294_v1 = vpop.xlane.xlu0 %9293 }
0x10cb   : > { %20474 = vrcp.f32 %v9294_v1 }
0x10d4   : > { %v20473_v57 = vpop.eup %20472 }
0x10d5   : > { %v20475_v44 = vpop.eup %20474  ;;  %v9313_v22 = vmul.f32 %v20473_v57, %v22266_v63 }
0x10d6   : > { %v9312_v52 = vmul.f32 %v20475_v44, %v22268_v30  ;;  %v20025_v30 = vld [vmem:[%s23324_s18 + $0x18] sm:$0xff]  }
0x10d7   : > { %v9321_v60 = vpack.c.bf16 %v9313_v22, %v9313_v22 }
0x10d8   : > { %v9320_v53 = vpack.c.bf16 %v9312_v52, %v9312_v52 }
0x10d9   : > { %18760 = vmatmul.mubr.msk.bf16.vlgmr.msra.gmra.mrb[200].mxu1 %vm4607_vm10, %v9321_v60 }
0x10da   : > { %18754 = vmatmul.mubr.msk.bf16.vlgmr.msra.gmra.mrb[172].mxu0 %vm4607_vm10, %v9320_v53  ;;  %18771 = vmatprep.mubr.msk.bf16.mxu1 %vm20575_vm4, %v20574_v6 }
0x10db   : > { %18765 = vmatprep.mubr.msk.bf16.mxu0 %vm20575_vm4, %v20574_v6  ;;  %18764 = vmatpush3.bf16.msra.mxu0 %v20022_v54 }
0x10dc   : > { %18775 = vmatprep.subr.bf16.mxu0 %v20574_v6  ;;  %18770 = vmatpush3.bf16.msra.mxu1 %v20023_v23 }
0x10dd   : > { %18781 = vmatprep.subr.bf16.mxu1 %v20574_v6 }
0x115b   : > { %v9370_v55 = vpop.f32.mrb[160].mxu0 }
0x115c   : > { %v9698_v16 = vpack.c.bf16 %v9370_v55, %v9370_v55  ;;  %v18719_v29 = vpop.f32.mrb[161].mxu0 }
0x115d   : > { %v9373_v32 = vpop.f32.mrb[162].mxu0 }
0x115e   : > { %v18720_v62 = vpop.f32.mrb[163].mxu0  ;;  %18766 = vmatmul.mubr.msk.bf16.vlgmr.msra.gmra.mrb[176].mxu0 %vm4217_vm7, %v9698_v16 }
0x115f   : > { %18776 = vmatpush3.bf16.msra.mxu0 %v20024_v58  ;;  %18777 = vmatprep.mubr.msk.bf16.mxu0 %vm20575_vm4, %v20574_v6 }
0x1160   : > { %18787 = vmatprep.subr.bf16.mxu0 %v20574_v6 }
0x1163   : > { %v9416_v63 = vpop.f32.mrb[188].mxu1 }
0x1164   : > { %v9699_v50 = vpack.c.bf16 %v9416_v63, %v9416_v63  ;;  %v18725_v20 = vpop.f32.mrb[189].mxu1 }
0x1165   : > { %v9419_v7 = vpop.f32.mrb[190].mxu1 }
0x1166   : > { %v18726_v39 = vpop.f32.mrb[191].mxu1  ;;  %18772 = vmatmul.mubr.msk.bf16.vlgmr.msra.gmra.mrb[204].mxu1 %vm4217_vm7, %v9699_v50 }
0x1167   : > { %18782 = vmatpush3.bf16.msra.mxu1 %v20025_v30  ;;  %18783 = vmatprep.mubr.msk.bf16.mxu1 %vm20575_vm4, %v20574_v6 }
0x1168   : > { %18793 = vmatprep.subr.bf16.mxu1 %v20574_v6 }
0x116c   : > { %v9462_v8 = vpop.f32.mrb[164].mxu0 }
0x116d   : > { %v9700_v5 = vpack.c.bf16 %v9462_v8, %v9462_v8  ;;  %v18731_v10 = vpop.f32.mrb[165].mxu0 }
0x116e   : > { %v9465_v11 = vpop.f32.mrb[166].mxu0 }
0x116f   : > { %v18732_v45 = vpop.f32.mrb[167].mxu0  ;;  %18778 = vmatmul.mubr.msk.bf16.vlgmr.msra.gmra.mrb[180].mxu0 %vm4217_vm7, %v9700_v5 }
0x1170   : > { %18788 = vmatpush3.bf16.msra.mxu0 %v20026_v9  ;;  %18789 = vmatprep.mubr.msk.bf16.mxu0 %vm20575_vm4, %v20574_v6 }
0x1171   : > { %18799 = vmatprep.subr.bf16.mxu0 %v20574_v6 }
0x1174   : > { %v9508_v19 = vpop.f32.mrb[192].mxu1 }
0x1175   : > { %v9701_v15 = vpack.c.bf16 %v9508_v19, %v9508_v19  ;;  %v18737_v49 = vpop.f32.mrb[193].mxu1 }
0x1176   : > { %v9511_v46 = vpop.f32.mrb[194].mxu1 }
0x1177   : > { %v18738_v17 = vpop.f32.mrb[195].mxu1  ;;  %18784 = vmatmul.mubr.msk.bf16.vlgmr.msra.gmra.mrb[208].mxu1 %vm4217_vm7, %v9701_v15 }
0x1178   : > { %18794 = vmatpush3.bf16.msra.mxu1 %v20027_v13  ;;  %18795 = vmatprep.mubr.msk.bf16.mxu1 %vm20575_vm4, %v20574_v6 }
0x1179   : > { %18805 = vmatprep.subr.bf16.mxu1 %v20574_v6 }
0x118c   : > { %v9600_v18 = vpop.f32.mrb[196].mxu1 }
0x118d   : > { %v9554_v21 = vpop.f32.mrb[168].mxu0  ;;  %v9703_v40 = vpack.c.bf16 %v9600_v18, %v9600_v18  ;;  %v18749_v27 = vpop.f32.mrb[197].mxu1 }
0x118e   : > { %v9702_v25 = vpack.c.bf16 %v9554_v21, %v9554_v21  ;;  %v18743_v48 = vpop.f32.mrb[169].mxu0  ;;  %v9603_v28 = vpop.f32.mrb[198].mxu1 }
0x118f   : > { %v9557_v36 = vpop.f32.mrb[170].mxu0  ;;  %v18750_v34 = vpop.f32.mrb[199].mxu1  ;;  %18796 = vmatmul.mubr.msk.bf16.vlgmr.msra.gmra.mrb[212].mxu1 %vm4217_vm7, %v9703_v40  ;;  %v20030_v28 = vld [vmem:[%s23326_s23] ss:$16 sps:$4 sm:$0xff]  }
0x1190   : > { %v18744_v35 = vpop.f32.mrb[171].mxu0  ;;  %18790 = vmatmul.mubr.msk.bf16.vlgmr.msra.gmra.mrb[184].mxu0 %vm4217_vm7, %v9702_v25  ;;  %18806 = vmatpush3.bf16.msra.mxu1 %v20029_v47  ;;  %v20032_v36 = vld [vmem:[%s23326_s23 + $0x4] ss:$16 sps:$4 sm:$0xff]   ;;  %v20033_v34 = vld [vmem:[%s23326_s23 + $0x8] ss:$16 sps:$4 sm:$0xff]  }
0x1191   : > { %18800 = vmatpush3.bf16.msra.mxu0 %v20028_v24  ;;  %18801 = vmatprep.mubr.msk.bf16.mxu0 %vm20575_vm4, %v20574_v6  ;;  %v16193_v24 = vld [vmem:[%s23325_s22] ss:$0 sm:$0xff]  ;;  %v20035_v35 = vld [vmem:[%s23326_s23 + $0xc] ss:$16 sps:$4 sm:$0xff]   ;;  %s23332_s22 = sld [smem:[#allocation22_spill]] }
0x1192   : > { %18807 = vmatprep.mubr.msk.bf16.mxu1 %vm20575_vm4, %v20574_v6  ;;  %10372 = vmatprep.subr.bf16.mxu0 %v20032_v36  ;;  %v20089_v36 = vld [vmem:[%s23327_s26 + $0x90] sm:$0xff]  }
0x1193   : > { %10413 = vmatprep.subr.bf16.mxu1 %v20035_v35  ;;  %v20091_v35 = vld [vmem:[%s23327_s26 + $0xd8] sm:$0xff]  }
0x11ac   : > { %v9692_v37 = vpop.f32.mrb[200].mxu1 }
0x11ad   : > { %v9646_v14 = vpop.f32.mrb[172].mxu0  ;;  %v9705_v59 = vpack.c.bf16 %v9692_v37, %v9692_v37  ;;  %v18761_v33 = vpop.f32.mrb[201].mxu1  ;;  %v20038_v37 = vld [vmem:[%s23326_s23 + $0x24] ss:$16 sps:$4 sm:$0xff]  }
0x11ae   : > { %v9704_v41 = vpack.c.bf16 %v9646_v14, %v9646_v14  ;;  %v18755_v26 = vpop.f32.mrb[173].mxu0  ;;  %v9695_v42 = vpop.f32.mrb[202].mxu1  ;;  %v20041_v14 = vld [vmem:[%s23326_s23 + $0x2c] ss:$16 sps:$4 sm:$0xff]   ;;  %v20044_v33 = vld [vmem:[%s23326_s23 + $0x44] ss:$16 sps:$4 sm:$0xff]  }
0x11af   : > { %v9649_v43 = vpop.f32.mrb[174].mxu0  ;;  %v18762_v31 = vpop.f32.mrb[203].mxu1  ;;  %18808 = vmatmul.mubr.msk.bf16.vlgmr.msra.gmra.mrb[216].mxu1 %vm4217_vm7, %v9705_v59  ;;  %v20036_v59 = vld [vmem:[%s23326_s23 + $0x20] ss:$16 sps:$4 sm:$0xff]   ;;  %v20045_v42 = vld [vmem:[%s23326_s23 + $0x48] ss:$16 sps:$4 sm:$0xff]  }
0x11b0   : > { %v18756_v61 = vpop.f32.mrb[175].mxu0  ;;  %18802 = vmatmul.mubr.msk.bf16.vlgmr.msra.gmra.mrb[188].mxu0 %vm4217_vm7, %v9704_v41  ;;  %10445 = vmatprep.mubr.bf16.mxu1 %v20576_v12  ;;  %v20047_v41 = vld [vmem:[%s23326_s23 + $0x4c] ss:$16 sps:$4 sm:$0xff]   ;;  %v20042_v26 = vld [vmem:[%s23326_s23 + $0x40] ss:$16 sps:$4 sm:$0xff]  }
0x11b1   : > { %10404 = vmatprep.mubr.bf16.mxu0 %v20576_v12  ;;  %10373 = vmatpush1.bf16.msra.mxu0 %v20030_v28  ;;  %v20088_v28 = vld [vmem:[%s23327_s26 + $0x10] sm:$0xff]  }
0x11b2   : > { %10414 = vmatpush1.bf16.msra.mxu1 %v20033_v34  ;;  %10374 = vmatprep.subr.bf16.mxu0 %v20038_v37  ;;  %v20090_v34 = vld [vmem:[%s23327_s26 + $0x58] sm:$0xff]  }
0x11b3   : > { %10415 = vmatprep.subr.bf16.mxu1 %v20041_v14  ;;  %v20092_v37 = vld [vmem:[%s23327_s26 + $0x18] sm:$0xff]  }
0x11b4   : > { %v20093_v14 = vld [vmem:[%s23327_s26 + $0x98] sm:$0xff]  }
0x11b5   : > { %10375 = vmatpush1.bf16.msra.mxu0 %v20036_v59  ;;  %v20094_v59 = vld [vmem:[%s23327_s26 + $0x60] sm:$0xff]  }
0x11b6   : > { %10376 = vmatprep.subr.bf16.mxu0 %v20044_v33  ;;  %v20096_v33 = vld [vmem:[%s23327_s26 + $0x20] sm:$0xff]  }
0x11b9   : > { %10377 = vmatpush1.bf16.msra.mxu0 %v20042_v26  ;;  %v20098_v26 = vld [vmem:[%s23327_s26 + $0x68] sm:$0xff]  }
0x1231   : > { %v9765_v3 = vpop.f32.mrb[176].mxu0 }
0x1232   : > { %v18767_v1 = vpop.f32.mrb[177].mxu0 }
0x1233   : > { %v9768_v57 = vpop.f32.mrb[178].mxu0  ;;  %v20050_v1 = vld [vmem:[%s23326_s23 + $0x64] ss:$16 sps:$4 sm:$0xff]  }
0x1234   : > { %v18768_v44 = vpop.f32.mrb[179].mxu0  ;;  %v20053_v57 = vld [vmem:[%s23326_s23 + $0x6c] ss:$16 sps:$4 sm:$0xff]   ;;  %10378 = vmatprep.subr.bf16.mxu0 %v20050_v1  ;;  %v20104_v1 = vld [vmem:[%s23327_s26 + $0x30] sm:$0xff]  }
0x1235   : > { %v20048_v44 = vld [vmem:[%s23326_s23 + $0x60] ss:$16 sps:$4 sm:$0xff]  }
0x1236   : > { %10379 = vmatpush1.bf16.msra.mxu0 %v20048_v44  ;;  %v20106_v44 = vld [vmem:[%s23327_s26 + $0x78] sm:$0xff]  }
0x1239   : > { %v9814_v22 = vpop.f32.mrb[204].mxu1 }
0x123a   : > { %v10114_v52 = vadd.f32 %v9814_v22, %v9765_v3  ;;  %v18773_v60 = vpop.f32.mrb[205].mxu1  ;;  %v20051_v22 = vld [vmem:[%s23326_s23 + $0x68] ss:$16 sps:$4 sm:$0xff]  }
0x123b   : > { %v9817_v53 = vpop.f32.mrb[206].mxu1  ;;  %v20054_v60 = vld [vmem:[%s23326_s23 + $0x80] ss:$16 sps:$4 sm:$0xff]  }
0x123c   : > { %v18774_v54 = vpop.f32.mrb[207].mxu1  ;;  %v20057_v53 = vld [vmem:[%s23326_s23 + $0x88] ss:$16 sps:$4 sm:$0xff]  }
0x123d   : > { %v20059_v54 = vld [vmem:[%s23326_s23 + $0x8c] ss:$16 sps:$4 sm:$0xff]  }
0x1242   : > { %v9863_v23 = vpop.f32.mrb[180].mxu0 }
0x1243   : > { %v10115_v55 = vadd.f32 %v10114_v52, %v9863_v23  ;;  %v18779_v58 = vpop.f32.mrb[181].mxu0  ;;  %v20056_v52 = vld [vmem:[%s23326_s23 + $0x84] ss:$16 sps:$4 sm:$0xff]  }
0x1244   : > { %v9866_v16 = vpop.f32.mrb[182].mxu0  ;;  %10380 = vmatprep.subr.bf16.mxu0 %v20056_v52  ;;  %v20062_v23 = vld [vmem:[%s23326_s23 + $0xa4] ss:$16 sps:$4 sm:$0xff]   ;;  %v20060_v58 = vld [vmem:[%s23326_s23 + $0xa0] ss:$16 sps:$4 sm:$0xff]   ;;  %v20108_v52 = vld [vmem:[%s23327_s26 + $0x38] sm:$0xff]  }
0x1245   : > { %v18780_v29 = vpop.f32.mrb[183].mxu0  ;;  %10381 = vmatpush1.bf16.msra.mxu0 %v20054_v60  ;;  %v20063_v16 = vld [vmem:[%s23326_s23 + $0xa8] ss:$16 sps:$4 sm:$0xff]  }
0x1246   : > { %10382 = vmatprep.subr.bf16.mxu0 %v20062_v23  ;;  %v20068_v29 = vld [vmem:[%s23326_s23 + $0xc4] ss:$16 sps:$4 sm:$0xff]   ;;  %v20109_v60 = vld [vmem:[%s23327_s26 + $0xb8] sm:$0xff]  }
0x1249   : > { %10383 = vmatpush1.bf16.msra.mxu0 %v20060_v58 }
0x124a   : > { %v9912_v32 = vpop.f32.mrb[208].mxu1  ;;  %10384 = vmatprep.subr.bf16.mxu0 %v20068_v29 }
0x124b   : > { %v10116_v62 = vadd.f32 %v10115_v55, %v9912_v32  ;;  %v18785_v63 = vpop.f32.mrb[209].mxu1  ;;  %v20065_v55 = vld [vmem:[%s23326_s23 + $0xac] ss:$16 sps:$4 sm:$0xff]  }
0x124c   : > { %v9915_v30 = vpop.f32.mrb[210].mxu1  ;;  %v20071_v32 = vld [vmem:[%s23326_s23 + $0xcc] ss:$16 sps:$4 sm:$0xff]   ;;  %v20069_v63 = vld [vmem:[%s23326_s23 + $0xc8] ss:$16 sps:$4 sm:$0xff]  }
0x124d   : > { %v18786_v50 = vpop.f32.mrb[211].mxu1  ;;  %v20074_v30 = vld [vmem:[%s23326_s23 + $0xe4] ss:$16 sps:$4 sm:$0xff]  }
0x124e   : > { %v20077_v50 = vld [vmem:[%s23326_s23 + $0xec] ss:$16 sps:$4 sm:$0xff]  }
0x1262   : > { %v10010_v20 = vpop.f32.mrb[212].mxu1 }
0x1263   : > { %v9961_v7 = vpop.f32.mrb[184].mxu0  ;;  %v18797_v39 = vpop.f32.mrb[213].mxu1 }
0x1264   : > { %v10117_v8 = vadd.f32 %v10116_v62, %v9961_v7  ;;  %v18791_v9 = vpop.f32.mrb[185].mxu0  ;;  %v10013_v5 = vpop.f32.mrb[214].mxu1  ;;  %v20066_v62 = vld [vmem:[%s23326_s23 + $0xc0] ss:$16 sps:$4 sm:$0xff]   ;;  %v20075_v7 = vld [vmem:[%s23326_s23 + $0xe8] ss:$16 sps:$4 sm:$0xff]  }
0x1265   : > { %v9964_v10 = vpop.f32.mrb[186].mxu0  ;;  %v18798_v11 = vpop.f32.mrb[215].mxu1  ;;  %10385 = vmatpush1.bf16.msra.mxu0 %v20066_v62  ;;  %v20078_v39 = vld [vmem:[%s23327_s26 + $0x40] sm:$0xff]  }
0x1266   : > { %v10118_v45 = vadd.f32 %v10117_v8, %v10010_v20  ;;  %v18792_v19 = vpop.f32.mrb[187].mxu0  ;;  %v20072_v20 = vld [vmem:[%s23326_s23 + $0xe0] ss:$16 sps:$4 sm:$0xff]   ;;  %10386 = vmatprep.subr.bf16.mxu0 %v20074_v30 }
0x1267   : > { %v20079_v8 = vld [vmem:[%s23327_s26 + $0xc0] sm:$0xff]  }
0x1269   : > { %10387 = vmatpush1.bf16.msra.mxu0 %v20072_v20 }
0x126a   : > { %17161 = vmatprep.subr.bf16.mxu0 %v20078_v39 }
0x1282   : > { %v10108_v13 = vpop.f32.mrb[216].mxu1 }
0x1283   : > { %v10059_v15 = vpop.f32.mrb[188].mxu0  ;;  %v18809_v49 = vpop.f32.mrb[217].mxu1 }
0x1284   : > { %v10119_v46 = vadd.f32 %v10118_v45, %v10059_v15  ;;  %v18803_v17 = vpop.f32.mrb[189].mxu0  ;;  %v10111_v18 = vpop.f32.mrb[218].mxu1  ;;  %v16194_v45 = vld [vmem:[%s23328_s1] ss:$0 sm:$0xff]  ;;  %s23333_s1 = sld [smem:[#allocation24_spill]] }
0x1285   : > { %v10062_v47 = vpop.f32.mrb[190].mxu0  ;;  %v18810_v21 = vpop.f32.mrb[219].mxu1  ;;  %v20081_v17 = vld [vmem:[%s23327_s26 + $0x80] sm:$0xff]  }
0x1286   : > { %v10120_v40 = vadd.f32 %v10119_v46, %v10108_v13  ;;  %v18804_v27 = vpop.f32.mrb[191].mxu0  ;;  %v16195_v13 = vld [vmem:[%s23329_s2] ss:$0 sm:$0xff]  ;;  %v20082_v47 = vld [vmem:[%s23327_s26 + $0x48] sm:$0xff]   ;;  %s23334_s2 = sld [smem:[#allocation27_spill]] }
0x1287   : > { %v20080_v46 = vld [vmem:[%s23327_s26] sm:$0xff]   ;;  %v20083_v21 = vld [vmem:[%s23327_s26 + $0xc8] sm:$0xff]  }
0x1288   : > { %v10121_v25 = vadd.f32 %v10120_v40, %v21675_v2  ;;  %v20039_v2 = vld [vmem:[%s23326_s23 + $0x28] ss:$16 sps:$4 sm:$0xff]  }
0x1289   : > { %10416 = vmatpush1.bf16.msra.mxu1 %v20039_v2  ;;  %v20084_v40 = vld [vmem:[%s23327_s26 + $0x8] sm:$0xff]   ;;  %v20095_v2 = vld [vmem:[%s23327_s26 + $0xe0] sm:$0xff]  }
0x128a   : > { %v22365_v48 = vadd.f32 %v16193_v24, %v10121_v25  ;;  %10417 = vmatprep.subr.bf16.mxu1 %v20047_v41  ;;  %v20085_v27 = vld [vmem:[%s23327_s26 + $0x88] sm:$0xff]   ;;  %v20086_v24 = vld [vmem:[%s23327_s26 + $0x50] sm:$0xff]   ;;  %v20097_v41 = vld [vmem:[%s23327_s26 + $0xa0] sm:$0xff]  }
0x128b   : > { %v20087_v25 = vld [vmem:[%s23327_s26 + $0xd0] sm:$0xff]  }
0x128c   : > { %10132 = vadd.xlane.f32.xlu0 %v22365_v48 }
0x128d   : > { %10418 = vmatpush1.bf16.msra.mxu1 %v20045_v42  ;;  %v20099_v42 = vld [vmem:[%s23327_s26 + $0xe8] sm:$0xff]  }
0x128e   : > { %10419 = vmatprep.subr.bf16.mxu1 %v20053_v57  ;;  %v20105_v57 = vld [vmem:[%s23327_s26 + $0xb0] sm:$0xff]  }
0x1291   : > { %10420 = vmatpush1.bf16.msra.mxu1 %v20051_v22  ;;  %v20107_v22 = vld [vmem:[%s23327_s26 + $0xf8] sm:$0xff]  }
0x1292   : > { %10421 = vmatprep.subr.bf16.mxu1 %v20059_v54 }
0x1295   : > { %10422 = vmatpush1.bf16.msra.mxu1 %v20057_v53  ;;  %v10190_v53 = vld [vmem:[%s23330_s7] sm:$0xf]  ;;  %s23335_s7 = sld [smem:[#allocation25_spill]] }
0x1296   : > { %10423 = vmatprep.subr.bf16.mxu1 %v20065_v55  ;;  %v10195_v54 = vrot.slane %v10190_v53, %v21634_v56  ;;  %v10203_v23 = vrot.slane %v10190_v53, %v21637_v4  ;;  %v10199_v55 = vrot.slane %v10190_v53, %v21641_v0  ;;  %v10207_v58 = vrot.slane %v10190_v53, %v21644_v38  ;;  %v20121_v53 = vld [vmem:[%s23334_s2 + $0x48] sm:$0xff]  }
0x1299   : > { %10424 = vmatpush1.bf16.msra.mxu1 %v20063_v16 }
0x129a   : > { %10425 = vmatprep.subr.bf16.mxu1 %v20071_v32 }
0x129d   : > { %10426 = vmatpush1.bf16.msra.mxu1 %v20069_v63 }
0x129e   : > { %10427 = vmatprep.subr.bf16.mxu1 %v20077_v50 }
0x12a1   : > { %10428 = vmatpush1.bf16.msra.mxu1 %v20075_v7 }
0x12a2   : > { %17183 = vmatprep.subr.bf16.mxu1 %v20079_v8 }
0x1319   : > { %v10133_v43 = vpop.xlane.xlu0 %10132 }
0x131a   : > { %v10134_v31 = vmul.f32 0.0078125, %v10133_v43  ;;  %v20100_v43 = vld [vmem:[%s23327_s26 + $0x28] sm:$0xff]  }
0x131c   : > { %v10135_v61 = vsub.f32 %v22365_v48, %v10134_v31  ;;  %v20101_v31 = vld [vmem:[%s23327_s26 + $0xa8] sm:$0xff]  }
0x131e   : > { %v10136_v3 = vmul.f32 %v10135_v61, %v10135_v61 }
0x1320   : > { %10137 = vadd.xlane.f32.xlu1 %v10136_v3  ;;  %v20103_v3 = vld [vmem:[%s23327_s26 + $0xf0] sm:$0xff]  }
0x13ad   : > { %v10138_v9 = vpop.xlane.xlu1 %10137 }
0x13ae   : > { %v10139_v5 = vmul.f32 0.0078125, %v10138_v9 }
0x13b0   : > { %v10140_v10 = vadd.f32 1e-05, %v10139_v5 }
0x13b2   : > { %20476 = vrsqrt.f32 %v10140_v10 }
0x13bc   : > { %v20477_v11 = vpop.eup %20476 }
0x13bd   : > { %v10142_v19 = vmul.f32 %v20477_v11, %v10135_v61  ;;  %v20102_v61 = vld [vmem:[%s23327_s26 + $0x70] sm:$0xff]  }
0x13bf   : > { %v10149_v15 = vmul.f32 %v16194_v45, %v10142_v19 }
0x13c1   : > { %v10156_v49 = vadd.f32 %v16195_v13, %v10149_v15  ;;  %v20110_v15 = vld [vmem:[%s23331_s11] sm:$0xff]  }
0x13c3   : > { %v10157_v18 = vpack.c.bf16 %v10156_v49, %v10156_v49 }
0x13c5   : > { %10405 = vmatmul.mubr.bf16.vlgmr.msra.gmra.mrb[192].mxu0 %v10157_v18  ;;  %10446 = vmatmul.mubr.bf16.vlgmr.msra.gmra.mrb[220].mxu1 %v10157_v18  ;;  %v20112_v18 = vld [vmem:[%s23331_s11 + $0x10] sm:$0xff]  }
0x13c6   : > { %17162 = vmatpush3.bf16.msra.mxu0 %v20080_v46  ;;  %17184 = vmatpush3.bf16.msra.mxu1 %v20081_v17  ;;  %v20111_v17 = vld [vmem:[%s23331_s11 + $0x8] sm:$0xff]  }
0x13c7   : > { %17163 = vmatprep.subr.bf16.mxu0 %v20082_v47  ;;  %17185 = vmatprep.subr.bf16.mxu1 %v20083_v21  ;;  %v20113_v47 = vld [vmem:[%s23331_s11 + $0x18] sm:$0xff]   ;;  %v20114_v21 = vld [vmem:[%s23331_s11 + $0x20] sm:$0xff]  }
0x13ca   : > { %17164 = vmatpush3.bf16.msra.mxu0 %v20084_v40  ;;  %17186 = vmatpush3.bf16.msra.mxu1 %v20085_v27  ;;  %v20115_v40 = vld [vmem:[%s23331_s11 + $0x28] sm:$0xff]   ;;  %v20116_v27 = vld [vmem:[%s23331_s11 + $0x30] sm:$0xff]  }
0x13cb   : > { %17165 = vmatprep.subr.bf16.mxu0 %v20086_v24  ;;  %17187 = vmatprep.subr.bf16.mxu1 %v20087_v25  ;;  %v20117_v24 = vld [vmem:[%s23331_s11 + $0x38] sm:$0xff]  }
0x13ce   : > { %17166 = vmatpush3.bf16.msra.mxu0 %v20088_v28  ;;  %17188 = vmatpush3.bf16.msra.mxu1 %v20089_v36  ;;  %v16228_v36 = vld [vmem:[%s23332_s22] ss:$0 sm:$0xff]  ;;  %s23336_s22 = sld [smem:[#allocation26_spill]] }
0x13cf   : > { %17167 = vmatprep.subr.bf16.mxu0 %v20090_v34  ;;  %17189 = vmatprep.subr.bf16.mxu1 %v20091_v35 }
0x13d2   : > { %17168 = vmatpush3.bf16.msra.mxu0 %v20092_v37  ;;  %17190 = vmatpush3.bf16.msra.mxu1 %v20093_v14 }
0x13d3   : > { %17169 = vmatprep.subr.bf16.mxu0 %v20094_v59  ;;  %17191 = vmatprep.subr.bf16.mxu1 %v20095_v2 }
0x13d6   : > { %17170 = vmatpush3.bf16.msra.mxu0 %v20096_v33  ;;  %17192 = vmatpush3.bf16.msra.mxu1 %v20097_v41 }
0x13d7   : > { %17171 = vmatprep.subr.bf16.mxu0 %v20098_v26  ;;  %17193 = vmatprep.subr.bf16.mxu1 %v20099_v42 }
0x13da   : > { %17172 = vmatpush3.bf16.msra.mxu0 %v20100_v43  ;;  %17194 = vmatpush3.bf16.msra.mxu1 %v20101_v31 }
0x13db   : > { %17173 = vmatprep.subr.bf16.mxu0 %v20102_v61  ;;  %17195 = vmatprep.subr.bf16.mxu1 %v20103_v3  ;;  %v16261_v61 = vld [vmem:[%s23333_s1] ss:$0 sm:$0xff]  ;;  %s23337_s1 = sld [smem:[#allocation28_spill]] }
0x13de   : > { %17174 = vmatpush3.bf16.msra.mxu0 %v20104_v1  ;;  %17196 = vmatpush3.bf16.msra.mxu1 %v20105_v57 }
0x13df   : > { %17175 = vmatprep.subr.bf16.mxu0 %v20106_v44  ;;  %17197 = vmatprep.subr.bf16.mxu1 %v20107_v22 }
0x13e2   : > { %17176 = vmatpush3.bf16.msra.mxu0 %v20108_v52  ;;  %17198 = vmatpush3.bf16.msra.mxu1 %v20109_v60  ;;  %v20118_v52 = vld [vmem:[%s23334_s2] sm:$0xff]  }
0x13e3   : > { %18811 = vmatprep.subr.bf16.mxu0 %v20574_v6  ;;  %18831 = vmatprep.subr.bf16.mxu1 %v20574_v6  ;;  %v20119_v60 = vld [vmem:[%s23334_s2 + $0x40] sm:$0xff]  }
0x1498   : > { %v10406_v16 = vpop.f32.mrb[192].mxu0  ;;  %v10447_v29 = vpop.f32.mrb[220].mxu1 }
0x1499   : > { %v10407_v32 = vadd.f32 %v10406_v16, %v10195_v54  ;;  %v10448_v62 = vadd.f32 %v10447_v29, %v10203_v23  ;;  %v10408_v63 = vpop.f32.mrb[193].mxu0  ;;  %v10449_v30 = vpop.f32.mrb[221].mxu1  ;;  %v20122_v54 = vld [vmem:[%s23334_s2 + $0x10] sm:$0xff]  }
0x149a   : > { %v10409_v50 = vadd.f32 %v10408_v63, %v10199_v55  ;;  %v10450_v20 = vadd.f32 %v10449_v30, %v10207_v58  ;;  %v10410_v7 = vpop.f32.mrb[194].mxu0  ;;  %v10451_v39 = vpop.f32.mrb[222].mxu1  ;;  %v20123_v23 = vld [vmem:[%s23334_s2 + $0x50] sm:$0xff]   ;;  %v20126_v63 = vld [vmem:[%s23334_s2 + $0x20] sm:$0xff]  }
0x149b   : > { %v10454_v8 = vmax.f32 %v10407_v32, 0.0  ;;  %v10456_v9 = vmax.f32 %v10448_v62, 0.0  ;;  %v10411_v5 = vpop.f32.mrb[195].mxu0  ;;  %v10452_v10 = vpop.f32.mrb[223].mxu1  ;;  %v20124_v32 = vld [vmem:[%s23334_s2 + $0x18] sm:$0xff]   ;;  %v20127_v30 = vld [vmem:[%s23334_s2 + $0x60] sm:$0xff]  }
0x149c   : > { %v10455_v11 = vmax.f32 %v10409_v50, 0.0  ;;  %v10457_v45 = vmax.f32 %v10450_v20, 0.0  ;;  %v20125_v62 = vld [vmem:[%s23334_s2 + $0x58] sm:$0xff]   ;;  %v20128_v50 = vld [vmem:[%s23334_s2 + $0x28] sm:$0xff]   ;;  %v20130_v7 = vld [vmem:[%s23334_s2 + $0x30] sm:$0xff]  }
0x149d   : > { %v10458_v49 = vpack.c.bf16 %v10454_v8, %v10454_v8  ;;  %v10460_v46 = vpack.c.bf16 %v10456_v9, %v10456_v9  ;;  %v20129_v20 = vld [vmem:[%s23334_s2 + $0x68] sm:$0xff]   ;;  %v20131_v39 = vld [vmem:[%s23334_s2 + $0x70] sm:$0xff]   ;;  %v20132_v8 = vld [vmem:[%s23334_s2 + $0x38] sm:$0xff]  }
0x149e   : > { %v10459_v19 = vpack.c.bf16 %v10455_v11, %v10455_v11  ;;  %v10461_v13 = vpack.c.bf16 %v10457_v45, %v10457_v45  ;;  %v20133_v9 = vld [vmem:[%s23334_s2 + $0x78] sm:$0xff]  }
0x14a0   : > { %10757 = vmatprep.mubr.bf16.mxu0 %v10459_v19  ;;  %10797 = vmatprep.mubr.bf16.mxu1 %v10461_v13  ;;  %v16270_v19 = vld [vmem:[%s23335_s7] ss:$0 sm:$0xff]  ;;  %s23338_s7 = sld [smem:[#allocation29_spill]] }
0x14a1   : > { %10758 = vmatmul.mubr.bf16.vlgmr.msra.gmra.mrb[196].mxu0 %v10458_v49  ;;  %10798 = vmatmul.mubr.bf16.vlgmr.msra.gmra.mrb[224].mxu1 %v10460_v46 }
0x14a2   : > { %18812 = vmatpush3.bf16.msra.mxu0 %v20110_v15  ;;  %18827 = vmatprep.mubr.msk.bf16.mxu0 %vm20575_vm4, %v20574_v6  ;;  %v16271_v15 = vld [vmem:[%s23336_s22] ss:$0 sm:$0xff]  ;;  %s23339_s22 = sld [smem:[#allocation30_spill]] }
0x14a3   : > { %18813 = vmatprep.subr.bf16.mxu0 %v20574_v6  ;;  %18847 = vmatprep.mubr.msk.bf16.mxu1 %vm20575_vm4, %v20574_v6 }
0x14a4   : > { %18832 = vmatpush3.bf16.msra.mxu1 %v20118_v52  ;;  %v20160_v52 = vld [vmem:[%s23334_s2 + $0x128] sm:$0xff]  }
0x14a5   : > { %18833 = vmatprep.subr.bf16.mxu1 %v20574_v6 }
0x14a6   : > { %18814 = vmatpush3.bf16.msra.mxu0 %v20111_v17  ;;  %v20134_v17 = vld [vmem:[%s23334_s2 + $0x80] sm:$0xff]  }
0x14a7   : > { %18815 = vmatprep.subr.bf16.mxu0 %v20574_v6 }
0x14aa   : > { %18816 = vmatpush3.bf16.msra.mxu0 %v20112_v18  ;;  %v20135_v18 = vld [vmem:[%s23334_s2 + $0xc0] sm:$0xff]  }
0x14ab   : > { %18817 = vmatprep.subr.bf16.mxu0 %v20574_v6 }
0x14ae   : > { %18818 = vmatpush3.bf16.msra.mxu0 %v20113_v47 }
0x14af   : > { %18819 = vmatprep.subr.bf16.mxu0 %v20574_v6 }
0x14b2   : > { %18820 = vmatpush3.bf16.msra.mxu0 %v20114_v21  ;;  %v20136_v21 = vld [vmem:[%s23334_s2 + $0x88] sm:$0xff]  }
0x14b3   : > { %18821 = vmatprep.subr.bf16.mxu0 %v20574_v6 }
0x14b6   : > { %18822 = vmatpush3.bf16.msra.mxu0 %v20115_v40  ;;  %v20137_v40 = vld [vmem:[%s23334_s2 + $0xc8] sm:$0xff]  }
0x14b7   : > { %18823 = vmatprep.subr.bf16.mxu0 %v20574_v6 }
0x14ba   : > { %18824 = vmatpush3.bf16.msra.mxu0 %v20116_v27  ;;  %v20138_v27 = vld [vmem:[%s23334_s2 + $0x90] sm:$0xff]  }
0x14bb   : > { %18825 = vmatprep.subr.bf16.mxu0 %v20574_v6 }
0x14be   : > { %18826 = vmatpush3.bf16.msra.mxu0 %v20117_v24  ;;  %v20139_v24 = vld [vmem:[%s23334_s2 + $0xd0] sm:$0xff]  }
0x14bf   : > { %18851 = vmatprep.subr.bf16.mxu0 %v20574_v6 }
0x1574   : > { %v17177_v25 = vpop.f32.mrb[196].mxu0  ;;  %v17199_v28 = vpop.f32.mrb[224].mxu1 }
0x1575   : > { %v17178_v34 = vpop.f32.mrb[197].mxu0  ;;  %v17200_v35 = vpop.f32.mrb[225].mxu1 }
0x1576   : > { %v17179_v37 = vadd.f32 %v17178_v34, %v17177_v25  ;;  %v17201_v14 = vadd.f32 %v17200_v35, %v17199_v28  ;;  %v17180_v59 = vpop.f32.mrb[198].mxu0  ;;  %v17202_v2 = vpop.f32.mrb[226].mxu1  ;;  %v20140_v25 = vld [vmem:[%s23334_s2 + $0x98] sm:$0xff]   ;;  %v20143_v34 = vld [vmem:[%s23334_s2 + $0xe0] sm:$0xff]   ;;  %v20144_v35 = vld [vmem:[%s23334_s2 + $0xa8] sm:$0xff]  }
0x1577   : > { %v17181_v33 = vpop.f32.mrb[199].mxu0  ;;  %v17203_v41 = vpop.f32.mrb[227].mxu1  ;;  %v20141_v28 = vld [vmem:[%s23334_s2 + $0xd8] sm:$0xff]   ;;  %v20147_v59 = vld [vmem:[%s23334_s2 + $0xf0] sm:$0xff]  }
0x1578   : > { %v10760_v26 = vadd.f32 %v17179_v37, %v16228_v36  ;;  %v20142_v36 = vld [vmem:[%s23334_s2 + $0xa0] sm:$0xff]   ;;  %v20145_v37 = vld [vmem:[%s23334_s2 + $0xe8] sm:$0xff]   ;;  %v20148_v2 = vld [vmem:[%s23334_s2 + $0xb8] sm:$0xff]  }
0x1579   : > { %v20149_v33 = vld [vmem:[%s23334_s2 + $0xf8] sm:$0xff]   ;;  %v20150_v41 = vld [vmem:[%s23334_s2 + $0x100] sm:$0xff]  }
0x157a   : > { %v10800_v42 = vadd.f32 %v17201_v14, %v10760_v26  ;;  %v20146_v14 = vld [vmem:[%s23334_s2 + $0xb0] sm:$0xff]   ;;  %v20151_v26 = vld [vmem:[%s23334_s2 + $0x140] sm:$0xff]  }
0x157c   : > { %v10805_v43 = vadd.f32 %v10800_v42, %v22365_v48  ;;  %v20120_v48 = vld [vmem:[%s23334_s2 + $0x8] sm:$0xff]  }
0x157d   : > { %18834 = vmatpush3.bf16.msra.mxu1 %v20120_v48  ;;  %v20152_v42 = vld [vmem:[%s23334_s2 + $0x108] sm:$0xff]   ;;  %v20162_v48 = vld [vmem:[%s23334_s2 + $0x130] sm:$0xff]  }
0x157e   : > { %v10806_v31 = vpack.c.bf16 %v10805_v43, %v10805_v43  ;;  %18835 = vmatprep.subr.bf16.mxu1 %v20574_v6  ;;  %v20153_v43 = vld [vmem:[%s23334_s2 + $0x148] sm:$0xff]  }
0x1580   : > { %18828 = vmatmul.mubr.bf16.vlgmr.msra.gmra.mrb[200].mxu0 %v10806_v31  ;;  %v20154_v31 = vld [vmem:[%s23334_s2 + $0x110] sm:$0xff]  }
0x1581   : > { %18867 = vmatprep.mubr.msk.bf16.mxu0 %vm20575_vm4, %v20574_v6  ;;  %18852 = vmatpush3.bf16.msra.mxu0 %v20119_v60  ;;  %v20161_v60 = vld [vmem:[%s23334_s2 + $0x168] sm:$0xff]  }
0x1582   : > { %18853 = vmatprep.subr.bf16.mxu0 %v20574_v6  ;;  %18836 = vmatpush3.bf16.msra.mxu1 %v20122_v54  ;;  %v20164_v54 = vld [vmem:[%s23334_s2 + $0x138] sm:$0xff]  }
0x1583   : > { %18837 = vmatprep.subr.bf16.mxu1 %v20574_v6 }
0x1585   : > { %18854 = vmatpush3.bf16.msra.mxu0 %v20121_v53  ;;  %v20163_v53 = vld [vmem:[%s23334_s2 + $0x170] sm:$0xff]  }
0x1586   : > { %18855 = vmatprep.subr.bf16.mxu0 %v20574_v6  ;;  %18838 = vmatpush3.bf16.msra.mxu1 %v20124_v32  ;;  %v20170_v32 = vld [vmem:[%s23334_s2 + $0x190] sm:$0xff]  }
0x1587   : > { %18839 = vmatprep.subr.bf16.mxu1 %v20574_v6 }
0x1589   : > { %18856 = vmatpush3.bf16.msra.mxu0 %v20123_v23  ;;  %v20165_v23 = vld [vmem:[%s23334_s2 + $0x178] sm:$0xff]  }
0x158a   : > { %18857 = vmatprep.subr.bf16.mxu0 %v20574_v6  ;;  %18840 = vmatpush3.bf16.msra.mxu1 %v20126_v63  ;;  %v20172_v63 = vld [vmem:[%s23334_s2 + $0x198] sm:$0xff]  }
0x158b   : > { %18841 = vmatprep.subr.bf16.mxu1 %v20574_v6 }
0x158d   : > { %18858 = vmatpush3.bf16.msra.mxu0 %v20125_v62  ;;  %v20171_v62 = vld [vmem:[%s23334_s2 + $0x1d0] sm:$0xff]  }
0x158e   : > { %18859 = vmatprep.subr.bf16.mxu0 %v20574_v6  ;;  %18842 = vmatpush3.bf16.msra.mxu1 %v20128_v50  ;;  %v20174_v50 = vld [vmem:[%s23334_s2 + $0x1a0] sm:$0xff]  }
0x158f   : > { %18843 = vmatprep.subr.bf16.mxu1 %v20574_v6 }
0x1591   : > { %18860 = vmatpush3.bf16.msra.mxu0 %v20127_v30  ;;  %v20173_v30 = vld [vmem:[%s23334_s2 + $0x1d8] sm:$0xff]  }
0x1592   : > { %18861 = vmatprep.subr.bf16.mxu0 %v20574_v6  ;;  %18844 = vmatpush3.bf16.msra.mxu1 %v20130_v7  ;;  %v20176_v7 = vld [vmem:[%s23334_s2 + $0x1a8] sm:$0xff]  }
0x1593   : > { %18845 = vmatprep.subr.bf16.mxu1 %v20574_v6 }
0x1595   : > { %18862 = vmatpush3.bf16.msra.mxu0 %v20129_v20  ;;  %v20175_v20 = vld [vmem:[%s23334_s2 + $0x1e0] sm:$0xff]  }
0x1596   : > { %18863 = vmatprep.subr.bf16.mxu0 %v20574_v6  ;;  %18846 = vmatpush3.bf16.msra.mxu1 %v20132_v8  ;;  %v20178_v8 = vld [vmem:[%s23334_s2 + $0x1b0] sm:$0xff]  }
0x1597   : > { %18871 = vmatprep.subr.bf16.mxu1 %v20574_v6 }
0x1599   : > { %18864 = vmatpush3.bf16.msra.mxu0 %v20131_v39  ;;  %v20177_v39 = vld [vmem:[%s23334_s2 + $0x1e8] sm:$0xff]  }
0x159a   : > { %18865 = vmatprep.subr.bf16.mxu0 %v20574_v6 }
0x159d   : > { %18866 = vmatpush3.bf16.msra.mxu0 %v20133_v9  ;;  %v20179_v9 = vld [vmem:[%s23334_s2 + $0x1f0] sm:$0xff]  }
0x159e   : > { %18891 = vmatprep.subr.bf16.mxu0 %v20574_v6 }
0x1653   : > { %v10912_v3 = vpop.f32.mrb[200].mxu0 }
0x1654   : > { %v22467_v1 = vadd.f32 %v16261_v61, %v10912_v3  ;;  %v18829_v57 = vpop.f32.mrb[201].mxu0  ;;  %v20155_v61 = vld [vmem:[%s23334_s2 + $0x150] sm:$0xff]   ;;  %v20156_v3 = vld [vmem:[%s23334_s2 + $0x118] sm:$0xff]  }
0x1655   : > { %v10915_v44 = vpop.f32.mrb[202].mxu0  ;;  %v20157_v57 = vld [vmem:[%s23334_s2 + $0x158] sm:$0xff]  }
0x1656   : > { %10920 = vadd.xlane.f32.xlu0 %v22467_v1  ;;  %v18830_v22 = vpop.f32.mrb[203].mxu0  ;;  %v20158_v44 = vld [vmem:[%s23334_s2 + $0x120] sm:$0xff]  }
0x1657   : > { %v20159_v22 = vld [vmem:[%s23334_s2 + $0x160] sm:$0xff]  }
0x16e3   : > { %v10921_v55 = vpop.xlane.xlu0 %10920 }
0x16e4   : > { %v10922_v58 = vmul.f32 0.0078125, %v10921_v55  ;;  %v20166_v55 = vld [vmem:[%s23334_s2 + $0x180] sm:$0xff]  }
0x16e6   : > { %v10923_v16 = vsub.f32 %v22467_v1, %v10922_v58  ;;  %v20167_v58 = vld [vmem:[%s23334_s2 + $0x1c0] sm:$0xff]  }
0x16e8   : > { %v10924_v29 = vmul.f32 %v10923_v16, %v10923_v16 }
0x16ea   : > { %10925 = vadd.xlane.f32.xlu1 %v10924_v29  ;;  %v20169_v29 = vld [vmem:[%s23334_s2 + $0x1c8] sm:$0xff]  }
0x1777   : > { %v10926_v5 = vpop.xlane.xlu1 %10925 }
0x1778   : > { %v10927_v10 = vmul.f32 0.0078125, %v10926_v5  ;;  %v20180_v5 = vld [vmem:[%s23334_s2 + $0x1b8] sm:$0xff]  }
0x177a   : > { %v10928_v11 = vadd.f32 1e-05, %v10927_v10  ;;  %v20181_v10 = vld [vmem:[%s23334_s2 + $0x1f8] sm:$0xff]  }
0x177c   : > { %20478 = vrsqrt.f32 %v10928_v11  ;;  %v20182_v11 = vld [vmem:[%s23337_s1] sm:$0xff]  }
0x1786   : > { %v20479_v45 = vpop.eup %20478 }
0x1787   : > { %v10930_v13 = vmul.f32 %v20479_v45, %v10923_v16  ;;  %v20168_v16 = vld [vmem:[%s23334_s2 + $0x188] sm:$0xff]   ;;  %v20183_v45 = vld [vmem:[%s23337_s1 + $0x40] sm:$0xff]   ;;  %s23341_s2 = sld [smem:[#allocation34_spill]] }
0x1789   : > { %v10937_v49 = vmul.f32 %v16270_v19, %v10930_v13  ;;  %v20184_v19 = vld [vmem:[%s23337_s1 + $0x8] sm:$0xff]  }
0x178a   : > { %v20185_v13 = vld [vmem:[%s23337_s1 + $0x48] sm:$0xff]  }
0x178b   : > { %v10944_v46 = vadd.f32 %v16271_v15, %v10937_v49  ;;  %v20186_v15 = vld [vmem:[%s23337_s1 + $0x10] sm:$0xff]  }
0x178c   : > { %v20187_v49 = vld [vmem:[%s23337_s1 + $0x50] sm:$0xff]  }
0x178d   : > { %v22507_v47 = vpack.c.bf16 %v10944_v46, %v10944_v46  ;;  %v20188_v46 = vld [vmem:[%s23337_s1 + $0x18] sm:$0xff]  }
0x178f   : > { %18848 = vmatmul.mubr.bf16.vlgmr.msra.gmra.mrb[228].mxu1 %v22507_v47  ;;  %18868 = vmatmul.mubr.bf16.vlgmr.msra.gmra.mrb[204].mxu0 %v22507_v47 }
0x1790   : > { %18872 = vmatpush3.bf16.msra.mxu1 %v20134_v17  ;;  %18892 = vmatpush3.bf16.msra.mxu0 %v20135_v18  ;;  %v20189_v17 = vld [vmem:[%s23337_s1 + $0x58] sm:$0xff]   ;;  %v20190_v18 = vld [vmem:[%s23337_s1 + $0x20] sm:$0xff]  }
0x1791   : > { %18873 = vmatprep.subr.bf16.mxu1 %v20574_v6  ;;  %18893 = vmatprep.subr.bf16.mxu0 %v20574_v6 }
0x1792   : > { %18887 = vmatprep.mubr.msk.bf16.mxu1 %vm20575_vm4, %v20574_v6  ;;  %18907 = vmatprep.mubr.msk.bf16.mxu0 %vm20575_vm4, %v20574_v6 }
0x1794   : > { %18874 = vmatpush3.bf16.msra.mxu1 %v20136_v21  ;;  %18894 = vmatpush3.bf16.msra.mxu0 %v20137_v40  ;;  %v20191_v21 = vld [vmem:[%s23337_s1 + $0x60] sm:$0xff]   ;;  %v20192_v40 = vld [vmem:[%s23337_s1 + $0x28] sm:$0xff]  }
0x1795   : > { %18875 = vmatprep.subr.bf16.mxu1 %v20574_v6  ;;  %18895 = vmatprep.subr.bf16.mxu0 %v20574_v6 }
0x1798   : > { %18876 = vmatpush3.bf16.msra.mxu1 %v20138_v27  ;;  %18896 = vmatpush3.bf16.msra.mxu0 %v20139_v24  ;;  %v20193_v27 = vld [vmem:[%s23337_s1 + $0x68] sm:$0xff]   ;;  %v20194_v24 = vld [vmem:[%s23337_s1 + $0x30] sm:$0xff]  }
0x1799   : > { %18877 = vmatprep.subr.bf16.mxu1 %v20574_v6  ;;  %18897 = vmatprep.subr.bf16.mxu0 %v20574_v6 }
0x179c   : > { %18878 = vmatpush3.bf16.msra.mxu1 %v20140_v25  ;;  %18898 = vmatpush3.bf16.msra.mxu0 %v20141_v28  ;;  %v20195_v25 = vld [vmem:[%s23337_s1 + $0x70] sm:$0xff]   ;;  %v20196_v28 = vld [vmem:[%s23337_s1 + $0x38] sm:$0xff]  }
0x179d   : > { %18879 = vmatprep.subr.bf16.mxu1 %v20574_v6  ;;  %18899 = vmatprep.subr.bf16.mxu0 %v20574_v6 }
0x17a0   : > { %18880 = vmatpush3.bf16.msra.mxu1 %v20142_v36  ;;  %18900 = vmatpush3.bf16.msra.mxu0 %v20143_v34  ;;  %v20197_v36 = vld [vmem:[%s23337_s1 + $0x78] sm:$0xff]   ;;  %v20198_v34 = vld [vmem:[%s23337_s1 + $0x80] sm:$0xff]  }
0x17a1   : > { %18881 = vmatprep.subr.bf16.mxu1 %v20574_v6  ;;  %18901 = vmatprep.subr.bf16.mxu0 %v20574_v6 }
0x17a4   : > { %18882 = vmatpush3.bf16.msra.mxu1 %v20144_v35  ;;  %18902 = vmatpush3.bf16.msra.mxu0 %v20145_v37  ;;  %v20199_v35 = vld [vmem:[%s23337_s1 + $0xc0] sm:$0xff]   ;;  %v20200_v37 = vld [vmem:[%s23337_s1 + $0x88] sm:$0xff]  }
0x17a5   : > { %18883 = vmatprep.subr.bf16.mxu1 %v20574_v6  ;;  %18903 = vmatprep.subr.bf16.mxu0 %v20574_v6 }
0x17a8   : > { %18884 = vmatpush3.bf16.msra.mxu1 %v20146_v14  ;;  %18904 = vmatpush3.bf16.msra.mxu0 %v20147_v59  ;;  %v20201_v14 = vld [vmem:[%s23337_s1 + $0xc8] sm:$0xff]   ;;  %v20202_v59 = vld [vmem:[%s23337_s1 + $0x90] sm:$0xff]  }
0x17a9   : > { %18885 = vmatprep.subr.bf16.mxu1 %v20574_v6  ;;  %18905 = vmatprep.subr.bf16.mxu0 %v20574_v6 }
0x17ac   : > { %18886 = vmatpush3.bf16.msra.mxu1 %v20148_v2  ;;  %18906 = vmatpush3.bf16.msra.mxu0 %v20149_v33  ;;  %v20203_v2 = vld [vmem:[%s23337_s1 + $0xd0] sm:$0xff]   ;;  %v20204_v33 = vld [vmem:[%s23337_s1 + $0x98] sm:$0xff]  }
0x17ad   : > { %18911 = vmatprep.subr.bf16.mxu1 %v20574_v6  ;;  %18931 = vmatprep.subr.bf16.mxu0 %v20574_v6 }
0x17af   : > { %18888 = vmatmul.mubr.bf16.vlgmr.msra.gmra.mrb[232].mxu1 %v22507_v47  ;;  %18908 = vmatmul.mubr.bf16.vlgmr.msra.gmra.mrb[208].mxu0 %v22507_v47 }
0x17b0   : > { %18912 = vmatpush3.bf16.msra.mxu1 %v20150_v41  ;;  %18932 = vmatpush3.bf16.msra.mxu0 %v20151_v26  ;;  %v20205_v41 = vld [vmem:[%s23337_s1 + $0xd8] sm:$0xff]   ;;  %v20206_v26 = vld [vmem:[%s23337_s1 + $0xa0] sm:$0xff]  }
0x17b1   : > { %18913 = vmatprep.subr.bf16.mxu1 %v20574_v6  ;;  %18933 = vmatprep.subr.bf16.mxu0 %v20574_v6 }
0x17b2   : > { %18927 = vmatprep.mubr.msk.bf16.mxu1 %vm20575_vm4, %v20574_v6  ;;  %18947 = vmatprep.mubr.msk.bf16.mxu0 %vm20575_vm4, %v20574_v6 }
0x17b4   : > { %18914 = vmatpush3.bf16.msra.mxu1 %v20152_v42  ;;  %18934 = vmatpush3.bf16.msra.mxu0 %v20153_v43  ;;  %v20207_v42 = vld [vmem:[%s23337_s1 + $0xe0] sm:$0xff]   ;;  %v20208_v43 = vld [vmem:[%s23337_s1 + $0xa8] sm:$0xff]  }
0x17b5   : > { %18915 = vmatprep.subr.bf16.mxu1 %v20574_v6  ;;  %18935 = vmatprep.subr.bf16.mxu0 %v20574_v6 }
0x17b8   : > { %18916 = vmatpush3.bf16.msra.mxu1 %v20154_v31  ;;  %18936 = vmatpush3.bf16.msra.mxu0 %v20155_v61  ;;  %v20209_v31 = vld [vmem:[%s23337_s1 + $0xe8] sm:$0xff]   ;;  %v20210_v61 = vld [vmem:[%s23337_s1 + $0xb0] sm:$0xff]  }
0x17b9   : > { %18917 = vmatprep.subr.bf16.mxu1 %v20574_v6  ;;  %18937 = vmatprep.subr.bf16.mxu0 %v20574_v6 }
0x17bc   : > { %18918 = vmatpush3.bf16.msra.mxu1 %v20156_v3  ;;  %18938 = vmatpush3.bf16.msra.mxu0 %v20157_v57  ;;  %v20211_v3 = vld [vmem:[%s23337_s1 + $0xf0] sm:$0xff]   ;;  %v20212_v57 = vld [vmem:[%s23337_s1 + $0xb8] sm:$0xff]  }
0x17bd   : > { %18919 = vmatprep.subr.bf16.mxu1 %v20574_v6  ;;  %18939 = vmatprep.subr.bf16.mxu0 %v20574_v6 }
0x17c0   : > { %18920 = vmatpush3.bf16.msra.mxu1 %v20158_v44  ;;  %18940 = vmatpush3.bf16.msra.mxu0 %v20159_v22  ;;  %v20213_v44 = vld [vmem:[%s23337_s1 + $0xf8] sm:$0xff]   ;;  %v20214_v22 = vld [vmem:[%s23337_s1 + $0x100] sm:$0xff]  }
0x17c1   : > { %18921 = vmatprep.subr.bf16.mxu1 %v20574_v6  ;;  %18941 = vmatprep.subr.bf16.mxu0 %v20574_v6 }
0x17c4   : > { %18922 = vmatpush3.bf16.msra.mxu1 %v20160_v52  ;;  %18942 = vmatpush3.bf16.msra.mxu0 %v20161_v60  ;;  %v20215_v52 = vld [vmem:[%s23337_s1 + $0x140] sm:$0xff]   ;;  %v20216_v60 = vld [vmem:[%s23337_s1 + $0x108] sm:$0xff]  }
0x17c5   : > { %18923 = vmatprep.subr.bf16.mxu1 %v20574_v6  ;;  %18943 = vmatprep.subr.bf16.mxu0 %v20574_v6 }
0x17c8   : > { %18924 = vmatpush3.bf16.msra.mxu1 %v20162_v48  ;;  %18944 = vmatpush3.bf16.msra.mxu0 %v20163_v53  ;;  %v20217_v48 = vld [vmem:[%s23337_s1 + $0x148] sm:$0xff]   ;;  %v20218_v53 = vld [vmem:[%s23337_s1 + $0x110] sm:$0xff]  }
0x17c9   : > { %18925 = vmatprep.subr.bf16.mxu1 %v20574_v6  ;;  %18945 = vmatprep.subr.bf16.mxu0 %v20574_v6 }
0x17cc   : > { %18926 = vmatpush3.bf16.msra.mxu1 %v20164_v54  ;;  %18946 = vmatpush3.bf16.msra.mxu0 %v20165_v23  ;;  %v20219_v54 = vld [vmem:[%s23337_s1 + $0x150] sm:$0xff]   ;;  %v20220_v23 = vld [vmem:[%s23337_s1 + $0x118] sm:$0xff]  }
0x17cd   : > { %18951 = vmatprep.subr.bf16.mxu1 %v20574_v6  ;;  %18971 = vmatprep.subr.bf16.mxu0 %v20574_v6 }
0x17cf   : > { %18928 = vmatmul.mubr.bf16.vlgmr.msra.gmra.mrb[236].mxu1 %v22507_v47  ;;  %18948 = vmatmul.mubr.bf16.vlgmr.msra.gmra.mrb[212].mxu0 %v22507_v47 }
0x17d0   : > { %18952 = vmatpush3.bf16.msra.mxu1 %v20166_v55  ;;  %18972 = vmatpush3.bf16.msra.mxu0 %v20167_v58  ;;  %v20221_v55 = vld [vmem:[%s23337_s1 + $0x158] sm:$0xff]   ;;  %v20222_v58 = vld [vmem:[%s23337_s1 + $0x120] sm:$0xff]  }
0x17d1   : > { %18953 = vmatprep.subr.bf16.mxu1 %v20574_v6  ;;  %18973 = vmatprep.subr.bf16.mxu0 %v20574_v6 }
0x17d2   : > { %18967 = vmatprep.mubr.msk.bf16.mxu1 %vm20575_vm4, %v20574_v6  ;;  %18987 = vmatprep.mubr.msk.bf16.mxu0 %vm20575_vm4, %v20574_v6 }
0x17d4   : > { %18954 = vmatpush3.bf16.msra.mxu1 %v20168_v16  ;;  %18974 = vmatpush3.bf16.msra.mxu0 %v20169_v29  ;;  %v20223_v16 = vld [vmem:[%s23337_s1 + $0x160] sm:$0xff]   ;;  %v20224_v29 = vld [vmem:[%s23337_s1 + $0x128] sm:$0xff]  }
0x17d5   : > { %18955 = vmatprep.subr.bf16.mxu1 %v20574_v6  ;;  %18975 = vmatprep.subr.bf16.mxu0 %v20574_v6 }
0x17d8   : > { %18956 = vmatpush3.bf16.msra.mxu1 %v20170_v32  ;;  %18976 = vmatpush3.bf16.msra.mxu0 %v20171_v62  ;;  %v20225_v32 = vld [vmem:[%s23337_s1 + $0x168] sm:$0xff]   ;;  %v20226_v62 = vld [vmem:[%s23337_s1 + $0x130] sm:$0xff]  }
0x17d9   : > { %18957 = vmatprep.subr.bf16.mxu1 %v20574_v6  ;;  %18977 = vmatprep.subr.bf16.mxu0 %v20574_v6 }
0x17dc   : > { %18958 = vmatpush3.bf16.msra.mxu1 %v20172_v63  ;;  %18978 = vmatpush3.bf16.msra.mxu0 %v20173_v30  ;;  %v20227_v63 = vld [vmem:[%s23337_s1 + $0x170] sm:$0xff]   ;;  %v20228_v30 = vld [vmem:[%s23337_s1 + $0x138] sm:$0xff]  }
0x17dd   : > { %18959 = vmatprep.subr.bf16.mxu1 %v20574_v6  ;;  %18979 = vmatprep.subr.bf16.mxu0 %v20574_v6 }
0x17e0   : > { %18960 = vmatpush3.bf16.msra.mxu1 %v20174_v50  ;;  %18980 = vmatpush3.bf16.msra.mxu0 %v20175_v20  ;;  %v20229_v50 = vld [vmem:[%s23337_s1 + $0x178] sm:$0xff]   ;;  %v20230_v20 = vld [vmem:[%s23337_s1 + $0x180] sm:$0xff]  }
0x17e1   : > { %18961 = vmatprep.subr.bf16.mxu1 %v20574_v6  ;;  %18981 = vmatprep.subr.bf16.mxu0 %v20574_v6 }
0x17e4   : > { %18962 = vmatpush3.bf16.msra.mxu1 %v20176_v7  ;;  %18982 = vmatpush3.bf16.msra.mxu0 %v20177_v39  ;;  %v20231_v7 = vld [vmem:[%s23337_s1 + $0x1c0] sm:$0xff]   ;;  %v20232_v39 = vld [vmem:[%s23337_s1 + $0x188] sm:$0xff]  }
0x17e5   : > { %18963 = vmatprep.subr.bf16.mxu1 %v20574_v6  ;;  %18983 = vmatprep.subr.bf16.mxu0 %v20574_v6 }
0x17e8   : > { %18964 = vmatpush3.bf16.msra.mxu1 %v20178_v8  ;;  %18984 = vmatpush3.bf16.msra.mxu0 %v20179_v9  ;;  %v20233_v8 = vld [vmem:[%s23337_s1 + $0x1c8] sm:$0xff]   ;;  %v20234_v9 = vld [vmem:[%s23337_s1 + $0x190] sm:$0xff]  }
0x17e9   : > { %18965 = vmatprep.subr.bf16.mxu1 %v20574_v6  ;;  %18985 = vmatprep.subr.bf16.mxu0 %v20574_v6 }
0x17ec   : > { %18966 = vmatpush3.bf16.msra.mxu1 %v20180_v5  ;;  %18986 = vmatpush3.bf16.msra.mxu0 %v20181_v10  ;;  %v20235_v5 = vld [vmem:[%s23337_s1 + $0x1d0] sm:$0xff]   ;;  %v20236_v10 = vld [vmem:[%s23337_s1 + $0x198] sm:$0xff]  }
0x17ed   : > { %18991 = vmatprep.subr.bf16.mxu1 %v20574_v6  ;;  %19011 = vmatprep.subr.bf16.mxu0 %v20574_v6 }
0x17ef   : > { %18968 = vmatmul.mubr.bf16.vlgmr.msra.gmra.mrb[240].mxu1 %v22507_v47  ;;  %18988 = vmatmul.mubr.bf16.vlgmr.msra.gmra.mrb[216].mxu0 %v22507_v47 }
0x17f0   : > { %18992 = vmatpush3.bf16.msra.mxu1 %v20182_v11  ;;  %19012 = vmatpush3.bf16.msra.mxu0 %v20183_v45  ;;  %v20237_v11 = vld [vmem:[%s23337_s1 + $0x1d8] sm:$0xff]   ;;  %v20238_v45 = vld [vmem:[%s23337_s1 + $0x1a0] sm:$0xff]  }
0x17f1   : > { %18993 = vmatprep.subr.bf16.mxu1 %v20574_v6  ;;  %19013 = vmatprep.subr.bf16.mxu0 %v20574_v6 }
0x17f2   : > { %19007 = vmatprep.mubr.msk.bf16.mxu1 %vm20575_vm4, %v20574_v6  ;;  %19027 = vmatprep.mubr.msk.bf16.mxu0 %vm20575_vm4, %v20574_v6 }
0x17f4   : > { %18994 = vmatpush3.bf16.msra.mxu1 %v20184_v19  ;;  %19014 = vmatpush3.bf16.msra.mxu0 %v20185_v13  ;;  %v20239_v19 = vld [vmem:[%s23337_s1 + $0x1e0] sm:$0xff]   ;;  %v20240_v13 = vld [vmem:[%s23337_s1 + $0x1a8] sm:$0xff]  }
0x17f5   : > { %18995 = vmatprep.subr.bf16.mxu1 %v20574_v6  ;;  %19015 = vmatprep.subr.bf16.mxu0 %v20574_v6 }
0x17f8   : > { %18996 = vmatpush3.bf16.msra.mxu1 %v20186_v15  ;;  %19016 = vmatpush3.bf16.msra.mxu0 %v20187_v49  ;;  %v20241_v15 = vld [vmem:[%s23337_s1 + $0x1e8] sm:$0xff]  }
0x17f9   : > { %18997 = vmatprep.subr.bf16.mxu1 %v20574_v6  ;;  %19017 = vmatprep.subr.bf16.mxu0 %v20574_v6 }
0x17fc   : > { %18998 = vmatpush3.bf16.msra.mxu1 %v20188_v46  ;;  %19018 = vmatpush3.bf16.msra.mxu0 %v20189_v17 }
0x17fd   : > { %18999 = vmatprep.subr.bf16.mxu1 %v20574_v6  ;;  %19019 = vmatprep.subr.bf16.mxu0 %v20574_v6 }
0x1800   : > { %19000 = vmatpush3.bf16.msra.mxu1 %v20190_v18  ;;  %19020 = vmatpush3.bf16.msra.mxu0 %v20191_v21 }
0x1801   : > { %19001 = vmatprep.subr.bf16.mxu1 %v20574_v6  ;;  %19021 = vmatprep.subr.bf16.mxu0 %v20574_v6 }
0x1804   : > { %19002 = vmatpush3.bf16.msra.mxu1 %v20192_v40  ;;  %19022 = vmatpush3.bf16.msra.mxu0 %v20193_v27  ;;  %v20242_v27 = vld [vmem:[%s23337_s1 + $0x1b0] sm:$0xff]  }
0x1805   : > { %19003 = vmatprep.subr.bf16.mxu1 %v20574_v6  ;;  %19023 = vmatprep.subr.bf16.mxu0 %v20574_v6 }
0x1808   : > { %19004 = vmatpush3.bf16.msra.mxu1 %v20194_v24  ;;  %19024 = vmatpush3.bf16.msra.mxu0 %v20195_v25  ;;  %v20243_v24 = vld [vmem:[%s23337_s1 + $0x1f0] sm:$0xff]  }
0x1809   : > { %19005 = vmatprep.subr.bf16.mxu1 %v20574_v6  ;;  %19025 = vmatprep.subr.bf16.mxu0 %v20574_v6 }
0x180c   : > { %19006 = vmatpush3.bf16.msra.mxu1 %v20196_v28  ;;  %19026 = vmatpush3.bf16.msra.mxu0 %v20197_v36  ;;  %v20244_v36 = vld [vmem:[%s23337_s1 + $0x1b8] sm:$0xff]  }
0x180d   : > { %19031 = vmatprep.subr.bf16.mxu1 %v20574_v6  ;;  %19051 = vmatprep.subr.bf16.mxu0 %v20574_v6 }
0x180f   : > { %19008 = vmatmul.mubr.bf16.vlgmr.msra.gmra.mrb[244].mxu1 %v22507_v47  ;;  %19028 = vmatmul.mubr.bf16.vlgmr.msra.gmra.mrb[220].mxu0 %v22507_v47 }
0x1810   : > { %19032 = vmatpush3.bf16.msra.mxu1 %v20198_v34  ;;  %19052 = vmatpush3.bf16.msra.mxu0 %v20199_v35  ;;  %v20245_v34 = vld [vmem:[%s23337_s1 + $0x1f8] sm:$0xff]   ;;  %v20246_v35 = vld [vmem:[%s23338_s7] sm:$0xff]   ;;  %s23340_s1 = sld [smem:[#allocation31_spill]] }
0x1811   : > { %19033 = vmatprep.subr.bf16.mxu1 %v20574_v6  ;;  %19053 = vmatprep.subr.bf16.mxu0 %v20574_v6 }
0x1812   : > { %19047 = vmatprep.mubr.msk.bf16.mxu1 %vm20575_vm4, %v20574_v6  ;;  %19067 = vmatprep.mubr.msk.bf16.mxu0 %vm20575_vm4, %v20574_v6 }
0x1814   : > { %19034 = vmatpush3.bf16.msra.mxu1 %v20200_v37  ;;  %19054 = vmatpush3.bf16.msra.mxu0 %v20201_v14  ;;  %v20247_v37 = vld [vmem:[%s23338_s7 + $0x40] sm:$0xff]   ;;  %v20248_v14 = vld [vmem:[%s23338_s7 + $0x8] sm:$0xff]  }
0x1815   : > { %19035 = vmatprep.subr.bf16.mxu1 %v20574_v6  ;;  %19055 = vmatprep.subr.bf16.mxu0 %v20574_v6 }
0x1818   : > { %19036 = vmatpush3.bf16.msra.mxu1 %v20202_v59  ;;  %19056 = vmatpush3.bf16.msra.mxu0 %v20203_v2  ;;  %v20249_v59 = vld [vmem:[%s23338_s7 + $0x48] sm:$0xff]   ;;  %v20250_v2 = vld [vmem:[%s23338_s7 + $0x10] sm:$0xff]  }
0x1819   : > { %19037 = vmatprep.subr.bf16.mxu1 %v20574_v6  ;;  %19057 = vmatprep.subr.bf16.mxu0 %v20574_v6 }
0x181c   : > { %19038 = vmatpush3.bf16.msra.mxu1 %v20204_v33  ;;  %19058 = vmatpush3.bf16.msra.mxu0 %v20205_v41  ;;  %v20251_v33 = vld [vmem:[%s23338_s7 + $0x50] sm:$0xff]   ;;  %v20252_v41 = vld [vmem:[%s23338_s7 + $0x18] sm:$0xff]  }
0x181d   : > { %19039 = vmatprep.subr.bf16.mxu1 %v20574_v6  ;;  %19059 = vmatprep.subr.bf16.mxu0 %v20574_v6 }
0x1820   : > { %19040 = vmatpush3.bf16.msra.mxu1 %v20206_v26  ;;  %19060 = vmatpush3.bf16.msra.mxu0 %v20207_v42  ;;  %v20253_v26 = vld [vmem:[%s23338_s7 + $0x58] sm:$0xff]   ;;  %v20254_v42 = vld [vmem:[%s23338_s7 + $0x20] sm:$0xff]  }
0x1821   : > { %19041 = vmatprep.subr.bf16.mxu1 %v20574_v6  ;;  %19061 = vmatprep.subr.bf16.mxu0 %v20574_v6 }
0x1824   : > { %19042 = vmatpush3.bf16.msra.mxu1 %v20208_v43  ;;  %19062 = vmatpush3.bf16.msra.mxu0 %v20209_v31  ;;  %v20255_v43 = vld [vmem:[%s23338_s7 + $0x60] sm:$0xff]   ;;  %v20256_v31 = vld [vmem:[%s23338_s7 + $0x28] sm:$0xff]  }
0x1825   : > { %19043 = vmatprep.subr.bf16.mxu1 %v20574_v6  ;;  %19063 = vmatprep.subr.bf16.mxu0 %v20574_v6 }
0x1828   : > { %19044 = vmatpush3.bf16.msra.mxu1 %v20210_v61  ;;  %19064 = vmatpush3.bf16.msra.mxu0 %v20211_v3  ;;  %v20257_v61 = vld [vmem:[%s23338_s7 + $0x68] sm:$0xff]  }
0x1829   : > { %19045 = vmatprep.subr.bf16.mxu1 %v20574_v6  ;;  %19065 = vmatprep.subr.bf16.mxu0 %v20574_v6 }
0x182c   : > { %19046 = vmatpush3.bf16.msra.mxu1 %v20212_v57  ;;  %19066 = vmatpush3.bf16.msra.mxu0 %v20213_v44 }
0x182d   : > { %19071 = vmatprep.subr.bf16.mxu1 %v20574_v6  ;;  %19091 = vmatprep.subr.bf16.mxu0 %v20574_v6 }
0x182f   : > { %19048 = vmatmul.mubr.bf16.vlgmr.msra.gmra.mrb[248].mxu1 %v22507_v47  ;;  %19068 = vmatmul.mubr.bf16.vlgmr.msra.gmra.mrb[224].mxu0 %v22507_v47 }
0x1830   : > { %19072 = vmatpush3.bf16.msra.mxu1 %v20214_v22  ;;  %19092 = vmatpush3.bf16.msra.mxu0 %v20215_v52 }
0x1831   : > { %19073 = vmatprep.subr.bf16.mxu1 %v20574_v6  ;;  %19093 = vmatprep.subr.bf16.mxu0 %v20574_v6 }
0x1832   : > { %19087 = vmatprep.mubr.msk.bf16.mxu1 %vm20575_vm4, %v20574_v6  ;;  %19107 = vmatprep.mubr.msk.bf16.mxu0 %vm20575_vm4, %v20574_v6 }
0x1834   : > { %19074 = vmatpush3.bf16.msra.mxu1 %v20216_v60  ;;  %19094 = vmatpush3.bf16.msra.mxu0 %v20217_v48  ;;  %v20258_v48 = vld [vmem:[%s23338_s7 + $0x30] sm:$0xff]  }
0x1835   : > { %19075 = vmatprep.subr.bf16.mxu1 %v20574_v6  ;;  %19095 = vmatprep.subr.bf16.mxu0 %v20574_v6 }
0x1838   : > { %19076 = vmatpush3.bf16.msra.mxu1 %v20218_v53  ;;  %19096 = vmatpush3.bf16.msra.mxu0 %v20219_v54  ;;  %v20259_v53 = vld [vmem:[%s23338_s7 + $0x70] sm:$0xff]  }
0x1839   : > { %19077 = vmatprep.subr.bf16.mxu1 %v20574_v6  ;;  %19097 = vmatprep.subr.bf16.mxu0 %v20574_v6 }
0x183c   : > { %19078 = vmatpush3.bf16.msra.mxu1 %v20220_v23  ;;  %19098 = vmatpush3.bf16.msra.mxu0 %v20221_v55  ;;  %v20260_v55 = vld [vmem:[%s23338_s7 + $0x38] sm:$0xff]  }
0x183d   : > { %19079 = vmatprep.subr.bf16.mxu1 %v20574_v6  ;;  %19099 = vmatprep.subr.bf16.mxu0 %v20574_v6 }
0x1840   : > { %19080 = vmatpush3.bf16.msra.mxu1 %v20222_v58  ;;  %19100 = vmatpush3.bf16.msra.mxu0 %v20223_v16  ;;  %v20261_v58 = vld [vmem:[%s23338_s7 + $0x78] sm:$0xff]   ;;  %v20262_v16 = vld [vmem:[%s23338_s7 + $0x80] sm:$0xff]  }
0x1841   : > { %19081 = vmatprep.subr.bf16.mxu1 %v20574_v6  ;;  %19101 = vmatprep.subr.bf16.mxu0 %v20574_v6 }
0x1844   : > { %19082 = vmatpush3.bf16.msra.mxu1 %v20224_v29  ;;  %19102 = vmatpush3.bf16.msra.mxu0 %v20225_v32  ;;  %v20263_v29 = vld [vmem:[%s23338_s7 + $0xc0] sm:$0xff]   ;;  %v20264_v32 = vld [vmem:[%s23338_s7 + $0x88] sm:$0xff]  }
0x1845   : > { %19083 = vmatprep.subr.bf16.mxu1 %v20574_v6  ;;  %19103 = vmatprep.subr.bf16.mxu0 %v20574_v6 }
0x1848   : > { %19084 = vmatpush3.bf16.msra.mxu1 %v20226_v62  ;;  %19104 = vmatpush3.bf16.msra.mxu0 %v20227_v63  ;;  %v20265_v62 = vld [vmem:[%s23338_s7 + $0xc8] sm:$0xff]   ;;  %v20266_v63 = vld [vmem:[%s23338_s7 + $0x90] sm:$0xff]  }
0x1849   : > { %19085 = vmatprep.subr.bf16.mxu1 %v20574_v6  ;;  %19105 = vmatprep.subr.bf16.mxu0 %v20574_v6 }
0x184c   : > { %19086 = vmatpush3.bf16.msra.mxu1 %v20228_v30  ;;  %19106 = vmatpush3.bf16.msra.mxu0 %v20229_v50  ;;  %v20267_v30 = vld [vmem:[%s23338_s7 + $0xd0] sm:$0xff]   ;;  %v20268_v50 = vld [vmem:[%s23338_s7 + $0x98] sm:$0xff]  }
0x184d   : > { %19111 = vmatprep.subr.bf16.mxu1 %v20574_v6  ;;  %19131 = vmatprep.subr.bf16.mxu0 %v20574_v6 }
0x184f   : > { %19088 = vmatmul.mubr.bf16.vlgmr.msra.gmra.mrb[252].mxu1 %v22507_v47  ;;  %19108 = vmatmul.mubr.bf16.vlgmr.msra.gmra.mrb[228].mxu0 %v22507_v47 }
0x1850   : > { %19112 = vmatpush3.bf16.msra.mxu1 %v20230_v20  ;;  %19132 = vmatpush3.bf16.msra.mxu0 %v20231_v7  ;;  %v20269_v20 = vld [vmem:[%s23338_s7 + $0xd8] sm:$0xff]   ;;  %v20270_v7 = vld [vmem:[%s23338_s7 + $0xa0] sm:$0xff]  }
0x1851   : > { %19113 = vmatprep.subr.bf16.mxu1 %v20574_v6  ;;  %19133 = vmatprep.subr.bf16.mxu0 %v20574_v6 }
0x1852   : > { %19127 = vmatprep.mubr.msk.bf16.mxu1 %vm20575_vm4, %v20574_v6  ;;  %19147 = vmatprep.mubr.msk.bf16.mxu0 %vm20575_vm4, %v20574_v6 }
0x1854   : > { %19114 = vmatpush3.bf16.msra.mxu1 %v20232_v39  ;;  %19134 = vmatpush3.bf16.msra.mxu0 %v20233_v8  ;;  %v20271_v39 = vld [vmem:[%s23338_s7 + $0xe0] sm:$0xff]   ;;  %v20272_v8 = vld [vmem:[%s23338_s7 + $0xa8] sm:$0xff]  }
0x1855   : > { %19115 = vmatprep.subr.bf16.mxu1 %v20574_v6  ;;  %19135 = vmatprep.subr.bf16.mxu0 %v20574_v6 }
0x1858   : > { %19116 = vmatpush3.bf16.msra.mxu1 %v20234_v9  ;;  %19136 = vmatpush3.bf16.msra.mxu0 %v20235_v5  ;;  %v20273_v9 = vld [vmem:[%s23338_s7 + $0xe8] sm:$0xff]  }
0x1859   : > { %19117 = vmatprep.subr.bf16.mxu1 %v20574_v6  ;;  %19137 = vmatprep.subr.bf16.mxu0 %v20574_v6 }
0x185c   : > { %19118 = vmatpush3.bf16.msra.mxu1 %v20236_v10  ;;  %19138 = vmatpush3.bf16.msra.mxu0 %v20237_v11 }
0x185d   : > { %19119 = vmatprep.subr.bf16.mxu1 %v20574_v6  ;;  %19139 = vmatprep.subr.bf16.mxu0 %v20574_v6 }
0x1860   : > { %19120 = vmatpush3.bf16.msra.mxu1 %v20238_v45  ;;  %19140 = vmatpush3.bf16.msra.mxu0 %v20239_v19 }
0x1861   : > { %19121 = vmatprep.subr.bf16.mxu1 %v20574_v6  ;;  %19141 = vmatprep.subr.bf16.mxu0 %v20574_v6 }
0x1862   : > { %v22763_v49 = vpop.f32.mrb[228].mxu1  ;;  %v22765_v46 = vpop.f32.mrb[204].mxu0 }
0x1863   : > { %v18849_v17 = vpop.f32.mrb[229].mxu1  ;;  %v18869_v18 = vpop.f32.mrb[205].mxu0 }
0x1864   : > { %19122 = vmatpush3.bf16.msra.mxu1 %v20240_v13  ;;  %19142 = vmatpush3.bf16.msra.mxu0 %v20241_v15  ;;  %v11159_v21 = vpop.f32.mrb[230].mxu1  ;;  %v11247_v40 = vpop.f32.mrb[206].mxu0  ;;  %v20274_v15 = vld [vmem:[%s23338_s7 + $0xb0] sm:$0xff]  }
0x1865   : > { %v18850_v25 = vpop.f32.mrb[231].mxu1  ;;  %v18870_v28 = vpop.f32.mrb[207].mxu0  ;;  %19123 = vmatprep.subr.bf16.mxu1 %v20574_v6  ;;  %19143 = vmatprep.subr.bf16.mxu0 %v20574_v6  ;;  %v20275_v17 = vld [vmem:[%s23338_s7 + $0xf0] sm:$0xff]   ;;  %v20276_v40 = vld [vmem:[%s23338_s7 + $0xb8] sm:$0xff]  }
0x1866   : > { %v20279_v25 = vld [vmem:[%s23338_s7 + $0x140] sm:$0xff]   ;;  %v20280_v28 = vld [vmem:[%s23338_s7 + $0x108] sm:$0xff]  }
0x1868   : > { %19124 = vmatpush3.bf16.msra.mxu1 %v20242_v27  ;;  %19144 = vmatpush3.bf16.msra.mxu0 %v20243_v24  ;;  %v20277_v27 = vld [vmem:[%s23338_s7 + $0xf8] sm:$0xff]   ;;  %v20278_v24 = vld [vmem:[%s23338_s7 + $0x100] sm:$0xff]  }
0x1869   : > { %19125 = vmatprep.subr.bf16.mxu1 %v20574_v6  ;;  %19145 = vmatprep.subr.bf16.mxu0 %v20574_v6 }
0x186c   : > { %19126 = vmatpush3.bf16.msra.mxu1 %v20244_v36  ;;  %19146 = vmatpush3.bf16.msra.mxu0 %v20245_v34  ;;  %v20281_v36 = vld [vmem:[%s23338_s7 + $0x148] sm:$0xff]   ;;  %v20282_v34 = vld [vmem:[%s23338_s7 + $0x110] sm:$0xff]  }
0x186d   : > { %19151 = vmatprep.subr.bf16.mxu1 %v20574_v6  ;;  %19171 = vmatprep.subr.bf16.mxu0 %v20574_v6 }
0x186f   : > { %19128 = vmatmul.mubr.bf16.vlgmr.msra.gmra.mrb[0].mxu1 %v22507_v47  ;;  %19148 = vmatmul.mubr.bf16.vlgmr.msra.gmra.mrb[232].mxu0 %v22507_v47 }
0x1870   : > { %19152 = vmatpush3.bf16.msra.mxu1 %v20246_v35  ;;  %19172 = vmatpush3.bf16.msra.mxu0 %v20247_v37  ;;  %v20283_v35 = vld [vmem:[%s23338_s7 + $0x150] sm:$0xff]   ;;  %v20284_v37 = vld [vmem:[%s23338_s7 + $0x118] sm:$0xff]  }
0x1871   : > { %19153 = vmatprep.subr.bf16.mxu1 %v20574_v6  ;;  %19173 = vmatprep.subr.bf16.mxu0 %v20574_v6 }
0x1872   : > { %19167 = vmatprep.mubr.msk.bf16.mxu1 %vm20575_vm4, %v20574_v6  ;;  %19187 = vmatprep.mubr.msk.bf16.mxu0 %vm20575_vm4, %v20574_v6 }
0x1874   : > { %19154 = vmatpush3.bf16.msra.mxu1 %v20248_v14  ;;  %19174 = vmatpush3.bf16.msra.mxu0 %v20249_v59  ;;  %v20285_v14 = vld [vmem:[%s23338_s7 + $0x158] sm:$0xff]   ;;  %v20286_v59 = vld [vmem:[%s23338_s7 + $0x120] sm:$0xff]  }
0x1875   : > { %19155 = vmatprep.subr.bf16.mxu1 %v20574_v6  ;;  %19175 = vmatprep.subr.bf16.mxu0 %v20574_v6 }
0x1878   : > { %19156 = vmatpush3.bf16.msra.mxu1 %v20250_v2  ;;  %19176 = vmatpush3.bf16.msra.mxu0 %v20251_v33  ;;  %v20287_v2 = vld [vmem:[%s23338_s7 + $0x160] sm:$0xff]   ;;  %v20288_v33 = vld [vmem:[%s23338_s7 + $0x128] sm:$0xff]  }
0x1879   : > { %19157 = vmatprep.subr.bf16.mxu1 %v20574_v6  ;;  %19177 = vmatprep.subr.bf16.mxu0 %v20574_v6 }
0x187c   : > { %19158 = vmatpush3.bf16.msra.mxu1 %v20252_v41  ;;  %19178 = vmatpush3.bf16.msra.mxu0 %v20253_v26  ;;  %v20289_v41 = vld [vmem:[%s23338_s7 + $0x168] sm:$0xff]  }
0x187d   : > { %19159 = vmatprep.subr.bf16.mxu1 %v20574_v6  ;;  %19179 = vmatprep.subr.bf16.mxu0 %v20574_v6 }
0x1880   : > { %19160 = vmatpush3.bf16.msra.mxu1 %v20254_v42  ;;  %19180 = vmatpush3.bf16.msra.mxu0 %v20255_v43 }
0x1881   : > { %19161 = vmatprep.subr.bf16.mxu1 %v20574_v6  ;;  %19181 = vmatprep.subr.bf16.mxu0 %v20574_v6 }
0x1882   : > { %v22805_v3 = vpop.f32.mrb[232].mxu1  ;;  %v22807_v57 = vpop.f32.mrb[208].mxu0 }
0x1883   : > { %v18889_v44 = vpop.f32.mrb[233].mxu1  ;;  %v18909_v22 = vpop.f32.mrb[209].mxu0 }
0x1884   : > { %v11335_v52 = vpop.f32.mrb[234].mxu1  ;;  %v11423_v60 = vpop.f32.mrb[210].mxu0  ;;  %19162 = vmatpush3.bf16.msra.mxu1 %v20256_v31  ;;  %19182 = vmatpush3.bf16.msra.mxu0 %v20257_v61  ;;  %v20290_v22 = vld [vmem:[%s23338_s7 + $0x130] sm:$0xff]  }
0x1885   : > { %v18890_v54 = vpop.f32.mrb[235].mxu1  ;;  %v18910_v23 = vpop.f32.mrb[211].mxu0  ;;  %19163 = vmatprep.subr.bf16.mxu1 %v20574_v6  ;;  %19183 = vmatprep.subr.bf16.mxu0 %v20574_v6  ;;  %v20291_v52 = vld [vmem:[%s23338_s7 + $0x170] sm:$0xff]  }
0x1886   : > { %v20293_v54 = vld [vmem:[%s23338_s7 + $0x178] sm:$0xff]   ;;  %v20294_v23 = vld [vmem:[%s23338_s7 + $0x180] sm:$0xff]  }
0x1888   : > { %19164 = vmatpush3.bf16.msra.mxu1 %v20258_v48  ;;  %19184 = vmatpush3.bf16.msra.mxu0 %v20259_v53  ;;  %v20292_v53 = vld [vmem:[%s23338_s7 + $0x138] sm:$0xff]  }
0x1889   : > { %19165 = vmatprep.subr.bf16.mxu1 %v20574_v6  ;;  %19185 = vmatprep.subr.bf16.mxu0 %v20574_v6 }
0x188c   : > { %19166 = vmatpush3.bf16.msra.mxu1 %v20260_v55  ;;  %19186 = vmatpush3.bf16.msra.mxu0 %v20261_v58  ;;  %v20295_v55 = vld [vmem:[%s23338_s7 + $0x1c0] sm:$0xff]   ;;  %v20296_v58 = vld [vmem:[%s23338_s7 + $0x188] sm:$0xff]  }
0x188d   : > { %19191 = vmatprep.subr.bf16.mxu1 %v20574_v6  ;;  %19211 = vmatprep.subr.bf16.mxu0 %v20574_v6 }
0x188f   : > { %19168 = vmatmul.mubr.bf16.vlgmr.msra.gmra.mrb[4].mxu1 %v22507_v47  ;;  %19188 = vmatmul.mubr.bf16.vlgmr.msra.gmra.mrb[236].mxu0 %v22507_v47 }
0x1890   : > { %19192 = vmatpush3.bf16.msra.mxu1 %v20262_v16  ;;  %19212 = vmatpush3.bf16.msra.mxu0 %v20263_v29  ;;  %v20297_v16 = vld [vmem:[%s23338_s7 + $0x1c8] sm:$0xff]   ;;  %v20298_v29 = vld [vmem:[%s23338_s7 + $0x190] sm:$0xff]  }
0x1891   : > { %19193 = vmatprep.subr.bf16.mxu1 %v20574_v6  ;;  %19213 = vmatprep.subr.bf16.mxu0 %v20574_v6 }
0x1892   : > { %19207 = vmatprep.mubr.msk.bf16.mxu1 %vm20575_vm4, %v20574_v6  ;;  %19227 = vmatprep.mubr.msk.bf16.mxu0 %vm20575_vm4, %v20574_v6 }
0x1894   : > { %19194 = vmatpush3.bf16.msra.mxu1 %v20264_v32  ;;  %19214 = vmatpush3.bf16.msra.mxu0 %v20265_v62  ;;  %v20299_v32 = vld [vmem:[%s23338_s7 + $0x1d0] sm:$0xff]   ;;  %v20300_v62 = vld [vmem:[%s23338_s7 + $0x198] sm:$0xff]  }
0x1895   : > { %19195 = vmatprep.subr.bf16.mxu1 %v20574_v6  ;;  %19215 = vmatprep.subr.bf16.mxu0 %v20574_v6 }
0x1898   : > { %19196 = vmatpush3.bf16.msra.mxu1 %v20266_v63  ;;  %19216 = vmatpush3.bf16.msra.mxu0 %v20267_v30  ;;  %v20301_v63 = vld [vmem:[%s23338_s7 + $0x1d8] sm:$0xff]   ;;  %v20302_v30 = vld [vmem:[%s23338_s7 + $0x1a0] sm:$0xff]  }
0x1899   : > { %19197 = vmatprep.subr.bf16.mxu1 %v20574_v6  ;;  %19217 = vmatprep.subr.bf16.mxu0 %v20574_v6 }
0x189c   : > { %19198 = vmatpush3.bf16.msra.mxu1 %v20268_v50  ;;  %19218 = vmatpush3.bf16.msra.mxu0 %v20269_v20  ;;  %v20303_v50 = vld [vmem:[%s23338_s7 + $0x1e0] sm:$0xff]   ;;  %v20304_v20 = vld [vmem:[%s23338_s7 + $0x1a8] sm:$0xff]  }
0x189d   : > { %19199 = vmatprep.subr.bf16.mxu1 %v20574_v6  ;;  %19219 = vmatprep.subr.bf16.mxu0 %v20574_v6 }
0x18a0   : > { %19200 = vmatpush3.bf16.msra.mxu1 %v20270_v7  ;;  %19220 = vmatpush3.bf16.msra.mxu0 %v20271_v39  ;;  %v20305_v7 = vld [vmem:[%s23338_s7 + $0x1e8] sm:$0xff]  }
0x18a1   : > { %19201 = vmatprep.subr.bf16.mxu1 %v20574_v6  ;;  %19221 = vmatprep.subr.bf16.mxu0 %v20574_v6 }
0x18a2   : > { %v22847_v5 = vpop.f32.mrb[236].mxu1  ;;  %v22849_v10 = vpop.f32.mrb[212].mxu0 }
0x18a3   : > { %v18929_v11 = vpop.f32.mrb[237].mxu1  ;;  %v18949_v45 = vpop.f32.mrb[213].mxu0 }
0x18a4   : > { %v11511_v19 = vpop.f32.mrb[238].mxu1  ;;  %v11599_v13 = vpop.f32.mrb[214].mxu0  ;;  %19202 = vmatpush3.bf16.msra.mxu1 %v20272_v8  ;;  %19222 = vmatpush3.bf16.msra.mxu0 %v20273_v9 }
0x18a5   : > { %v18930_v18 = vpop.f32.mrb[239].mxu1  ;;  %v18950_v21 = vpop.f32.mrb[215].mxu0  ;;  %19203 = vmatprep.subr.bf16.mxu1 %v20574_v6  ;;  %19223 = vmatprep.subr.bf16.mxu0 %v20574_v6  ;;  %v20306_v13 = vld [vmem:[%s23338_s7 + $0x1b0] sm:$0xff]  }
0x18a6   : > { %v20308_v21 = vld [vmem:[%s23338_s7 + $0x1b8] sm:$0xff]  }
0x18a8   : > { %19204 = vmatpush3.bf16.msra.mxu1 %v20274_v15  ;;  %19224 = vmatpush3.bf16.msra.mxu0 %v20275_v17  ;;  %v20307_v15 = vld [vmem:[%s23338_s7 + $0x1f0] sm:$0xff]  }
0x18a9   : > { %19205 = vmatprep.subr.bf16.mxu1 %v20574_v6  ;;  %19225 = vmatprep.subr.bf16.mxu0 %v20574_v6 }
0x18ac   : > { %19206 = vmatpush3.bf16.msra.mxu1 %v20276_v40  ;;  %19226 = vmatpush3.bf16.msra.mxu0 %v20277_v27  ;;  %v20309_v40 = vld [vmem:[%s23338_s7 + $0x1f8] sm:$0xff]  }
0x18ad   : > { %19231 = vmatprep.subr.bf16.mxu1 %v20574_v6  ;;  %19251 = vmatprep.subr.bf16.mxu0 %v20574_v6 }
0x18af   : > { %19208 = vmatmul.mubr.bf16.vlgmr.msra.gmra.mrb[8].mxu1 %v22507_v47  ;;  %19228 = vmatmul.mubr.bf16.vlgmr.msra.gmra.mrb[240].mxu0 %v22507_v47 }
0x18b0   : > { %19232 = vmatpush3.bf16.msra.mxu1 %v20278_v24  ;;  %19252 = vmatpush3.bf16.msra.mxu0 %v20279_v25 }
0x18b1   : > { %19233 = vmatprep.subr.bf16.mxu1 %v20574_v6  ;;  %19253 = vmatprep.subr.bf16.mxu0 %v20574_v6 }
0x18b2   : > { %19247 = vmatprep.mubr.msk.bf16.mxu1 %vm20575_vm4, %v20574_v6  ;;  %19267 = vmatprep.mubr.msk.bf16.mxu0 %vm20575_vm4, %v20574_v6 }
0x18b4   : > { %19234 = vmatpush3.bf16.msra.mxu1 %v20280_v28  ;;  %19254 = vmatpush3.bf16.msra.mxu0 %v20281_v36  ;;  %v13442_v28 = vpack.c.bf16 %v22763_v49, %v22763_v49 }
0x18b5   : > { %19235 = vmatprep.subr.bf16.mxu1 %v20574_v6  ;;  %19255 = vmatprep.subr.bf16.mxu0 %v20574_v6 }
0x18b8   : > { %19236 = vmatpush3.bf16.msra.mxu1 %v20282_v34  ;;  %19256 = vmatpush3.bf16.msra.mxu0 %v20283_v35 }
0x18b9   : > { %19237 = vmatprep.subr.bf16.mxu1 %v20574_v6  ;;  %19257 = vmatprep.subr.bf16.mxu0 %v20574_v6 }
0x18bc   : > { %19238 = vmatpush3.bf16.msra.mxu1 %v20284_v37  ;;  %19258 = vmatpush3.bf16.msra.mxu0 %v20285_v14 }
0x18bd   : > { %19239 = vmatprep.subr.bf16.mxu1 %v20574_v6  ;;  %19259 = vmatprep.subr.bf16.mxu0 %v20574_v6 }
0x18c0   : > { %19240 = vmatpush3.bf16.msra.mxu1 %v20286_v59  ;;  %19260 = vmatpush3.bf16.msra.mxu0 %v20287_v2 }
0x18c1   : > { %19241 = vmatprep.subr.bf16.mxu1 %v20574_v6  ;;  %19261 = vmatprep.subr.bf16.mxu0 %v20574_v6 }
0x18c2   : > { %v22889_v26 = vpop.f32.mrb[240].mxu1  ;;  %v22891_v42 = vpop.f32.mrb[216].mxu0 }
0x18c3   : > { %v18969_v43 = vpop.f32.mrb[241].mxu1  ;;  %v18989_v31 = vpop.f32.mrb[217].mxu0 }
0x18c4   : > { %v11687_v61 = vpop.f32.mrb[242].mxu1  ;;  %v11775_v44 = vpop.f32.mrb[218].mxu0  ;;  %19242 = vmatpush3.bf16.msra.mxu1 %v20288_v33  ;;  %19262 = vmatpush3.bf16.msra.mxu0 %v20289_v41  ;;  %v13444_v31 = vpack.c.bf16 %v22805_v3, %v22805_v3 }
0x18c5   : > { %v18970_v60 = vpop.f32.mrb[243].mxu1  ;;  %v18990_v48 = vpop.f32.mrb[219].mxu0  ;;  %19243 = vmatprep.subr.bf16.mxu1 %v20574_v6  ;;  %19263 = vmatprep.subr.bf16.mxu0 %v20574_v6  ;;  %v13445_v44 = vpack.c.bf16 %v22807_v57, %v22807_v57  ;;  %v13446_v57 = vpack.c.bf16 %v22847_v5, %v22847_v5 }
0x18c8   : > { %19244 = vmatpush3.bf16.msra.mxu1 %v20290_v22  ;;  %19264 = vmatpush3.bf16.msra.mxu0 %v20291_v52 }
0x18c9   : > { %19245 = vmatprep.subr.bf16.mxu1 %v20574_v6  ;;  %19265 = vmatprep.subr.bf16.mxu0 %v20574_v6 }
0x18cc   : > { %19246 = vmatpush3.bf16.msra.mxu1 %v20292_v53  ;;  %19266 = vmatpush3.bf16.msra.mxu0 %v20293_v54 }
0x18cd   : > { %19271 = vmatprep.subr.bf16.mxu1 %v20574_v6  ;;  %19291 = vmatprep.subr.bf16.mxu0 %v20574_v6 }
0x18cf   : > { %19248 = vmatmul.mubr.bf16.vlgmr.msra.gmra.mrb[12].mxu1 %v22507_v47  ;;  %19268 = vmatmul.mubr.bf16.vlgmr.msra.gmra.mrb[244].mxu0 %v22507_v47 }
0x18d0   : > { %19272 = vmatpush3.bf16.msra.mxu1 %v20294_v23  ;;  %19292 = vmatpush3.bf16.msra.mxu0 %v20295_v55 }
0x18d1   : > { %19273 = vmatprep.subr.bf16.mxu1 %v20574_v6  ;;  %19293 = vmatprep.subr.bf16.mxu0 %v20574_v6 }
0x18d2   : > { %19287 = vmatprep.mubr.msk.bf16.mxu1 %vm20575_vm4, %v20574_v6  ;;  %19307 = vmatprep.mubr.msk.bf16.mxu0 %vm20575_vm4, %v20574_v6 }
0x18d4   : > { %19274 = vmatpush3.bf16.msra.mxu1 %v20296_v58  ;;  %19294 = vmatpush3.bf16.msra.mxu0 %v20297_v16 }
0x18d5   : > { %19275 = vmatprep.subr.bf16.mxu1 %v20574_v6  ;;  %19295 = vmatprep.subr.bf16.mxu0 %v20574_v6 }
0x18d8   : > { %19276 = vmatpush3.bf16.msra.mxu1 %v20298_v29  ;;  %19296 = vmatpush3.bf16.msra.mxu0 %v20299_v32  ;;  %v13447_v32 = vpack.c.bf16 %v22849_v10, %v22849_v10 }
0x18d9   : > { %19277 = vmatprep.subr.bf16.mxu1 %v20574_v6  ;;  %19297 = vmatprep.subr.bf16.mxu0 %v20574_v6 }
0x18dc   : > { %19278 = vmatpush3.bf16.msra.mxu1 %v20300_v62  ;;  %19298 = vmatpush3.bf16.msra.mxu0 %v20301_v63 }
0x18dd   : > { %19279 = vmatprep.subr.bf16.mxu1 %v20574_v6  ;;  %19299 = vmatprep.subr.bf16.mxu0 %v20574_v6 }
0x18e0   : > { %19280 = vmatpush3.bf16.msra.mxu1 %v20302_v30  ;;  %19300 = vmatpush3.bf16.msra.mxu0 %v20303_v50 }
0x18e1   : > { %19281 = vmatprep.subr.bf16.mxu1 %v20574_v6  ;;  %19301 = vmatprep.subr.bf16.mxu0 %v20574_v6 }
0x18e2   : > { %v11988_v39 = vpop.f32.mrb[244].mxu1  ;;  %v12076_v8 = vpop.f32.mrb[220].mxu0 }
0x18e3   : > { %v19009_v9 = vpop.f32.mrb[245].mxu1  ;;  %v19029_v11 = vpop.f32.mrb[221].mxu0  ;;  %v13450_v27 = vpack.c.bf16 %v11988_v39, %v11988_v39  ;;  %v13451_v25 = vpack.c.bf16 %v12076_v8, %v12076_v8 }
0x18e4   : > { %v11991_v45 = vpop.f32.mrb[246].mxu1  ;;  %v12079_v19 = vpop.f32.mrb[222].mxu0  ;;  %19282 = vmatpush3.bf16.msra.mxu1 %v20304_v20  ;;  %19302 = vmatpush3.bf16.msra.mxu0 %v20305_v7 }
0x18e5   : > { %v19010_v17 = vpop.f32.mrb[247].mxu1  ;;  %v19030_v18 = vpop.f32.mrb[223].mxu0  ;;  %19283 = vmatprep.subr.bf16.mxu1 %v20574_v6  ;;  %19303 = vmatprep.subr.bf16.mxu0 %v20574_v6  ;;  %v13462_v24 = vsel %vm4217_vm7, %v13450_v27, 0  ;;  %v13508_v36 = vsel %vm4217_vm7, %v13451_v25, 0  ;;  %v13448_v45 = vpack.c.bf16 %v22889_v26, %v22889_v26  ;;  %v13449_v19 = vpack.c.bf16 %v22891_v42, %v22891_v42 }
0x18e8   : > { %19284 = vmatpush3.bf16.msra.mxu1 %v20306_v13  ;;  %19304 = vmatpush3.bf16.msra.mxu0 %v20307_v15 }
0x18e9   : > { %19285 = vmatprep.subr.bf16.mxu1 %v20574_v6  ;;  %19305 = vmatprep.subr.bf16.mxu0 %v20574_v6 }
0x18ec   : > { %19286 = vmatpush3.bf16.msra.mxu1 %v20308_v21  ;;  %19306 = vmatpush3.bf16.msra.mxu0 %v20309_v40 }
0x18ed   : > { %19311 = vmatprep.subr.bf16.mxu1 %v20574_v6  ;;  %19335 = vmatprep.subr.bf16.mxu0 %v20574_v6 }
0x18ef   : > { %19288 = vmatmul.mubr.bf16.vlgmr.msra.gmra.mrb[16].mxu1 %v22507_v47  ;;  %19308 = vmatmul.mubr.bf16.vlgmr.msra.gmra.mrb[248].mxu0 %v22507_v47  ;;  %v13443_v47 = vpack.c.bf16 %v22765_v46, %v22765_v46 }
0x18f0   : > { %19313 = vmatprep.mubr.msk.bf16.mxu1 %vm20575_vm4, %v20574_v6  ;;  %19337 = vmatprep.mubr.msk.bf16.mxu0 %vm20575_vm4, %v20574_v6 }
0x18f5   : > { %19312 = vmatpush3.bf16.xpose.msra.mxu1 %v13462_v24 }
0x18f6   : > { %19317 = vmatprep.subr.bf16.mxu1 %v20574_v6 }
0x18fc   : > { %19314 = vmatmul.mubr.msk.bf16.vlgmr.msra.gmra.mrb[20].mxu1 %vm4217_vm7, %v13442_v28 }
0x18fd   : > { %19318 = vmatpush3.bf16.xpose.msra.mxu1 %v13508_v36  ;;  %19319 = vmatprep.mubr.msk.bf16.mxu1 %vm20575_vm4, %v20574_v6 }
0x18fe   : > { %19323 = vmatprep.subr.bf16.mxu1 %v20574_v6 }
0x1902   : > { %v12164_v34 = vpop.f32.mrb[248].mxu1  ;;  %v12252_v35 = vpop.f32.mrb[224].mxu0 }
0x1903   : > { %v13452_v37 = vpack.c.bf16 %v12164_v34, %v12164_v34  ;;  %v19049_v14 = vpop.f32.mrb[249].mxu1  ;;  %v19069_v59 = vpop.f32.mrb[225].mxu0  ;;  %v13453_v46 = vpack.c.bf16 %v12252_v35, %v12252_v35 }
0x1904   : > { %v12167_v2 = vpop.f32.mrb[250].mxu1  ;;  %v12255_v49 = vpop.f32.mrb[226].mxu0  ;;  %19320 = vmatmul.mubr.msk.bf16.vlgmr.msra.gmra.mrb[24].mxu1 %vm4217_vm7, %v13443_v47 }
0x1905   : > { %v13554_v33 = vsel %vm4217_vm7, %v13452_v37, 0  ;;  %v19050_v41 = vpop.f32.mrb[251].mxu1  ;;  %v19070_v43 = vpop.f32.mrb[227].mxu0  ;;  %19325 = vmatprep.mubr.msk.bf16.mxu1 %vm20575_vm4, %v20574_v6  ;;  %v13600_v61 = vsel %vm4217_vm7, %v13453_v46, 0 }
0x1906   : > { %19324 = vmatpush3.bf16.xpose.msra.mxu1 %v13554_v33 }
0x1907   : > { %19329 = vmatprep.subr.bf16.mxu1 %v20574_v6 }
0x190d   : > { %19326 = vmatmul.mubr.msk.bf16.vlgmr.msra.gmra.mrb[28].mxu1 %vm4217_vm7, %v13444_v31 }
0x190e   : > { %19330 = vmatpush3.bf16.xpose.msra.mxu1 %v13600_v61  ;;  %19331 = vmatprep.mubr.msk.bf16.mxu1 %vm20575_vm4, %v20574_v6 }
0x190f   : > { %19341 = vmatprep.subr.bf16.mxu1 %v20574_v6 }
0x1915   : > { %19332 = vmatmul.mubr.msk.bf16.vlgmr.msra.gmra.mrb[32].mxu1 %vm4217_vm7, %v13445_v44 }
0x1916   : > { %19343 = vmatprep.mubr.msk.bf16.mxu1 %vm20575_vm4, %v20574_v6 }
0x1922   : > { %v12340_v22 = vpop.f32.mrb[252].mxu1  ;;  %v12428_v3 = vpop.f32.mrb[228].mxu0 }
0x1923   : > { %v13454_v52 = vpack.c.bf16 %v12340_v22, %v12340_v22  ;;  %v13455_v60 = vpack.c.bf16 %v12428_v3, %v12428_v3  ;;  %v19089_v48 = vpop.f32.mrb[253].mxu1  ;;  %v19109_v53 = vpop.f32.mrb[229].mxu0 }
0x1924   : > { %v12343_v54 = vpop.f32.mrb[254].mxu1  ;;  %v12431_v23 = vpop.f32.mrb[230].mxu0 }
0x1925   : > { %v13646_v55 = vsel %vm4217_vm7, %v13454_v52, 0  ;;  %v13692_v58 = vsel %vm4217_vm7, %v13455_v60, 0  ;;  %v19090_v16 = vpop.f32.mrb[255].mxu1  ;;  %v19110_v29 = vpop.f32.mrb[231].mxu0 }
0x1926   : > { %19336 = vmatpush3.bf16.xpose.msra.mxu0 %v13646_v55  ;;  %19342 = vmatpush3.bf16.xpose.msra.mxu1 %v13692_v58 }
0x1927   : > { %19347 = vmatprep.subr.bf16.mxu0 %v20574_v6  ;;  %19353 = vmatprep.subr.bf16.mxu1 %v20574_v6 }
0x192d   : > { %19338 = vmatmul.mubr.msk.bf16.vlgmr.msra.gmra.mrb[252].mxu0 %vm4217_vm7, %v13446_v57  ;;  %19344 = vmatmul.mubr.msk.bf16.vlgmr.msra.gmra.mrb[36].mxu1 %vm4217_vm7, %v13447_v32 }
0x192e   : > { %19349 = vmatprep.mubr.msk.bf16.mxu0 %vm20575_vm4, %v20574_v6  ;;  %19355 = vmatprep.mubr.msk.bf16.mxu1 %vm20575_vm4, %v20574_v6 }
0x1942   : > { %v12516_v62 = vpop.f32.mrb[0].mxu1  ;;  %v12604_v63 = vpop.f32.mrb[232].mxu0 }
0x1943   : > { %v13456_v30 = vpack.c.bf16 %v12516_v62, %v12516_v62  ;;  %v13457_v50 = vpack.c.bf16 %v12604_v63, %v12604_v63  ;;  %v19129_v20 = vpop.f32.mrb[1].mxu1  ;;  %v19149_v7 = vpop.f32.mrb[233].mxu0 }
0x1944   : > { %v12519_v5 = vpop.f32.mrb[2].mxu1  ;;  %v12607_v39 = vpop.f32.mrb[234].mxu0 }
0x1945   : > { %v13738_v10 = vsel %vm4217_vm7, %v13456_v30, 0  ;;  %v13784_v8 = vsel %vm4217_vm7, %v13457_v50, 0  ;;  %v19130_v9 = vpop.f32.mrb[3].mxu1  ;;  %v19150_v11 = vpop.f32.mrb[235].mxu0 }
0x1946   : > { %19348 = vmatpush3.bf16.xpose.msra.mxu0 %v13738_v10  ;;  %19354 = vmatpush3.bf16.xpose.msra.mxu1 %v13784_v8 }
0x1947   : > { %19359 = vmatprep.subr.bf16.mxu0 %v20574_v6  ;;  %19365 = vmatprep.subr.bf16.mxu1 %v20574_v6 }
0x194d   : > { %19350 = vmatmul.mubr.msk.bf16.vlgmr.msra.gmra.mrb[0].mxu0 %vm4217_vm7, %v13448_v45  ;;  %19356 = vmatmul.mubr.msk.bf16.vlgmr.msra.gmra.mrb[40].mxu1 %vm4217_vm7, %v13449_v19 }
0x194e   : > { %19361 = vmatprep.mubr.msk.bf16.mxu0 %vm20575_vm4, %v20574_v6  ;;  %19367 = vmatprep.mubr.msk.bf16.mxu1 %vm20575_vm4, %v20574_v6 }
0x1962   : > { %v12820_v13 = vpop.f32.mrb[4].mxu1  ;;  %v12908_v15 = vpop.f32.mrb[236].mxu0 }
0x1963   : > { %v13938_v17 = vpack.c.bf16 %v12820_v13, %v12820_v13  ;;  %v13939_v18 = vpack.c.bf16 %v12908_v15, %v12908_v15  ;;  %v19169_v21 = vpop.f32.mrb[5].mxu1  ;;  %v19189_v40 = vpop.f32.mrb[237].mxu0 }
0x1964   : > { %v12823_v26 = vpop.f32.mrb[6].mxu1  ;;  %v12911_v27 = vpop.f32.mrb[238].mxu0 }
0x1965   : > { %v13950_v42 = vsel %vm4715_vm8, %v13938_v17, 0  ;;  %v13996_v24 = vsel %vm4715_vm8, %v13939_v18, 0  ;;  %v19170_v25 = vpop.f32.mrb[7].mxu1  ;;  %v19190_v28 = vpop.f32.mrb[239].mxu0 }
0x1966   : > { %19360 = vmatpush3.bf16.msra.mxu0 %v13950_v42  ;;  %19366 = vmatpush3.bf16.msra.mxu1 %v13996_v24 }
0x1967   : > { %19371 = vmatprep.subr.bf16.mxu0 %v20574_v6  ;;  %19377 = vmatprep.subr.bf16.mxu1 %v20574_v6 }
0x1982   : > { %v23007_v36 = vpop.f32.mrb[8].mxu1  ;;  %v23009_v47 = vpop.f32.mrb[240].mxu0 }
0x1983   : > { %v19209_v34 = vpop.f32.mrb[9].mxu1  ;;  %v19229_v35 = vpop.f32.mrb[241].mxu0 }
0x1984   : > { %v12999_v37 = vpop.f32.mrb[10].mxu1  ;;  %v13087_v14 = vpop.f32.mrb[242].mxu0 }
0x1985   : > { %v19210_v59 = vpop.f32.mrb[11].mxu1  ;;  %v19230_v2 = vpop.f32.mrb[243].mxu0 }
0x19a2   : > { %v23011_v49 = vpop.f32.mrb[12].mxu1  ;;  %v23013_v33 = vpop.f32.mrb[244].mxu0 }
0x19a3   : > { %v19249_v41 = vpop.f32.mrb[13].mxu1  ;;  %v19269_v43 = vpop.f32.mrb[245].mxu0 }
0x19a4   : > { %v13175_v46 = vpop.f32.mrb[14].mxu1  ;;  %v13263_v31 = vpop.f32.mrb[246].mxu0 }
0x19a5   : > { %v19250_v61 = vpop.f32.mrb[15].mxu1  ;;  %v19270_v44 = vpop.f32.mrb[247].mxu0 }
0x19c2   : > { %v23015_v22 = vpop.f32.mrb[16].mxu1  ;;  %v23017_v3 = vpop.f32.mrb[248].mxu0 }
0x19c3   : > { %v19289_v52 = vpop.f32.mrb[17].mxu1  ;;  %v19309_v60 = vpop.f32.mrb[249].mxu0 }
0x19c4   : > { %v13351_v48 = vpop.f32.mrb[18].mxu1  ;;  %v13439_v53 = vpop.f32.mrb[250].mxu0 }
0x19c5   : > { %v19290_v54 = vpop.f32.mrb[19].mxu1  ;;  %v19310_v23 = vpop.f32.mrb[251].mxu0 }
0x19cf   : > { %v13498_v55 = vpop.f32.mrb[20].mxu1 }
0x19d0   : > { %v13826_v58 = vmul.f32 0.25, %v13498_v55  ;;  %v19315_v16 = vpop.f32.mrb[21].mxu1 }
0x19d1   : > { %v13501_v29 = vpop.f32.mrb[22].mxu1 }
0x19d2   : > { %v19316_v57 = vpop.f32.mrb[23].mxu1  ;;  %v13834_v32 = vsel %vm21419_vm9, %v13826_v58, -1e+30 }
0x19d3   : > { %v13842_v62 = vsel %vm4607_vm10, %v13834_v32, -inf }
0x19d4   : > { %13843 = vmax.xlane.f32.xlu0 %v13842_v62 }
0x19d7   : > { %v13544_v63 = vpop.f32.mrb[24].mxu1 }
0x19d8   : > { %v13827_v30 = vmul.f32 0.25, %v13544_v63  ;;  %v19321_v50 = vpop.f32.mrb[25].mxu1 }
0x19d9   : > { %v13547_v20 = vpop.f32.mrb[26].mxu1 }
0x19da   : > { %v19322_v7 = vpop.f32.mrb[27].mxu1  ;;  %v13835_v5 = vsel %vm21419_vm9, %v13827_v30, -1e+30 }
0x19db   : > { %v13845_v39 = vsel %vm4607_vm10, %v13835_v5, -inf }
0x19dc   : > { %13846 = vmax.xlane.f32.xlu1 %v13845_v39 }
0x19e0   : > { %v13590_v10 = vpop.f32.mrb[28].mxu1 }
0x19e1   : > { %v13828_v8 = vmul.f32 0.25, %v13590_v10  ;;  %v19327_v9 = vpop.f32.mrb[29].mxu1 }
0x19e2   : > { %v13593_v11 = vpop.f32.mrb[30].mxu1 }
0x19e3   : > { %v19328_v45 = vpop.f32.mrb[31].mxu1  ;;  %v13836_v19 = vsel %vm21419_vm9, %v13828_v8, -1e+30 }
0x19e4   : > { %v13848_v13 = vsel %vm4607_vm10, %v13836_v19, -inf }
0x19e5   : > { %13849 = vmax.xlane.f32.xlu0 %v13848_v13 }
0x19e8   : > { %v13636_v15 = vpop.f32.mrb[32].mxu1 }
0x19e9   : > { %v13829_v17 = vmul.f32 0.25, %v13636_v15  ;;  %v19333_v18 = vpop.f32.mrb[33].mxu1 }
0x19ea   : > { %v13639_v21 = vpop.f32.mrb[34].mxu1 }
0x19eb   : > { %v19334_v40 = vpop.f32.mrb[35].mxu1  ;;  %v13837_v26 = vsel %vm21419_vm9, %v13829_v17, -1e+30 }
0x19ec   : > { %v13851_v27 = vsel %vm4607_vm10, %v13837_v26, -inf }
0x19ed   : > { %13852 = vmax.xlane.f32.xlu1 %v13851_v27 }
0x1a00   : > { %v13682_v42 = vpop.f32.mrb[252].mxu0  ;;  %v13728_v24 = vpop.f32.mrb[36].mxu1 }
0x1a01   : > { %v13830_v25 = vmul.f32 0.25, %v13682_v42  ;;  %v13831_v28 = vmul.f32 0.25, %v13728_v24  ;;  %v19339_v34 = vpop.f32.mrb[253].mxu0  ;;  %v19345_v35 = vpop.f32.mrb[37].mxu1 }
0x1a02   : > { %v13685_v37 = vpop.f32.mrb[254].mxu0  ;;  %v13731_v14 = vpop.f32.mrb[38].mxu1 }
0x1a03   : > { %v19340_v59 = vpop.f32.mrb[255].mxu0  ;;  %v19346_v2 = vpop.f32.mrb[39].mxu1  ;;  %v13839_v41 = vsel %vm21419_vm9, %v13831_v28, -1e+30  ;;  %v13838_v43 = vsel %vm21419_vm9, %v13830_v25, -1e+30 }
0x1a04   : > { %v13857_v46 = vsel %vm4607_vm10, %v13839_v41, -inf  ;;  %v13854_v31 = vsel %vm4607_vm10, %v13838_v43, -inf }
0x1a05   : > { %13858 = vmax.xlane.f32.xlu1 %v13857_v46  ;;  %13855 = vmax.xlane.f32.xlu0 %v13854_v31 }
0x1a20   : > { %v13774_v61 = vpop.f32.mrb[0].mxu0  ;;  %v13820_v44 = vpop.f32.mrb[40].mxu1 }
0x1a21   : > { %v13832_v52 = vmul.f32 0.25, %v13774_v61  ;;  %v13833_v60 = vmul.f32 0.25, %v13820_v44  ;;  %v19351_v48 = vpop.f32.mrb[1].mxu0  ;;  %v19357_v53 = vpop.f32.mrb[41].mxu1 }
0x1a22   : > { %v13777_v54 = vpop.f32.mrb[2].mxu0  ;;  %v13823_v23 = vpop.f32.mrb[42].mxu1 }
0x1a23   : > { %v19352_v55 = vpop.f32.mrb[3].mxu0  ;;  %v19358_v58 = vpop.f32.mrb[43].mxu1  ;;  %v13841_v16 = vsel %vm21419_vm9, %v13833_v60, -1e+30  ;;  %v13840_v29 = vsel %vm21419_vm9, %v13832_v52, -1e+30  ;;  %v13940_v54 = vpack.c.bf16 %v23007_v36, %v23007_v36 }
0x1a24   : > { %v13863_v57 = vsel %vm4607_vm10, %v13841_v16, -inf  ;;  %v13860_v62 = vsel %vm4607_vm10, %v13840_v29, -inf }
0x1a25   : > { %13864 = vmax.xlane.f32.xlu1 %v13863_v57  ;;  %13861 = vmax.xlane.f32.xlu0 %v13860_v62  ;;  %v14042_v58 = vsel %vm4715_vm8, %v13940_v54, 0  ;;  %v13941_v57 = vpack.c.bf16 %v23009_v47, %v23009_v47 }
0x1a61   : > { %v13844_v63 = vpop.xlane.xlu0 %13843 }
0x1a62   : > { %v13866_v30 = vsub.f32 %v13834_v32, %v13844_v63  ;;  %v14088_v63 = vsel %vm4715_vm8, %v13941_v57, 0 }
0x1a64   : > { %v13874_v50 = vmul.f32 1.442695, %v13866_v30 }
0x1a66   : > { %20480 = vpow2.f32 %v13874_v50 }
0x1a69   : > { %v13847_v20 = vpop.xlane.xlu1 %13846 }
0x1a6a   : > { %v13867_v7 = vsub.f32 %v13835_v5, %v13847_v20  ;;  %v13942_v20 = vpack.c.bf16 %v23011_v49, %v23011_v49 }
0x1a6c   : > { %v13876_v39 = vmul.f32 1.442695, %v13867_v7 }
0x1a6e   : > { %20482 = vpow2.f32 %v13876_v39  ;;  %v14134_v39 = vsel %vm4715_vm8, %v13942_v20, 0 }
0x1a70   : > { %v20481_v10 = vpop.eup %20480 }
0x1a71   : > { %v13890_v8 = vsel %vm4607_vm10, %v20481_v10, 0.0 }
0x1a72   : > { %v13850_v9 = vpop.xlane.xlu0 %13849  ;;  %13891 = vadd.xlane.f32.xlu0 %v13890_v8  ;;  %v13943_v8 = vpack.c.bf16 %v23013_v33, %v23013_v33  ;;  %v13945_v33 = vpack.c.bf16 %v23017_v3, %v23017_v3 }
0x1a73   : > { %v13868_v51 = vsub.f32 %v13836_v19, %v13850_v9 }
0x1a74   : > { %v14180_v49 = vsel %vm4715_vm8, %v13943_v8, 0 }
0x1a75   : > { %v13878_v11 = vmul.f32 1.442695, %v13868_v51 }
0x1a77   : > { %20484 = vpow2.f32 %v13878_v11 }
0x1a78   : > { %v20483_v45 = vpop.eup %20482 }
0x1a79   : > { %v13893_v13 = vsel %vm4607_vm10, %v20483_v45, 0.0 }
0x1a7a   : > { %v13853_v15 = vpop.xlane.xlu1 %13852  ;;  %13894 = vadd.xlane.f32.xlu1 %v13893_v13 }
0x1a7b   : > { %v13869_v32 = vsub.f32 %v13837_v26, %v13853_v15 }
0x1a7d   : > { %v13880_v17 = vmul.f32 1.442695, %v13869_v32 }
0x1a7f   : > { %20486 = vpow2.f32 %v13880_v17  ;;  %v13944_v17 = vpack.c.bf16 %v23015_v22, %v23015_v22 }
0x1a81   : > { %v20485_v18 = vpop.eup %20484 }
0x1a82   : > { %v13896_v5 = vsel %vm4607_vm10, %v20485_v18, 0.0 }
0x1a83   : > { %13897 = vadd.xlane.f32.xlu0 %v13896_v5 }
0x1a89   : > { %v23046_v21 = vpop.eup %20486 }
0x1a8a   : > { %v13899_v40 = vsel %vm4607_vm10, %v23046_v21, 0.0 }
0x1a8b   : > { %13900 = vadd.xlane.f32.xlu1 %v13899_v40  ;;  %v14272_v40 = vsel %vm4715_vm8, %v13945_v33, 0 }
0x1a92   : > { %v13859_v19 = vpop.xlane.xlu1 %13858  ;;  %v13856_v27 = vpop.xlane.xlu0 %13855 }
0x1a93   : > { %v13871_v42 = vsub.f32 %v13839_v41, %v13859_v19  ;;  %v13870_v24 = vsub.f32 %v13838_v43, %v13856_v27  ;;  %v14226_v19 = vsel %vm4715_vm8, %v13944_v17, 0 }
0x1a95   : > { %v13884_v25 = vmul.f32 1.442695, %v13871_v42  ;;  %v13882_v28 = vmul.f32 1.442695, %v13870_v24 }
0x1a97   : > { %20488 = vpow2.f32 %v13884_v25 }
0x1a98   : > { %20490 = vpow2.f32 %v13882_v28 }
0x1aa1   : > { %v23050_v26 = vpop.eup %20488 }
0x1aa2   : > { %v23052_v34 = vpop.eup %20490  ;;  %v13905_v35 = vsel %vm4607_vm10, %v23050_v26, 0.0 }
0x1aa3   : > { %13906 = vadd.xlane.f32.xlu1 %v13905_v35  ;;  %v13902_v37 = vsel %vm4607_vm10, %v23052_v34, 0.0  ;;  %v20311_v35 = vld [vmem:[%s23339_s22 + $0x8] sm:$0xff]  }
0x1aa4   : > { %13903 = vadd.xlane.f32.xlu0 %v13902_v37 }
0x1ab2   : > { %v13865_v14 = vpop.xlane.xlu1 %13864  ;;  %v13862_v59 = vpop.xlane.xlu0 %13861 }
0x1ab3   : > { %v13873_v2 = vsub.f32 %v13841_v16, %v13865_v14  ;;  %v13872_v41 = vsub.f32 %v13840_v29, %v13862_v59  ;;  %v20312_v14 = vld [vmem:[%s23339_s22 + $0x10] sm:$0xff]  }
0x1ab5   : > { %v13888_v43 = vmul.f32 1.442695, %v13873_v2  ;;  %v13886_v46 = vmul.f32 1.442695, %v13872_v41 }
0x1ab7   : > { %20492 = vpow2.f32 %v13888_v43 }
0x1ab8   : > { %20494 = vpow2.f32 %v13886_v46 }
0x1ac1   : > { %v23058_v31 = vpop.eup %20492 }
0x1ac2   : > { %v23060_v61 = vpop.eup %20494  ;;  %v13911_v44 = vsel %vm4607_vm10, %v23058_v31, 0.0 }
0x1ac3   : > { %13912 = vadd.xlane.f32.xlu1 %v13911_v44  ;;  %v13908_v52 = vsel %vm4607_vm10, %v23060_v61, 0.0 }
0x1ac4   : > { %13909 = vadd.xlane.f32.xlu0 %v13908_v52 }
0x1aff   : > { %v13892_v60 = vpop.xlane.xlu0 %13891 }
0x1b00   : > { %20496 = vrcp.f32 %v13892_v60 }
0x1b07   : > { %v13895_v48 = vpop.xlane.xlu1 %13894 }
0x1b08   : > { %20498 = vrcp.f32 %v13895_v48 }
0x1b0a   : > { %v20497_v53 = vpop.eup %20496 }
0x1b0b   : > { %v13922_v23 = vmul.f32 %v20497_v53, %v20481_v10  ;;  %v20314_v53 = vld [vmem:[%s23339_s22 + $0x20] sm:$0xff]  }
0x1b0d   : > { %v13930_v55 = vpack.c.bf16 %v13922_v23, %v13922_v23 }
0x1b0f   : > { %19362 = vmatmul.mubr.msk.bf16.vlgmr.msra.gmra.mrb[4].mxu0 %vm4607_vm10, %v13930_v55 }
0x1b10   : > { %19372 = vmatpush3.bf16.msra.mxu0 %v14042_v58  ;;  %v13898_v16 = vpop.xlane.xlu0 %13897  ;;  %19373 = vmatprep.mubr.msk.bf16.mxu0 %vm20575_vm4, %v20574_v6 }
0x1b11   : > { %20500 = vrcp.f32 %v13898_v16  ;;  %19383 = vmatprep.subr.bf16.mxu0 %v20574_v6 }
0x1b12   : > { %v20499_v29 = vpop.eup %20498 }
0x1b13   : > { %v13923_v62 = vmul.f32 %v20499_v29, %v20483_v45  ;;  %v20315_v29 = vld [vmem:[%s23339_s22 + $0x28] sm:$0xff]  }
0x1b15   : > { %v13931_v36 = vpack.c.bf16 %v13923_v62, %v13923_v62 }
0x1b17   : > { %19368 = vmatmul.mubr.msk.bf16.vlgmr.msra.gmra.mrb[44].mxu1 %vm4607_vm10, %v13931_v36 }
0x1b18   : > { %19378 = vmatpush3.bf16.msra.mxu1 %v14088_v63  ;;  %v13901_v30 = vpop.xlane.xlu1 %13900  ;;  %19379 = vmatprep.mubr.msk.bf16.mxu1 %vm20575_vm4, %v20574_v6 }
0x1b19   : > { %20502 = vrcp.f32 %v13901_v30  ;;  %19389 = vmatprep.subr.bf16.mxu1 %v20574_v6 }
0x1b1b   : > { %v20501_v50 = vpop.eup %20500 }
0x1b1c   : > { %v13924_v7 = vmul.f32 %v20501_v50, %v20485_v18  ;;  %v20317_v50 = vld [vmem:[%s23339_s22 + $0x38] sm:$0xff]  }
0x1b1e   : > { %v13932_v47 = vpack.c.bf16 %v13924_v7, %v13924_v7 }
0x1b20   : > { %19374 = vmatmul.mubr.msk.bf16.vlgmr.msra.gmra.mrb[8].mxu0 %vm4607_vm10, %v13932_v47 }
0x1b21   : > { %19384 = vmatpush3.bf16.msra.mxu0 %v14134_v39  ;;  %19385 = vmatprep.mubr.msk.bf16.mxu0 %vm20575_vm4, %v20574_v6  ;;  %v20316_v39 = vld [vmem:[%s23339_s22 + $0x30] sm:$0xff]  }
0x1b22   : > { %19395 = vmatprep.subr.bf16.mxu0 %v20574_v6 }
0x1b23   : > { %v20503_v10 = vpop.eup %20502 }
0x1b24   : > { %v13925_v9 = vmul.f32 %v20503_v10, %v23046_v21 }
0x1b26   : > { %v13933_v51 = vpack.c.bf16 %v13925_v9, %v13925_v9 }
0x1b28   : > { %19380 = vmatmul.mubr.msk.bf16.vlgmr.msra.gmra.mrb[48].mxu1 %vm4607_vm10, %v13933_v51 }
0x1b29   : > { %19390 = vmatpush3.bf16.msra.mxu1 %v14180_v49  ;;  %19391 = vmatprep.mubr.msk.bf16.mxu1 %vm20575_vm4, %v20574_v6 }
0x1b2a   : > { %19401 = vmatprep.subr.bf16.mxu1 %v20574_v6 }
0x1b30   : > { %v13907_v11 = vpop.xlane.xlu1 %13906 }
0x1b31   : > { %20504 = vrcp.f32 %v13907_v11  ;;  %v13904_v45 = vpop.xlane.xlu0 %13903 }
0x1b32   : > { %20506 = vrcp.f32 %v13904_v45 }
0x1b3b   : > { %v20505_v13 = vpop.eup %20504 }
0x1b3c   : > { %v20507_v15 = vpop.eup %20506  ;;  %v13927_v32 = vmul.f32 %v20505_v13, %v23050_v26 }
0x1b3d   : > { %v13926_v18 = vmul.f32 %v20507_v15, %v23052_v34  ;;  %v20310_v34 = vld [vmem:[%s23339_s22] sm:$0xff]  }
0x1b3e   : > { %v13935_v5 = vpack.c.bf16 %v13927_v32, %v13927_v32 }
0x1b3f   : > { %v13934_v21 = vpack.c.bf16 %v13926_v18, %v13926_v18 }
0x1b40   : > { %19392 = vmatmul.mubr.msk.bf16.vlgmr.msra.gmra.mrb[52].mxu1 %vm4607_vm10, %v13935_v5 }
0x1b41   : > { %19386 = vmatmul.mubr.msk.bf16.vlgmr.msra.gmra.mrb[12].mxu0 %vm4607_vm10, %v13934_v21  ;;  %19402 = vmatpush3.bf16.msra.mxu1 %v14272_v40 }
0x1b42   : > { %19396 = vmatpush3.bf16.msra.mxu0 %v14226_v19  ;;  %19397 = vmatprep.mubr.msk.bf16.mxu0 %vm20575_vm4, %v20574_v6 }
0x1b43   : > { %19403 = vmatprep.mubr.msk.bf16.mxu1 %vm20575_vm4, %v20574_v6  ;;  %19407 = vmatprep.subr.bf16.mxu0 %v20574_v6 }
0x1b44   : > { %19413 = vmatprep.subr.bf16.mxu1 %v20574_v6 }
0x1b50   : > { %v13913_v22 = vpop.xlane.xlu1 %13912 }
0x1b51   : > { %20508 = vrcp.f32 %v13913_v22  ;;  %v13910_v3 = vpop.xlane.xlu0 %13909 }
0x1b52   : > { %20510 = vrcp.f32 %v13910_v3 }
0x1b5b   : > { %v20509_v27 = vpop.eup %20508 }
0x1b5c   : > { %v20511_v42 = vpop.eup %20510  ;;  %v13929_v24 = vmul.f32 %v20509_v27, %v23058_v31  ;;  %v20313_v31 = vld [vmem:[%s23339_s22 + $0x18] sm:$0xff]  }
0x1b5d   : > { %v13928_v25 = vmul.f32 %v20511_v42, %v23060_v61 }
0x1b5e   : > { %v13937_v28 = vpack.c.bf16 %v13929_v24, %v13929_v24 }
0x1b5f   : > { %v13936_v26 = vpack.c.bf16 %v13928_v25, %v13928_v25 }
0x1b60   : > { %19404 = vmatmul.mubr.msk.bf16.vlgmr.msra.gmra.mrb[56].mxu1 %vm4607_vm10, %v13937_v28 }
0x1b61   : > { %19398 = vmatmul.mubr.msk.bf16.vlgmr.msra.gmra.mrb[16].mxu0 %vm4607_vm10, %v13936_v26  ;;  %19415 = vmatprep.mubr.msk.bf16.mxu1 %vm20575_vm4, %v20574_v6 }
0x1b62   : > { %19409 = vmatprep.mubr.msk.bf16.mxu0 %vm20575_vm4, %v20574_v6  ;;  %19408 = vmatpush3.bf16.msra.mxu0 %v20310_v34 }
0x1b63   : > { %19419 = vmatprep.subr.bf16.mxu0 %v20574_v6  ;;  %19414 = vmatpush3.bf16.msra.mxu1 %v20311_v35 }
0x1b64   : > { %19425 = vmatprep.subr.bf16.mxu1 %v20574_v6 }
0x1be2   : > { %v13986_v37 = vpop.f32.mrb[4].mxu0 }
0x1be3   : > { %v14314_v59 = vpack.c.bf16 %v13986_v37, %v13986_v37  ;;  %v19363_v2 = vpop.f32.mrb[5].mxu0 }
0x1be4   : > { %v13989_v41 = vpop.f32.mrb[6].mxu0 }
0x1be5   : > { %v19364_v43 = vpop.f32.mrb[7].mxu0  ;;  %19410 = vmatmul.mubr.msk.bf16.vlgmr.msra.gmra.mrb[20].mxu0 %vm4217_vm7, %v14314_v59 }
0x1be6   : > { %19420 = vmatpush3.bf16.msra.mxu0 %v20312_v14  ;;  %19421 = vmatprep.mubr.msk.bf16.mxu0 %vm20575_vm4, %v20574_v6 }
0x1be7   : > { %19431 = vmatprep.subr.bf16.mxu0 %v20574_v6 }
0x1bea   : > { %v14032_v46 = vpop.f32.mrb[44].mxu1 }
0x1beb   : > { %v14315_v61 = vpack.c.bf16 %v14032_v46, %v14032_v46  ;;  %v19369_v44 = vpop.f32.mrb[45].mxu1 }
0x1bec   : > { %v14035_v52 = vpop.f32.mrb[46].mxu1 }
0x1bed   : > { %v19370_v60 = vpop.f32.mrb[47].mxu1  ;;  %19416 = vmatmul.mubr.msk.bf16.vlgmr.msra.gmra.mrb[60].mxu1 %vm4217_vm7, %v14315_v61 }
0x1bee   : > { %19426 = vmatpush3.bf16.msra.mxu1 %v20313_v31  ;;  %19427 = vmatprep.mubr.msk.bf16.mxu1 %vm20575_vm4, %v20574_v6 }
0x1bef   : > { %19437 = vmatprep.subr.bf16.mxu1 %v20574_v6 }
0x1bf3   : > { %v14078_v48 = vpop.f32.mrb[8].mxu0 }
0x1bf4   : > { %v14316_v54 = vpack.c.bf16 %v14078_v48, %v14078_v48  ;;  %v19375_v23 = vpop.f32.mrb[9].mxu0 }
0x1bf5   : > { %v14081_v55 = vpop.f32.mrb[10].mxu0 }
0x1bf6   : > { %v19376_v58 = vpop.f32.mrb[11].mxu0  ;;  %19422 = vmatmul.mubr.msk.bf16.vlgmr.msra.gmra.mrb[24].mxu0 %vm4217_vm7, %v14316_v54 }
0x1bf7   : > { %19432 = vmatpush3.bf16.msra.mxu0 %v20314_v53  ;;  %19433 = vmatprep.mubr.msk.bf16.mxu0 %vm20575_vm4, %v20574_v6 }
0x1bf8   : > { %19443 = vmatprep.subr.bf16.mxu0 %v20574_v6 }
0x1bfb   : > { %v14124_v16 = vpop.f32.mrb[48].mxu1 }
0x1bfc   : > { %v14317_v57 = vpack.c.bf16 %v14124_v16, %v14124_v16  ;;  %v19381_v62 = vpop.f32.mrb[49].mxu1 }
0x1bfd   : > { %v14127_v36 = vpop.f32.mrb[50].mxu1 }
0x1bfe   : > { %v19382_v63 = vpop.f32.mrb[51].mxu1  ;;  %19428 = vmatmul.mubr.msk.bf16.vlgmr.msra.gmra.mrb[64].mxu1 %vm4217_vm7, %v14317_v57 }
0x1bff   : > { %19438 = vmatpush3.bf16.msra.mxu1 %v20315_v29  ;;  %19439 = vmatprep.mubr.msk.bf16.mxu1 %vm20575_vm4, %v20574_v6 }
0x1c00   : > { %19449 = vmatprep.subr.bf16.mxu1 %v20574_v6 }
0x1c13   : > { %v14216_v30 = vpop.f32.mrb[52].mxu1 }
0x1c14   : > { %v14170_v20 = vpop.f32.mrb[12].mxu0  ;;  %v14319_v7 = vpack.c.bf16 %v14216_v30, %v14216_v30  ;;  %v19393_v47 = vpop.f32.mrb[53].mxu1 }
0x1c15   : > { %v14318_v10 = vpack.c.bf16 %v14170_v20, %v14170_v20  ;;  %v19387_v8 = vpop.f32.mrb[13].mxu0  ;;  %v14219_v9 = vpop.f32.mrb[54].mxu1 }
0x1c16   : > { %v14173_v51 = vpop.f32.mrb[14].mxu0  ;;  %v19394_v49 = vpop.f32.mrb[55].mxu1  ;;  %19440 = vmatmul.mubr.msk.bf16.vlgmr.msra.gmra.mrb[68].mxu1 %vm4217_vm7, %v14319_v7  ;;  %v16496_v7 = vld [vmem:[%s23340_s1] ss:$0 sm:$0xff]  ;;  %v20320_v8 = vld [vmem:[%s23341_s2 + $0x4] ss:$16 sps:$4 sm:$0xff]  }
0x1c17   : > { %v19388_v11 = vpop.f32.mrb[15].mxu0  ;;  %19434 = vmatmul.mubr.msk.bf16.vlgmr.msra.gmra.mrb[28].mxu0 %vm4217_vm7, %v14318_v10  ;;  %19450 = vmatpush3.bf16.msra.mxu1 %v20317_v50  ;;  %v20318_v10 = vld [vmem:[%s23341_s2] ss:$16 sps:$4 sm:$0xff]   ;;  %v20321_v9 = vld [vmem:[%s23341_s2 + $0x8] ss:$16 sps:$4 sm:$0xff]   ;;  %s23342_s1 = sld [smem:[#allocation36_spill]] }
0x1c18   : > { %19444 = vmatpush3.bf16.msra.mxu0 %v20316_v39  ;;  %19445 = vmatprep.mubr.msk.bf16.mxu0 %vm20575_vm4, %v20574_v6  ;;  %v20323_v51 = vld [vmem:[%s23341_s2 + $0xc] ss:$16 sps:$4 sm:$0xff]   ;;  %v20326_v49 = vld [vmem:[%s23341_s2 + $0x24] ss:$16 sps:$4 sm:$0xff]  }
0x1c19   : > { %19451 = vmatprep.mubr.msk.bf16.mxu1 %vm20575_vm4, %v20574_v6  ;;  %14988 = vmatprep.subr.bf16.mxu0 %v20320_v8  ;;  %v20329_v11 = vld [vmem:[%s23341_s2 + $0x2c] ss:$16 sps:$4 sm:$0xff]  }
0x1c1a   : > { %15029 = vmatprep.subr.bf16.mxu1 %v20323_v51 }
0x1c1d   : > { %v20379_v8 = vld [vmem:[%s23342_s1 + $0xd8] sm:$0xff]  }
0x1c1e   : > { %v20381_v51 = vld [vmem:[%s23342_s1 + $0x98] sm:$0xff]  }
0x1c33   : > { %v14308_v45 = vpop.f32.mrb[56].mxu1 }
0x1c34   : > { %v14262_v13 = vpop.f32.mrb[16].mxu0  ;;  %v14321_v15 = vpack.c.bf16 %v14308_v45, %v14308_v45  ;;  %v19405_v33 = vpop.f32.mrb[57].mxu1  ;;  %v20324_v45 = vld [vmem:[%s23341_s2 + $0x20] ss:$16 sps:$4 sm:$0xff]  }
0x1c35   : > { %v14320_v32 = vpack.c.bf16 %v14262_v13, %v14262_v13  ;;  %v19399_v17 = vpop.f32.mrb[17].mxu0  ;;  %v14311_v18 = vpop.f32.mrb[58].mxu1  ;;  %v20332_v13 = vld [vmem:[%s23341_s2 + $0x44] ss:$16 sps:$4 sm:$0xff]   ;;  %v20330_v33 = vld [vmem:[%s23341_s2 + $0x40] ss:$16 sps:$4 sm:$0xff]  }
0x1c36   : > { %v14265_v5 = vpop.f32.mrb[18].mxu0  ;;  %v19406_v21 = vpop.f32.mrb[59].mxu1  ;;  %19452 = vmatmul.mubr.msk.bf16.vlgmr.msra.gmra.mrb[72].mxu1 %vm4217_vm7, %v14321_v15  ;;  %v20335_v15 = vld [vmem:[%s23341_s2 + $0x4c] ss:$16 sps:$4 sm:$0xff]  }
0x1c37   : > { %v19400_v40 = vpop.f32.mrb[19].mxu0  ;;  %19446 = vmatmul.mubr.msk.bf16.vlgmr.msra.gmra.mrb[32].mxu0 %vm4217_vm7, %v14320_v32  ;;  %15061 = vmatprep.mubr.bf16.mxu1 %v20576_v12  ;;  %v20333_v32 = vld [vmem:[%s23341_s2 + $0x48] ss:$16 sps:$4 sm:$0xff]  }
0x1c38   : > { %15020 = vmatprep.mubr.bf16.mxu0 %v20576_v12  ;;  %14989 = vmatpush1.bf16.msra.mxu0 %v20318_v10  ;;  %v20338_v40 = vld [vmem:[%s23341_s2 + $0x64] ss:$16 sps:$4 sm:$0xff]   ;;  %v20378_v10 = vld [vmem:[%s23342_s1 + $0x58] sm:$0xff]  }
0x1c39   : > { %15030 = vmatpush1.bf16.msra.mxu1 %v20321_v9  ;;  %14990 = vmatprep.subr.bf16.mxu0 %v20326_v49  ;;  %v20380_v9 = vld [vmem:[%s23342_s1 + $0x18] sm:$0xff]   ;;  %v20382_v49 = vld [vmem:[%s23342_s1 + $0x60] sm:$0xff]  }
0x1c3a   : > { %15031 = vmatprep.subr.bf16.mxu1 %v20329_v11  ;;  %v20383_v11 = vld [vmem:[%s23342_s1 + $0xe0] sm:$0xff]  }
0x1c3c   : > { %14991 = vmatpush1.bf16.msra.mxu0 %v20324_v45  ;;  %v20384_v45 = vld [vmem:[%s23342_s1 + $0x20] sm:$0xff]  }
0x1c3d   : > { %14992 = vmatprep.subr.bf16.mxu0 %v20332_v13  ;;  %v20386_v13 = vld [vmem:[%s23342_s1 + $0x68] sm:$0xff]  }
0x1c40   : > { %14993 = vmatpush1.bf16.msra.mxu0 %v20330_v33  ;;  %v20388_v33 = vld [vmem:[%s23342_s1 + $0x28] sm:$0xff]  }
0x1c41   : > { %14994 = vmatprep.subr.bf16.mxu0 %v20338_v40  ;;  %v20394_v40 = vld [vmem:[%s23342_s1 + $0x78] sm:$0xff]  }
0x1cb8   : > { %v14381_v19 = vpop.f32.mrb[20].mxu0 }
0x1cb9   : > { %v19411_v22 = vpop.f32.mrb[21].mxu0 }
0x1cba   : > { %v14384_v3 = vpop.f32.mrb[22].mxu0  ;;  %v20336_v22 = vld [vmem:[%s23341_s2 + $0x60] ss:$16 sps:$4 sm:$0xff]  }
0x1cbb   : > { %v19412_v27 = vpop.f32.mrb[23].mxu0  ;;  %v20339_v3 = vld [vmem:[%s23341_s2 + $0x68] ss:$16 sps:$4 sm:$0xff]   ;;  %14995 = vmatpush1.bf16.msra.mxu0 %v20336_v22 }
0x1cbc   : > { %v20344_v27 = vld [vmem:[%s23341_s2 + $0x84] ss:$16 sps:$4 sm:$0xff]   ;;  %v20396_v22 = vld [vmem:[%s23342_s1 + $0x38] sm:$0xff]  }
0x1cbd   : > { %14996 = vmatprep.subr.bf16.mxu0 %v20344_v27 }
0x1cc0   : > { %v14430_v42 = vpop.f32.mrb[60].mxu1 }
0x1cc1   : > { %v14730_v24 = vadd.f32 %v14430_v42, %v14381_v19  ;;  %v19417_v25 = vpop.f32.mrb[61].mxu1  ;;  %v20341_v19 = vld [vmem:[%s23341_s2 + $0x6c] ss:$16 sps:$4 sm:$0xff]  }
0x1cc2   : > { %v14433_v28 = vpop.f32.mrb[62].mxu1  ;;  %v20347_v42 = vld [vmem:[%s23341_s2 + $0x8c] ss:$16 sps:$4 sm:$0xff]   ;;  %v20345_v25 = vld [vmem:[%s23341_s2 + $0x88] ss:$16 sps:$4 sm:$0xff]  }
0x1cc3   : > { %v19418_v26 = vpop.f32.mrb[63].mxu1  ;;  %v20350_v28 = vld [vmem:[%s23341_s2 + $0xa4] ss:$16 sps:$4 sm:$0xff]  }
0x1cc4   : > { %v20353_v26 = vld [vmem:[%s23341_s2 + $0xac] ss:$16 sps:$4 sm:$0xff]  }
0x1cc9   : > { %v14479_v34 = vpop.f32.mrb[24].mxu0 }
0x1cca   : > { %v14731_v35 = vadd.f32 %v14730_v24, %v14479_v34  ;;  %v19423_v37 = vpop.f32.mrb[25].mxu0  ;;  %v20342_v24 = vld [vmem:[%s23341_s2 + $0x80] ss:$16 sps:$4 sm:$0xff]  }
0x1ccb   : > { %v14482_v14 = vpop.f32.mrb[26].mxu0  ;;  %14997 = vmatpush1.bf16.msra.mxu0 %v20342_v24  ;;  %v20348_v34 = vld [vmem:[%s23341_s2 + $0xa0] ss:$16 sps:$4 sm:$0xff]   ;;  %v20356_v37 = vld [vmem:[%s23341_s2 + $0xc4] ss:$16 sps:$4 sm:$0xff]  }
0x1ccc   : > { %v19424_v59 = vpop.f32.mrb[27].mxu0  ;;  %14998 = vmatprep.subr.bf16.mxu0 %v20350_v28  ;;  %v20359_v14 = vld [vmem:[%s23341_s2 + $0xcc] ss:$16 sps:$4 sm:$0xff]  }
0x1ccd   : > { %v20354_v59 = vld [vmem:[%s23341_s2 + $0xc0] ss:$16 sps:$4 sm:$0xff]  }
0x1ccf   : > { %14999 = vmatpush1.bf16.msra.mxu0 %v20348_v34 }
0x1cd0   : > { %15000 = vmatprep.subr.bf16.mxu0 %v20356_v37 }
0x1cd1   : > { %v14528_v2 = vpop.f32.mrb[64].mxu1 }
0x1cd2   : > { %v14732_v41 = vadd.f32 %v14731_v35, %v14528_v2  ;;  %v19429_v43 = vpop.f32.mrb[65].mxu1  ;;  %v20351_v35 = vld [vmem:[%s23341_s2 + $0xa8] ss:$16 sps:$4 sm:$0xff]  }
0x1cd3   : > { %v14531_v46 = vpop.f32.mrb[66].mxu1  ;;  %v20357_v2 = vld [vmem:[%s23341_s2 + $0xc8] ss:$16 sps:$4 sm:$0xff]   ;;  %15001 = vmatpush1.bf16.msra.mxu0 %v20354_v59  ;;  %v20365_v43 = vld [vmem:[%s23341_s2 + $0xec] ss:$16 sps:$4 sm:$0xff]  }
0x1cd4   : > { %v19430_v31 = vpop.f32.mrb[67].mxu1  ;;  %v20360_v46 = vld [vmem:[%s23341_s2 + $0xe0] ss:$16 sps:$4 sm:$0xff]  }
0x1cd5   : > { %v20363_v31 = vld [vmem:[%s23341_s2 + $0xe8] ss:$16 sps:$4 sm:$0xff]  }
0x1ce9   : > { %v14626_v12 = vpop.f32.mrb[68].mxu1 }
0x1cea   : > { %v14577_v61 = vpop.f32.mrb[28].mxu0  ;;  %v19441_v44 = vpop.f32.mrb[69].mxu1 }
0x1ceb   : > { %v14733_v52 = vadd.f32 %v14732_v41, %v14577_v61  ;;  %v19435_v60 = vpop.f32.mrb[29].mxu0  ;;  %v14629_v48 = vpop.f32.mrb[70].mxu1  ;;  %v20362_v41 = vld [vmem:[%s23341_s2 + $0xe4] ss:$16 sps:$4 sm:$0xff]  }
0x1cec   : > { %v14580_v53 = vpop.f32.mrb[30].mxu0  ;;  %v19442_v54 = vpop.f32.mrb[71].mxu1  ;;  %15002 = vmatprep.subr.bf16.mxu0 %v20362_v41  ;;  %v20367_v61 = vld [vmem:[%s23342_s1 + $0xc0] sm:$0xff]  }
0x1ced   : > { %v14734_v23 = vadd.f32 %v14733_v52, %v14626_v12  ;;  %v19436_v55 = vpop.f32.mrb[31].mxu0  ;;  %15003 = vmatpush1.bf16.msra.mxu0 %v20360_v46  ;;  %v20366_v12 = vld [vmem:[%s23342_s1 + $0x40] sm:$0xff]  }
0x1cee   : > { %17478 = vmatprep.subr.bf16.mxu0 %v20366_v12  ;;  %v16497_v53 = vld [vmem:[%s23343_s3] ss:$0 sm:$0xff]  ;;  %s23345_s3 = sld [smem:[#allocation35_spill]] }
0x1cf4   : > { %v14806_v27 = vld [vmem:[%s23345_s3] sm:$0xf] }
0x1cf5   : > { %v14819_v24 = vrot.slane %v14806_v27, %v21637_v4  ;;  %v14823_v28 = vrot.slane %v14806_v27, %v21644_v38 }
0x1d09   : > { %v14724_v58 = vpop.f32.mrb[72].mxu1 }
0x1d0a   : > { %v14675_v16 = vpop.f32.mrb[32].mxu0  ;;  %v19453_v29 = vpop.f32.mrb[73].mxu1 }
0x1d0b   : > { %v14735_v57 = vadd.f32 %v14734_v23, %v14675_v16  ;;  %v19447_v62 = vpop.f32.mrb[33].mxu0  ;;  %v14727_v36 = vpop.f32.mrb[74].mxu1  ;;  %v16498_v23 = vld [vmem:[%s23344_s4] ss:$0 sm:$0xff]  ;;  %s1504_s4 = scalar_lea.vmem %s20833_s6, %s20852_s0 }
0x1d0c   : > { %v14678_v63 = vpop.f32.mrb[34].mxu0  ;;  %v19454_v30 = vpop.f32.mrb[75].mxu1  ;;  %v20368_v16 = vld [vmem:[%s23342_s1] sm:$0xff]   ;;  %v20370_v62 = vld [vmem:[%s23342_s1 + $0x48] sm:$0xff]  }
0x1d0d   : > { %v14736_v50 = vadd.f32 %v14735_v57, %v14724_v58  ;;  %v19448_v20 = vpop.f32.mrb[35].mxu0  ;;  %v20369_v29 = vld [vmem:[%s23342_s1 + $0x80] sm:$0xff]   ;;  %v20371_v36 = vld [vmem:[%s23342_s1 + $0xc8] sm:$0xff]  }
0x1d0e   : > { %v20372_v63 = vld [vmem:[%s23342_s1 + $0x8] sm:$0xff]   ;;  %v20375_v20 = vld [vmem:[%s23342_s1 + $0xd0] sm:$0xff]  }
0x1d0f   : > { %v14737_v47 = vadd.f32 %v14736_v50, %v22467_v1  ;;  %v20327_v1 = vld [vmem:[%s23341_s2 + $0x28] ss:$16 sps:$4 sm:$0xff]   ;;  %v20374_v50 = vld [vmem:[%s23342_s1 + $0x50] sm:$0xff]  }
0x1d10   : > { %15032 = vmatpush1.bf16.msra.mxu1 %v20327_v1  ;;  %v20373_v30 = vld [vmem:[%s23342_s1 + $0x88] sm:$0xff]   ;;  %v20385_v1 = vld [vmem:[%s23342_s1 + $0xa0] sm:$0xff]  }
0x1d11   : > { %v23157_v39 = vadd.f32 %v16496_v7, %v14737_v47  ;;  %15033 = vmatprep.subr.bf16.mxu1 %v20335_v15  ;;  %v20376_v7 = vld [vmem:[%s23342_s1 + $0x10] sm:$0xff]   ;;  %v20387_v15 = vld [vmem:[%s23342_s1 + $0xe8] sm:$0xff]  }
0x1d12   : > { %v20377_v47 = vld [vmem:[%s23342_s1 + $0x90] sm:$0xff]  }
0x1d13   : > { %14748 = vadd.xlane.f32.xlu0 %v23157_v39 }
0x1d14   : > { %15034 = vmatpush1.bf16.msra.mxu1 %v20333_v32  ;;  %v20389_v32 = vld [vmem:[%s23342_s1 + $0xa8] sm:$0xff]  }
0x1d15   : > { %15035 = vmatprep.subr.bf16.mxu1 %v20341_v19  ;;  %v20395_v19 = vld [vmem:[%s23342_s1 + $0xf8] sm:$0xff]  }
0x1d18   : > { %15036 = vmatpush1.bf16.msra.mxu1 %v20339_v3  ;;  %v20397_v3 = vld [vmem:[%s23342_s1 + $0xb8] sm:$0xff]  }
0x1d19   : > { %15037 = vmatprep.subr.bf16.mxu1 %v20347_v42  ;;  %v14811_v42 = vrot.slane %v14806_v27, %v21634_v56 }
0x1d1c   : > { %15038 = vmatpush1.bf16.msra.mxu1 %v20345_v25  ;;  %v14815_v25 = vrot.slane %v14806_v27, %v21641_v0 }
0x1d1d   : > { %15039 = vmatprep.subr.bf16.mxu1 %v20353_v26 }
0x1d20   : > { %15040 = vmatpush1.bf16.msra.mxu1 %v20351_v35 }
0x1d21   : > { %15041 = vmatprep.subr.bf16.mxu1 %v20359_v14 }
0x1d24   : > { %15042 = vmatpush1.bf16.msra.mxu1 %v20357_v2 }
0x1d25   : > { %15043 = vmatprep.subr.bf16.mxu1 %v20365_v43 }
0x1d28   : > { %15044 = vmatpush1.bf16.msra.mxu1 %v20363_v31 }
0x1d29   : > { %17500 = vmatprep.subr.bf16.mxu1 %v20367_v61 }
0x1da0   : > { %v14749_v17 = vpop.xlane.xlu0 %14748 }
0x1da1   : > { %v14750_v18 = vmul.f32 0.0078125, %v14749_v17  ;;  %v20390_v17 = vld [vmem:[%s23342_s1 + $0x70] sm:$0xff]  }
0x1da3   : > { %v14751_v5 = vsub.f32 %v23157_v39, %v14750_v18  ;;  %v20391_v18 = vld [vmem:[%s23342_s1 + $0xf0] sm:$0xff]  }
0x1da5   : > { %v14752_v21 = vmul.f32 %v14751_v5, %v14751_v5 }
0x1da7   : > { %14753 = vadd.xlane.f32.xlu1 %v14752_v21  ;;  %v20393_v21 = vld [vmem:[%s23342_s1 + $0xb0] sm:$0xff]  }
0x1e34   : > { %v14754_v44 = vpop.xlane.xlu1 %14753 }
0x1e35   : > { %v14755_v52 = vmul.f32 0.0078125, %v14754_v44 }
0x1e37   : > { %v14756_v60 = vadd.f32 1e-05, %v14755_v52  ;;  %v20398_v52 = vld [vmem:[%s20825_s30] sm:$0xff]  }
0x1e39   : > { %20512 = vrsqrt.f32 %v14756_v60 }
0x1e43   : > { %v20513_v48 = vpop.eup %20512 }
0x1e44   : > { %v14758_v54 = vmul.f32 %v20513_v48, %v14751_v5  ;;  %v20392_v5 = vld [vmem:[%s23342_s1 + $0x30] sm:$0xff]  }
0x1e46   : > { %v14765_v55 = vmul.f32 %v16497_v53, %v14758_v54  ;;  %v20399_v53 = vld [vmem:[%s20825_s30 + $0x8] sm:$0xff]   ;;  %v20400_v54 = vld [vmem:[%s20825_s30 + $0x10] sm:$0xff]  }
0x1e48   : > { %v14772_v58 = vadd.f32 %v16498_v23, %v14765_v55  ;;  %v20401_v23 = vld [vmem:[%s20825_s30 + $0x18] sm:$0xff]   ;;  %v20402_v55 = vld [vmem:[%s20825_s30 + $0x20] sm:$0xff]  }
0x1e4a   : > { %v14773_v57 = vpack.c.bf16 %v14772_v58, %v14772_v58  ;;  %v20403_v58 = vld [vmem:[%s20825_s30 + $0x28] sm:$0xff]  }
0x1e4c   : > { %15021 = vmatmul.mubr.bf16.vlgmr.msra.gmra.mrb[36].mxu0 %v14773_v57  ;;  %15062 = vmatmul.mubr.bf16.vlgmr.msra.gmra.mrb[76].mxu1 %v14773_v57 }
0x1e4d   : > { %17479 = vmatpush3.bf16.msra.mxu0 %v20368_v16  ;;  %17501 = vmatpush3.bf16.msra.mxu1 %v20369_v29  ;;  %v20404_v16 = vld [vmem:[%s20825_s30 + $0x30] sm:$0xff]   ;;  %v20405_v29 = vld [vmem:[%s20825_s30 + $0x38] sm:$0xff]  }
0x1e4e   : > { %17480 = vmatprep.subr.bf16.mxu0 %v20370_v62  ;;  %17502 = vmatprep.subr.bf16.mxu1 %v20371_v36  ;;  %v16531_v36 = vld [vmem:[%s20820_s20] ss:$0 sm:$0xff] }
0x1e51   : > { %17481 = vmatpush3.bf16.msra.mxu0 %v20372_v63  ;;  %17503 = vmatpush3.bf16.msra.mxu1 %v20373_v30 }
0x1e52   : > { %17482 = vmatprep.subr.bf16.mxu0 %v20374_v50  ;;  %17504 = vmatprep.subr.bf16.mxu1 %v20375_v20 }
0x1e55   : > { %17483 = vmatpush3.bf16.msra.mxu0 %v20376_v7  ;;  %17505 = vmatpush3.bf16.msra.mxu1 %v20377_v47 }
0x1e56   : > { %17484 = vmatprep.subr.bf16.mxu0 %v20378_v10  ;;  %17506 = vmatprep.subr.bf16.mxu1 %v20379_v8 }
0x1e59   : > { %17485 = vmatpush3.bf16.msra.mxu0 %v20380_v9  ;;  %17507 = vmatpush3.bf16.msra.mxu1 %v20381_v51 }
0x1e5a   : > { %17486 = vmatprep.subr.bf16.mxu0 %v20382_v49  ;;  %17508 = vmatprep.subr.bf16.mxu1 %v20383_v11  ;;  %v16564_v11 = vld [vmem:[#allocation2] ss:$0 sm:$0xff] }
0x1e5d   : > { %17487 = vmatpush3.bf16.msra.mxu0 %v20384_v45  ;;  %17509 = vmatpush3.bf16.msra.mxu1 %v20385_v1 }
0x1e5e   : > { %17488 = vmatprep.subr.bf16.mxu0 %v20386_v13  ;;  %17510 = vmatprep.subr.bf16.mxu1 %v20387_v15 }
0x1e61   : > { %17489 = vmatpush3.bf16.msra.mxu0 %v20388_v33  ;;  %17511 = vmatpush3.bf16.msra.mxu1 %v20389_v32 }
0x1e62   : > { %17490 = vmatprep.subr.bf16.mxu0 %v20390_v17  ;;  %17512 = vmatprep.subr.bf16.mxu1 %v20391_v18 }
0x1e65   : > { %17491 = vmatpush3.bf16.msra.mxu0 %v20392_v5  ;;  %17513 = vmatpush3.bf16.msra.mxu1 %v20393_v21 }
0x1e66   : > { %17492 = vmatprep.subr.bf16.mxu0 %v20394_v40  ;;  %17514 = vmatprep.subr.bf16.mxu1 %v20395_v19 }
0x1e69   : > { %17493 = vmatpush3.bf16.msra.mxu0 %v20396_v22  ;;  %17515 = vmatpush3.bf16.msra.mxu1 %v20397_v3 }
0x1e6a   : > { %19455 = vmatprep.subr.bf16.mxu0 %v20574_v6 }
0x1f1f   : > { %v15022_v26 = vpop.f32.mrb[36].mxu0  ;;  %v15063_v34 = vpop.f32.mrb[76].mxu1 }
0x1f20   : > { %v15023_v35 = vadd.f32 %v15022_v26, %v14811_v42  ;;  %v15064_v37 = vadd.f32 %v15063_v34, %v14819_v24  ;;  %v15024_v14 = vpop.f32.mrb[37].mxu0  ;;  %v15065_v59 = vpop.f32.mrb[77].mxu1 }
0x1f21   : > { %v15025_v2 = vadd.f32 %v15024_v14, %v14815_v25  ;;  %v15066_v41 = vadd.f32 %v15065_v59, %v14823_v28  ;;  %v15026_v43 = vpop.f32.mrb[38].mxu0  ;;  %v15067_v46 = vpop.f32.mrb[78].mxu1 }
0x1f22   : > { %v15070_v31 = vmax.f32 %v15023_v35, 0.0  ;;  %v15072_v56 = vmax.f32 %v15064_v37, 0.0  ;;  %v15027_v12 = vpop.f32.mrb[39].mxu0  ;;  %v15068_v4 = vpop.f32.mrb[79].mxu1 }
0x1f23   : > { %v15071_v61 = vmax.f32 %v15025_v2, 0.0  ;;  %v15073_v0 = vmax.f32 %v15066_v41, 0.0 }
0x1f24   : > { %v15074_v60 = vpack.c.bf16 %v15070_v31, %v15070_v31  ;;  %v15076_v48 = vpack.c.bf16 %v15072_v56, %v15072_v56 }
0x1f25   : > { %v15075_v38 = vpack.c.bf16 %v15071_v61, %v15071_v61  ;;  %v15077_v44 = vpack.c.bf16 %v15073_v0, %v15073_v0 }
0x1f27   : > { %15373 = vmatprep.mubr.bf16.mxu0 %v15075_v38  ;;  %15413 = vmatprep.mubr.bf16.mxu1 %v15077_v44 }
0x1f28   : > { %15374 = vmatmul.mubr.bf16.vlgmr.msra.gmra.mrb[40].mxu0 %v15074_v60  ;;  %15414 = vmatmul.mubr.bf16.vlgmr.msra.gmra.mrb[80].mxu1 %v15076_v48 }
0x1f29   : > { %19456 = vmatpush3.bf16.msra.mxu0 %v20398_v52  ;;  %19471 = vmatprep.mubr.msk.bf16.mxu0 %vm20575_vm4, %v20574_v6 }
0x1f2a   : > { %19457 = vmatprep.subr.bf16.mxu0 %v20574_v6 }
0x1f2d   : > { %19458 = vmatpush3.bf16.msra.mxu0 %v20399_v53 }
0x1f2e   : > { %19459 = vmatprep.subr.bf16.mxu0 %v20574_v6 }
0x1f31   : > { %19460 = vmatpush3.bf16.msra.mxu0 %v20400_v54 }
0x1f32   : > { %19461 = vmatprep.subr.bf16.mxu0 %v20574_v6 }
0x1f35   : > { %19462 = vmatpush3.bf16.msra.mxu0 %v20401_v23 }
0x1f36   : > { %19463 = vmatprep.subr.bf16.mxu0 %v20574_v6 }
0x1f39   : > { %19464 = vmatpush3.bf16.msra.mxu0 %v20402_v55 }
0x1f3a   : > { %19465 = vmatprep.subr.bf16.mxu0 %v20574_v6 }
0x1f3d   : > { %19466 = vmatpush3.bf16.msra.mxu0 %v20403_v58 }
0x1f3e   : > { %19467 = vmatprep.subr.bf16.mxu0 %v20574_v6 }
0x1f41   : > { %19468 = vmatpush3.bf16.msra.mxu0 %v20404_v16 }
0x1f42   : > { %19469 = vmatprep.subr.bf16.mxu0 %v20574_v6 }
0x1f45   : > { %19470 = vmatpush3.bf16.msra.mxu0 %v20405_v29 }
0x1ffb   : > { %v17494_v57 = vpop.f32.mrb[40].mxu0  ;;  %v17516_v62 = vpop.f32.mrb[80].mxu1 }
0x1ffc   : > { %v17495_v63 = vpop.f32.mrb[41].mxu0  ;;  %v17517_v30 = vpop.f32.mrb[81].mxu1 }
0x1ffd   : > { %v17496_v50 = vadd.f32 %v17495_v63, %v17494_v57  ;;  %v17518_v20 = vadd.f32 %v17517_v30, %v17516_v62  ;;  %v17497_v7 = vpop.f32.mrb[42].mxu0  ;;  %v17519_v47 = vpop.f32.mrb[82].mxu1 }
0x1ffe   : > { %v17498_v10 = vpop.f32.mrb[43].mxu0  ;;  %v17520_v8 = vpop.f32.mrb[83].mxu1 }
0x1fff   : > { %v15376_v9 = vadd.f32 %v17496_v50, %v16531_v36 }
0x2001   : > { %v15416_v51 = vadd.f32 %v17518_v20, %v15376_v9 }
0x2003   : > { %v15421_v49 = vadd.f32 %v15416_v51, %v23157_v39 }
0x2005   : > { %v15422_v6 = vpack.c.bf16 %v15421_v49, %v15421_v49 }
0x2007   : > { %19472 = vmatmul.mubr.bf16.vlgmr.msra.gmra.mrb[44].mxu0 %v15422_v6 }
0x20da   : > { %v15528_v45 = vpop.f32.mrb[44].mxu0 }
0x20db   : > { %v15529_v1 = vadd.f32 %v16564_v11, %v15528_v45  ;;  %v19473_v13 = vpop.f32.mrb[45].mxu0 }
0x20dc   : > { %v15531_v15 = vpop.f32.mrb[46].mxu0 }
0x20dd   : > { %15535 = vst.msk [vmem:[%s1504_s4] sm:$0xff] %vm15534_vm11, %v15529_v1  ;;  %v19474_v33 = vpop.f32.mrb[47].mxu0 }
0x20de PF: > { %s113_s15 = sadd.s32 1, %s20520_s15  }
0x20df   : > { %p110_p4 = scmp.ge.s32.totalorder %s113_s15, 4  }
0x20e1   :  { %112 = sbr.rel (!%p110_p4) target bundleno = 92 (0x5c), region = 303 }

</bundles_post_ra>
